<compile_context>
chip_gen: v7x
topology: tpu7x:2x2x1
jax: 0.10.0
libtpu: 0.0.40
codegen_flags: <defaults>
</compile_context>

<pallas_src>
import math

import jax
import jax.numpy as jnp
from jax.experimental import pallas as pl
from jax.experimental.pallas import tpu as pltpu


def _make_kernel(hard: bool):
    def kernel(inv_tau_ref, z_ref, g_ref, cb_ref, disc_ref, idx_ref, sums_ref):
        K = cb_ref.shape[0]
        tn = z_ref.shape[-1]

        z = z_ref[0]          # (1, tn)  rows along lanes
        g = g_ref[0]          # (K, tn)  gumbel noise
        cb = cb_ref[...]      # (K, 1)   codebook along sublanes

        dist = jnp.abs(z - cb)            # (K, tn)
        logits = -dist

        rows = jax.lax.broadcasted_iota(jnp.int32, (K, tn), 0)

        # nearest-codebook index (first minimum, matches torch.argmin tie-break)
        dmin = jnp.min(dist, axis=0, keepdims=True)                     # (1, tn)
        idx = jnp.min(jnp.where(dist == dmin, rows, K), axis=0,
                      keepdims=True)                                    # (1, tn) int32
        idx_ref[...] = idx[None]

        # gumbel-softmax logits scaled by precomputed 1/tau (no divides)
        y = (logits + g) * inv_tau_ref[0]                               # (K, tn)

        if hard:
            # straight-through hard one-hot: argmax(y) == argmax(softmax(y))
            ymax = jnp.max(y, axis=0, keepdims=True)                    # (1, tn)
            amax = jnp.min(jnp.where(y == ymax, rows, K), axis=0,
                           keepdims=True)                               # (1, tn)
            probs = (rows == amax).astype(jnp.float32)                  # (K, tn)
        else:
            y = y - jnp.max(y, axis=0, keepdims=True)
            ey = jnp.exp(y)
            inv_den = 1.0 / jnp.sum(ey, axis=0, keepdims=True)          # (1, tn)
            probs = ey * inv_den                                        # (K, tn)

        # discretized = probs @ codebook — output width 1, keep it on the VPU
        # (sublane reduce), never the MXU.
        disc_ref[...] = jnp.sum(probs * cb, axis=0, keepdims=True)[None]   # (1,1,tn)

        # per-tile column sums of the assignment probabilities; perplexity is
        # finished in the wrapper so the grid stays fully parallel.
        sums_ref[...] = jnp.sum(probs, axis=1, keepdims=True)[None]        # (1,K,1)

    return kernel


def _pick_tile(n: int, tile_n: int) -> int:
    """Largest lane-aligned tile (multiple of 128) <= tile_n that divides n."""
    if n <= tile_n:
        return n
    tn = (tile_n // 128) * 128
    while tn >= 128:
        if n % tn == 0:
            return tn
        tn -= 128
    # TODO(synk): ragged N (not a multiple of 128) falls back to one block.
    return n


def gumbel_softmax_discretize(z, codebook, log_temperature, key,
                              hard=False, tile_n=1024):
    """Pallas forward pass. Returns (discretized, perplexity, encoding_indices)."""
    B, num_ws, w_dim = z.shape
    N = B * num_ws * w_dim
    K = codebook.shape[0]

    tn = _pick_tile(N, tile_n)
    n_tiles = N // tn

    flat_z = z.reshape(n_tiles, 1, tn).astype(jnp.float32)        # rows on lanes
    cb = codebook.reshape(K, 1).astype(jnp.float32)               # codes on sublanes
    inv_tau = jnp.exp(-log_temperature).astype(jnp.float32).reshape(1)  # 1/tau
    # Standard Gumbel noise generated functionally outside the kernel.
    gumbel = jax.random.gumbel(key, (n_tiles, K, tn), dtype=jnp.float32)

    kernel = _make_kernel(hard)

    disc_t, idx_t, sums_t = pl.pallas_call(
        kernel,
        out_shape=(
            jax.ShapeDtypeStruct((n_tiles, 1, tn), jnp.float32),  # discretized
            jax.ShapeDtypeStruct((n_tiles, 1, tn), jnp.int32),    # encoding idx
            jax.ShapeDtypeStruct((n_tiles, K, 1), jnp.float32),   # partial col sums
        ),
        grid_spec=pltpu.PrefetchScalarGridSpec(
            num_scalar_prefetch=0,
            grid=(n_tiles,),
            in_specs=[
                pl.BlockSpec(memory_space=pltpu.MemorySpace.SMEM),     # inv_tau
                pl.BlockSpec((1, 1, tn), lambda i: (i, 0, 0)),         # flat_z
                pl.BlockSpec((1, K, tn), lambda i: (i, 0, 0)),         # gumbel
                pl.BlockSpec((K, 1), lambda i: (0, 0)),                # codebook
            ],
            out_specs=[
                pl.BlockSpec((1, 1, tn), lambda i: (i, 0, 0)),
                pl.BlockSpec((1, 1, tn), lambda i: (i, 0, 0)),
                pl.BlockSpec((1, K, 1), lambda i: (i, 0, 0)),
            ],
        ),
        compiler_params=pltpu.CompilerParams(
            dimension_semantics=("parallel",),       # independent tiles (v7x 2 TCs)
            vmem_limit_bytes=32 * 1024 * 1024,       # safe on v5e/v6e/v7x
        ),
    )(inv_tau, flat_z, gumbel, cb)

    discretized = disc_t.reshape(B, num_ws, w_dim)
    encoding_indices = idx_t.reshape(N)

    # finish the perplexity from the per-tile partial sums (tiny [K] reduction)
    col_sums = jnp.sum(sums_t, axis=(0, 2))                   # (K,)
    avg_probs = col_sums / N
    perplexity = jnp.exp(-jnp.sum(avg_probs * jnp.log(avg_probs + 1e-10)))

    return discretized, perplexity, encoding_indices


if __name__ == "__main__":
    # Module parameters (deterministic, synthetic)
    n_embeddings = 256
    temperature = 1.0
    codebook = jnp.linspace(-1.0, 1.0, n_embeddings, dtype=jnp.float32)
    log_temperature = jnp.array([math.log(temperature)], dtype=jnp.float32)

    # Small input consistent with forward: z is [batch, num_ws, w_dim]
    B, num_ws, w_dim = 2, 8, 32
    key = jax.random.PRNGKey(0)
    zkey, gkey = jax.random.split(key)
    z = jax.random.normal(zkey, (B, num_ws, w_dim), dtype=jnp.float32)

    # hard=False matches the PyTorch module's training-mode default (soft samples)
    disc, perp, idx = gumbel_softmax_discretize(
        z, codebook, log_temperature, gkey, hard=False)
    # hard=True exercises the inference-mode straight-through path
    disc_h, perp_h, idx_h = gumbel_softmax_discretize(
        z, codebook, log_temperature, gkey, hard=True)
    jax.block_until_ready((disc, perp, idx, disc_h, perp_h, idx_h))

    assert disc.shape == (B, num_ws, w_dim)
    assert idx.shape == (B * num_ws * w_dim,)
    assert perp.shape == ()
    assert bool(jnp.all(jnp.isfinite(disc)))
    assert bool(jnp.isfinite(perp))
    assert bool(jnp.all((idx >= 0) & (idx < n_embeddings)))
    assert disc_h.shape == (B, num_ws, w_dim)
    assert bool(jnp.all(jnp.isfinite(disc_h)))
    assert bool(jnp.isfinite(perp_h))

    print("KERNEL_OK")
</pallas_src>

<mosaic_0001>
module attributes {stable_mosaic.version = 11 : i64} {
  func.func @kernel(%arg0: i32, %arg1: memref<1xf32, #tpu.memory_space<smem>>, %arg2: memref<1x1x512xf32, #tpu.memory_space<vmem>>, %arg3: memref<1x256x512xf32, #tpu.memory_space<vmem>>, %arg4: memref<256x1xf32, #tpu.memory_space<vmem>>, %arg5: memref<1x1x512xf32, #tpu.memory_space<vmem>>, %arg6: memref<1x1x512xi32, #tpu.memory_space<vmem>>, %arg7: memref<1x256x1xf32, #tpu.memory_space<vmem>>) attributes {dimension_semantics = [#tpu.dimension_semantics<parallel>], iteration_bounds = array<i64: 1>, scalar_prefetch = 0 : i64, scratch_operands = 0 : i64, tpu.core_type = #tpu.core_type<tc>, window_params = [{transform_indices = @transform_0, window_bounds = array<i64: 1>}, {transform_indices = @transform_1, window_bounds = array<i64: 1, 1, 512>}, {transform_indices = @transform_2, window_bounds = array<i64: 1, 256, 512>}, {pipeline_mode = #tpu.pipeline_mode<synchronous>, transform_indices = @transform_3, window_bounds = array<i64: 256, 1>}, {transform_indices = @transform_4, window_bounds = array<i64: 1, 1, 512>}, {transform_indices = @transform_5, window_bounds = array<i64: 1, 1, 512>}, {transform_indices = @transform_6, window_bounds = array<i64: 1, 256, 1>}]} {
    %c0 = arith.constant 0 : index
    %c0_0 = arith.constant 0 : index
    %c0_1 = arith.constant 0 : index
    %0 = vector.load %arg2[%c0, %c0_0, %c0_1] : memref<1x1x512xf32, #tpu.memory_space<vmem>>, vector<1x1x512xf32>
    %1 = vector.shape_cast %0 : vector<1x1x512xf32> to vector<1x512xf32>
    %c0_2 = arith.constant 0 : index
    %c0_3 = arith.constant 0 : index
    %c0_4 = arith.constant 0 : index
    %2 = vector.load %arg3[%c0_2, %c0_3, %c0_4] : memref<1x256x512xf32, #tpu.memory_space<vmem>>, vector<1x256x512xf32>
    %3 = vector.shape_cast %2 : vector<1x256x512xf32> to vector<256x512xf32>
    %c0_5 = arith.constant 0 : index
    %c0_6 = arith.constant 0 : index
    %4 = vector.load %arg4[%c0_5, %c0_6] : memref<256x1xf32, #tpu.memory_space<vmem>>, vector<256x1xf32>
    %5 = vector.broadcast %1 : vector<1x512xf32> to vector<256x512xf32>
    %6 = vector.broadcast %4 : vector<256x1xf32> to vector<256x512xf32>
    %7 = arith.subf %5, %6 : vector<256x512xf32>
    %8 = math.absf %7 : vector<256x512xf32>
    %cst = arith.constant 0.000000e+00 : f32
    %9 = vector.broadcast %cst : f32 to vector<256x512xf32>
    %10 = arith.subf %9, %8 : vector<256x512xf32>
    %11 = tpu.iota {dimensions = array<i32: 0>} : vector<256x512xi32>
    %cst_7 = arith.constant dense<0x7F800000> : vector<512xf32>
    %12 = vector.multi_reduction <minimumf>, %8, %cst_7 [0] : vector<256x512xf32> to vector<512xf32>
    %13 = vector.shape_cast %12 : vector<512xf32> to vector<1x512xf32>
    %14 = vector.broadcast %13 : vector<1x512xf32> to vector<256x512xf32>
    %15 = arith.cmpf oeq, %8, %14 : vector<256x512xf32>
    %c256_i32 = arith.constant 256 : i32
    %16 = vector.broadcast %c256_i32 : i32 to vector<256x512xi32>
    %17 = arith.select %15, %11, %16 : vector<256x512xi1>, vector<256x512xi32>
    %cst_8 = arith.constant dense<2147483647> : vector<512xi32>
    %18 = vector.multi_reduction <minsi>, %17, %cst_8 [0] : vector<256x512xi32> to vector<512xi32>
    %19 = vector.shape_cast %18 : vector<512xi32> to vector<1x512xi32>
    %20 = vector.shape_cast %19 : vector<1x512xi32> to vector<1x1x512xi32>
    %c0_9 = arith.constant 0 : index
    %c0_10 = arith.constant 0 : index
    %c0_11 = arith.constant 0 : index
    %21 = vector.load %arg6[%c0_9, %c0_10, %c0_11] : memref<1x1x512xi32, #tpu.memory_space<vmem>>, vector<1x1x512xi32>
    tpu.vector_store %arg6[%c0_9, %c0_10, %c0_11], %20 {strides = array<i32>} : memref<1x1x512xi32, #tpu.memory_space<vmem>>, vector<1x1x512xi32>,
    %22 = arith.addf %10, %3 : vector<256x512xf32>
    %c0_12 = arith.constant 0 : index
    %23 = memref.load %arg1[%c0_12] : memref<1xf32, #tpu.memory_space<smem>>
    %24 = vector.broadcast %23 : f32 to vector<256x512xf32>
    %25 = arith.mulf %22, %24 : vector<256x512xf32>
    %cst_13 = arith.constant dense<0xFF800000> : vector<512xf32>
    %26 = vector.multi_reduction <maximumf>, %25, %cst_13 [0] : vector<256x512xf32> to vector<512xf32>
    %27 = vector.shape_cast %26 : vector<512xf32> to vector<1x512xf32>
    %28 = vector.broadcast %27 : vector<1x512xf32> to vector<256x512xf32>
    %29 = arith.subf %25, %28 : vector<256x512xf32>
    %30 = math.exp %29 : vector<256x512xf32>
    %cst_14 = arith.constant dense<0.000000e+00> : vector<512xf32>
    %31 = vector.multi_reduction <add>, %30, %cst_14 [0] : vector<256x512xf32> to vector<512xf32>
    %32 = vector.shape_cast %31 : vector<512xf32> to vector<1x512xf32>
    %cst_15 = arith.constant 1.000000e+00 : f32
    %33 = vector.broadcast %cst_15 : f32 to vector<1x512xf32>
    %34 = arith.divf %33, %32 : vector<1x512xf32>
    %35 = vector.broadcast %34 : vector<1x512xf32> to vector<256x512xf32>
    %36 = arith.mulf %30, %35 : vector<256x512xf32>
    %37 = vector.broadcast %4 : vector<256x1xf32> to vector<256x512xf32>
    %38 = arith.mulf %36, %37 : vector<256x512xf32>
    %cst_16 = arith.constant dense<0.000000e+00> : vector<512xf32>
    %39 = vector.multi_reduction <add>, %38, %cst_16 [0] : vector<256x512xf32> to vector<512xf32>
    %40 = vector.shape_cast %39 : vector<512xf32> to vector<1x512xf32>
    %41 = vector.shape_cast %40 : vector<1x512xf32> to vector<1x1x512xf32>
    %c0_17 = arith.constant 0 : index
    %c0_18 = arith.constant 0 : index
    %c0_19 = arith.constant 0 : index
    %42 = vector.load %arg5[%c0_17, %c0_18, %c0_19] : memref<1x1x512xf32, #tpu.memory_space<vmem>>, vector<1x1x512xf32>
    tpu.vector_store %arg5[%c0_17, %c0_18, %c0_19], %41 {strides = array<i32>} : memref<1x1x512xf32, #tpu.memory_space<vmem>>, vector<1x1x512xf32>,
    %cst_20 = arith.constant dense<0.000000e+00> : vector<256xf32>
    %43 = vector.multi_reduction <add>, %36, %cst_20 [1] : vector<256x512xf32> to vector<256xf32>
    %44 = vector.shape_cast %43 : vector<256xf32> to vector<256x1xf32>
    %45 = vector.shape_cast %44 : vector<256x1xf32> to vector<1x256x1xf32>
    %c0_21 = arith.constant 0 : index
    %c0_22 = arith.constant 0 : index
    %c0_23 = arith.constant 0 : index
    %46 = vector.load %arg7[%c0_21, %c0_22, %c0_23] : memref<1x256x1xf32, #tpu.memory_space<vmem>>, vector<1x256x1xf32>
    tpu.vector_store %arg7[%c0_21, %c0_22, %c0_23], %45 {strides = array<i32>} : memref<1x256x1xf32, #tpu.memory_space<vmem>>, vector<1x256x1xf32>,
    return
  }
  func.func @transform_0(%arg0: i32) -> i32 {
    %c0_i32 = arith.constant 0 : i32
    %c0_i32_0 = arith.constant 0 : i32
    return %c0_i32 : i32
  }
  func.func @transform_1(%arg0: i32) -> (i32, i32, i32) {
    %c0_i32 = arith.constant 0 : i32
    %c0_i32_0 = arith.constant 0 : i32
    %c0_i32_1 = arith.constant 0 : i32
    return %arg0, %c0_i32, %c0_i32_0 : i32, i32, i32
  }
  func.func @transform_2(%arg0: i32) -> (i32, i32, i32) {
    %c0_i32 = arith.constant 0 : i32
    %c0_i32_0 = arith.constant 0 : i32
    %c0_i32_1 = arith.constant 0 : i32
    return %arg0, %c0_i32, %c0_i32_0 : i32, i32, i32
  }
  func.func @transform_3(%arg0: i32) -> (i32, i32) {
    %c0_i32 = arith.constant 0 : i32
    %c0_i32_0 = arith.constant 0 : i32
    %c0_i32_1 = arith.constant 0 : i32
    return %c0_i32, %c0_i32_0 : i32, i32
  }
  func.func @transform_4(%arg0: i32) -> (i32, i32, i32) {
    %c0_i32 = arith.constant 0 : i32
    %c0_i32_0 = arith.constant 0 : i32
    %c0_i32_1 = arith.constant 0 : i32
    return %arg0, %c0_i32, %c0_i32_0 : i32, i32, i32
  }
  func.func @transform_5(%arg0: i32) -> (i32, i32, i32) {
    %c0_i32 = arith.constant 0 : i32
    %c0_i32_0 = arith.constant 0 : i32
    %c0_i32_1 = arith.constant 0 : i32
    return %arg0, %c0_i32, %c0_i32_0 : i32, i32, i32
  }
  func.func @transform_6(%arg0: i32) -> (i32, i32, i32) {
    %c0_i32 = arith.constant 0 : i32
    %c0_i32_0 = arith.constant 0 : i32
    %c0_i32_1 = arith.constant 0 : i32
    return %arg0, %c0_i32, %c0_i32_0 : i32, i32, i32
  }
}

</mosaic_0001>

<bundles_post_ra>
// kernel: tpu_custom_call.1
= control target key start
LH: loop header
LB: loop body
LE: loop exit
PB: predicated region body
PF: predicated region fallthrough
CT: control target
= control target key end

     0   :  { %13 = vsyncpa [#allocation4], 0  ;;  %s8634_s0 = inlined_call_operand.<no memory space> [shape: f32[1], index: 0, kind: input, shape index: {}]   ;;  %s8635_s1 = inlined_call_operand.vmem [shape: f32[1,1,512], index: 1, kind: input, shape index: {}]   ;;  %s8636_s2 = inlined_call_operand.hbm [shape: f32[1,256,512], index: 2, kind: input, shape index: {}]   ;;  %s8637_s3 = inlined_call_operand.vmem [shape: f32[256,1], index: 3, kind: input, shape index: {}]   ;;  %s8638_s4 = inlined_call_operand.hbm [shape: f32[1,1,512], index: 4, kind: output, shape index: {0}]   ;;  %s8639_s5 = inlined_call_operand.hbm [shape: s32[1,1,512], index: 5, kind: output, shape index: {1}]   ;;  %s8640_s6 = inlined_call_operand.vmem [shape: f32[1,256,1], index: 6, kind: output, shape index: {2}]  }
   0x1   :  { %14 = vsyncpa [#allocation5], 0 }
   0x2   :  { %15 = vsyncpa [#allocation8], 0  ;;  %s3464_s21 = smov [#allocation3]   ;;  %s3392_s25 = scalar_lea.hbm %s8636_s2, 16384 }
   0x3   :  { %s25_s22 = sshll.u32 %s3464_s21, 4  ;;  %p3393_p0 = scmp.ne.s32.totalorder %s8636_s2, %s3392_s25  ;;  %s26_s22 = int_to_ptr.vmem [resolvable:$true] %s25_s22 }
   0x4   :  { %p3396_p1 = scmp.lt.u32.totalorder %s3392_s25, %s8636_s2 }
   0x6   :  { %p3398_p2 = pnand %p3396_p1, %p3393_p0 }
   0x8   :  { %3401 = shalt.err (!%p3398_p2)
}
   0x9   :  { %s3402_s30 = scalar_lea.vmem %s26_s22, 16384  ;;  %p3407_p4 = scmp.lt.s32.totalorder %s26_s22, %s26_s22 }
   0xa   :  { %p3403_p3 = scmp.ne.s32.totalorder %s26_s22, %s3402_s30  ;;  %p3408_p5 = scmp.lt.s32.totalorder %s3402_s30, %s3402_s30 }
   0xc   :  { %p3409_p6 = por %p3408_p5, %p3407_p4 }
   0xe   :  { %p3410_p7 = pnand %p3409_p6, %p3403_p3 }
  0x10   :  { %3413 = shalt.err (!%p3410_p7)
}
  0x11   :  { %s3465_s7 = smov 512   ;;  %s3466_s8 = smov 32  }
  0x12   :  { %31 = dma.hbm_to_vmem [thread:$0]  %s8636_s2, 16384, %s26_s22, [#allocation4], %s3465_s7, %s3465_s7, %s3466_s8  }
  0x13   :  { %3458 = dma.done.wait [#allocation4], 16384  }
  0x14   :  { %3459 = vsyncadd [#allocation4], 4294950912  ;;  %v3467_v0 = vmov 0   ;;  %v168_v1 = vld [vmem:[%s8637_s3 + $0x10] sm:$0xff]  ;;  %v166_v2 = vld [vmem:[%s8637_s3] sm:$0xff]  ;;  %v8641_v33 = vlaneseq  ;;  %s3469_s9 = smov [#allocation6]  }
  0x15   :  { %3127 = vset.pattern.permute.xlu1 %v3467_v0  ;;  %3126 = vset.pattern.permute.xlu0 %v3467_v0  ;;  %v169_v3 = vld [vmem:[%s8637_s3 + $0x18] sm:$0xff]  ;;  %v167_v4 = vld [vmem:[%s8637_s3 + $0x8] sm:$0xff]  ;;  %v170_v6 = vld [vmem:[%s8637_s3 + $0x20] sm:$0xff]  ;;  %s3092_s10 = sshll.u32 %s3469_s9, 4  ;;  %s3093_s10 = int_to_ptr.vmem [resolvable:$true] %s3092_s10 }
  0x16   :  { %231 = vperm.xlu1 %3127, %v168_v1   ;;  %221 = vperm.xlu0 %3126, %v166_v2   ;;  %v171_v5 = vld [vmem:[%s8637_s3 + $0x28] sm:$0xff]  ;;  %v173_v7 = vld [vmem:[%s8637_s3 + $0x38] sm:$0xff]  ;;  %v172_v8 = vld [vmem:[%s8637_s3 + $0x30] sm:$0xff]  ;;  %v3615_v34 = vshrl.u32 %v8641_v33, 7  ;;  %s3414_s15 = scalar_lea.vmem %s3093_s10, 64  ;;  %p3419_p9 = scmp.lt.s32.totalorder %s3093_s10, %s3093_s10 }
  0x17   :  { %v175_v9 = vld [vmem:[%s8637_s3 + $0x48] sm:$0xff]  ;;  %v174_v10 = vld [vmem:[%s8637_s3 + $0x40] sm:$0xff]  ;;  %v177_v11 = vld [vmem:[%s8637_s3 + $0x58] sm:$0xff]  ;;  %p3415_p8 = scmp.ne.s32.totalorder %s3093_s10, %s3414_s15  ;;  %p3420_p10 = scmp.lt.s32.totalorder %s3414_s15, %s3414_s15 }
  0x18   :  { %v176_v12 = vld [vmem:[%s8637_s3 + $0x50] sm:$0xff]  ;;  %v179_v13 = vld [vmem:[%s8637_s3 + $0x68] sm:$0xff]  ;;  %v178_v14 = vld [vmem:[%s8637_s3 + $0x60] sm:$0xff]  ;;  %9428 = vst [vmem:[#allocation12_spill] sm:$0xff] %v3615_v34  ;;  %v201_v35 = vsub.s32 0, %v3615_v34  ;;  %v205_v36 = vsub.s32 1, %v3615_v34 }
  0x19   :  { %v181_v15 = vld [vmem:[%s8637_s3 + $0x78] sm:$0xff]  ;;  %v180_v16 = vld [vmem:[%s8637_s3 + $0x70] sm:$0xff]  ;;  %v183_v17 = vld [vmem:[%s8637_s3 + $0x88] sm:$0xff]  ;;  %v209_v37 = vsub.s32 2, %v3615_v34  ;;  %v213_v39 = vsub.s32 3, %v3615_v34  ;;  %p3421_p11 = por %p3420_p10, %p3419_p9 }
  0x1a   :  { %236 = vperm.xlu1 %3127, %v169_v3   ;;  %226 = vperm.xlu0 %3126, %v167_v4   ;;  %v182_v18 = vld [vmem:[%s8637_s3 + $0x80] sm:$0xff]  ;;  %v185_v19 = vld [vmem:[%s8637_s3 + $0x98] sm:$0xff]  ;;  %v184_v20 = vld [vmem:[%s8637_s3 + $0x90] sm:$0xff] }
  0x1b   :  { %v187_v21 = vld [vmem:[%s8637_s3 + $0xa8] sm:$0xff]  ;;  %v186_v22 = vld [vmem:[%s8637_s3 + $0xa0] sm:$0xff]  ;;  %v189_v23 = vld [vmem:[%s8637_s3 + $0xb8] sm:$0xff]  ;;  %p3422_p12 = pnand %p3421_p11, %p3415_p8 }
  0x1c   :  { %v188_v24 = vld [vmem:[%s8637_s3 + $0xb0] sm:$0xff]  ;;  %v191_v25 = vld [vmem:[%s8637_s3 + $0xc8] sm:$0xff]  ;;  %v190_v26 = vld [vmem:[%s8637_s3 + $0xc0] sm:$0xff] }
  0x1d   :  { %v193_v27 = vld [vmem:[%s8637_s3 + $0xd8] sm:$0xff]  ;;  %v192_v28 = vld [vmem:[%s8637_s3 + $0xd0] sm:$0xff]  ;;  %v195_v29 = vld [vmem:[%s8637_s3 + $0xe8] sm:$0xff] }
  0x1e   :  { %246 = vperm.xlu1 %3127, %v171_v5   ;;  %241 = vperm.xlu0 %3126, %v170_v6   ;;  %v194_v30 = vld [vmem:[%s8637_s3 + $0xe0] sm:$0xff]  ;;  %v197_v31 = vld [vmem:[%s8637_s3 + $0xf8] sm:$0xff]  ;;  %v196_v32 = vld [vmem:[%s8637_s3 + $0xf0] sm:$0xff] }
  0x1f   :  { %v37_v38 = vld [vmem:[%s8635_s1] sm:$0xf]  ;;  %v47_v5 = vld [vmem:[#allocation3 + $0x48] sm:$0xff] }
  0x20   :  { %v3626_v41 = vrot.slane %v37_v38, %v201_v35  ;;  %v3628_v42 = vrot.slane %v37_v38, %v205_v36  ;;  %v3630_v43 = vrot.slane %v37_v38, %v209_v37  ;;  %v3632_v44 = vrot.slane %v37_v38, %v213_v39  ;;  %v46_v4 = vld [vmem:[#allocation3 + $0x40] sm:$0xff] }
  0x21   :  { %v50_v35 = vld [vmem:[#allocation3 + $0x60] sm:$0xff] }
  0x22   :  { %256 = vperm.xlu1 %3127, %v173_v7   ;;  %251 = vperm.xlu0 %3126, %v172_v8   ;;  %v3684_v8 = vstv %s8634_s0 }
  0x26   :  { %266 = vperm.xlu1 %3127, %v175_v9   ;;  %261 = vperm.xlu0 %3126, %v174_v10   ;;  %v48_v10 = vld [vmem:[#allocation3 + $0x50] sm:$0xff] }
  0x2a   :  { %276 = vperm.xlu1 %3127, %v177_v11   ;;  %271 = vperm.xlu0 %3126, %v176_v12  }
  0x2e   :  { %286 = vperm.xlu1 %3127, %v179_v13   ;;  %281 = vperm.xlu0 %3126, %v178_v14  }
  0x32   :  { %296 = vperm.xlu1 %3127, %v181_v15   ;;  %291 = vperm.xlu0 %3126, %v180_v16  }
  0x36   :  { %306 = vperm.xlu1 %3127, %v183_v17   ;;  %301 = vperm.xlu0 %3126, %v182_v18  }
  0x3a   :  { %316 = vperm.xlu1 %3127, %v185_v19   ;;  %311 = vperm.xlu0 %3126, %v184_v20  }
  0x3e   :  { %326 = vperm.xlu1 %3127, %v187_v21   ;;  %321 = vperm.xlu0 %3126, %v186_v22  }
  0x42   :  { %336 = vperm.xlu1 %3127, %v189_v23   ;;  %331 = vperm.xlu0 %3126, %v188_v24   ;;  %v38_v24 = vld [vmem:[#allocation3] sm:$0xff] }
  0x46   :  { %346 = vperm.xlu1 %3127, %v191_v25   ;;  %341 = vperm.xlu0 %3126, %v190_v26  }
  0x4a   :  { %356 = vperm.xlu1 %3127, %v193_v27   ;;  %351 = vperm.xlu0 %3126, %v192_v28   ;;  %v39_v28 = vld [vmem:[#allocation3 + $0x8] sm:$0xff] }
  0x4e   :  { %366 = vperm.xlu1 %3127, %v195_v29   ;;  %361 = vperm.xlu0 %3126, %v194_v30  }
  0x52   :  { %376 = vperm.xlu1 %3127, %v197_v31   ;;  %371 = vperm.xlu0 %3126, %v196_v32  }
  0x95   :  { %v3624_v40 = vpop.permute.xlu1 %231  ;;  %v3644_v50 = vpop.permute.xlu0 %221 }
  0x96   :  { %9429 = vst [vmem:[#allocation13_spill] sm:$0xff] %v3624_v40  ;;  %v387_v45 = vsub.f32 %v3626_v41, %v3624_v40  ;;  %v388_v46 = vsub.f32 %v3628_v42, %v3624_v40  ;;  %v389_v47 = vsub.f32 %v3630_v43, %v3624_v40  ;;  %v390_v49 = vsub.f32 %v3632_v44, %v3624_v40 }
  0x97   :  { %9431 = vst [vmem:[#allocation15_spill] sm:$0xff] %v3644_v50  ;;  %v379_v51 = vsub.f32 %v3626_v41, %v3644_v50  ;;  %v380_v54 = vsub.f32 %v3628_v42, %v3644_v50  ;;  %v381_v56 = vsub.f32 %v3630_v43, %v3644_v50  ;;  %v382_v58 = vsub.f32 %v3632_v44, %v3644_v50 }
  0x98   :  { %v3648_v52 = vand.u32 2147483647, %v387_v45  ;;  %v3650_v53 = vand.u32 2147483647, %v388_v46  ;;  %v3654_v55 = vand.u32 2147483647, %v389_v47 }
  0x99   :  { %v3640_v48 = vpop.permute.xlu1 %236  ;;  %v3658_v57 = vand.u32 2147483647, %v390_v49  ;;  %v3664_v60 = vand.u32 2147483647, %v379_v51  ;;  %v3672_v1 = vand.u32 2147483647, %v380_v54  ;;  %v3676_v3 = vpop.permute.xlu0 %226 }
  0x9a   :  { %9430 = vst [vmem:[#allocation14_spill] sm:$0xff] %v3640_v48  ;;  %9432 = vst [vmem:[#allocation16_spill] sm:$0xff] %v3648_v52  ;;  %v391_v59 = vsub.f32 %v3626_v41, %v3640_v48  ;;  %v392_v61 = vsub.f32 %v3628_v42, %v3640_v48  ;;  %v643_v63 = vsub.f32 0.0, %v3648_v52  ;;  %v644_v0 = vsub.f32 0.0, %v3650_v53  ;;  %v51_v49 = vld [vmem:[#allocation3 + $0x68] sm:$0xff]  ;;  %v61_v46 = vld [vmem:[#allocation3 + $0xb8] sm:$0xff] }
  0x9b   :  { %9433 = vst [vmem:[#allocation17_spill] sm:$0xff] %v3650_v53  ;;  %9434 = vst [vmem:[#allocation18_spill] sm:$0xff] %v3654_v55  ;;  %v393_v2 = vsub.f32 %v3630_v43, %v3640_v48  ;;  %v645_v6 = vsub.f32 0.0, %v3654_v55  ;;  %v3679_v7 = vand.u32 2147483647, %v381_v56  ;;  %v394_v9 = vsub.f32 %v3632_v44, %v3640_v48  ;;  %v52_v56 = vld [vmem:[#allocation3 + $0x70] sm:$0xff] }
  0x9c   :  { %9435 = vst [vmem:[#allocation19_spill] sm:$0xff] %v3658_v57  ;;  %9436 = vst [vmem:[#allocation20_spill] sm:$0xff] %v3664_v60  ;;  %v3689_v12 = vand.u32 2147483647, %v382_v58  ;;  %v3691_v13 = vand.u32 2147483647, %v391_v59  ;;  %v383_v17 = vsub.f32 %v3626_v41, %v3676_v3  ;;  %v384_v18 = vsub.f32 %v3628_v42, %v3676_v3 }
  0x9d   :  { %v3668_v62 = vpop.permute.xlu1 %246  ;;  %9438 = vst [vmem:[#allocation22_spill] sm:$0xff] %v3672_v1  ;;  %9439 = vst [vmem:[#allocation23_spill] sm:$0xff] %v3676_v3  ;;  %v635_v15 = vsub.f32 0.0, %v3664_v60  ;;  %v3696_v16 = vand.u32 2147483647, %v392_v61  ;;  %v3702_v19 = vadd.f32 %v643_v63, %v46_v4  ;;  %v3704_v20 = vadd.f32 %v644_v0, %v47_v5  ;;  %v3743_v63 = vpop.permute.xlu0 %241  ;;  %v53_v0 = vld [vmem:[#allocation3 + $0x78] sm:$0xff] }
  0x9e   :  { %9437 = vst [vmem:[#allocation21_spill] sm:$0xff] %v3668_v62  ;;  %9440 = vst [vmem:[#allocation24_spill] sm:$0xff] %v3679_v7  ;;  %v399_v14 = vsub.f32 %v3626_v41, %v3668_v62  ;;  %v636_v21 = vsub.f32 0.0, %v3672_v1  ;;  %v3707_v22 = vand.u32 2147483647, %v393_v2  ;;  %v3709_v23 = vadd.f32 %v645_v6, %v48_v10 }
  0x9f   :  { %9441 = vst [vmem:[#allocation25_spill] sm:$0xff] %v3689_v12  ;;  %9442 = vst [vmem:[#allocation26_spill] sm:$0xff] %v3691_v13  ;;  %v3711_v25 = vand.u32 2147483647, %v394_v9  ;;  %v400_v26 = vsub.f32 %v3628_v42, %v3668_v62  ;;  %v401_v27 = vsub.f32 %v3630_v43, %v3668_v62  ;;  %v647_v29 = vsub.f32 0.0, %v3691_v13 }
  0xa0   :  { %9443 = vst [vmem:[#allocation27_spill] sm:$0xff] %v3696_v16  ;;  %9444 = vst [vmem:[#allocation28_spill] sm:$0xff] %v3702_v19  ;;  %v385_v30 = vsub.f32 %v3630_v43, %v3676_v3  ;;  %v402_v31 = vsub.f32 %v3632_v44, %v3668_v62  ;;  %v3722_v32 = vand.u32 2147483647, %v399_v14  ;;  %v648_v36 = vsub.f32 0.0, %v3696_v16 }
  0xa1   :  { %9445 = vst [vmem:[#allocation29_spill] sm:$0xff] %v3704_v20  ;;  %9446 = vst [vmem:[#allocation30_spill] sm:$0xff] %v3707_v22  ;;  %v386_v37 = vsub.f32 %v3632_v44, %v3676_v3  ;;  %v3727_v38 = vand.u32 2147483647, %v383_v17  ;;  %v3729_v39 = vand.u32 2147483647, %v384_v18  ;;  %v3733_v47 = vadd.f32 %v635_v15, %v38_v24 }
  0xa2   :  { %9447 = vst [vmem:[#allocation31_spill] sm:$0xff] %v3711_v25  ;;  %9448 = vst [vmem:[#allocation32_spill] sm:$0xff] %v3722_v32  ;;  %v649_v51 = vsub.f32 0.0, %v3707_v22  ;;  %v3736_v54 = vadd.f32 %v636_v21, %v39_v28  ;;  %v650_v58 = vsub.f32 0.0, %v3711_v25  ;;  %v3739_v59 = vand.u32 2147483647, %v400_v26 }
  0xa3   :  { %9449 = vst [vmem:[#allocation33_spill] sm:$0xff] %v3727_v38  ;;  %9450 = vst [vmem:[#allocation34_spill] sm:$0xff] %v3729_v39  ;;  %v3741_v61 = vand.u32 2147483647, %v401_v27  ;;  %v1525_v2 = vadd.f32 %v647_v29, %v50_v35  ;;  %v3745_v4 = vand.u32 2147483647, %v385_v30  ;;  %v1526_v9 = vadd.f32 %v648_v36, %v51_v49  ;;  %v3762_v27 = vpop.permute.xlu1 %256 }
  0xa4   :  { %9451 = vst [vmem:[#allocation35_spill] sm:$0xff] %v3739_v59  ;;  %9453 = vst [vmem:[#allocation37_spill] sm:$0xff] %v3743_v63  ;;  %v3747_v5 = vand.u32 2147483647, %v402_v31  ;;  %v655_v6 = vsub.f32 0.0, %v3722_v32  ;;  %v58_v17 = vld [vmem:[#allocation3 + $0xa0] sm:$0xff]  ;;  %v3754_v18 = vadd.f32 %v649_v51, %v52_v56  ;;  %v395_v21 = vsub.f32 %v3626_v41, %v3743_v63 }
  0xa5   :  { %9452 = vst [vmem:[#allocation36_spill] sm:$0xff] %v3741_v61  ;;  %9454 = vst [vmem:[#allocation38_spill] sm:$0xff] %v3745_v4  ;;  %v3750_v10 = vand.u32 2147483647, %v386_v37  ;;  %v396_v24 = vsub.f32 %v3628_v42, %v3743_v63  ;;  %v397_v26 = vsub.f32 %v3630_v43, %v3743_v63  ;;  %v3764_v28 = vadd.f32 %v650_v58, %v53_v0  ;;  %v59_v37 = vld [vmem:[#allocation3 + $0xa8] sm:$0xff]  ;;  %v60_v49 = vld [vmem:[#allocation3 + $0xb0] sm:$0xff] }
  0xa6   :  { %9455 = vst [vmem:[#allocation39_spill] sm:$0xff] %v3747_v5  ;;  %9457 = vst [vmem:[#allocation41_spill] sm:$0xff] %v3762_v27  ;;  %v656_v29 = vsub.f32 0.0, %v3739_v59  ;;  %v657_v30 = vsub.f32 0.0, %v3741_v61  ;;  %v398_v31 = vsub.f32 %v3632_v44, %v3743_v63  ;;  %v796_v35 = vmin.f32 %v3664_v60, %v3727_v38 }
  0xa7   :  { %9456 = vst [vmem:[#allocation40_spill] sm:$0xff] %v3750_v10  ;;  %v833_v36 = vmin.f32 %v3672_v1, %v3729_v39  ;;  %v658_v51 = vsub.f32 0.0, %v3747_v5  ;;  %v1533_v56 = vadd.f32 %v655_v6, %v58_v17  ;;  %v3776_v58 = vmul.f32 %v3684_v8, %v1525_v2 }
  0xa8   :  { %v870_v0 = vmin.f32 %v3679_v7, %v3745_v4  ;;  %v907_v33 = vmin.f32 %v3689_v12, %v3750_v10  ;;  %v407_v45 = vsub.f32 %v3626_v41, %v3762_v27  ;;  %v3784_v15 = vand.u32 2147483647, %v395_v21 }
  0xa9   :  { %9458 = vst [vmem:[#allocation42_spill] sm:$0xff] %v3776_v58  ;;  %v3786_v14 = vand.u32 2147483647, %v396_v24  ;;  %v3788_v11 = vand.u32 2147483647, %v397_v26  ;;  %v408_v2 = vsub.f32 %v3628_v42, %v3762_v27  ;;  %v3793_v6 = vmul.f32 %v3684_v8, %v1526_v9 }
  0xaa   :  { %9459 = vst [vmem:[#allocation43_spill] sm:$0xff] %v3784_v15  ;;  %v1534_v17 = vadd.f32 %v656_v29, %v59_v37  ;;  %v1535_v62 = vadd.f32 %v657_v30, %v60_v49  ;;  %v3795_v48 = vand.u32 2147483647, %v398_v31  ;;  %v797_v40 = vmin.f32 %v796_v35, %v3648_v52 }
  0xab   :  { %9460 = vst [vmem:[#allocation44_spill] sm:$0xff] %v3786_v14  ;;  %9461 = vst [vmem:[#allocation45_spill] sm:$0xff] %v3788_v11  ;;  %v834_v63 = vmin.f32 %v833_v36, %v3650_v53  ;;  %v1536_v21 = vadd.f32 %v658_v51, %v61_v46  ;;  %v3800_v24 = vmul.f32 %v3684_v8, %v1533_v56  ;;  %v3807_v29 = vand.u32 2147483647, %v407_v45  ;;  %v54_v51 = vld [vmem:[#allocation3 + $0x80] sm:$0xff]  ;;  %v55_v56 = vld [vmem:[#allocation3 + $0x88] sm:$0xff] }
  0xac   :  { %9462 = vst [vmem:[#allocation46_spill] sm:$0xff] %v3793_v6  ;;  %9463 = vst [vmem:[#allocation47_spill] sm:$0xff] %v3795_v48  ;;  %v871_v26 = vmin.f32 %v870_v0, %v3654_v55  ;;  %v409_v50 = vsub.f32 %v3630_v43, %v3762_v27  ;;  %v410_v9 = vsub.f32 %v3632_v44, %v3762_v27  ;;  %v651_v30 = vsub.f32 0.0, %v3784_v15  ;;  %v56_v45 = vld [vmem:[#allocation3 + $0x90] sm:$0xff] }
  0xad   :  { %9464 = vst [vmem:[#allocation48_spill] sm:$0xff] %v3800_v24  ;;  %9465 = vst [vmem:[#allocation49_spill] sm:$0xff] %v3807_v29  ;;  %v652_v31 = vsub.f32 0.0, %v3786_v14  ;;  %v653_v35 = vsub.f32 0.0, %v3788_v11  ;;  %v3812_v46 = vand.u32 2147483647, %v408_v2  ;;  %v908_v36 = vmin.f32 %v907_v33, %v3658_v57 }
  0xae   :  { %v3816_v37 = vmul.f32 %v3684_v8, %v1534_v17  ;;  %v3819_v49 = vmul.f32 %v3684_v8, %v1535_v62  ;;  %v1773_v27 = vmax.f32 %v3800_v24, %v3776_v58  ;;  %v3825_v3 = vmul.f32 %v3684_v8, %v1536_v21  ;;  %v3829_v17 = vpop.permute.xlu0 %251  ;;  %v66_v24 = vld [vmem:[#allocation3 + $0xe0] sm:$0xff] }
  0xaf   :  { %9466 = vst [vmem:[#allocation50_spill] sm:$0xff] %v3812_v46  ;;  %v798_v2 = vmin.f32 %v797_v40, %v3691_v13  ;;  %v835_v33 = vmin.f32 %v834_v63, %v3696_v16  ;;  %9470 = vst [vmem:[#allocation54_spill] sm:$0xff] %v3829_v17  ;;  %v872_v62 = vmin.f32 %v871_v26, %v3707_v22  ;;  %v3832_v55 = vand.u32 2147483647, %v409_v50  ;;  %v67_v16 = vld [vmem:[#allocation3 + $0xe8] sm:$0xff]  ;;  %v62_v58 = vld [vmem:[#allocation3 + $0xc0] sm:$0xff] }
  0xb0   :  { %9467 = vst [vmem:[#allocation51_spill] sm:$0xff] %v3816_v37  ;;  %9468 = vst [vmem:[#allocation52_spill] sm:$0xff] %v3819_v49  ;;  %v3834_v53 = vand.u32 2147483647, %v410_v9  ;;  %v663_v0 = vsub.f32 0.0, %v3807_v29  ;;  %v1529_v52 = vadd.f32 %v651_v30, %v54_v51  ;;  %v1530_v1 = vadd.f32 %v652_v31, %v55_v56 }
  0xb1   :  { %9469 = vst [vmem:[#allocation53_spill] sm:$0xff] %v3825_v3  ;;  %9471 = vst [vmem:[#allocation55_spill] sm:$0xff] %v3832_v55  ;;  %v1531_v60 = vadd.f32 %v653_v35, %v56_v45  ;;  %v664_v21 = vsub.f32 0.0, %v3812_v46  ;;  %v1810_v40 = vmax.f32 %v3816_v37, %v3793_v6  ;;  %v909_v63 = vmin.f32 %v908_v36, %v3711_v25  ;;  %v3855_v36 = vpop.permute.xlu1 %266  ;;  %v69_v25 = vld [vmem:[#allocation3 + $0xf8] sm:$0xff] }
  0xb2   :  { %9472 = vst [vmem:[#allocation56_spill] sm:$0xff] %v3834_v53  ;;  %v403_v50 = vsub.f32 %v3626_v41, %v3829_v17  ;;  %v404_v26 = vsub.f32 %v3628_v42, %v3829_v17  ;;  %v3846_v9 = vmin.f32 %v798_v2, %v3784_v15  ;;  %v3849_v30 = vmin.f32 %v835_v33, %v3786_v14 }
  0xb3   :  { %v405_v31 = vsub.f32 %v3630_v43, %v3829_v17  ;;  %v406_v35 = vsub.f32 %v3632_v44, %v3829_v17  ;;  %9473 = vst [vmem:[#allocation57_spill] sm:$0xff] %v3855_v36  ;;  %v3858_v51 = vmin.f32 %v872_v62, %v3788_v11  ;;  %v665_v56 = vsub.f32 0.0, %v3832_v55  ;;  %v68_v17 = vld [vmem:[#allocation3 + $0xf0] sm:$0xff] }
  0xb4   :  { %v666_v45 = vsub.f32 0.0, %v3834_v53  ;;  %v1541_v2 = vadd.f32 %v663_v0, %v66_v24  ;;  %v3863_v15 = vmul.f32 %v3684_v8, %v1529_v52  ;;  %v3866_v33 = vmul.f32 %v3684_v8, %v1530_v1 }
  0xb5   :  { %v3869_v14 = vmul.f32 %v3684_v8, %v1531_v60  ;;  %v1542_v22 = vadd.f32 %v664_v21, %v67_v16  ;;  %v3871_v13 = vand.u32 2147483647, %v403_v50  ;;  %v3873_v62 = vand.u32 2147483647, %v404_v26 }
  0xb6   :  { %9474 = vst [vmem:[#allocation58_spill] sm:$0xff] %v3863_v15  ;;  %9475 = vst [vmem:[#allocation59_spill] sm:$0xff] %v3866_v33  ;;  %v415_v11 = vsub.f32 %v3626_v41, %v3855_v36  ;;  %v416_v52 = vsub.f32 %v3628_v42, %v3855_v36  ;;  %v3879_v24 = vand.u32 2147483647, %v405_v31  ;;  %v3881_v1 = vand.u32 2147483647, %v406_v35 }
  0xb7   :  { %9476 = vst [vmem:[#allocation60_spill] sm:$0xff] %v3869_v14  ;;  %9477 = vst [vmem:[#allocation61_spill] sm:$0xff] %v3871_v13  ;;  %v417_v60 = vsub.f32 %v3630_v43, %v3855_v36  ;;  %v418_v16 = vsub.f32 %v3632_v44, %v3855_v36  ;;  %v1774_v0 = vmax.f32 %v1773_v27, %v3863_v15  ;;  %v63_v36 = vld [vmem:[#allocation3 + $0xc8] sm:$0xff]  ;;  %v659_v27 = vsub.f32 0.0, %v3871_v13 }
  0xb8   :  { %9478 = vst [vmem:[#allocation62_spill] sm:$0xff] %v3873_v62  ;;  %9479 = vst [vmem:[#allocation63_spill] sm:$0xff] %v3879_v24  ;;  %v1543_v21 = vadd.f32 %v665_v56, %v68_v17  ;;  %v1544_v50 = vadd.f32 %v666_v45, %v69_v25  ;;  %v3889_v26 = vmul.f32 %v3684_v8, %v1541_v2  ;;  %v660_v25 = vsub.f32 0.0, %v3873_v62 }
  0xb9   :  { %9480 = vst [vmem:[#allocation64_spill] sm:$0xff] %v3881_v1  ;;  %v3892_v37 = vmin.f32 %v909_v63, %v3795_v48  ;;  %v1811_v31 = vmax.f32 %v1810_v40, %v3866_v33  ;;  %v1846_v35 = vmax.f32 %v3869_v14, %v3819_v49  ;;  %v3898_v6 = vmul.f32 %v3684_v8, %v1542_v22  ;;  %v65_v33 = vld [vmem:[#allocation3 + $0xd8] sm:$0xff] }
  0xba   :  { %9481 = vst [vmem:[#allocation65_spill] sm:$0xff] %v3889_v26  ;;  %v3902_v17 = vand.u32 2147483647, %v415_v11  ;;  %v3904_v56 = vand.u32 2147483647, %v416_v52  ;;  %v661_v63 = vsub.f32 0.0, %v3879_v24  ;;  %v1775_v22 = vmax.f32 %v1774_v0, %v3889_v26 }
  0xbb   :  { %9482 = vst [vmem:[#allocation66_spill] sm:$0xff] %v3898_v6  ;;  %v662_v40 = vsub.f32 0.0, %v3881_v1  ;;  %v3908_v45 = vand.u32 2147483647, %v417_v60  ;;  %v3910_v2 = vand.u32 2147483647, %v418_v16  ;;  %v3914_v49 = vmul.f32 %v3684_v8, %v1543_v21  ;;  %v3928_v21 = vpop.permute.xlu0 %261 }
  0xbc   :  { %9483 = vst [vmem:[#allocation67_spill] sm:$0xff] %v3902_v17  ;;  %9484 = vst [vmem:[#allocation68_spill] sm:$0xff] %v3904_v56  ;;  %v3917_v14 = vmul.f32 %v3684_v8, %v1544_v50  ;;  %v64_v11 = vld [vmem:[#allocation3 + $0xd0] sm:$0xff]  ;;  %v800_v52 = vmin.f32 %v3846_v9, %v3722_v32  ;;  %v1812_v15 = vmax.f32 %v1811_v31, %v3898_v6  ;;  %v671_v34 = vsub.f32 0.0, %v3902_v17  ;;  %v74_v31 = vld [vmem:[#allocation3 + $0x120] sm:$0xff] }
  0xbd   :  { %9485 = vst [vmem:[#allocation69_spill] sm:$0xff] %v3908_v45  ;;  %9486 = vst [vmem:[#allocation70_spill] sm:$0xff] %v3910_v2  ;;  %v837_v60 = vmin.f32 %v3849_v30, %v3739_v59  ;;  %v874_v16 = vmin.f32 %v3858_v51, %v3741_v61  ;;  %v911_v0 = vmin.f32 %v3892_v37, %v3747_v5  ;;  %v672_v20 = vsub.f32 0.0, %v3904_v56  ;;  %v75_v6 = vld [vmem:[#allocation3 + $0x128] sm:$0xff] }
  0xbe   :  { %9487 = vst [vmem:[#allocation71_spill] sm:$0xff] %v3914_v49  ;;  %9488 = vst [vmem:[#allocation72_spill] sm:$0xff] %v3917_v14  ;;  %v1537_v50 = vadd.f32 %v659_v27, %v62_v58  ;;  %v1538_v26 = vadd.f32 %v660_v25, %v63_v36  ;;  %v1539_v9 = vadd.f32 %v661_v63, %v64_v11  ;;  %v673_v30 = vsub.f32 0.0, %v3908_v45  ;;  %v76_v36 = vld [vmem:[#allocation3 + $0x130] sm:$0xff]  ;;  %v77_v27 = vld [vmem:[#allocation3 + $0x138] sm:$0xff]  ;;  %v3951_v11 = vpop.permute.xlu1 %276 }
  0xbf   :  { %9489 = vst [vmem:[#allocation73_spill] sm:$0xff] %v3928_v21  ;;  %v1540_v32 = vadd.f32 %v662_v40, %v65_v33  ;;  %v674_v59 = vsub.f32 0.0, %v3910_v2  ;;  %v1847_v51 = vmax.f32 %v1846_v35, %v3914_v49  ;;  %v1883_v37 = vmax.f32 %v3917_v14, %v3825_v3  ;;  %9490 = vst [vmem:[#allocation74_spill] sm:$0xff] %v3951_v11 }
  0xc0   :  { %v3938_v58 = vmin.f32 %v800_v52, %v3871_v13  ;;  %v411_v25 = vsub.f32 %v3626_v41, %v3928_v21  ;;  %v3943_v33 = vmin.f32 %v837_v60, %v3873_v62  ;;  %v412_v63 = vsub.f32 %v3628_v42, %v3928_v21 }
  0xc1   :  { %v413_v35 = vsub.f32 %v3630_v43, %v3928_v21  ;;  %v414_v40 = vsub.f32 %v3632_v44, %v3928_v21  ;;  %v3954_v52 = vmul.f32 %v3684_v8, %v1537_v50  ;;  %v3957_v13 = vmul.f32 %v3684_v8, %v1538_v26 }
  0xc2   :  { %v1549_v5 = vadd.f32 %v671_v34, %v74_v31  ;;  %v1550_v60 = vadd.f32 %v672_v20, %v75_v6  ;;  %v3960_v62 = vmul.f32 %v3684_v8, %v1539_v9  ;;  %v3963_v61 = vmul.f32 %v3684_v8, %v1540_v32 }
  0xc3   :  { %9491 = vst [vmem:[#allocation75_spill] sm:$0xff] %v3954_v52  ;;  %9492 = vst [vmem:[#allocation76_spill] sm:$0xff] %v3957_v13  ;;  %v1551_v14 = vadd.f32 %v673_v30, %v76_v36  ;;  %v1552_v49 = vadd.f32 %v674_v59, %v77_v27  ;;  %v3966_v21 = vmax.f32 %v1775_v22, %v3954_v52  ;;  %v3971_v50 = vand.u32 2147483647, %v411_v25  ;;  %v82_v52 = vld [vmem:[#allocation3 + $0x160] sm:$0xff] }
  0xc4   :  { %9493 = vst [vmem:[#allocation77_spill] sm:$0xff] %v3960_v62  ;;  %9494 = vst [vmem:[#allocation78_spill] sm:$0xff] %v3963_v61  ;;  %v3969_v3 = vmax.f32 %v1812_v15, %v3957_v13  ;;  %v423_v34 = vsub.f32 %v3626_v41, %v3951_v11  ;;  %v3975_v20 = vand.u32 2147483647, %v412_v63  ;;  %v3977_v6 = vand.u32 2147483647, %v413_v35 }
  0xc5   :  { %9495 = vst [vmem:[#allocation79_spill] sm:$0xff] %v3971_v50  ;;  %v3979_v26 = vand.u32 2147483647, %v414_v40  ;;  %v424_v32 = vsub.f32 %v3628_v42, %v3951_v11  ;;  %v3984_v59 = vmul.f32 %v3684_v8, %v1549_v5  ;;  %v3987_v15 = vmul.f32 %v3684_v8, %v1550_v60  ;;  %v70_v63 = vld [vmem:[#allocation3 + $0x100] sm:$0xff]  ;;  %v71_v60 = vld [vmem:[#allocation3 + $0x108] sm:$0xff] }
  0xc6   :  { %9496 = vst [vmem:[#allocation80_spill] sm:$0xff] %v3975_v20  ;;  %9497 = vst [vmem:[#allocation81_spill] sm:$0xff] %v3977_v6  ;;  %v425_v22 = vsub.f32 %v3630_v43, %v3951_v11  ;;  %v426_v9 = vsub.f32 %v3632_v44, %v3951_v11  ;;  %v1848_v31 = vmax.f32 %v1847_v51, %v3960_v62  ;;  %v667_v35 = vsub.f32 0.0, %v3971_v50 }
  0xc7   :  { %9498 = vst [vmem:[#allocation82_spill] sm:$0xff] %v3979_v26  ;;  %9499 = vst [vmem:[#allocation83_spill] sm:$0xff] %v3984_v59  ;;  %v3995_v30 = vmax.f32 %v1883_v37, %v3963_v61  ;;  %v3998_v36 = vmul.f32 %v3684_v8, %v1551_v14  ;;  %v4001_v5 = vmul.f32 %v3684_v8, %v1552_v49  ;;  %v4006_v40 = vand.u32 2147483647, %v423_v34 }
  0xc8   :  { %9500 = vst [vmem:[#allocation84_spill] sm:$0xff] %v3987_v15  ;;  %v875_v27 = vmin.f32 %v874_v16, %v3879_v24  ;;  %v912_v25 = vmin.f32 %v911_v0, %v3881_v1  ;;  %v668_v51 = vsub.f32 0.0, %v3975_v20  ;;  %v669_v37 = vsub.f32 0.0, %v3977_v6  ;;  %v72_v0 = vld [vmem:[#allocation3 + $0x110] sm:$0xff]  ;;  %v73_v1 = vld [vmem:[#allocation3 + $0x118] sm:$0xff] }
  0xc9   :  { %9501 = vst [vmem:[#allocation85_spill] sm:$0xff] %v3998_v36  ;;  %9502 = vst [vmem:[#allocation86_spill] sm:$0xff] %v4001_v5  ;;  %v670_v14 = vsub.f32 0.0, %v3979_v26  ;;  %v4011_v11 = vand.u32 2147483647, %v424_v32  ;;  %v1777_v49 = vmax.f32 %v3966_v21, %v3984_v59  ;;  %v1814_v16 = vmax.f32 %v3969_v3, %v3987_v15  ;;  %v4030_v59 = vpop.permute.xlu0 %271 }
  0xca   :  { %9503 = vst [vmem:[#allocation87_spill] sm:$0xff] %v4006_v40  ;;  %v4017_v24 = vand.u32 2147483647, %v425_v22  ;;  %v4019_v34 = vand.u32 2147483647, %v426_v9  ;;  %v4022_v61 = vmax.f32 %v1848_v31, %v3998_v36  ;;  %v1885_v62 = vmax.f32 %v3995_v30, %v4001_v5  ;;  %9507 = vst [vmem:[#allocation91_spill] sm:$0xff] %v4030_v59 }
  0xcb   :  { %9504 = vst [vmem:[#allocation88_spill] sm:$0xff] %v4011_v11  ;;  %v802_v32 = vmin.f32 %v3938_v58, %v3807_v29  ;;  %v839_v21 = vmin.f32 %v3943_v33, %v3812_v46  ;;  %v876_v3 = vmin.f32 %v875_v27, %v3832_v55  ;;  %v913_v22 = vmin.f32 %v912_v25, %v3834_v53  ;;  %v83_v5 = vld [vmem:[#allocation3 + $0x168] sm:$0xff] }
  0xcc   :  { %9505 = vst [vmem:[#allocation89_spill] sm:$0xff] %v4017_v24  ;;  %9506 = vst [vmem:[#allocation90_spill] sm:$0xff] %v4019_v34  ;;  %v1545_v9 = vadd.f32 %v667_v35, %v70_v63  ;;  %v679_v15 = vsub.f32 0.0, %v4006_v40  ;;  %v1546_v31 = vadd.f32 %v668_v51, %v71_v60  ;;  %v1547_v36 = vadd.f32 %v669_v37, %v72_v0  ;;  %v85_v35 = vld [vmem:[#allocation3 + $0x178] sm:$0xff] }
  0xcd   :  { %v1548_v13 = vadd.f32 %v670_v14, %v73_v1  ;;  %v680_v30 = vsub.f32 0.0, %v4011_v11  ;;  %v681_v58 = vsub.f32 0.0, %v4017_v24  ;;  %v682_v33 = vsub.f32 0.0, %v4019_v34  ;;  %v84_v1 = vld [vmem:[#allocation3 + $0x170] sm:$0xff] }
  0xce   :  { %v419_v46 = vsub.f32 %v3626_v41, %v4030_v59  ;;  %v420_v27 = vsub.f32 %v3628_v42, %v4030_v59  ;;  %v803_v25 = vmin.f32 %v802_v32, %v3971_v50  ;;  %v4044_v63 = vmin.f32 %v839_v21, %v3975_v20  ;;  %v4059_v21 = vpop.permute.xlu1 %286 }
  0xcf   :  { %v421_v60 = vsub.f32 %v3630_v43, %v4030_v59  ;;  %v422_v51 = vsub.f32 %v3632_v44, %v4030_v59  ;;  %v4051_v37 = vmin.f32 %v876_v3, %v3977_v6  ;;  %v4054_v14 = vmin.f32 %v913_v22, %v3979_v26  ;;  %9509 = vst [vmem:[#allocation93_spill] sm:$0xff] %v4059_v21 }
  0xd0   :  { %v4057_v0 = vmul.f32 %v3684_v8, %v1545_v9  ;;  %v1557_v32 = vadd.f32 %v679_v15, %v82_v52  ;;  %v4062_v20 = vmul.f32 %v3684_v8, %v1546_v31  ;;  %v4065_v50 = vmul.f32 %v3684_v8, %v1547_v36 }
  0xd1   :  { %v4068_v59 = vmul.f32 %v3684_v8, %v1548_v13  ;;  %v1558_v3 = vadd.f32 %v680_v30, %v83_v5  ;;  %v1559_v6 = vadd.f32 %v681_v58, %v84_v1  ;;  %v1560_v53 = vadd.f32 %v682_v33, %v85_v35  ;;  %v78_v35 = vld [vmem:[#allocation3 + $0x140] sm:$0xff] }
  0xd2   :  { %9508 = vst [vmem:[#allocation92_spill] sm:$0xff] %v4057_v0  ;;  %9510 = vst [vmem:[#allocation94_spill] sm:$0xff] %v4062_v20  ;;  %v4070_v22 = vand.u32 2147483647, %v419_v46  ;;  %v4072_v26 = vand.u32 2147483647, %v420_v27  ;;  %v431_v15 = vsub.f32 %v3626_v41, %v4059_v21  ;;  %v432_v36 = vsub.f32 %v3628_v42, %v4059_v21 }
  0xd3   :  { %9511 = vst [vmem:[#allocation95_spill] sm:$0xff] %v4065_v50  ;;  %9512 = vst [vmem:[#allocation96_spill] sm:$0xff] %v4068_v59  ;;  %v4074_v9 = vand.u32 2147483647, %v421_v60  ;;  %v4076_v52 = vand.u32 2147483647, %v422_v51  ;;  %v4083_v13 = vmax.f32 %v1777_v49, %v4057_v0  ;;  %v4086_v5 = vmul.f32 %v3684_v8, %v1557_v32 }
  0xd4   :  { %9513 = vst [vmem:[#allocation97_spill] sm:$0xff] %v4070_v22  ;;  %9514 = vst [vmem:[#allocation98_spill] sm:$0xff] %v4072_v26  ;;  %v433_v46 = vsub.f32 %v3630_v43, %v4059_v21  ;;  %v434_v31 = vsub.f32 %v3632_v44, %v4059_v21  ;;  %v4093_v30 = vmax.f32 %v1814_v16, %v4062_v20  ;;  %v79_v60 = vld [vmem:[#allocation3 + $0x148] sm:$0xff]  ;;  %v675_v16 = vsub.f32 0.0, %v4070_v22  ;;  %v80_v21 = vld [vmem:[#allocation3 + $0x150] sm:$0xff] }
  0xd5   :  { %9515 = vst [vmem:[#allocation99_spill] sm:$0xff] %v4074_v9  ;;  %9516 = vst [vmem:[#allocation100_spill] sm:$0xff] %v4076_v52  ;;  %v1850_v58 = vmax.f32 %v4022_v61, %v4065_v50  ;;  %v4098_v33 = vmax.f32 %v1885_v62, %v4068_v59  ;;  %v4101_v49 = vmul.f32 %v3684_v8, %v1558_v3  ;;  %v676_v51 = vsub.f32 0.0, %v4072_v26 }
  0xd6   :  { %9517 = vst [vmem:[#allocation101_spill] sm:$0xff] %v4086_v5  ;;  %v4104_v27 = vmul.f32 %v3684_v8, %v1559_v6  ;;  %v4107_v1 = vmul.f32 %v3684_v8, %v1560_v53  ;;  %v677_v61 = vsub.f32 0.0, %v4074_v9  ;;  %v678_v62 = vsub.f32 0.0, %v4076_v52  ;;  %v81_v53 = vld [vmem:[#allocation3 + $0x158] sm:$0xff] }
  0xd7   :  { %9518 = vst [vmem:[#allocation102_spill] sm:$0xff] %v4101_v49  ;;  %v4113_v32 = vand.u32 2147483647, %v431_v15  ;;  %v4115_v3 = vand.u32 2147483647, %v432_v36  ;;  %v1779_v6 = vmax.f32 %v4083_v13, %v4086_v5  ;;  %v804_v55 = vmin.f32 %v803_v25, %v3902_v17  ;;  %v4132_v5 = vpop.permute.xlu0 %281 }
  0xd8   :  { %9519 = vst [vmem:[#allocation103_spill] sm:$0xff] %v4104_v27  ;;  %9520 = vst [vmem:[#allocation104_spill] sm:$0xff] %v4107_v1  ;;  %v4120_v29 = vand.u32 2147483647, %v433_v46  ;;  %v4122_v59 = vand.u32 2147483647, %v434_v31  ;;  %v1816_v50 = vmax.f32 %v4093_v30, %v4101_v49  ;;  %v841_v15 = vmin.f32 %v4044_v63, %v3904_v56 }
  0xd9   :  { %9521 = vst [vmem:[#allocation105_spill] sm:$0xff] %v4113_v32  ;;  %9522 = vst [vmem:[#allocation106_spill] sm:$0xff] %v4115_v3  ;;  %v878_v36 = vmin.f32 %v4051_v37, %v3908_v45  ;;  %v915_v13 = vmin.f32 %v4054_v14, %v3910_v2  ;;  %v4135_v25 = vmax.f32 %v1850_v58, %v4104_v27  ;;  %v687_v63 = vsub.f32 0.0, %v4113_v32  ;;  %v90_v14 = vld [vmem:[#allocation3 + $0x1a0] sm:$0xff]  ;;  %v91_v2 = vld [vmem:[#allocation3 + $0x1a8] sm:$0xff] }
  0xda   :  { %9523 = vst [vmem:[#allocation107_spill] sm:$0xff] %v4120_v29  ;;  %9524 = vst [vmem:[#allocation108_spill] sm:$0xff] %v4122_v59  ;;  %v1887_v46 = vmax.f32 %v4098_v33, %v4107_v1  ;;  %v1553_v31 = vadd.f32 %v675_v16, %v78_v35  ;;  %v1554_v17 = vadd.f32 %v676_v51, %v79_v60  ;;  %v688_v56 = vsub.f32 0.0, %v4115_v3  ;;  %v93_v60 = vld [vmem:[#allocation3 + $0x1b8] sm:$0xff] }
  0xdb   :  { %9525 = vst [vmem:[#allocation109_spill] sm:$0xff] %v4132_v5  ;;  %v1555_v30 = vadd.f32 %v677_v61, %v80_v21  ;;  %v1556_v49 = vadd.f32 %v678_v62, %v81_v53  ;;  %v4142_v37 = vmin.f32 %v804_v55, %v4070_v22  ;;  %v689_v45 = vsub.f32 0.0, %v4120_v29  ;;  %v92_v21 = vld [vmem:[#allocation3 + $0x1b0] sm:$0xff]  ;;  %v4157_v61 = vpop.permute.xlu1 %296 }
  0xdc   :  { %v690_v58 = vsub.f32 0.0, %v4122_v59  ;;  %v427_v33 = vsub.f32 %v3626_v41, %v4132_v5  ;;  %v4149_v35 = vmin.f32 %v841_v15, %v4072_v26  ;;  %v428_v16 = vsub.f32 %v3628_v42, %v4132_v5  ;;  %9526 = vst [vmem:[#allocation110_spill] sm:$0xff] %v4157_v61 }
  0xdd   :  { %v429_v55 = vsub.f32 %v3630_v43, %v4132_v5  ;;  %v430_v51 = vsub.f32 %v3632_v44, %v4132_v5  ;;  %v879_v62 = vmin.f32 %v878_v36, %v4074_v9  ;;  %v916_v53 = vmin.f32 %v915_v13, %v4076_v52 }
  0xde   :  { %v4162_v15 = vmul.f32 %v3684_v8, %v1553_v31  ;;  %v4165_v26 = vmul.f32 %v3684_v8, %v1554_v17  ;;  %v4168_v22 = vmul.f32 %v3684_v8, %v1555_v30  ;;  %v4171_v1 = vmul.f32 %v3684_v8, %v1556_v49 }
  0xdf   :  { %v1565_v27 = vadd.f32 %v687_v63, %v90_v14  ;;  %v1566_v5 = vadd.f32 %v688_v56, %v91_v2  ;;  %v1567_v20 = vadd.f32 %v689_v45, %v92_v21  ;;  %v1568_v0 = vadd.f32 %v690_v58, %v93_v60  ;;  %v86_v21 = vld [vmem:[#allocation3 + $0x180] sm:$0xff] }
  0xe0   :  { %9527 = vst [vmem:[#allocation111_spill] sm:$0xff] %v4162_v15  ;;  %9528 = vst [vmem:[#allocation112_spill] sm:$0xff] %v4165_v26  ;;  %v4173_v19 = vand.u32 2147483647, %v427_v33  ;;  %v439_v36 = vsub.f32 %v3626_v41, %v4157_v61  ;;  %v4177_v13 = vand.u32 2147483647, %v428_v16  ;;  %v440_v30 = vsub.f32 %v3628_v42, %v4157_v61 }
  0xe1   :  { %9529 = vst [vmem:[#allocation113_spill] sm:$0xff] %v4168_v22  ;;  %9530 = vst [vmem:[#allocation114_spill] sm:$0xff] %v4171_v1  ;;  %v4179_v31 = vand.u32 2147483647, %v429_v55  ;;  %v4181_v17 = vand.u32 2147483647, %v430_v51  ;;  %v4186_v49 = vmax.f32 %v1779_v6, %v4162_v15  ;;  %v4189_v56 = vmax.f32 %v1816_v50, %v4165_v26 }
  0xe2   :  { %9531 = vst [vmem:[#allocation115_spill] sm:$0xff] %v4173_v19  ;;  %9532 = vst [vmem:[#allocation116_spill] sm:$0xff] %v4177_v13  ;;  %v441_v45 = vsub.f32 %v3630_v43, %v4157_v61  ;;  %v442_v2 = vsub.f32 %v3632_v44, %v4157_v61  ;;  %v1852_v63 = vmax.f32 %v4135_v25, %v4168_v22  ;;  %v683_v60 = vsub.f32 0.0, %v4173_v19  ;;  %v87_v25 = vld [vmem:[#allocation3 + $0x188] sm:$0xff]  ;;  %v88_v51 = vld [vmem:[#allocation3 + $0x190] sm:$0xff] }
  0xe3   :  { %9533 = vst [vmem:[#allocation117_spill] sm:$0xff] %v4179_v31  ;;  %9534 = vst [vmem:[#allocation118_spill] sm:$0xff] %v4181_v17  ;;  %v4198_v14 = vmax.f32 %v1887_v46, %v4171_v1  ;;  %v4201_v58 = vmul.f32 %v3684_v8, %v1565_v27  ;;  %v4204_v6 = vmul.f32 %v3684_v8, %v1566_v5  ;;  %v4213_v16 = vand.u32 2147483647, %v439_v36 }
  0xe4   :  { %v4207_v50 = vmul.f32 %v3684_v8, %v1567_v20  ;;  %v4210_v33 = vmul.f32 %v3684_v8, %v1568_v0  ;;  %v684_v46 = vsub.f32 0.0, %v4177_v13  ;;  %v685_v27 = vsub.f32 0.0, %v4179_v31  ;;  %v89_v20 = vld [vmem:[#allocation3 + $0x198] sm:$0xff] }
  0xe5   :  { %9535 = vst [vmem:[#allocation119_spill] sm:$0xff] %v4201_v58  ;;  %9536 = vst [vmem:[#allocation120_spill] sm:$0xff] %v4204_v6  ;;  %v686_v55 = vsub.f32 0.0, %v4181_v17  ;;  %v4218_v5 = vand.u32 2147483647, %v440_v30  ;;  %v806_v0 = vmin.f32 %v4142_v37, %v4006_v40  ;;  %v843_v61 = vmin.f32 %v4149_v35, %v4011_v11 }
  0xe6   :  { %9537 = vst [vmem:[#allocation121_spill] sm:$0xff] %v4207_v50  ;;  %9538 = vst [vmem:[#allocation122_spill] sm:$0xff] %v4210_v33  ;;  %v4224_v52 = vand.u32 2147483647, %v441_v45  ;;  %v4226_v36 = vand.u32 2147483647, %v442_v2  ;;  %v1781_v9 = vmax.f32 %v4186_v49, %v4201_v58  ;;  %v1818_v1 = vmax.f32 %v4189_v56, %v4204_v6  ;;  %v4240_v2 = vpop.permute.xlu0 %291 }
  0xe7   :  { %9539 = vst [vmem:[#allocation123_spill] sm:$0xff] %v4213_v16  ;;  %9540 = vst [vmem:[#allocation124_spill] sm:$0xff] %v4218_v5  ;;  %v880_v30 = vmin.f32 %v879_v62, %v4017_v24  ;;  %v917_v22 = vmin.f32 %v916_v53, %v4019_v34  ;;  %v4235_v26 = vmax.f32 %v1852_v63, %v4207_v50  ;;  %v695_v45 = vsub.f32 0.0, %v4213_v16  ;;  %v98_v58 = vld [vmem:[#allocation3 + $0x1e0] sm:$0xff]  ;;  %v99_v63 = vld [vmem:[#allocation3 + $0x1e8] sm:$0xff] }
  0xe8   :  { %9541 = vst [vmem:[#allocation125_spill] sm:$0xff] %v4224_v52  ;;  %9542 = vst [vmem:[#allocation126_spill] sm:$0xff] %v4226_v36  ;;  %v1889_v37 = vmax.f32 %v4198_v14, %v4210_v33  ;;  %v1561_v35 = vadd.f32 %v683_v60, %v86_v21  ;;  %v1562_v11 = vadd.f32 %v684_v46, %v87_v25  ;;  %v696_v56 = vsub.f32 0.0, %v4218_v5  ;;  %v100_v46 = vld [vmem:[#allocation3 + $0x1f0] sm:$0xff] }
  0xe9   :  { %9543 = vst [vmem:[#allocation127_spill] sm:$0xff] %v4240_v2  ;;  %v1563_v49 = vadd.f32 %v685_v27, %v88_v51  ;;  %v1564_v40 = vadd.f32 %v686_v55, %v89_v20  ;;  %v4244_v62 = vmin.f32 %v806_v0, %v4173_v19  ;;  %v4247_v53 = vmin.f32 %v843_v61, %v4177_v13  ;;  %v101_v27 = vld [vmem:[#allocation3 + $0x1f8] sm:$0xff]  ;;  %v4261_v51 = vpop.permute.xlu1 %306  ;;  %v96_v50 = vld [vmem:[#allocation3 + $0x1d0] sm:$0xff] }
  0xea   :  { %v697_v14 = vsub.f32 0.0, %v4224_v52  ;;  %v698_v21 = vsub.f32 0.0, %v4226_v36  ;;  %v4252_v60 = vmin.f32 %v880_v30, %v4179_v31  ;;  %v4255_v25 = vmin.f32 %v917_v22, %v4181_v17  ;;  %9544 = vst [vmem:[#allocation128_spill] sm:$0xff] %v4261_v51  ;;  %v4342_v6 = vpop.permute.xlu0 %301 }
  0xeb   :  { %v435_v55 = vsub.f32 %v3626_v41, %v4240_v2  ;;  %v436_v61 = vsub.f32 %v3628_v42, %v4240_v2  ;;  %v4264_v20 = vmul.f32 %v3684_v8, %v1561_v35  ;;  %v1573_v0 = vadd.f32 %v695_v45, %v98_v58  ;;  %9561 = vst [vmem:[#allocation145_spill] sm:$0xff] %v4342_v6 }
  0xec   :  { %v437_v30 = vsub.f32 %v3630_v43, %v4240_v2  ;;  %v438_v22 = vsub.f32 %v3632_v44, %v4240_v2  ;;  %v4271_v17 = vmul.f32 %v3684_v8, %v1562_v11  ;;  %v4274_v31 = vmul.f32 %v3684_v8, %v1563_v49 }
  0xed   :  { %9545 = vst [vmem:[#allocation129_spill] sm:$0xff] %v4264_v20  ;;  %v4277_v13 = vmul.f32 %v3684_v8, %v1564_v40  ;;  %v1574_v19 = vadd.f32 %v696_v56, %v99_v63  ;;  %v1575_v34 = vadd.f32 %v697_v14, %v100_v46  ;;  %v1576_v35 = vadd.f32 %v698_v21, %v101_v27 }
  0xee   :  { %9546 = vst [vmem:[#allocation130_spill] sm:$0xff] %v4271_v17  ;;  %9547 = vst [vmem:[#allocation131_spill] sm:$0xff] %v4274_v31  ;;  %v447_v58 = vsub.f32 %v3626_v41, %v4261_v51  ;;  %v448_v45 = vsub.f32 %v3628_v42, %v4261_v51  ;;  %v4283_v24 = vand.u32 2147483647, %v435_v55  ;;  %v4285_v2 = vand.u32 2147483647, %v436_v61 }
  0xef   :  { %9548 = vst [vmem:[#allocation132_spill] sm:$0xff] %v4277_v13  ;;  %v449_v11 = vsub.f32 %v3630_v43, %v4261_v51  ;;  %v450_v40 = vsub.f32 %v3632_v44, %v4261_v51  ;;  %v4292_v49 = vmax.f32 %v1781_v9, %v4264_v20  ;;  %v4295_v56 = vmul.f32 %v3684_v8, %v1573_v0  ;;  %v95_v51 = vld [vmem:[#allocation3 + $0x1c8] sm:$0xff] }
  0xf0   :  { %9549 = vst [vmem:[#allocation133_spill] sm:$0xff] %v4283_v24  ;;  %9550 = vst [vmem:[#allocation134_spill] sm:$0xff] %v4285_v2  ;;  %v4297_v63 = vand.u32 2147483647, %v437_v30  ;;  %v4299_v14 = vand.u32 2147483647, %v438_v22  ;;  %v4302_v21 = vmax.f32 %v1818_v1, %v4271_v17  ;;  %v1854_v46 = vmax.f32 %v4235_v26, %v4274_v31 }
  0xf1   :  { %9551 = vst [vmem:[#allocation135_spill] sm:$0xff] %v4295_v56  ;;  %v4307_v27 = vmax.f32 %v1889_v37, %v4277_v13  ;;  %v4310_v55 = vmul.f32 %v3684_v8, %v1574_v19  ;;  %v4313_v9 = vmul.f32 %v3684_v8, %v1575_v34  ;;  %v4316_v61 = vmul.f32 %v3684_v8, %v1576_v35  ;;  %v94_v34 = vld [vmem:[#allocation3 + $0x1c0] sm:$0xff] }
  0xf2   :  { %9552 = vst [vmem:[#allocation136_spill] sm:$0xff] %v4297_v63  ;;  %9553 = vst [vmem:[#allocation137_spill] sm:$0xff] %v4299_v14  ;;  %v4318_v0 = vand.u32 2147483647, %v447_v58  ;;  %v4320_v30 = vand.u32 2147483647, %v448_v45  ;;  %v1783_v19 = vmax.f32 %v4292_v49, %v4295_v56  ;;  %v808_v45 = vmin.f32 %v4244_v62, %v4113_v32 }
  0xf3   :  { %9554 = vst [vmem:[#allocation138_spill] sm:$0xff] %v4310_v55  ;;  %9555 = vst [vmem:[#allocation139_spill] sm:$0xff] %v4313_v9  ;;  %v691_v1 = vsub.f32 0.0, %v4283_v24  ;;  %v692_v26 = vsub.f32 0.0, %v4285_v2  ;;  %v4324_v22 = vand.u32 2147483647, %v449_v11  ;;  %v1820_v33 = vmax.f32 %v4302_v21, %v4310_v55 }
  0xf4   :  { %9556 = vst [vmem:[#allocation140_spill] sm:$0xff] %v4316_v61  ;;  %9557 = vst [vmem:[#allocation141_spill] sm:$0xff] %v4318_v0  ;;  %v4326_v37 = vand.u32 2147483647, %v450_v40  ;;  %v693_v35 = vsub.f32 0.0, %v4297_v63  ;;  %v694_v58 = vsub.f32 0.0, %v4299_v14  ;;  %v845_v40 = vmin.f32 %v4247_v53, %v4115_v3 }
  0xf5   :  { %9558 = vst [vmem:[#allocation142_spill] sm:$0xff] %v4320_v30  ;;  %9559 = vst [vmem:[#allocation143_spill] sm:$0xff] %v4324_v22  ;;  %v97_v11 = vld [vmem:[#allocation3 + $0x1d8] sm:$0xff]  ;;  %v882_v49 = vmin.f32 %v4252_v60, %v4120_v29  ;;  %v919_v56 = vmin.f32 %v4255_v25, %v4122_v59  ;;  %v1855_v13 = vmax.f32 %v1854_v46, %v4313_v9  ;;  %v703_v21 = vsub.f32 0.0, %v4318_v0  ;;  %v106_v53 = vld [vmem:[#allocation3 + $0x220] sm:$0xff] }
  0xf6   :  { %9560 = vst [vmem:[#allocation144_spill] sm:$0xff] %v4326_v37  ;;  %v1891_v62 = vmax.f32 %v4307_v27, %v4316_v61  ;;  %v704_v32 = vsub.f32 0.0, %v4320_v30  ;;  %v1569_v55 = vadd.f32 %v691_v1, %v94_v34  ;;  %v1570_v31 = vadd.f32 %v692_v26, %v95_v51  ;;  %v107_v3 = vld [vmem:[#allocation3 + $0x228] sm:$0xff]  ;;  %v108_v46 = vld [vmem:[#allocation3 + $0x230] sm:$0xff]  ;;  %v109_v9 = vld [vmem:[#allocation3 + $0x238] sm:$0xff]  ;;  %v4361_v34 = vpop.permute.xlu1 %316 }
  0xf7   :  { %v705_v60 = vsub.f32 0.0, %v4324_v22  ;;  %v706_v29 = vsub.f32 0.0, %v4326_v37  ;;  %v809_v25 = vmin.f32 %v808_v45, %v4283_v24  ;;  %v1571_v59 = vadd.f32 %v693_v35, %v96_v50  ;;  %9562 = vst [vmem:[#allocation146_spill] sm:$0xff] %v4361_v34 }
  0xf8   :  { %v1572_v17 = vadd.f32 %v694_v58, %v97_v11  ;;  %v443_v27 = vsub.f32 %v3626_v41, %v4342_v6  ;;  %v846_v61 = vmin.f32 %v845_v40, %v4285_v2  ;;  %v444_v51 = vsub.f32 %v3628_v42, %v4342_v6 }
  0xf9   :  { %v445_v1 = vsub.f32 %v3630_v43, %v4342_v6  ;;  %v446_v26 = vsub.f32 %v3632_v44, %v4342_v6  ;;  %v883_v50 = vmin.f32 %v882_v49, %v4297_v63  ;;  %v920_v35 = vmin.f32 %v919_v56, %v4299_v14 }
  0xfa   :  { %v1581_v58 = vadd.f32 %v703_v21, %v106_v53  ;;  %v1582_v45 = vadd.f32 %v704_v32, %v107_v3  ;;  %v4366_v11 = vmul.f32 %v3684_v8, %v1569_v55  ;;  %v4369_v40 = vmul.f32 %v3684_v8, %v1570_v31 }
  0xfb   :  { %v1583_v2 = vadd.f32 %v705_v60, %v108_v46  ;;  %v1584_v24 = vadd.f32 %v706_v29, %v109_v9  ;;  %v4372_v20 = vmul.f32 %v3684_v8, %v1571_v59  ;;  %v4375_v6 = vmul.f32 %v3684_v8, %v1572_v17 }
  0xfc   :  { %9563 = vst [vmem:[#allocation147_spill] sm:$0xff] %v4366_v11  ;;  %9564 = vst [vmem:[#allocation148_spill] sm:$0xff] %v4369_v40  ;;  %v4377_v15 = vand.u32 2147483647, %v443_v27  ;;  %v455_v56 = vsub.f32 %v3626_v41, %v4361_v34  ;;  %v4382_v32 = vmax.f32 %v1783_v19, %v4366_v11  ;;  %v4384_v3 = vand.u32 2147483647, %v444_v51 }
  0xfd   :  { %9565 = vst [vmem:[#allocation149_spill] sm:$0xff] %v4372_v20  ;;  %9566 = vst [vmem:[#allocation150_spill] sm:$0xff] %v4375_v6  ;;  %v4386_v31 = vand.u32 2147483647, %v445_v1  ;;  %v4388_v55 = vand.u32 2147483647, %v446_v26  ;;  %v4391_v29 = vmax.f32 %v1820_v33, %v4369_v40  ;;  %v1856_v59 = vmax.f32 %v1855_v13, %v4372_v20 }
  0xfe   :  { %9567 = vst [vmem:[#allocation151_spill] sm:$0xff] %v4377_v15  ;;  %9568 = vst [vmem:[#allocation152_spill] sm:$0xff] %v4384_v3  ;;  %v4395_v17 = vmul.f32 %v3684_v8, %v1581_v58  ;;  %v4398_v9 = vmul.f32 %v3684_v8, %v1582_v45  ;;  %v4401_v19 = vmax.f32 %v1891_v62, %v4375_v6  ;;  %v699_v13 = vsub.f32 0.0, %v4377_v15  ;;  %v102_v62 = vld [vmem:[#allocation3 + $0x200] sm:$0xff]  ;;  %v103_v58 = vld [vmem:[#allocation3 + $0x208] sm:$0xff] }
  0xff   :  { %9569 = vst [vmem:[#allocation153_spill] sm:$0xff] %v4386_v31  ;;  %9570 = vst [vmem:[#allocation154_spill] sm:$0xff] %v4388_v55  ;;  %v4404_v49 = vmul.f32 %v3684_v8, %v1583_v2  ;;  %v4407_v21 = vmul.f32 %v3684_v8, %v1584_v24  ;;  %v456_v33 = vsub.f32 %v3628_v42, %v4361_v34  ;;  %v4416_v46 = vand.u32 2147483647, %v455_v56  ;;  %v104_v45 = vld [vmem:[#allocation3 + $0x210] sm:$0xff]  ;;  %v123_v11 = vld [vmem:[#allocation3 + $0x2a8] sm:$0xff] }
 0x100   :  { %9571 = vst [vmem:[#allocation155_spill] sm:$0xff] %v4395_v17  ;;  %9572 = vst [vmem:[#allocation156_spill] sm:$0xff] %v4398_v9  ;;  %v457_v53 = vsub.f32 %v3630_v43, %v4361_v34  ;;  %v458_v60 = vsub.f32 %v3632_v44, %v4361_v34  ;;  %v700_v2 = vsub.f32 0.0, %v4384_v3  ;;  %v701_v27 = vsub.f32 0.0, %v4386_v31  ;;  %v105_v34 = vld [vmem:[#allocation3 + $0x218] sm:$0xff] }
 0x101   :  { %9573 = vst [vmem:[#allocation157_spill] sm:$0xff] %v4404_v49  ;;  %9574 = vst [vmem:[#allocation158_spill] sm:$0xff] %v4407_v21  ;;  %v702_v24 = vsub.f32 0.0, %v4388_v55  ;;  %v810_v51 = vmin.f32 %v809_v25, %v4213_v16  ;;  %v1785_v1 = vmax.f32 %v4382_v32, %v4395_v17  ;;  %v1822_v26 = vmax.f32 %v4391_v29, %v4398_v9  ;;  %v4436_v32 = vpop.permute.xlu0 %311 }
 0x102   :  { %9575 = vst [vmem:[#allocation159_spill] sm:$0xff] %v4416_v46  ;;  %v847_v56 = vmin.f32 %v846_v61, %v4218_v5  ;;  %v884_v14 = vmin.f32 %v883_v50, %v4224_v52  ;;  %v4429_v63 = vmax.f32 %v1856_v59, %v4404_v49  ;;  %v1893_v6 = vmax.f32 %v4401_v19, %v4407_v21  ;;  %v114_v19 = vld [vmem:[#allocation3 + $0x260] sm:$0xff] }
 0x103   :  { %v921_v25 = vmin.f32 %v920_v35, %v4226_v36  ;;  %v4434_v16 = vand.u32 2147483647, %v456_v33  ;;  %9577 = vst [vmem:[#allocation161_spill] sm:$0xff] %v4436_v32  ;;  %v1577_v29 = vadd.f32 %v699_v13, %v102_v62  ;;  %v4438_v9 = vand.u32 2147483647, %v457_v53 }
 0x104   :  { %v4440_v17 = vand.u32 2147483647, %v458_v60  ;;  %v711_v61 = vsub.f32 0.0, %v4416_v46  ;;  %v4444_v50 = vmin.f32 %v810_v51, %v4377_v15  ;;  %v1578_v59 = vadd.f32 %v700_v2, %v103_v58  ;;  %v4456_v60 = vpop.permute.xlu1 %326 }
 0x105   :  { %9576 = vst [vmem:[#allocation160_spill] sm:$0xff] %v4434_v16  ;;  %9578 = vst [vmem:[#allocation162_spill] sm:$0xff] %v4438_v9  ;;  %v1579_v52 = vadd.f32 %v701_v27, %v104_v45  ;;  %v1580_v5 = vadd.f32 %v702_v24, %v105_v34  ;;  %v4447_v35 = vmin.f32 %v847_v56, %v4384_v3  ;;  %v712_v34 = vsub.f32 0.0, %v4434_v16  ;;  %v115_v24 = vld [vmem:[#allocation3 + $0x268] sm:$0xff] }
 0x106   :  { %9579 = vst [vmem:[#allocation163_spill] sm:$0xff] %v4440_v17  ;;  %v4450_v33 = vmin.f32 %v884_v14, %v4386_v31  ;;  %v451_v13 = vsub.f32 %v3626_v41, %v4436_v32  ;;  %v452_v53 = vsub.f32 %v3628_v42, %v4436_v32  ;;  %9580 = vst [vmem:[#allocation164_spill] sm:$0xff] %v4456_v60  ;;  %v713_v51 = vsub.f32 0.0, %v4438_v9  ;;  %v116_v31 = vld [vmem:[#allocation3 + $0x270] sm:$0xff] }
 0x107   :  { %v4459_v62 = vmin.f32 %v921_v25, %v4388_v55  ;;  %v453_v2 = vsub.f32 %v3630_v43, %v4436_v32  ;;  %v454_v14 = vsub.f32 %v3632_v44, %v4436_v32  ;;  %v4467_v27 = vmul.f32 %v3684_v8, %v1577_v29  ;;  %v117_v32 = vld [vmem:[#allocation3 + $0x278] sm:$0xff] }
 0x108   :  { %v714_v58 = vsub.f32 0.0, %v4440_v17  ;;  %v1589_v45 = vadd.f32 %v711_v61, %v114_v19  ;;  %v4472_v56 = vmul.f32 %v3684_v8, %v1578_v59  ;;  %v4475_v25 = vmul.f32 %v3684_v8, %v1579_v52 }
 0x109   :  { %9581 = vst [vmem:[#allocation165_spill] sm:$0xff] %v4467_v27  ;;  %v4478_v55 = vmul.f32 %v3684_v8, %v1580_v5  ;;  %v463_v29 = vsub.f32 %v3626_v41, %v4456_v60  ;;  %v4482_v3 = vand.u32 2147483647, %v451_v13  ;;  %v4484_v15 = vand.u32 2147483647, %v452_v53 }
 0x10a   :  { %9582 = vst [vmem:[#allocation166_spill] sm:$0xff] %v4472_v56  ;;  %9583 = vst [vmem:[#allocation167_spill] sm:$0xff] %v4475_v25  ;;  %v464_v61 = vsub.f32 %v3628_v42, %v4456_v60  ;;  %v465_v59 = vsub.f32 %v3630_v43, %v4456_v60  ;;  %v1590_v52 = vadd.f32 %v712_v34, %v115_v24  ;;  %v4490_v19 = vand.u32 2147483647, %v453_v2 }
 0x10b   :  { %9584 = vst [vmem:[#allocation168_spill] sm:$0xff] %v4478_v55  ;;  %9585 = vst [vmem:[#allocation169_spill] sm:$0xff] %v4482_v3  ;;  %v4492_v5 = vand.u32 2147483647, %v454_v14  ;;  %v466_v36 = vsub.f32 %v3632_v44, %v4456_v60  ;;  %v1786_v21 = vmax.f32 %v1785_v1, %v4467_v27  ;;  %v1591_v13 = vadd.f32 %v713_v51, %v116_v31  ;;  %v111_v51 = vld [vmem:[#allocation3 + $0x248] sm:$0xff]  ;;  %v113_v60 = vld [vmem:[#allocation3 + $0x258] sm:$0xff] }
 0x10c   :  { %9586 = vst [vmem:[#allocation170_spill] sm:$0xff] %v4484_v15  ;;  %9587 = vst [vmem:[#allocation171_spill] sm:$0xff] %v4490_v19  ;;  %v1592_v49 = vadd.f32 %v714_v58, %v117_v32  ;;  %v4498_v53 = vmul.f32 %v3684_v8, %v1589_v45  ;;  %v1823_v20 = vmax.f32 %v1822_v26, %v4472_v56  ;;  %v4506_v2 = vand.u32 2147483647, %v463_v29  ;;  %v110_v26 = vld [vmem:[#allocation3 + $0x240] sm:$0xff] }
 0x10d   :  { %9588 = vst [vmem:[#allocation172_spill] sm:$0xff] %v4492_v5  ;;  %v1858_v40 = vmax.f32 %v4429_v63, %v4475_v25  ;;  %v4504_v34 = vmax.f32 %v1893_v6, %v4478_v55  ;;  %v707_v14 = vsub.f32 0.0, %v4482_v3  ;;  %v708_v24 = vsub.f32 0.0, %v4484_v15  ;;  %v122_v56 = vld [vmem:[#allocation3 + $0x2a0] sm:$0xff] }
 0x10e   :  { %9589 = vst [vmem:[#allocation173_spill] sm:$0xff] %v4498_v53  ;;  %9590 = vst [vmem:[#allocation174_spill] sm:$0xff] %v4506_v2  ;;  %v4510_v1 = vand.u32 2147483647, %v464_v61  ;;  %v4512_v31 = vand.u32 2147483647, %v465_v59  ;;  %v4515_v32 = vmul.f32 %v3684_v8, %v1590_v52  ;;  %v1787_v45 = vmax.f32 %v1786_v21, %v4498_v53  ;;  %v4537_v53 = vpop.permute.xlu0 %321 }
 0x10f   :  { %v709_v63 = vsub.f32 0.0, %v4490_v19  ;;  %v710_v6 = vsub.f32 0.0, %v4492_v5  ;;  %v4519_v58 = vand.u32 2147483647, %v466_v36  ;;  %v4523_v29 = vmul.f32 %v3684_v8, %v1591_v13  ;;  %v112_v59 = vld [vmem:[#allocation3 + $0x250] sm:$0xff]  ;;  %9597 = vst [vmem:[#allocation181_spill] sm:$0xff] %v4537_v53 }
 0x110   :  { %9591 = vst [vmem:[#allocation175_spill] sm:$0xff] %v4510_v1  ;;  %9592 = vst [vmem:[#allocation176_spill] sm:$0xff] %v4512_v31  ;;  %v4526_v61 = vmul.f32 %v3684_v8, %v1592_v49  ;;  %v812_v52 = vmin.f32 %v4444_v50, %v4318_v0  ;;  %v849_v55 = vmin.f32 %v4447_v35, %v4320_v30  ;;  %v719_v13 = vsub.f32 0.0, %v4506_v2 }
 0x111   :  { %9593 = vst [vmem:[#allocation177_spill] sm:$0xff] %v4515_v32  ;;  %9594 = vst [vmem:[#allocation178_spill] sm:$0xff] %v4519_v58  ;;  %v886_v36 = vmin.f32 %v4450_v33, %v4324_v22  ;;  %v923_v21 = vmin.f32 %v4459_v62, %v4326_v37  ;;  %v1585_v49 = vadd.f32 %v707_v14, %v110_v26  ;;  %v720_v27 = vsub.f32 0.0, %v4510_v1  ;;  %v124_v33 = vld [vmem:[#allocation3 + $0x2b0] sm:$0xff]  ;;  %v125_v14 = vld [vmem:[#allocation3 + $0x2b8] sm:$0xff] }
 0x112   :  { %9595 = vst [vmem:[#allocation179_spill] sm:$0xff] %v4523_v29  ;;  %9596 = vst [vmem:[#allocation180_spill] sm:$0xff] %v4526_v61  ;;  %v1586_v25 = vadd.f32 %v708_v24, %v111_v51  ;;  %v721_v50 = vsub.f32 0.0, %v4512_v31  ;;  %v1824_v0 = vmax.f32 %v1823_v20, %v4515_v32  ;;  %v1587_v35 = vadd.f32 %v709_v63, %v112_v59 }
 0x113   :  { %v1588_v30 = vadd.f32 %v710_v6, %v113_v60  ;;  %v722_v22 = vsub.f32 0.0, %v4519_v58  ;;  %v1859_v62 = vmax.f32 %v1858_v40, %v4523_v29  ;;  %v1895_v37 = vmax.f32 %v4504_v34, %v4526_v61  ;;  %v4556_v40 = vpop.permute.xlu1 %336 }
 0x114   :  { %v459_v24 = vsub.f32 %v3626_v41, %v4537_v53  ;;  %v460_v26 = vsub.f32 %v3628_v42, %v4537_v53  ;;  %v813_v20 = vmin.f32 %v812_v52, %v4482_v3  ;;  %v4552_v60 = vmin.f32 %v849_v55, %v4484_v15  ;;  %9598 = vst [vmem:[#allocation182_spill] sm:$0xff] %v4556_v40 }
 0x115   :  { %v1597_v51 = vadd.f32 %v719_v13, %v122_v56  ;;  %v461_v63 = vsub.f32 %v3630_v43, %v4537_v53  ;;  %v4559_v34 = vmul.f32 %v3684_v8, %v1585_v49  ;;  %v4562_v6 = vmul.f32 %v3684_v8, %v1586_v25 }
 0x116   :  { %v1598_v59 = vadd.f32 %v720_v27, %v123_v11  ;;  %v1599_v61 = vadd.f32 %v721_v50, %v124_v33  ;;  %v4565_v29 = vmul.f32 %v3684_v8, %v1587_v35  ;;  %v4568_v55 = vmul.f32 %v3684_v8, %v1588_v30 }
 0x117   :  { %9599 = vst [vmem:[#allocation183_spill] sm:$0xff] %v4559_v34  ;;  %9600 = vst [vmem:[#allocation184_spill] sm:$0xff] %v4562_v6  ;;  %v1600_v56 = vadd.f32 %v722_v22, %v125_v14  ;;  %v462_v52 = vsub.f32 %v3632_v44, %v4537_v53  ;;  %v4573_v13 = vmax.f32 %v1787_v45, %v4559_v34  ;;  %v4575_v49 = vand.u32 2147483647, %v459_v24  ;;  %v119_v53 = vld [vmem:[#allocation3 + $0x288] sm:$0xff] }
 0x118   :  { %9601 = vst [vmem:[#allocation185_spill] sm:$0xff] %v4565_v29  ;;  %9602 = vst [vmem:[#allocation186_spill] sm:$0xff] %v4568_v55  ;;  %v4577_v15 = vand.u32 2147483647, %v460_v26  ;;  %v471_v11 = vsub.f32 %v3626_v41, %v4556_v40  ;;  %v4582_v27 = vmax.f32 %v1824_v0, %v4562_v6  ;;  %v4585_v30 = vmul.f32 %v3684_v8, %v1597_v51 }
 0x119   :  { %9603 = vst [vmem:[#allocation187_spill] sm:$0xff] %v4575_v49  ;;  %v4587_v22 = vand.u32 2147483647, %v461_v63  ;;  %v472_v25 = vsub.f32 %v3628_v42, %v4556_v40  ;;  %v1860_v45 = vmax.f32 %v1859_v62, %v4565_v29  ;;  %v4593_v50 = vmul.f32 %v3684_v8, %v1598_v59 }
 0x11a   :  { %9604 = vst [vmem:[#allocation188_spill] sm:$0xff] %v4577_v15  ;;  %9605 = vst [vmem:[#allocation189_spill] sm:$0xff] %v4585_v30  ;;  %v4596_v35 = vmul.f32 %v3684_v8, %v1599_v61  ;;  %v473_v0 = vsub.f32 %v3630_v43, %v4556_v40  ;;  %v887_v33 = vmin.f32 %v886_v36, %v4490_v19  ;;  %v4607_v26 = vand.u32 2147483647, %v462_v52  ;;  %v118_v36 = vld [vmem:[#allocation3 + $0x280] sm:$0xff] }
 0x11b   :  { %9606 = vst [vmem:[#allocation190_spill] sm:$0xff] %v4587_v22  ;;  %9607 = vst [vmem:[#allocation191_spill] sm:$0xff] %v4593_v50  ;;  %v4602_v14 = vmax.f32 %v1895_v37, %v4568_v55  ;;  %v4605_v24 = vmul.f32 %v3684_v8, %v1600_v56  ;;  %v924_v62 = vmin.f32 %v923_v21, %v4492_v5  ;;  %v715_v51 = vsub.f32 0.0, %v4575_v49 }
 0x11c   :  { %9608 = vst [vmem:[#allocation192_spill] sm:$0xff] %v4596_v35  ;;  %9610 = vst [vmem:[#allocation194_spill] sm:$0xff] %v4607_v26  ;;  %v716_v61 = vsub.f32 0.0, %v4577_v15  ;;  %v4612_v63 = vand.u32 2147483647, %v471_v11  ;;  %v1789_v59 = vmax.f32 %v4573_v13, %v4585_v30  ;;  %v717_v37 = vsub.f32 0.0, %v4587_v22  ;;  %v4629_v13 = vpop.permute.xlu0 %331 }
 0x11d   :  { %9609 = vst [vmem:[#allocation193_spill] sm:$0xff] %v4605_v24  ;;  %v474_v56 = vsub.f32 %v3632_v44, %v4556_v40  ;;  %v4619_v52 = vand.u32 2147483647, %v472_v25  ;;  %v1826_v21 = vmax.f32 %v4582_v27, %v4593_v50  ;;  %v4624_v5 = vmax.f32 %v1860_v45, %v4596_v35  ;;  %v120_v11 = vld [vmem:[#allocation3 + $0x290] sm:$0xff]  ;;  %9614 = vst [vmem:[#allocation198_spill] sm:$0xff] %v4629_v13  ;;  %v121_v50 = vld [vmem:[#allocation3 + $0x298] sm:$0xff] }
 0x11e   :  { %9611 = vst [vmem:[#allocation195_spill] sm:$0xff] %v4612_v63  ;;  %v814_v19 = vmin.f32 %v813_v20, %v4416_v46  ;;  %v4627_v3 = vand.u32 2147483647, %v473_v0  ;;  %v1897_v30 = vmax.f32 %v4602_v14, %v4605_v24  ;;  %v718_v40 = vsub.f32 0.0, %v4607_v26  ;;  %v130_v46 = vld [vmem:[#allocation3 + $0x2e0] sm:$0xff] }
 0x11f   :  { %9612 = vst [vmem:[#allocation196_spill] sm:$0xff] %v4619_v52  ;;  %v851_v25 = vmin.f32 %v4552_v60, %v4434_v16  ;;  %v888_v27 = vmin.f32 %v887_v33, %v4438_v9  ;;  %v925_v45 = vmin.f32 %v924_v62, %v4440_v17  ;;  %v1593_v35 = vadd.f32 %v715_v51, %v118_v36  ;;  %v131_v33 = vld [vmem:[#allocation3 + $0x2e8] sm:$0xff] }
 0x120   :  { %9613 = vst [vmem:[#allocation197_spill] sm:$0xff] %v4627_v3  ;;  %v1594_v32 = vadd.f32 %v716_v61, %v119_v53  ;;  %v727_v20 = vsub.f32 0.0, %v4612_v63  ;;  %v1595_v0 = vadd.f32 %v717_v37, %v120_v11  ;;  %v4639_v55 = vand.u32 2147483647, %v474_v56  ;;  %v132_v37 = vld [vmem:[#allocation3 + $0x2f0] sm:$0xff]  ;;  %v4660_v56 = vpop.permute.xlu1 %346 }
 0x121   :  { %v728_v14 = vsub.f32 0.0, %v4619_v52  ;;  %v467_v24 = vsub.f32 %v3626_v41, %v4629_v13  ;;  %v4645_v60 = vmin.f32 %v814_v19, %v4575_v49  ;;  %v729_v9 = vsub.f32 0.0, %v4627_v3  ;;  %9616 = vst [vmem:[#allocation200_spill] sm:$0xff] %v4660_v56 }
 0x122   :  { %9615 = vst [vmem:[#allocation199_spill] sm:$0xff] %v4639_v55  ;;  %v468_v53 = vsub.f32 %v3628_v42, %v4629_v13  ;;  %v469_v62 = vsub.f32 %v3630_v43, %v4629_v13  ;;  %v4653_v51 = vmin.f32 %v851_v25, %v4577_v15  ;;  %v4656_v61 = vmin.f32 %v888_v27, %v4587_v22 }
 0x123   :  { %v1596_v36 = vadd.f32 %v718_v40, %v121_v50  ;;  %v470_v19 = vsub.f32 %v3632_v44, %v4629_v13  ;;  %v4663_v11 = vmin.f32 %v925_v45, %v4607_v26  ;;  %v4666_v49 = vmul.f32 %v3684_v8, %v1593_v35  ;;  %v133_v13 = vld [vmem:[#allocation3 + $0x2f8] sm:$0xff] }
 0x124   :  { %v4669_v17 = vmul.f32 %v3684_v8, %v1594_v32  ;;  %v1605_v25 = vadd.f32 %v727_v20, %v130_v46  ;;  %v4672_v27 = vmul.f32 %v3684_v8, %v1595_v0  ;;  %v730_v40 = vsub.f32 0.0, %v4639_v55 }
 0x125   :  { %9617 = vst [vmem:[#allocation201_spill] sm:$0xff] %v4666_v49  ;;  %v1606_v50 = vadd.f32 %v728_v14, %v131_v33  ;;  %v4675_v22 = vand.u32 2147483647, %v467_v24  ;;  %v1607_v15 = vadd.f32 %v729_v9, %v132_v37  ;;  %v4677_v16 = vand.u32 2147483647, %v468_v53 }
 0x126   :  { %9618 = vst [vmem:[#allocation202_spill] sm:$0xff] %v4669_v17  ;;  %9619 = vst [vmem:[#allocation203_spill] sm:$0xff] %v4672_v27  ;;  %v4679_v45 = vand.u32 2147483647, %v469_v62  ;;  %v479_v35 = vsub.f32 %v3626_v41, %v4660_v56  ;;  %v4684_v32 = vmul.f32 %v3684_v8, %v1596_v36  ;;  %v4686_v46 = vand.u32 2147483647, %v470_v19 }
 0x127   :  { %9620 = vst [vmem:[#allocation204_spill] sm:$0xff] %v4675_v22  ;;  %9621 = vst [vmem:[#allocation205_spill] sm:$0xff] %v4677_v16  ;;  %v480_v20 = vsub.f32 %v3628_v42, %v4660_v56  ;;  %v481_v24 = vsub.f32 %v3630_v43, %v4660_v56  ;;  %v4693_v9 = vmax.f32 %v1789_v59, %v4666_v49  ;;  %v723_v37 = vsub.f32 0.0, %v4675_v22  ;;  %v127_v19 = vld [vmem:[#allocation3 + $0x2c8] sm:$0xff] }
 0x128   :  { %9622 = vst [vmem:[#allocation206_spill] sm:$0xff] %v4679_v45  ;;  %9623 = vst [vmem:[#allocation207_spill] sm:$0xff] %v4684_v32  ;;  %v4696_v0 = vmax.f32 %v1826_v21, %v4669_v17  ;;  %v4699_v14 = vmul.f32 %v3684_v8, %v1605_v25  ;;  %v482_v33 = vsub.f32 %v3632_v44, %v4660_v56  ;;  %v126_v21 = vld [vmem:[#allocation3 + $0x2c0] sm:$0xff]  ;;  %v724_v25 = vsub.f32 0.0, %v4677_v16 }
 0x129   :  { %9624 = vst [vmem:[#allocation208_spill] sm:$0xff] %v4686_v46  ;;  %v1862_v53 = vmax.f32 %v4624_v5, %v4672_v27  ;;  %v1608_v62 = vadd.f32 %v730_v40, %v133_v13  ;;  %v4706_v36 = vmul.f32 %v3684_v8, %v1606_v50  ;;  %v4710_v59 = vmul.f32 %v3684_v8, %v1607_v15  ;;  %v128_v5 = vld [vmem:[#allocation3 + $0x2d0] sm:$0xff]  ;;  %v129_v27 = vld [vmem:[#allocation3 + $0x2d8] sm:$0xff] }
 0x12a   :  { %9625 = vst [vmem:[#allocation209_spill] sm:$0xff] %v4699_v14  ;;  %v725_v26 = vsub.f32 0.0, %v4679_v45  ;;  %v4714_v17 = vand.u32 2147483647, %v479_v35  ;;  %v1898_v56 = vmax.f32 %v1897_v30, %v4684_v32  ;;  %v726_v13 = vsub.f32 0.0, %v4686_v46  ;;  %v4730_v30 = vpop.permute.xlu0 %341 }
 0x12b   :  { %9626 = vst [vmem:[#allocation210_spill] sm:$0xff] %v4706_v36  ;;  %9627 = vst [vmem:[#allocation211_spill] sm:$0xff] %v4710_v59  ;;  %v4718_v40 = vand.u32 2147483647, %v480_v20  ;;  %v4720_v50 = vand.u32 2147483647, %v481_v24  ;;  %v1791_v15 = vmax.f32 %v4693_v9, %v4699_v14  ;;  %v816_v49 = vmin.f32 %v4645_v60, %v4506_v2 }
 0x12c   :  { %9628 = vst [vmem:[#allocation212_spill] sm:$0xff] %v4714_v17  ;;  %v853_v35 = vmin.f32 %v4653_v51, %v4510_v1  ;;  %v4728_v29 = vand.u32 2147483647, %v482_v33  ;;  %9632 = vst [vmem:[#allocation216_spill] sm:$0xff] %v4730_v30  ;;  %v1828_v20 = vmax.f32 %v4696_v0, %v4706_v36  ;;  %v4735_v24 = vmul.f32 %v3684_v8, %v1608_v62  ;;  %v138_v1 = vld [vmem:[#allocation3 + $0x320] sm:$0xff] }
 0x12d   :  { %9629 = vst [vmem:[#allocation213_spill] sm:$0xff] %v4718_v40  ;;  %9630 = vst [vmem:[#allocation214_spill] sm:$0xff] %v4720_v50  ;;  %v890_v9 = vmin.f32 %v4656_v61, %v4512_v31  ;;  %v1601_v14 = vadd.f32 %v723_v37, %v126_v21  ;;  %v4740_v32 = vmax.f32 %v1862_v53, %v4710_v59  ;;  %v735_v51 = vsub.f32 0.0, %v4714_v17  ;;  %v139_v61 = vld [vmem:[#allocation3 + $0x328] sm:$0xff]  ;;  %v140_v37 = vld [vmem:[#allocation3 + $0x330] sm:$0xff] }
 0x12e   :  { %9631 = vst [vmem:[#allocation215_spill] sm:$0xff] %v4728_v29  ;;  %9633 = vst [vmem:[#allocation217_spill] sm:$0xff] %v4735_v24  ;;  %v1602_v60 = vadd.f32 %v724_v25, %v127_v19  ;;  %v1603_v2 = vadd.f32 %v725_v26, %v128_v5  ;;  %v1604_v33 = vadd.f32 %v726_v13, %v129_v27  ;;  %v736_v6 = vsub.f32 0.0, %v4718_v40  ;;  %v141_v5 = vld [vmem:[#allocation3 + $0x338] sm:$0xff]  ;;  %v4764_v13 = vpop.permute.xlu1 %356 }
 0x12f   :  { %v737_v0 = vsub.f32 0.0, %v4720_v50  ;;  %v475_v62 = vsub.f32 %v3626_v41, %v4730_v30  ;;  %v4748_v36 = vmin.f32 %v816_v49, %v4675_v22  ;;  %v738_v53 = vsub.f32 0.0, %v4728_v29  ;;  %9635 = vst [vmem:[#allocation219_spill] sm:$0xff] %v4764_v13 }
 0x130   :  { %v476_v26 = vsub.f32 %v3628_v42, %v4730_v30  ;;  %v477_v27 = vsub.f32 %v3630_v43, %v4730_v30  ;;  %v1899_v21 = vmax.f32 %v1898_v56, %v4735_v24  ;;  %v4757_v19 = vmin.f32 %v853_v35, %v4677_v16 }
 0x131   :  { %v927_v25 = vmin.f32 %v4663_v11, %v4519_v58  ;;  %v4762_v49 = vmul.f32 %v3684_v8, %v1601_v14  ;;  %v4767_v22 = vmul.f32 %v3684_v8, %v1602_v60  ;;  %v4770_v31 = vmul.f32 %v3684_v8, %v1603_v2 }
 0x132   :  { %v1613_v59 = vadd.f32 %v735_v51, %v138_v1  ;;  %v478_v56 = vsub.f32 %v3632_v44, %v4730_v30  ;;  %v4775_v35 = vmul.f32 %v3684_v8, %v1604_v33  ;;  %v1614_v11 = vadd.f32 %v736_v6, %v139_v61  ;;  %v57_v33 = vld [vmem:[#allocation3 + $0x98] sm:$0xff] }
 0x133   :  { %9634 = vst [vmem:[#allocation218_spill] sm:$0xff] %v4762_v49  ;;  %9636 = vst [vmem:[#allocation220_spill] sm:$0xff] %v4767_v22  ;;  %v1615_v16 = vadd.f32 %v737_v0, %v140_v37  ;;  %v4777_v14 = vand.u32 2147483647, %v475_v62  ;;  %v1616_v58 = vadd.f32 %v738_v53, %v141_v5  ;;  %v4779_v24 = vand.u32 2147483647, %v476_v26 }
 0x134   :  { %9637 = vst [vmem:[#allocation221_spill] sm:$0xff] %v4770_v31  ;;  %9638 = vst [vmem:[#allocation222_spill] sm:$0xff] %v4775_v35  ;;  %v4781_v34 = vand.u32 2147483647, %v477_v27  ;;  %v487_v2 = vsub.f32 %v3626_v41, %v4764_v13  ;;  %v4786_v1 = vmax.f32 %v1791_v15, %v4762_v49  ;;  %v488_v60 = vsub.f32 %v3628_v42, %v4764_v13  ;;  %v134_v27 = vld [vmem:[#allocation3 + $0x300] sm:$0xff] }
 0x135   :  { %9639 = vst [vmem:[#allocation223_spill] sm:$0xff] %v4777_v14  ;;  %9640 = vst [vmem:[#allocation224_spill] sm:$0xff] %v4779_v24  ;;  %v489_v6 = vsub.f32 %v3630_v43, %v4764_v13  ;;  %v490_v51 = vsub.f32 %v3632_v44, %v4764_v13  ;;  %v4795_v0 = vmax.f32 %v1828_v20, %v4767_v22  ;;  %v4802_v15 = vand.u32 2147483647, %v478_v56 }
 0x136   :  { %9641 = vst [vmem:[#allocation225_spill] sm:$0xff] %v4781_v34  ;;  %v1864_v62 = vmax.f32 %v4740_v32, %v4770_v31  ;;  %v4800_v61 = vmul.f32 %v3684_v8, %v1613_v59  ;;  %v4805_v37 = vmax.f32 %v1899_v21, %v4775_v35  ;;  %v4808_v53 = vmul.f32 %v3684_v8, %v1614_v11  ;;  %v135_v32 = vld [vmem:[#allocation3 + $0x308] sm:$0xff]  ;;  %v136_v59 = vld [vmem:[#allocation3 + $0x310] sm:$0xff] }
 0x137   :  { %9643 = vst [vmem:[#allocation227_spill] sm:$0xff] %v4802_v15  ;;  %v4811_v26 = vmul.f32 %v3684_v8, %v1615_v16  ;;  %v731_v20 = vsub.f32 0.0, %v4777_v14  ;;  %v4815_v5 = vmul.f32 %v3684_v8, %v1616_v58  ;;  %v732_v56 = vsub.f32 0.0, %v4779_v24 }
 0x138   :  { %9642 = vst [vmem:[#allocation226_spill] sm:$0xff] %v4800_v61  ;;  %9644 = vst [vmem:[#allocation228_spill] sm:$0xff] %v4808_v53  ;;  %v733_v13 = vsub.f32 0.0, %v4781_v34  ;;  %v4819_v21 = vand.u32 2147483647, %v487_v2  ;;  %v9648_v11 = vsub.f32 0.0, %v3795_v48  ;;  %v891_v58 = vmin.f32 %v890_v9, %v4679_v45 }
 0x139   :  { %9645 = vst [vmem:[#allocation229_spill] sm:$0xff] %v4811_v26  ;;  %9646 = vst [vmem:[#allocation230_spill] sm:$0xff] %v4815_v5  ;;  %v4825_v16 = vand.u32 2147483647, %v488_v60  ;;  %v4827_v35 = vand.u32 2147483647, %v489_v6  ;;  %v928_v22 = vmin.f32 %v927_v25, %v4686_v46  ;;  %v1793_v49 = vmax.f32 %v4786_v1, %v4800_v61 }
 0x13a   :  { %9647 = vst [vmem:[#allocation231_spill] sm:$0xff] %v4819_v21  ;;  %v4823_v30 = vadd.f32 %v9648_v11, %v57_v33  ;;  %v4829_v31 = vand.u32 2147483647, %v490_v51  ;;  %v734_v2 = vsub.f32 0.0, %v4802_v15  ;;  %v1830_v48 = vmax.f32 %v4795_v0, %v4808_v53  ;;  %v137_v60 = vld [vmem:[#allocation3 + $0x318] sm:$0xff]  ;;  %v4845_v51 = vpop.permute.xlu0 %351  ;;  %v146_v45 = vld [vmem:[#allocation3 + $0x360] sm:$0xff] }
 0x13b   :  { %9649 = vst [vmem:[#allocation232_spill] sm:$0xff] %v4825_v16  ;;  %9650 = vst [vmem:[#allocation233_spill] sm:$0xff] %v4827_v35  ;;  %v4839_v33 = vmax.f32 %v1864_v62, %v4811_v26  ;;  %v818_v6 = vmin.f32 %v4748_v36, %v4612_v63  ;;  %v855_v9 = vmin.f32 %v4757_v19, %v4619_v52  ;;  %v743_v0 = vsub.f32 0.0, %v4819_v21  ;;  %v147_v52 = vld [vmem:[#allocation3 + $0x368] sm:$0xff]  ;;  %v148_v53 = vld [vmem:[#allocation3 + $0x370] sm:$0xff] }
 0x13c   :  { %9651 = vst [vmem:[#allocation234_spill] sm:$0xff] %v4829_v31  ;;  %9652 = vst [vmem:[#allocation235_spill] sm:$0xff] %v4845_v51  ;;  %v1901_v25 = vmax.f32 %v4805_v37, %v4815_v5  ;;  %v1609_v1 = vadd.f32 %v731_v20, %v134_v27  ;;  %v1610_v11 = vadd.f32 %v732_v56, %v135_v32  ;;  %v744_v62 = vsub.f32 0.0, %v4825_v16  ;;  %v149_v61 = vld [vmem:[#allocation3 + $0x378] sm:$0xff] }
 0x13d   :  { %v1611_v46 = vadd.f32 %v733_v13, %v136_v59  ;;  %v745_v26 = vsub.f32 0.0, %v4827_v35  ;;  %v746_v36 = vsub.f32 0.0, %v4829_v31  ;;  %v892_v63 = vmin.f32 %v891_v58, %v4627_v3 }
 0x13e   :  { %v1612_v19 = vadd.f32 %v734_v2, %v137_v60  ;;  %v483_v37 = vsub.f32 %v3626_v41, %v4845_v51  ;;  %v484_v13 = vsub.f32 %v3628_v42, %v4845_v51  ;;  %v819_v27 = vmin.f32 %v818_v6, %v4777_v14 }
 0x13f   :  { %v856_v20 = vmin.f32 %v855_v9, %v4779_v24  ;;  %v929_v32 = vmin.f32 %v928_v22, %v4639_v55  ;;  %v485_v59 = vsub.f32 %v3630_v43, %v4845_v51  ;;  %v4864_v56 = vmul.f32 %v3684_v8, %v1609_v1  ;;  %v4874_v22 = vpop.permute.xlu1 %366 }
 0x140   :  { %v4867_v58 = vmul.f32 %v3684_v8, %v1610_v11  ;;  %v4870_v2 = vmul.f32 %v3684_v8, %v1611_v46  ;;  %v486_v60 = vsub.f32 %v3632_v44, %v4845_v51  ;;  %v1621_v6 = vadd.f32 %v743_v0, %v146_v45  ;;  %9656 = vst [vmem:[#allocation239_spill] sm:$0xff] %v4874_v22 }
 0x141   :  { %9653 = vst [vmem:[#allocation236_spill] sm:$0xff] %v4864_v56  ;;  %v1622_v14 = vadd.f32 %v744_v62, %v147_v52  ;;  %v1623_v9 = vadd.f32 %v745_v26, %v148_v53  ;;  %v1624_v24 = vadd.f32 %v746_v36, %v149_v61  ;;  %v893_v55 = vmin.f32 %v892_v63, %v4781_v34  ;;  %v144_v34 = vld [vmem:[#allocation3 + $0x350] sm:$0xff] }
 0x142   :  { %9654 = vst [vmem:[#allocation237_spill] sm:$0xff] %v4867_v58  ;;  %9655 = vst [vmem:[#allocation238_spill] sm:$0xff] %v4870_v2  ;;  %v4878_v1 = vmul.f32 %v3684_v8, %v1612_v19  ;;  %v4880_v3 = vand.u32 2147483647, %v483_v37  ;;  %v4882_v11 = vand.u32 2147483647, %v484_v13  ;;  %v4885_v46 = vmax.f32 %v1793_v49, %v4864_v56 }
 0x143   :  { %v4888_v51 = vmax.f32 %v1830_v48, %v4867_v58  ;;  %v1866_v52 = vmax.f32 %v4839_v33, %v4870_v2  ;;  %v4892_v45 = vand.u32 2147483647, %v485_v59  ;;  %v4897_v61 = vand.u32 2147483647, %v486_v60  ;;  %v142_v60 = vld [vmem:[#allocation3 + $0x340] sm:$0xff]  ;;  %v155_v2 = vld [vmem:[#allocation3 + $0x3a8] sm:$0xff] }
 0x144   :  { %9657 = vst [vmem:[#allocation240_spill] sm:$0xff] %v4878_v1  ;;  %9658 = vst [vmem:[#allocation241_spill] sm:$0xff] %v4880_v3  ;;  %v4895_v63 = vmax.f32 %v1901_v25, %v4878_v1  ;;  %v497_v53 = vsub.f32 %v3630_v43, %v4874_v22  ;;  %v498_v49 = vsub.f32 %v3632_v44, %v4874_v22  ;;  %v739_v62 = vsub.f32 0.0, %v4880_v3  ;;  %v156_v1 = vld [vmem:[#allocation3 + $0x3b0] sm:$0xff] }
 0x145   :  { %9659 = vst [vmem:[#allocation242_spill] sm:$0xff] %v4882_v11  ;;  %9660 = vst [vmem:[#allocation243_spill] sm:$0xff] %v4892_v45  ;;  %v4904_v26 = vmul.f32 %v3684_v8, %v1621_v6  ;;  %v4907_v48 = vmul.f32 %v3684_v8, %v1622_v14  ;;  %v4910_v33 = vmul.f32 %v3684_v8, %v1623_v9  ;;  %v740_v36 = vsub.f32 0.0, %v4882_v11 }
 0x146   :  { %9661 = vst [vmem:[#allocation244_spill] sm:$0xff] %v4897_v61  ;;  %v4913_v25 = vmul.f32 %v3684_v8, %v1624_v24  ;;  %v930_v0 = vmin.f32 %v929_v32, %v4802_v15  ;;  %v820_v19 = vmin.f32 %v819_v27, %v4714_v17  ;;  %v741_v37 = vsub.f32 0.0, %v4892_v45  ;;  %v4925_v24 = vpop.permute.xlu0 %361  ;;  %v4942_v15 = vpop.permute.xlu1 %376 }
 0x147   :  { %9662 = vst [vmem:[#allocation245_spill] sm:$0xff] %v4904_v26  ;;  %9663 = vst [vmem:[#allocation246_spill] sm:$0xff] %v4907_v48  ;;  %v857_v13 = vmin.f32 %v856_v20, %v4718_v40  ;;  %v495_v14 = vsub.f32 %v3626_v41, %v4874_v22  ;;  %v496_v59 = vsub.f32 %v3628_v42, %v4874_v22  ;;  %v742_v32 = vsub.f32 0.0, %v4897_v61 }
 0x148   :  { %9664 = vst [vmem:[#allocation247_spill] sm:$0xff] %v4910_v33  ;;  %9665 = vst [vmem:[#allocation248_spill] sm:$0xff] %v4913_v25  ;;  %v894_v6 = vmin.f32 %v893_v55, %v4720_v50  ;;  %v4929_v9 = vand.u32 2147483647, %v497_v53  ;;  %v4931_v27 = vand.u32 2147483647, %v498_v49  ;;  %v1795_v20 = vmax.f32 %v4885_v46, %v4904_v26 }
 0x149   :  { %9666 = vst [vmem:[#allocation249_spill] sm:$0xff] %v4925_v24  ;;  %v4938_v17 = vmax.f32 %v1866_v52, %v4910_v33  ;;  %v1903_v22 = vmax.f32 %v4895_v63, %v4913_v25  ;;  %9669 = vst [vmem:[#allocation252_spill] sm:$0xff] %v4942_v15  ;;  %v145_v55 = vld [vmem:[#allocation3 + $0x358] sm:$0xff]  ;;  %v4945_v53 = vmin.f32 %v820_v19, %v4880_v3  ;;  %v143_v52 = vld [vmem:[#allocation3 + $0x348] sm:$0xff]  ;;  %v4955_v25 = vand.u32 2147483647, %v495_v14 }
 0x14a   :  { %9667 = vst [vmem:[#allocation250_spill] sm:$0xff] %v4929_v9  ;;  %9668 = vst [vmem:[#allocation251_spill] sm:$0xff] %v4931_v27  ;;  %v931_v49 = vmin.f32 %v930_v0, %v4728_v29  ;;  %v493_v46 = vsub.f32 %v3630_v43, %v4925_v24  ;;  %v494_v40 = vsub.f32 %v3632_v44, %v4925_v24  ;;  %v4957_v33 = vand.u32 2147483647, %v496_v59 }
 0x14b   :  { %v4953_v50 = vmin.f32 %v857_v13, %v4882_v11  ;;  %v1617_v63 = vadd.f32 %v739_v62, %v142_v60  ;;  %9670 = vst [vmem:[#allocation253_spill] sm:$0xff] %v4955_v25  ;;  %v4960_v19 = vmin.f32 %v894_v6, %v4892_v45  ;;  %v753_v0 = vsub.f32 0.0, %v4929_v9  ;;  %v157_v13 = vld [vmem:[#allocation3 + $0x3b8] sm:$0xff] }
 0x14c   :  { %9671 = vst [vmem:[#allocation254_spill] sm:$0xff] %v4957_v33  ;;  %v754_v3 = vsub.f32 0.0, %v4931_v27  ;;  %v505_v29 = vsub.f32 %v3630_v43, %v4942_v15  ;;  %v1619_v26 = vadd.f32 %v741_v37, %v144_v34  ;;  %v1620_v5 = vadd.f32 %v742_v32, %v145_v55  ;;  %v154_v55 = vld [vmem:[#allocation3 + $0x3a0] sm:$0xff] }
 0x14d   :  { %v491_v62 = vsub.f32 %v3626_v41, %v4925_v24  ;;  %v506_v14 = vsub.f32 %v3632_v44, %v4942_v15  ;;  %v1618_v59 = vadd.f32 %v740_v36, %v143_v52  ;;  %v492_v60 = vsub.f32 %v3628_v42, %v4925_v24 }
 0x14e   :  { %v4972_v6 = vand.u32 2147483647, %v493_v46  ;;  %v4974_v45 = vand.u32 2147483647, %v494_v40  ;;  %v4977_v11 = vmin.f32 %v931_v49, %v4897_v61  ;;  %v4980_v34 = vmul.f32 %v3684_v8, %v1617_v63 }
 0x14f   :  { %v751_v37 = vsub.f32 0.0, %v4955_v25  ;;  %v752_v32 = vsub.f32 0.0, %v4957_v33  ;;  %v1631_v36 = vadd.f32 %v753_v0, %v156_v1  ;;  %v1632_v52 = vadd.f32 %v754_v3, %v157_v13 }
 0x150   :  { %9672 = vst [vmem:[#allocation255_spill] sm:$0xff] %v4972_v6  ;;  %9673 = vst [vmem:[#allocation256_spill] sm:$0xff] %v4974_v45  ;;  %v4984_v58 = vand.u32 2147483647, %v505_v29  ;;  %v4986_v46 = vand.u32 2147483647, %v506_v14  ;;  %v4989_v40 = vmul.f32 %v3684_v8, %v1619_v26  ;;  %v4992_v49 = vmul.f32 %v3684_v8, %v1620_v5 }
 0x151   :  { %9674 = vst [vmem:[#allocation257_spill] sm:$0xff] %v4980_v34  ;;  %v4994_v63 = vand.u32 2147483647, %v491_v62  ;;  %v503_v24 = vsub.f32 %v3626_v41, %v4942_v15  ;;  %v4998_v61 = vand.u32 2147483647, %v492_v60  ;;  %v749_v1 = vsub.f32 0.0, %v4972_v6 }
 0x152   :  { %9675 = vst [vmem:[#allocation258_spill] sm:$0xff] %v4984_v58  ;;  %9676 = vst [vmem:[#allocation259_spill] sm:$0xff] %v4986_v46  ;;  %v750_v3 = vsub.f32 0.0, %v4974_v45  ;;  %v504_v29 = vsub.f32 %v3628_v42, %v4942_v15  ;;  %v1868_v26 = vmax.f32 %v4938_v17, %v4989_v40  ;;  %v1904_v5 = vmax.f32 %v1903_v22, %v4992_v49  ;;  %v152_v62 = vld [vmem:[#allocation3 + $0x390] sm:$0xff]  ;;  %v153_v14 = vld [vmem:[#allocation3 + $0x398] sm:$0xff]  ;;  %v5015_v15 = vpop.permute.xlu0 %371 }
 0x153   :  { %9677 = vst [vmem:[#allocation260_spill] sm:$0xff] %v4989_v40  ;;  %9678 = vst [vmem:[#allocation261_spill] sm:$0xff] %v4992_v49  ;;  %v1629_v0 = vadd.f32 %v751_v37, %v154_v55  ;;  %v1630_v13 = vadd.f32 %v752_v32, %v155_v2  ;;  %v5008_v56 = vmul.f32 %v3684_v8, %v1631_v36  ;;  %v761_v27 = vsub.f32 0.0, %v4984_v58  ;;  %v164_v37 = vld [vmem:[#allocation3 + $0x3f0] sm:$0xff]  ;;  %v165_v32 = vld [vmem:[#allocation3 + $0x3f8] sm:$0xff] }
 0x154   :  { %9679 = vst [vmem:[#allocation262_spill] sm:$0xff] %v4994_v63  ;;  %9680 = vst [vmem:[#allocation263_spill] sm:$0xff] %v4998_v61  ;;  %v5011_v60 = vmul.f32 %v3684_v8, %v1632_v52  ;;  %v762_v9 = vsub.f32 0.0, %v4986_v46  ;;  %v1796_v17 = vmax.f32 %v1795_v20, %v4980_v34  ;;  %v5019_v22 = vmul.f32 %v3684_v8, %v1618_v59  ;;  %v150_v36 = vld [vmem:[#allocation3 + $0x380] sm:$0xff] }
 0x155   :  { %9681 = vst [vmem:[#allocation264_spill] sm:$0xff] %v5008_v56  ;;  %9683 = vst [vmem:[#allocation266_spill] sm:$0xff] %v5015_v15  ;;  %v747_v2 = vsub.f32 0.0, %v4994_v63  ;;  %v5022_v55 = vand.u32 2147483647, %v503_v24  ;;  %v748_v52 = vsub.f32 0.0, %v4998_v61  ;;  %v1627_v49 = vadd.f32 %v749_v1, %v152_v62 }
 0x156   :  { %9682 = vst [vmem:[#allocation265_spill] sm:$0xff] %v5011_v60  ;;  %v1628_v40 = vadd.f32 %v750_v3, %v153_v14  ;;  %v5025_v58 = vand.u32 2147483647, %v504_v29  ;;  %v9686_v20 = vmax.f32 %v4888_v51, %v4907_v48  ;;  %v5032_v59 = vmul.f32 %v3684_v8, %v1629_v0  ;;  %v151_v24 = vld [vmem:[#allocation3 + $0x388] sm:$0xff] }
 0x157   :  { %9684 = vst [vmem:[#allocation267_spill] sm:$0xff] %v5022_v55  ;;  %v5035_v46 = vmul.f32 %v3684_v8, %v1630_v13  ;;  %v501_v33 = vsub.f32 %v3630_v43, %v5015_v15  ;;  %v1869_v1 = vmax.f32 %v1868_v26, %v5008_v56  ;;  %v1905_v3 = vmax.f32 %v1904_v5, %v5011_v60  ;;  %v162_v26 = vld [vmem:[#allocation3 + $0x3e0] sm:$0xff] }
 0x158   :  { %9685 = vst [vmem:[#allocation268_spill] sm:$0xff] %v5025_v58  ;;  %v1833_v34 = vmax.f32 %v9686_v20, %v5019_v22  ;;  %9687 = vst [vmem:[#allocation269_spill] sm:$0xff] %v5032_v59  ;;  %v1639_v29 = vadd.f32 %v761_v27, %v164_v37  ;;  %v1640_v62 = vadd.f32 %v762_v9, %v165_v32  ;;  %v759_v51 = vsub.f32 0.0, %v5022_v55  ;;  %v49_v37 = vld [vmem:[#allocation3 + $0x58] sm:$0xff] }
 0x159   :  { %9688 = vst [vmem:[#allocation270_spill] sm:$0xff] %v5035_v46  ;;  %v1625_v14 = vadd.f32 %v747_v2, %v150_v36  ;;  %v499_v0 = vsub.f32 %v3626_v41, %v5015_v15  ;;  %v502_v13 = vsub.f32 %v3632_v44, %v5015_v15  ;;  %v1626_v20 = vadd.f32 %v748_v52, %v151_v24  ;;  %v163_v2 = vld [vmem:[#allocation3 + $0x3e8] sm:$0xff] }
 0x15a   :  { %v5047_v48 = vmul.f32 %v3684_v8, %v1627_v49  ;;  %v5050_v43 = vmul.f32 %v3684_v8, %v1628_v40  ;;  %v760_v27 = vsub.f32 0.0, %v5025_v58  ;;  %v1797_v9 = vmax.f32 %v1796_v17, %v5032_v59 }
 0x15b   :  { %v1834_v5 = vmax.f32 %v1833_v34, %v5035_v46  ;;  %v500_v41 = vsub.f32 %v3628_v42, %v5015_v15  ;;  %v5057_v44 = vand.u32 2147483647, %v501_v33  ;;  %v5062_v40 = vmul.f32 %v3684_v8, %v1639_v29  ;;  %v42_v15 = vld [vmem:[#allocation3 + $0x20] sm:$0xff] }
 0x15c   :  { %9689 = vst [vmem:[#allocation271_spill] sm:$0xff] %v5047_v48  ;;  %9690 = vst [vmem:[#allocation272_spill] sm:$0xff] %v5050_v43  ;;  %v1870_v49 = vmax.f32 %v1869_v1, %v5047_v48  ;;  %v1906_v32 = vmax.f32 %v1905_v3, %v5050_v43  ;;  %v5065_v36 = vmul.f32 %v3684_v8, %v1640_v62  ;;  %v5069_v52 = vand.u32 2147483647, %v499_v0  ;;  %v41_v43 = vld [vmem:[#allocation3 + $0x18] sm:$0xff]  ;;  %v159_v48 = vld [vmem:[#allocation3 + $0x3c8] sm:$0xff] }
 0x15d   :  { %9691 = vst [vmem:[#allocation273_spill] sm:$0xff] %v5057_v44  ;;  %9692 = vst [vmem:[#allocation274_spill] sm:$0xff] %v5062_v40  ;;  %v1637_v17 = vadd.f32 %v759_v51, %v162_v26  ;;  %v5071_v24 = vand.u32 2147483647, %v502_v13  ;;  %v5074_v42 = vmul.f32 %v3684_v8, %v1625_v14  ;;  %v5077_v33 = vmul.f32 %v3684_v8, %v1626_v20 }
 0x15e   :  { %9693 = vst [vmem:[#allocation275_spill] sm:$0xff] %v5065_v36  ;;  %9694 = vst [vmem:[#allocation276_spill] sm:$0xff] %v5069_v52  ;;  %v1638_v1 = vadd.f32 %v760_v27, %v163_v2  ;;  %v9697_v3 = vsub.f32 0.0, %v3658_v57  ;;  %v5083_v34 = vand.u32 2147483647, %v500_v41  ;;  %v641_v51 = vsub.f32 0.0, %v3745_v4 }
 0x15f   :  { %9695 = vst [vmem:[#allocation277_spill] sm:$0xff] %v5071_v24  ;;  %9696 = vst [vmem:[#allocation278_spill] sm:$0xff] %v5077_v33  ;;  %v757_v0 = vsub.f32 0.0, %v5057_v44  ;;  %v1798_v14 = vmax.f32 %v1797_v9, %v5074_v42  ;;  %v5089_v13 = vmax.f32 %v1834_v5, %v5077_v33  ;;  %v1871_v20 = vmax.f32 %v1870_v49, %v5062_v40  ;;  %v43_v27 = vld [vmem:[#allocation3 + $0x28] sm:$0xff]  ;;  %v44_v2 = vld [vmem:[#allocation3 + $0x30] sm:$0xff] }
 0x160   :  { %v1524_v29 = vadd.f32 %v9697_v3, %v49_v37  ;;  %9698 = vst [vmem:[#allocation279_spill] sm:$0xff] %v5083_v34  ;;  %v1907_v26 = vmax.f32 %v1906_v32, %v5065_v36  ;;  %v160_v37 = vld [vmem:[#allocation3 + $0x3d0] sm:$0xff]  ;;  %v5094_v3 = vmul.f32 %v3684_v8, %v1637_v17  ;;  %v642_v62 = vsub.f32 0.0, %v3750_v10  ;;  %v45_v4 = vld [vmem:[#allocation3 + $0x38] sm:$0xff]  ;;  %v158_v49 = vld [vmem:[#allocation3 + $0x3c0] sm:$0xff] }
 0x161   :  { %v40_v41 = vld [vmem:[#allocation3 + $0x10] sm:$0xff]  ;;  %v755_v57 = vsub.f32 0.0, %v5069_v52  ;;  %v758_v9 = vsub.f32 0.0, %v5071_v24  ;;  %v5100_v5 = vmul.f32 %v3684_v8, %v1638_v1  ;;  %v161_v40 = vld [vmem:[#allocation3 + $0x3d8] sm:$0xff]  ;;  %v9701_v32 = vsub.f32 0.0, %v3727_v38 }
 0x162   :  { %9699 = vst [vmem:[#allocation280_spill] sm:$0xff] %v5094_v3  ;;  %v5106_v17 = vmul.f32 %v3684_v8, %v3709_v23  ;;  %v5109_v60 = vmul.f32 %v3684_v8, %v1524_v29  ;;  %v756_v10 = vsub.f32 0.0, %v5083_v34  ;;  %v9702_v56 = vsub.f32 0.0, %v3729_v39 }
 0x163   :  { %9700 = vst [vmem:[#allocation281_spill] sm:$0xff] %v5100_v5  ;;  %v1517_v36 = vadd.f32 %v9701_v32, %v42_v15  ;;  %v1519_v1 = vadd.f32 %v641_v51, %v44_v2  ;;  %v1635_v59 = vadd.f32 %v757_v0, %v160_v37  ;;  %v5118_v23 = vmul.f32 %v3684_v8, %v3754_v18 }
 0x164   :  { %v1518_v46 = vadd.f32 %v9702_v56, %v43_v27  ;;  %v1872_v33 = vmax.f32 %v1871_v20, %v5106_v17  ;;  %v1908_v15 = vmax.f32 %v1907_v26, %v5109_v60  ;;  %v5122_v29 = vmul.f32 %v3684_v8, %v3764_v28 }
 0x165   :  { %v9703_v32 = vsub.f32 0.0, %v3679_v7  ;;  %v1520_v56 = vadd.f32 %v642_v62, %v45_v4  ;;  %v1633_v51 = vadd.f32 %v755_v57, %v158_v49  ;;  %v1636_v0 = vadd.f32 %v758_v9, %v161_v40  ;;  %v9705_v49 = vld [vmem:[#allocation28_spill] sm:$0xff] }
 0x166   :  { %v5127_v27 = vmul.f32 %v3684_v8, %v1517_v36  ;;  %v1873_v20 = vmax.f32 %v1872_v33, %v5118_v23  ;;  %v1909_v26 = vmax.f32 %v1908_v15, %v5122_v29  ;;  %v5133_v18 = vmul.f32 %v3684_v8, %v4823_v30 }
 0x167   :  { %v1515_v39 = vadd.f32 %v9703_v32, %v40_v41  ;;  %v1799_v28 = vmax.f32 %v1798_v14, %v5094_v3  ;;  %v9704_v2 = vsub.f32 0.0, %v3689_v12  ;;  %v1634_v41 = vadd.f32 %v756_v10, %v159_v48 }
 0x168   :  { %v5139_v57 = vmul.f32 %v3684_v8, %v1518_v46  ;;  %v5143_v4 = vmul.f32 %v3684_v8, %v3733_v47  ;;  %v5146_v40 = vmul.f32 %v3684_v8, %v1519_v1  ;;  %v1910_v36 = vmax.f32 %v1909_v26, %v5133_v18 }
 0x169   :  { %v1516_v37 = vadd.f32 %v9704_v2, %v41_v43  ;;  %v5150_v30 = vmul.f32 %v3684_v8, %v1635_v59  ;;  %v1836_v33 = vmax.f32 %v5089_v13, %v5100_v5  ;;  %v5156_v10 = vmul.f32 %v3684_v8, %v3736_v54 }
 0x16a   :  { %v5159_v48 = vmul.f32 %v3684_v8, %v1520_v56  ;;  %v5162_v47 = vmul.f32 %v3684_v8, %v1636_v0  ;;  %v5165_v46 = vmul.f32 %v3684_v8, %v1515_v39  ;;  %v5168_v43 = vmul.f32 %v3684_v8, %v1633_v51  ;;  %v9706_v51 = vld [vmem:[#allocation29_spill] sm:$0xff] }
 0x16b   :  { %v1874_v59 = vmax.f32 %v1873_v20, %v5150_v30  ;;  %v1771_v62 = vmax.f32 %v5143_v4, %v5127_v27  ;;  %v5174_v54 = vmul.f32 %v3684_v8, %v1516_v37  ;;  %v5177_v14 = vmul.f32 %v3684_v8, %v1634_v41 }
 0x16c   :  { %v1911_v13 = vmax.f32 %v1910_v36, %v5162_v47  ;;  %v1808_v39 = vmax.f32 %v5156_v10, %v5139_v57  ;;  %v896_v9 = vmin.f32 %v4960_v19, %v4827_v35  ;;  %v5186_v1 = vmul.f32 %v3684_v8, %v9705_v49 }
 0x16d   :  { %v1800_v15 = vmax.f32 %v1799_v28, %v5168_v43  ;;  %v1845_v32 = vmax.f32 %v5165_v46, %v5146_v40  ;;  %v933_v56 = vmin.f32 %v4977_v11, %v4829_v31  ;;  %v5195_v0 = vmul.f32 %v3684_v8, %v9706_v51  ;;  %v9710_v31 = vld [vmem:[#allocation250_spill] sm:$0xff] }
 0x16e   :  { %v1837_v20 = vmax.f32 %v1836_v33, %v5177_v14  ;;  %v1882_v19 = vmax.f32 %v5174_v54, %v5159_v48  ;;  %v1772_v26 = vmax.f32 %v1771_v62, %v5186_v1  ;;  %v9707_v41 = vmin.f32 %v4945_v53, %v4819_v21 }
 0x16f   :  { %v1875_v2 = vmax.f32 %v1874_v59, %v1845_v32  ;;  %v1809_v28 = vmax.f32 %v1808_v39, %v5195_v0  ;;  %v9708_v8 = vmin.f32 %v4953_v50, %v4825_v16  ;;  %v897_v33 = vmin.f32 %v896_v9, %v4972_v6  ;;  %v9709_v39 = vld [vmem:[#allocation254_spill] sm:$0xff] }
 0x170   :  { %v1912_v37 = vmax.f32 %v1911_v13, %v1882_v19  ;;  %v823_v11 = vmin.f32 %v9707_v41, %v4994_v63  ;;  %v1801_v49 = vmax.f32 %v1800_v15, %v1772_v26  ;;  %v934_v51 = vmin.f32 %v933_v56, %v4974_v45  ;;  %v9711_v63 = vld [vmem:[#allocation251_spill] sm:$0xff] }
 0x171   :  { %v860_v36 = vmin.f32 %v9708_v8, %v4998_v61  ;;  %v1838_v62 = vmax.f32 %v1837_v20, %v1809_v28  ;;  %v1876_v59 = vrot.slane %v1875_v2, 4  ;;  %v898_v53 = vmin.f32 %v897_v33, %v9710_v31 }
 0x172   :  { %v1913_v32 = vrot.slane %v1912_v37, 4  ;;  %v824_v13 = vmin.f32 %v823_v11, %v4955_v25  ;;  %v1802_v41 = vrot.slane %v1801_v49, 4  ;;  %v935_v35 = vmin.f32 %v934_v51, %v9711_v63  ;;  %v9712_v51 = vld [vmem:[#allocation258_spill] sm:$0xff] }
 0x173   :  { %v861_v19 = vmin.f32 %v860_v36, %v9709_v39  ;;  %v1839_v21 = vrot.slane %v1838_v62, 4  ;;  %v1877_v50 = vmax.f32 %v1875_v2, %v1876_v59  ;;  %v899_v56 = vmin.f32 %v898_v53, %v5057_v44 }
 0x174   :  { %v1914_v8 = vmax.f32 %v1912_v37, %v1913_v32  ;;  %v825_v9 = vmin.f32 %v824_v13, %v5069_v52  ;;  %v1803_v20 = vmax.f32 %v1801_v49, %v1802_v41  ;;  %v936_v26 = vmin.f32 %v935_v35, %v5071_v24  ;;  %v9713_v37 = vld [vmem:[#allocation259_spill] sm:$0xff] }
 0x175   :  { %v862_v15 = vmin.f32 %v861_v19, %v5083_v34  ;;  %v1840_v28 = vmax.f32 %v1838_v62, %v1839_v21  ;;  %v1878_v11 = vrot.slane %v1877_v50, 2  ;;  %v900_v63 = vmin.f32 %v899_v56, %v9712_v51  ;;  %v9714_v51 = vld [vmem:[#allocation12_spill] sm:$0xff] }
 0x176   :  { %v1915_v36 = vrot.slane %v1914_v8, 2  ;;  %v826_v33 = vmin.f32 %v825_v9, %v5022_v55  ;;  %v1804_v2 = vrot.slane %v1803_v20, 2  ;;  %v937_v59 = vmin.f32 %v936_v26, %v9713_v37 }
 0x177   :  { %v863_v31 = vmin.f32 %v862_v15, %v5025_v58  ;;  %v1841_v32 = vrot.slane %v1840_v28, 2  ;;  %v1879_v13 = vmax.f32 %v1877_v50, %v1878_v11  ;;  %v901_v49 = vrot.slane %v900_v63, 4 }
 0x178   :  { %v1916_v19 = vmax.f32 %v1914_v8, %v1915_v36  ;;  %v827_v34 = vrot.slane %v826_v33, 4  ;;  %v1805_v41 = vmax.f32 %v1803_v20, %v1804_v2  ;;  %v938_v35 = vrot.slane %v937_v59, 4 }
 0x179   :  { %v864_v53 = vrot.slane %v863_v31, 4  ;;  %v1842_v21 = vmax.f32 %v1840_v28, %v1841_v32  ;;  %v1880_v62 = vrot.slane %v1879_v13, 1  ;;  %v902_v55 = vmin.f32 %v900_v63, %v901_v49 }
 0x17a   :  { %v1917_v24 = vrot.slane %v1916_v19, 1  ;;  %v828_v44 = vmin.f32 %v826_v33, %v827_v34  ;;  %v1806_v15 = vrot.slane %v1805_v41, 1  ;;  %v939_v58 = vmin.f32 %v937_v59, %v938_v35 }
 0x17b   :  { %v865_v9 = vmin.f32 %v863_v31, %v864_v53  ;;  %v1843_v56 = vrot.slane %v1842_v21, 1  ;;  %v5225_v52 = vadd.s32 16, %v9714_v51  ;;  %v5228_v50 = vadd.s32 24, %v9714_v51 }
 0x17c   :  { %v5230_v8 = vmax.f32 %v1879_v13, %v1880_v62  ;;  %v5233_v20 = vadd.s32 8, %v9714_v51  ;;  %v5236_v26 = vadd.s32 40, %v9714_v51  ;;  %v5239_v31 = vadd.s32 32, %v9714_v51 }
 0x17d   :  { %9715 = vst [vmem:[#allocation28_spill] sm:$0xff] %v5225_v52  ;;  %9716 = vst [vmem:[#allocation29_spill] sm:$0xff] %v5228_v50  ;;  %v5241_v63 = vmax.f32 %v1916_v19, %v1917_v24  ;;  %v829_v34 = vrot.slane %v828_v44, 2  ;;  %v866_v28 = vrot.slane %v865_v9, 2  ;;  %v903_v11 = vrot.slane %v902_v55, 2  ;;  %v9848_v50 = vld [vmem:[#allocation278_spill] sm:$0xff] }
 0x17e   :  { %9717 = vst [vmem:[#allocation282_spill] sm:$0xff] %v5233_v20  ;;  %9718 = vst [vmem:[#allocation283_spill] sm:$0xff] %v5236_v26  ;;  %v5243_v36 = vmax.f32 %v1805_v41, %v1806_v15  ;;  %v5246_v33 = vadd.s32 56, %v9714_v51  ;;  %v5249_v2 = vadd.s32 48, %v9714_v51  ;;  %v940_v59 = vrot.slane %v939_v58, 2 }
 0x17f   :  { %9719 = vst [vmem:[#allocation284_spill] sm:$0xff] %v5239_v31  ;;  %v5251_v32 = vmax.f32 %v1842_v21, %v1843_v56  ;;  %v5254_v13 = vadd.s32 72, %v9714_v51  ;;  %v5257_v24 = vadd.s32 64, %v9714_v51  ;;  %v5260_v19 = vadd.s32 88, %v9714_v51  ;;  %v9835_v31 = vld [vmem:[#allocation238_spill] sm:$0xff] }
 0x180   :  { %9720 = vst [vmem:[#allocation285_spill] sm:$0xff] %v5246_v33  ;;  %9721 = vst [vmem:[#allocation286_spill] sm:$0xff] %v5249_v2  ;;  %v2041_v53 = vsub.f32 %v5150_v30, %v5230_v8  ;;  %v5265_v49 = vadd.s32 80, %v9714_v51  ;;  %v5268_v41 = vadd.s32 104, %v9714_v51  ;;  %v5271_v35 = vadd.s32 96, %v9714_v51  ;;  %v9775_v33 = vld [vmem:[#allocation112_spill] sm:$0xff] }
 0x181   :  { %9722 = vst [vmem:[#allocation287_spill] sm:$0xff] %v5254_v13  ;;  %9723 = vst [vmem:[#allocation288_spill] sm:$0xff] %v5257_v24  ;;  %v2042_v21 = vsub.f32 %v5162_v47, %v5241_v63  ;;  %v830_v62 = vmin.f32 %v828_v44, %v829_v34  ;;  %v867_v15 = vmin.f32 %v865_v9, %v866_v28  ;;  %v5278_v30 = vadd.s32 120, %v9714_v51  ;;  %v9772_v13 = vld [vmem:[#allocation86_spill] sm:$0xff]  ;;  %v9773_v24 = vld [vmem:[#allocation111_spill] sm:$0xff] }
 0x182   :  { %9724 = vst [vmem:[#allocation289_spill] sm:$0xff] %v5260_v19  ;;  %9725 = vst [vmem:[#allocation290_spill] sm:$0xff] %v5265_v49  ;;  %v904_v56 = vmin.f32 %v902_v55, %v903_v11  ;;  %v2039_v37 = vsub.f32 %v5168_v43, %v5243_v36  ;;  %v5281_v39 = vadd.s32 112, %v9714_v51  ;;  %v941_v25 = vmin.f32 %v939_v58, %v940_v59  ;;  %v9770_v19 = vld [vmem:[#allocation84_spill] sm:$0xff]  ;;  %v9771_v49 = vld [vmem:[#allocation85_spill] sm:$0xff] }
 0x183   :  { %9726 = vst [vmem:[#allocation291_spill] sm:$0xff] %v5268_v41  ;;  %9727 = vst [vmem:[#allocation292_spill] sm:$0xff] %v5271_v35  ;;  %v2040_v45 = vsub.f32 %v5177_v14, %v5251_v32  ;;  %v5286_v6 = vadd.s32 136, %v9714_v51  ;;  %v5289_v44 = vadd.s32 128, %v9714_v51  ;;  %v5292_v55 = vadd.s32 152, %v9714_v51  ;;  %v9768_v41 = vld [vmem:[#allocation96_spill] sm:$0xff] }
 0x184   :  { %9728 = vst [vmem:[#allocation293_spill] sm:$0xff] %v5278_v30  ;;  %9729 = vst [vmem:[#allocation294_spill] sm:$0xff] %v5281_v39  ;;  %v2291_v47 = vmul.f32 1.442695, %v2041_v53  ;;  %v5295_v43 = vadd.s32 144, %v9714_v51  ;;  %v5298_v9 = vadd.s32 168, %v9714_v51  ;;  %v1919_v12 = vsub.f32 %v5143_v4, %v5243_v36 }
 0x185   :  { %9730 = vst [vmem:[#allocation295_spill] sm:$0xff] %v5286_v6  ;;  %9731 = vst [vmem:[#allocation296_spill] sm:$0xff] %v5289_v44  ;;  %v5301_v58 = vadd.s32 160, %v9714_v51  ;;  %v2293_v14 = vmul.f32 1.442695, %v2042_v21  ;;  %v831_v34 = vrot.slane %v830_v62, 1  ;;  %v1922_v26 = vsub.f32 %v5174_v54, %v5241_v63 }
 0x186   :  { %9732 = vst [vmem:[#allocation297_spill] sm:$0xff] %v5292_v55  ;;  %9733 = vst [vmem:[#allocation298_spill] sm:$0xff] %v5295_v43  ;;  %v868_v28 = vrot.slane %v867_v15, 1  ;;  %v905_v11 = vrot.slane %v904_v56, 1  ;;  %v2287_v59 = vmul.f32 1.442695, %v2039_v37  ;;  %3128 = vpow2.f32 %v2291_v47 }
 0x187   :  { %9734 = vst [vmem:[#allocation299_spill] sm:$0xff] %v5298_v9  ;;  %9735 = vst [vmem:[#allocation300_spill] sm:$0xff] %v5301_v58  ;;  %v5304_v61 = vadd.s32 184, %v9714_v51  ;;  %v5307_v16 = vadd.s32 176, %v9714_v51  ;;  %v942_v53 = vrot.slane %v941_v25, 1  ;;  %v5310_v43 = vadd.s32 200, %v9714_v51 }
 0x188   :  { %v2289_v55 = vmul.f32 1.442695, %v2040_v45  ;;  %v5313_v9 = vadd.s32 192, %v9714_v51  ;;  %v5316_v21 = vadd.s32 216, %v9714_v51  ;;  %v5319_v37 = vadd.s32 208, %v9714_v51  ;;  %v9748_v47 = vld [vmem:[#allocation42_spill] sm:$0xff] }
 0x189   :  { %9736 = vst [vmem:[#allocation301_spill] sm:$0xff] %v5304_v61  ;;  %9737 = vst [vmem:[#allocation302_spill] sm:$0xff] %v5307_v16  ;;  %v5322_v61 = vadd.s32 232, %v9714_v51  ;;  %v5325_v16 = vadd.s32 224, %v9714_v51  ;;  %3130 = vpow2.f32 %v2293_v14  ;;  %v5327_v45 = vmin.f32 %v830_v62, %v831_v34  ;;  %v9750_v6 = vld [vmem:[#allocation58_spill] sm:$0xff]  ;;  %v9751_v62 = vld [vmem:[#allocation59_spill] sm:$0xff] }
 0x18a   :  { %9738 = vst [vmem:[#allocation303_spill] sm:$0xff] %v5310_v43  ;;  %9739 = vst [vmem:[#allocation304_spill] sm:$0xff] %v5313_v9  ;;  %v5329_v43 = vmin.f32 %v867_v15, %v868_v28  ;;  %v5331_v58 = vmin.f32 %v904_v56, %v905_v11  ;;  %3132 = vpow2.f32 %v2287_v59  ;;  %v5333_v9 = vmin.f32 %v941_v25, %v942_v53  ;;  %v9752_v15 = vld [vmem:[#allocation60_spill] sm:$0xff]  ;;  %v9756_v53 = vld [vmem:[#allocation53_spill] sm:$0xff] }
 0x18b   :  { %9740 = vst [vmem:[#allocation305_spill] sm:$0xff] %v5316_v21  ;;  %9741 = vst [vmem:[#allocation306_spill] sm:$0xff] %v5319_v37  ;;  %3134 = vpow2.f32 %v2289_v55  ;;  %v9749_v37 = vld [vmem:[#allocation46_spill] sm:$0xff]  ;;  %v9753_v34 = vld [vmem:[#allocation48_spill] sm:$0xff]  ;;  %v1926_v2 = vsub.f32 %v5159_v48, %v5241_v63  ;;  %v1927_v54 = vsub.f32 %v5186_v1, %v5243_v36  ;;  %v1928_v4 = vsub.f32 %v5195_v0, %v5251_v32 }
 0x18c   :  { %9742 = vst [vmem:[#allocation307_spill] sm:$0xff] %v5322_v61  ;;  %9743 = vst [vmem:[#allocation308_spill] sm:$0xff] %v5325_v16  ;;  %v9754_v55 = vld [vmem:[#allocation51_spill] sm:$0xff]  ;;  %v9755_v11 = vld [vmem:[#allocation52_spill] sm:$0xff]  ;;  %v1933_v48 = vsub.f32 %v5118_v23, %v5230_v8  ;;  %v2053_v52 = vmul.f32 1.442695, %v1922_v26  ;;  %v1934_v1 = vsub.f32 %v5122_v29, %v5241_v63  ;;  %v1938_v0 = vsub.f32 %v5133_v18, %v5241_v63 }
 0x18d   :  { %9744 = vst [vmem:[#allocation309_spill] sm:$0xff] %v5327_v45  ;;  %9745 = vst [vmem:[#allocation310_spill] sm:$0xff] %v5329_v43  ;;  %v9757_v16 = vld [vmem:[#allocation75_spill] sm:$0xff]  ;;  %v9758_v14 = vld [vmem:[#allocation76_spill] sm:$0xff]  ;;  %v2063_v3 = vmul.f32 1.442695, %v1927_v54  ;;  %v9857_v23 = vsub.f32 %v9748_v47, %v5243_v36  ;;  %v9858_v29 = vsub.f32 %v9749_v37, %v5251_v32  ;;  %v9862_v37 = vsub.f32 %v9753_v34, %v5243_v36 }
 0x18e   :  { %9746 = vst [vmem:[#allocation311_spill] sm:$0xff] %v5331_v58  ;;  %9747 = vst [vmem:[#allocation312_spill] sm:$0xff] %v5333_v9  ;;  %v9759_v56 = vld [vmem:[#allocation77_spill] sm:$0xff]  ;;  %v9760_v25 = vld [vmem:[#allocation78_spill] sm:$0xff]  ;;  %v1921_v58 = vsub.f32 %v5165_v46, %v5230_v8  ;;  %v1923_v46 = vsub.f32 %v5127_v27, %v5243_v36  ;;  %v1924_v9 = vsub.f32 %v5139_v57, %v5251_v32  ;;  %v2065_v57 = vmul.f32 1.442695, %v1928_v4 }
 0x18f   :  { %v9761_v28 = vld [vmem:[#allocation65_spill] sm:$0xff]  ;;  %v9762_v59 = vld [vmem:[#allocation66_spill] sm:$0xff]  ;;  %v9763_v61 = vld [vmem:[#allocation71_spill] sm:$0xff]  ;;  %v2071_v26 = vmul.f32 1.442695, %v9857_v23  ;;  %v9866_v34 = vsub.f32 %v9757_v16, %v5243_v36 }
 0x190   :  { %v9764_v21 = vld [vmem:[#allocation72_spill] sm:$0xff]  ;;  %v9766_v30 = vld [vmem:[#allocation94_spill] sm:$0xff]  ;;  %v9767_v39 = vld [vmem:[#allocation95_spill] sm:$0xff]  ;;  %v5387_v51 = vpop.eup %3128  ;;  %v2051_v5 = vmul.f32 1.442695, %v1921_v58  ;;  %v9870_v16 = vsub.f32 %v9761_v28, %v5243_v36 }
 0x191   :  { %v9765_v44 = vld [vmem:[#allocation92_spill] sm:$0xff]  ;;  %v9769_v35 = vld [vmem:[#allocation83_spill] sm:$0xff]  ;;  %9774 = vst [vmem:[#allocation42_spill] sm:$0xff] %v5387_v51  ;;  %v9851_v43 = vld [vmem:[#allocation269_spill] sm:$0xff]  ;;  %v2061_v58 = vmul.f32 1.442695, %v1926_v2  ;;  %v9861_v2 = vsub.f32 %v9752_v15, %v5230_v8  ;;  %v9865_v15 = vsub.f32 %v9756_v53, %v5241_v63  ;;  %v9869_v53 = vsub.f32 %v9760_v25, %v5241_v63 }
 0x192   :  { %v9847_v45 = vld [vmem:[#allocation248_spill] sm:$0xff]  ;;  %v2073_v18 = vmul.f32 1.442695, %v9858_v29  ;;  %v2085_v47 = vmul.f32 1.442695, %v1938_v0  ;;  %v9873_v25 = vsub.f32 %v9764_v21, %v5241_v63  ;;  %v9875_v28 = vsub.f32 %v9765_v44, %v5243_v36 }
 0x193   :  { %v5397_v7 = vpop.eup %3130  ;;  %v5609_v4 = vmul.f32 1.442695, %v9862_v37  ;;  %v9880_v44 = vsub.f32 %v9769_v35, %v5243_v36  ;;  %v9885_v35 = vsub.f32 %v9773_v24, %v5243_v36 }
 0x194   :  { %9779 = vst [vmem:[#allocation46_spill] sm:$0xff] %v5397_v7  ;;  %v5407_v38 = vpop.eup %3132  ;;  %v1920_v7 = vsub.f32 %v5156_v10, %v5251_v32  ;;  %v2047_v10 = vmul.f32 1.442695, %v1919_v12  ;;  %v2055_v12 = vmul.f32 1.442695, %v1923_v46 }
 0x195   :  { %9784 = vst [vmem:[#allocation58_spill] sm:$0xff] %v5407_v38  ;;  %v5417_v20 = vpop.eup %3134  ;;  %v1929_v38 = vsub.f32 %v5106_v17, %v5230_v8  ;;  %v2077_v46 = vmul.f32 1.442695, %v1934_v1 }
 0x196   :  { %9789 = vst [vmem:[#allocation59_spill] sm:$0xff] %v5417_v20  ;;  %v1925_v20 = vsub.f32 %v5146_v40, %v5230_v8  ;;  %v2049_v27 = vmul.f32 1.442695, %v1920_v7  ;;  %v1930_v40 = vsub.f32 %v5109_v60, %v5241_v63  ;;  %3136 = vpow2.f32 %v2047_v10 }
 0x197   :  { %v2057_v7 = vmul.f32 1.442695, %v1924_v9  ;;  %v2067_v60 = vmul.f32 1.442695, %v1929_v38  ;;  %v2075_v10 = vmul.f32 1.442695, %v1933_v48  ;;  %v9860_v38 = vsub.f32 %v9751_v62, %v5251_v32 }
 0x198   :  { %3138 = vpow2.f32 %v2049_v27  ;;  %v2059_v17 = vmul.f32 1.442695, %v1925_v20  ;;  %v2069_v51 = vmul.f32 1.442695, %v1930_v40  ;;  %v9859_v20 = vsub.f32 %v9750_v6, %v5243_v36 }
 0x199   :  { %3140 = vpow2.f32 %v2051_v5  ;;  %v2083_v9 = vmul.f32 1.442695, %v9861_v2  ;;  %v9863_v6 = vsub.f32 %v9754_v55, %v5251_v32  ;;  %v9864_v62 = vsub.f32 %v9755_v11, %v5230_v8 }
 0x19a   :  { %3142 = vpow2.f32 %v2053_v52  ;;  %v2079_v5 = vmul.f32 1.442695, %v9859_v20  ;;  %v2081_v52 = vmul.f32 1.442695, %v9860_v38  ;;  %v5624_v40 = vmul.f32 1.442695, %v9865_v15 }
 0x19b   :  { %3144 = vpow2.f32 %v2055_v12  ;;  %v5614_v54 = vmul.f32 1.442695, %v9863_v6  ;;  %v5619_v27 = vmul.f32 1.442695, %v9864_v62  ;;  %v5629_v48 = vmul.f32 1.442695, %v9866_v34 }
 0x19c   :  { %3146 = vpow2.f32 %v2057_v7  ;;  %v9867_v55 = vsub.f32 %v9758_v14, %v5251_v32  ;;  %v9868_v11 = vsub.f32 %v9759_v56, %v5230_v8  ;;  %v5644_v12 = vmul.f32 1.442695, %v9869_v53 }
 0x19d   :  { %3148 = vpow2.f32 %v2059_v17  ;;  %v5649_v7 = vmul.f32 1.442695, %v9870_v16  ;;  %v9871_v14 = vsub.f32 %v9762_v59, %v5251_v32  ;;  %v9872_v56 = vsub.f32 %v9763_v61, %v5230_v8 }
 0x19e   :  { %3150 = vpow2.f32 %v2061_v58  ;;  %v5634_v1 = vmul.f32 1.442695, %v9867_v55  ;;  %v5639_v0 = vmul.f32 1.442695, %v9868_v11  ;;  %v5664_v58 = vmul.f32 1.442695, %v9873_v25 }
 0x19f   :  { %3152 = vpow2.f32 %v2063_v3  ;;  %v5654_v3 = vmul.f32 1.442695, %v9871_v14  ;;  %v5659_v17 = vmul.f32 1.442695, %v9872_v56  ;;  %v9876_v59 = vsub.f32 %v9766_v30, %v5251_v32  ;;  %v9893_v14 = vld [vmem:[#allocation101_spill] sm:$0xff] }
 0x1a0   :  { %3154 = vpow2.f32 %v2065_v57  ;;  %v5666_v23 = vpop.eup %3136  ;;  %v5671_v57 = vmul.f32 1.442695, %v9875_v28  ;;  %v9877_v61 = vsub.f32 %v9767_v39, %v5230_v8  ;;  %v5693_v2 = vmul.f32 1.442695, %v9880_v44 }
 0x1a1   :  { %9874 = vst [vmem:[#allocation60_spill] sm:$0xff] %v5666_v23  ;;  %3156 = vpow2.f32 %v2067_v60  ;;  %v5676_v29 = vmul.f32 1.442695, %v9876_v59  ;;  %v9879_v60 = vsub.f32 %v9768_v41, %v5241_v63  ;;  %v9881_v30 = vsub.f32 %v9770_v19, %v5251_v32  ;;  %v9897_v59 = vld [vmem:[#allocation103_spill] sm:$0xff] }
 0x1a2   :  { %v5681_v20 = vmul.f32 1.442695, %v9877_v61  ;;  %v5683_v21 = vpop.eup %3138  ;;  %3158 = vpow2.f32 %v2069_v51  ;;  %v9883_v51 = vsub.f32 %v9771_v49, %v5230_v8  ;;  %v9884_v41 = vsub.f32 %v9772_v13, %v5241_v63  ;;  %v9888_v49 = vld [vmem:[#allocation113_spill] sm:$0xff]  ;;  %v9890_v13 = vld [vmem:[#allocation114_spill] sm:$0xff] }
 0x1a3   :  { %9878 = vst [vmem:[#allocation48_spill] sm:$0xff] %v5683_v21  ;;  %v5688_v38 = vmul.f32 1.442695, %v9879_v60  ;;  %v5698_v37 = vmul.f32 1.442695, %v9881_v30  ;;  %v5700_v39 = vpop.eup %3140  ;;  %3160 = vpow2.f32 %v2071_v26  ;;  %v9887_v26 = vsub.f32 %v9775_v33, %v5251_v32  ;;  %v9895_v33 = vld [vmem:[#allocation102_spill] sm:$0xff] }
 0x1a4   :  { %9882 = vst [vmem:[#allocation51_spill] sm:$0xff] %v5700_v39  ;;  %v5705_v6 = vmul.f32 1.442695, %v9883_v51  ;;  %v5710_v62 = vmul.f32 1.442695, %v9884_v41  ;;  %v5717_v19 = vpop.eup %3142  ;;  %3162 = vpow2.f32 %v2073_v18  ;;  %v9889_v55 = vsub.f32 %v9888_v49, %v5230_v8  ;;  %v9900_v30 = vld [vmem:[#allocation104_spill] sm:$0xff] }
 0x1a5   :  { %v5715_v15 = vmul.f32 1.442695, %v9885_v35  ;;  %9886 = vst [vmem:[#allocation52_spill] sm:$0xff] %v5717_v19  ;;  %v5722_v34 = vmul.f32 1.442695, %v9887_v26  ;;  %v9891_v53 = vsub.f32 %v9890_v13, %v5241_v63  ;;  %v5734_v24 = vpop.eup %3144  ;;  %3164 = vpow2.f32 %v2075_v10  ;;  %v9902_v41 = vld [vmem:[#allocation129_spill] sm:$0xff] }
 0x1a6   :  { %v5727_v11 = vmul.f32 1.442695, %v9889_v55  ;;  %9892 = vst [vmem:[#allocation53_spill] sm:$0xff] %v5734_v24  ;;  %v9894_v18 = vsub.f32 %v9893_v14, %v5243_v36  ;;  %v9896_v25 = vsub.f32 %v9895_v33, %v5251_v32  ;;  %v9898_v61 = vsub.f32 %v9897_v59, %v5230_v8  ;;  %v5751_v44 = vpop.eup %3146  ;;  %v9904_v49 = vld [vmem:[#allocation130_spill] sm:$0xff]  ;;  %v9908_v14 = vld [vmem:[#allocation131_spill] sm:$0xff]  ;;  %v9911_v33 = vld [vmem:[#allocation132_spill] sm:$0xff] }
 0x1a7   :  { %v5732_v16 = vmul.f32 1.442695, %v9891_v53  ;;  %9899 = vst [vmem:[#allocation75_spill] sm:$0xff] %v5751_v44  ;;  %3166 = vpow2.f32 %v2077_v46  ;;  %v9901_v10 = vsub.f32 %v9900_v30, %v5241_v63  ;;  %v9903_v35 = vsub.f32 %v9902_v41, %v5243_v36  ;;  %v5768_v53 = vpop.eup %3148 }
 0x1a8   :  { %v5739_v56 = vmul.f32 1.442695, %v9894_v18  ;;  %v5744_v28 = vmul.f32 1.442695, %v9896_v25  ;;  %v5749_v60 = vmul.f32 1.442695, %v9898_v61  ;;  %v9905_v55 = vsub.f32 %v9904_v49, %v5251_v32  ;;  %v5785_v41 = vpop.eup %3150 }
 0x1a9   :  { %v5756_v51 = vmul.f32 1.442695, %v9901_v10  ;;  %v5761_v26 = vmul.f32 1.442695, %v9903_v35  ;;  %9907 = vst [vmem:[#allocation77_spill] sm:$0xff] %v5768_v53  ;;  %3168 = vpow2.f32 %v2079_v5  ;;  %v9909_v46 = vsub.f32 %v9908_v14, %v5230_v8  ;;  %v9914_v61 = vld [vmem:[#allocation119_spill] sm:$0xff] }
 0x1aa   :  { %v5766_v13 = vmul.f32 1.442695, %v9905_v55  ;;  %v9912_v25 = vsub.f32 %v9911_v33, %v5241_v63  ;;  %v9915_v30 = vsub.f32 %v9914_v61, %v5243_v36  ;;  %9917 = vst [vmem:[#allocation71_spill] sm:$0xff] %v5785_v41  ;;  %3170 = vpow2.f32 %v2081_v52  ;;  %v9918_v35 = vld [vmem:[#allocation120_spill] sm:$0xff]  ;;  %v9921_v55 = vld [vmem:[#allocation121_spill] sm:$0xff]  ;;  %v9924_v33 = vld [vmem:[#allocation122_spill] sm:$0xff]  ;;  %v5802_v61 = vpop.eup %3152 }
 0x1ab   :  { %v5773_v18 = vmul.f32 1.442695, %v9909_v46  ;;  %v9919_v5 = vsub.f32 %v9918_v35, %v5251_v32  ;;  %v9922_v14 = vsub.f32 %v9921_v55, %v5230_v8  ;;  %9927 = vst [vmem:[#allocation95_spill] sm:$0xff] %v5802_v61  ;;  %3172 = vpow2.f32 %v2083_v9  ;;  %v9931_v35 = vld [vmem:[#allocation148_spill] sm:$0xff]  ;;  %v9934_v55 = vld [vmem:[#allocation149_spill] sm:$0xff] }
 0x1ac   :  { %9906 = vst [vmem:[#allocation76_spill] sm:$0xff] %v5766_v13  ;;  %v5778_v59 = vmul.f32 1.442695, %v9912_v25  ;;  %v5783_v10 = vmul.f32 1.442695, %v9915_v30  ;;  %v9925_v25 = vsub.f32 %v9924_v33, %v5241_v63  ;;  %v9928_v30 = vld [vmem:[#allocation147_spill] sm:$0xff]  ;;  %v5819_v33 = vpop.eup %3154  ;;  %3174 = vpow2.f32 %v2085_v47 }
 0x1ad   :  { %9910 = vst [vmem:[#allocation78_spill] sm:$0xff] %v5773_v18  ;;  %v5790_v49 = vmul.f32 1.442695, %v9919_v5  ;;  %v5795_v46 = vmul.f32 1.442695, %v9922_v14  ;;  %v9929_v52 = vsub.f32 %v9928_v30, %v5243_v36  ;;  %v9932_v5 = vsub.f32 %v9931_v35, %v5251_v32  ;;  %9937 = vst [vmem:[#allocation85_spill] sm:$0xff] %v5819_v33 }
 0x1ae   :  { %9913 = vst [vmem:[#allocation65_spill] sm:$0xff] %v5778_v59  ;;  %9916 = vst [vmem:[#allocation66_spill] sm:$0xff] %v5783_v10  ;;  %v5800_v59 = vmul.f32 1.442695, %v9925_v25  ;;  %v9935_v14 = vsub.f32 %v9934_v55, %v5230_v8  ;;  %v9938_v25 = vld [vmem:[#allocation150_spill] sm:$0xff]  ;;  %v9941_v30 = vld [vmem:[#allocation135_spill] sm:$0xff]  ;;  %v5836_v55 = vpop.eup %3156  ;;  %3176 = vpow2.f32 %v5609_v4 }
 0x1af   :  { %9920 = vst [vmem:[#allocation72_spill] sm:$0xff] %v5790_v49  ;;  %9923 = vst [vmem:[#allocation92_spill] sm:$0xff] %v5795_v46  ;;  %v5807_v10 = vmul.f32 1.442695, %v9929_v52  ;;  %v5812_v49 = vmul.f32 1.442695, %v9932_v5  ;;  %v9939_v9 = vsub.f32 %v9938_v25, %v5241_v63  ;;  %v9942_v52 = vsub.f32 %v9941_v30, %v5243_v36 }
 0x1b0   :  { %9926 = vst [vmem:[#allocation94_spill] sm:$0xff] %v5800_v59  ;;  %v5817_v46 = vmul.f32 1.442695, %v9935_v14  ;;  %v9944_v35 = vld [vmem:[#allocation138_spill] sm:$0xff]  ;;  %9947 = vst [vmem:[#allocation238_spill] sm:$0xff] %v5836_v55  ;;  %v9948_v47 = vld [vmem:[#allocation139_spill] sm:$0xff]  ;;  %3178 = vpow2.f32 %v5614_v54 }
 0x1b1   :  { %9930 = vst [vmem:[#allocation96_spill] sm:$0xff] %v5807_v10  ;;  %9933 = vst [vmem:[#allocation83_spill] sm:$0xff] %v5812_v49  ;;  %v5824_v59 = vmul.f32 1.442695, %v9939_v9  ;;  %v5829_v10 = vmul.f32 1.442695, %v9942_v52  ;;  %v9945_v5 = vsub.f32 %v9944_v35, %v5251_v32  ;;  %v9949_v14 = vsub.f32 %v9948_v47, %v5230_v8 }
 0x1b2   :  { %9936 = vst [vmem:[#allocation84_spill] sm:$0xff] %v5817_v46  ;;  %v9951_v9 = vld [vmem:[#allocation140_spill] sm:$0xff]  ;;  %v9954_v52 = vld [vmem:[#allocation165_spill] sm:$0xff]  ;;  %v9958_v4 = vld [vmem:[#allocation166_spill] sm:$0xff]  ;;  %3180 = vpow2.f32 %v5619_v27 }
 0x1b3   :  { %9940 = vst [vmem:[#allocation86_spill] sm:$0xff] %v5824_v59  ;;  %9943 = vst [vmem:[#allocation111_spill] sm:$0xff] %v5829_v10  ;;  %v5834_v49 = vmul.f32 1.442695, %v9945_v5  ;;  %v5842_v25 = vmul.f32 1.442695, %v9949_v14  ;;  %v9952_v59 = vsub.f32 %v9951_v9, %v5241_v63  ;;  %v9955_v10 = vsub.f32 %v9954_v52, %v5243_v36  ;;  %v5854_v5 = vpop.eup %3158 }
 0x1b4   :  { %9957 = vst [vmem:[#allocation113_spill] sm:$0xff] %v5854_v5  ;;  %v9961_v14 = vld [vmem:[#allocation167_spill] sm:$0xff]  ;;  %3182 = vpow2.f32 %v5624_v40  ;;  %v9978_v27 = vld [vmem:[#allocation158_spill] sm:$0xff]  ;;  %v9988_v40 = vld [vmem:[#allocation185_spill] sm:$0xff] }
 0x1b5   :  { %9946 = vst [vmem:[#allocation112_spill] sm:$0xff] %v5834_v49  ;;  %9950 = vst [vmem:[#allocation248_spill] sm:$0xff] %v5842_v25  ;;  %v5847_v30 = vmul.f32 1.442695, %v9952_v59  ;;  %v5852_v35 = vmul.f32 1.442695, %v9955_v10  ;;  %v9959_v49 = vsub.f32 %v9958_v4, %v5251_v32  ;;  %v9962_v25 = vsub.f32 %v9961_v14, %v5230_v8  ;;  %v5872_v10 = vpop.eup %3160 }
 0x1b6   :  { %v9964_v59 = vld [vmem:[#allocation168_spill] sm:$0xff]  ;;  %9967 = vst [vmem:[#allocation103_spill] sm:$0xff] %v5872_v10  ;;  %v9968_v54 = vld [vmem:[#allocation155_spill] sm:$0xff]  ;;  %3184 = vpow2.f32 %v5629_v48  ;;  %v9998_v48 = vld [vmem:[#allocation177_spill] sm:$0xff] }
 0x1b7   :  { %9953 = vst [vmem:[#allocation278_spill] sm:$0xff] %v5847_v30  ;;  %9956 = vst [vmem:[#allocation269_spill] sm:$0xff] %v5852_v35  ;;  %v5860_v47 = vmul.f32 1.442695, %v9959_v49  ;;  %v5865_v9 = vmul.f32 1.442695, %v9962_v25  ;;  %v9965_v30 = vsub.f32 %v9964_v59, %v5241_v63  ;;  %v9969_v35 = vsub.f32 %v9968_v54, %v5243_v36 }
 0x1b8   :  { %v9971_v49 = vld [vmem:[#allocation156_spill] sm:$0xff]  ;;  %v9974_v25 = vld [vmem:[#allocation157_spill] sm:$0xff]  ;;  %3186 = vpow2.f32 %v5634_v1  ;;  %v10089_v46 = vld [vmem:[#allocation310_spill] sm:$0xff] }
 0x1b9   :  { %9960 = vst [vmem:[#allocation114_spill] sm:$0xff] %v5860_v47  ;;  %9963 = vst [vmem:[#allocation101_spill] sm:$0xff] %v5865_v9  ;;  %v5870_v52 = vmul.f32 1.442695, %v9965_v30  ;;  %v5878_v4 = vmul.f32 1.442695, %v9969_v35  ;;  %v9972_v47 = vsub.f32 %v9971_v49, %v5251_v32  ;;  %v9975_v9 = vsub.f32 %v9974_v25, %v5230_v8  ;;  %v5890_v30 = vpop.eup %3162 }
 0x1ba   :  { %9977 = vst [vmem:[#allocation131_spill] sm:$0xff] %v5890_v30  ;;  %v9981_v35 = vld [vmem:[#allocation183_spill] sm:$0xff]  ;;  %3188 = vpow2.f32 %v5639_v0  ;;  %v10008_v1 = vld [vmem:[#allocation201_spill] sm:$0xff]  ;;  %v10090_v18 = vld [vmem:[#allocation22_spill] sm:$0xff] }
 0x1bb   :  { %9966 = vst [vmem:[#allocation102_spill] sm:$0xff] %v5870_v52  ;;  %9970 = vst [vmem:[#allocation104_spill] sm:$0xff] %v5878_v4  ;;  %v5883_v14 = vmul.f32 1.442695, %v9972_v47  ;;  %v5888_v59 = vmul.f32 1.442695, %v9975_v9  ;;  %v9979_v52 = vsub.f32 %v9978_v27, %v5241_v63  ;;  %v9982_v4 = vsub.f32 %v9981_v35, %v5243_v36  ;;  %v5908_v9 = vpop.eup %3164 }
 0x1bc   :  { %v9984_v47 = vld [vmem:[#allocation184_spill] sm:$0xff]  ;;  %9987 = vst [vmem:[#allocation121_spill] sm:$0xff] %v5908_v9  ;;  %3190 = vpow2.f32 %v5644_v12  ;;  %v10018_v0 = vld [vmem:[#allocation207_spill] sm:$0xff]  ;;  %vm945_vm1 = vcmp.eq.f32.partialorder %v10090_v18, %v10089_v46  ;;  %v10112_v13 = vld [vmem:[#allocation25_spill] sm:$0xff] }
 0x1bd   :  { %9973 = vst [vmem:[#allocation129_spill] sm:$0xff] %v5883_v14  ;;  %9976 = vst [vmem:[#allocation130_spill] sm:$0xff] %v5888_v59  ;;  %v5896_v54 = vmul.f32 1.442695, %v9979_v52  ;;  %v5901_v49 = vmul.f32 1.442695, %v9982_v4  ;;  %v9985_v14 = vsub.f32 %v9984_v47, %v5251_v32  ;;  %v9989_v59 = vsub.f32 %v9988_v40, %v5230_v8 }
 0x1be   :  { %v9991_v52 = vld [vmem:[#allocation186_spill] sm:$0xff]  ;;  %v9994_v4 = vld [vmem:[#allocation173_spill] sm:$0xff]  ;;  %3192 = vpow2.f32 %v5649_v7  ;;  %v10028_v12 = vld [vmem:[#allocation192_spill] sm:$0xff] }
 0x1bf   :  { %9980 = vst [vmem:[#allocation132_spill] sm:$0xff] %v5896_v54  ;;  %9983 = vst [vmem:[#allocation119_spill] sm:$0xff] %v5901_v49  ;;  %v5906_v25 = vmul.f32 1.442695, %v9985_v14  ;;  %v5914_v27 = vmul.f32 1.442695, %v9989_v59  ;;  %v9992_v54 = vsub.f32 %v9991_v52, %v5241_v63  ;;  %v9995_v49 = vsub.f32 %v9994_v4, %v5243_v36  ;;  %v5926_v14 = vpop.eup %3166 }
 0x1c0   :  { %9997 = vst [vmem:[#allocation149_spill] sm:$0xff] %v5926_v14  ;;  %v10001_v59 = vld [vmem:[#allocation179_spill] sm:$0xff]  ;;  %3194 = vpow2.f32 %v5654_v3  ;;  %v10038_v7 = vld [vmem:[#allocation220_spill] sm:$0xff]  ;;  %v10048_v3 = vld [vmem:[#allocation209_spill] sm:$0xff] }
 0x1c1   :  { %9986 = vst [vmem:[#allocation120_spill] sm:$0xff] %v5906_v25  ;;  %9990 = vst [vmem:[#allocation122_spill] sm:$0xff] %v5914_v27  ;;  %v5919_v35 = vmul.f32 1.442695, %v9992_v54  ;;  %v5924_v47 = vmul.f32 1.442695, %v9995_v49  ;;  %v9999_v25 = vsub.f32 %v9998_v48, %v5251_v32  ;;  %v10002_v27 = vsub.f32 %v10001_v59, %v5230_v8  ;;  %v5944_v49 = vpop.eup %3168 }
 0x1c2   :  { %v10004_v54 = vld [vmem:[#allocation180_spill] sm:$0xff]  ;;  %10007 = vst [vmem:[#allocation139_spill] sm:$0xff] %v5944_v49  ;;  %3196 = vpow2.f32 %v5659_v17  ;;  %v10058_v17 = vld [vmem:[#allocation217_spill] sm:$0xff] }
 0x1c3   :  { %9993 = vst [vmem:[#allocation147_spill] sm:$0xff] %v5919_v35  ;;  %9996 = vst [vmem:[#allocation148_spill] sm:$0xff] %v5924_v47  ;;  %v5932_v40 = vmul.f32 1.442695, %v9999_v25  ;;  %v5937_v52 = vmul.f32 1.442695, %v10002_v27  ;;  %v10005_v35 = vsub.f32 %v10004_v54, %v5241_v63  ;;  %v10009_v47 = vsub.f32 %v10008_v1, %v5243_v36 }
 0x1c4   :  { %v10011_v25 = vld [vmem:[#allocation202_spill] sm:$0xff]  ;;  %v10014_v27 = vld [vmem:[#allocation203_spill] sm:$0xff]  ;;  %3198 = vpow2.f32 %v5664_v58  ;;  %v10068_v58 = vsub.f32 %v9835_v31, %v5230_v8  ;;  %v10079_v31 = vld [vmem:[#allocation228_spill] sm:$0xff] }
 0x1c5   :  { %10000 = vst [vmem:[#allocation150_spill] sm:$0xff] %v5932_v40  ;;  %10003 = vst [vmem:[#allocation135_spill] sm:$0xff] %v5937_v52  ;;  %v5942_v4 = vmul.f32 1.442695, %v10005_v35  ;;  %v5950_v48 = vmul.f32 1.442695, %v10009_v47  ;;  %v10012_v40 = vsub.f32 %v10011_v25, %v5251_v32  ;;  %v10015_v52 = vsub.f32 %v10014_v27, %v5230_v8  ;;  %v5962_v35 = vpop.eup %3170 }
 0x1c6   :  { %10017 = vst [vmem:[#allocation167_spill] sm:$0xff] %v5962_v35  ;;  %v10021_v47 = vld [vmem:[#allocation189_spill] sm:$0xff]  ;;  %3200 = vpow2.f32 %v5671_v57  ;;  %v10080_v57 = vsub.f32 %v10079_v31, %v5251_v32 }
 0x1c7   :  { %10006 = vst [vmem:[#allocation138_spill] sm:$0xff] %v5942_v4  ;;  %10010 = vst [vmem:[#allocation140_spill] sm:$0xff] %v5950_v48  ;;  %v5955_v59 = vmul.f32 1.442695, %v10012_v40  ;;  %v5960_v54 = vmul.f32 1.442695, %v10015_v52  ;;  %v10019_v4 = vsub.f32 %v10018_v0, %v5241_v63  ;;  %v10022_v48 = vsub.f32 %v10021_v47, %v5243_v36  ;;  %v5980_v52 = vpop.eup %3172 }
 0x1c8   :  { %v10024_v40 = vld [vmem:[#allocation191_spill] sm:$0xff]  ;;  %10027 = vst [vmem:[#allocation157_spill] sm:$0xff] %v5980_v52  ;;  %3202 = vpow2.f32 %v5676_v29  ;;  %v10091_v29 = vld [vmem:[#allocation257_spill] sm:$0xff] }
 0x1c9   :  { %10013 = vst [vmem:[#allocation165_spill] sm:$0xff] %v5955_v59  ;;  %10016 = vst [vmem:[#allocation166_spill] sm:$0xff] %v5960_v54  ;;  %v5968_v1 = vmul.f32 1.442695, %v10019_v4  ;;  %v5973_v25 = vmul.f32 1.442695, %v10022_v48  ;;  %v10025_v59 = vsub.f32 %v10024_v40, %v5251_v32  ;;  %v10029_v54 = vsub.f32 %v10028_v12, %v5230_v8 }
 0x1ca   :  { %v10031_v4 = vld [vmem:[#allocation193_spill] sm:$0xff]  ;;  %v10034_v48 = vld [vmem:[#allocation218_spill] sm:$0xff]  ;;  %3204 = vpow2.f32 %v5681_v20  ;;  %v10092_v31 = vsub.f32 %v10091_v29, %v5243_v36 }
 0x1cb   :  { %10020 = vst [vmem:[#allocation168_spill] sm:$0xff] %v5968_v1  ;;  %10023 = vst [vmem:[#allocation155_spill] sm:$0xff] %v5973_v25  ;;  %v5978_v27 = vmul.f32 1.442695, %v10025_v59  ;;  %v5986_v0 = vmul.f32 1.442695, %v10029_v54  ;;  %v10032_v1 = vsub.f32 %v10031_v4, %v5241_v63  ;;  %v10035_v25 = vsub.f32 %v10034_v48, %v5243_v36  ;;  %v5998_v59 = vpop.eup %3174 }
 0x1cc   :  { %10037 = vst [vmem:[#allocation185_spill] sm:$0xff] %v5998_v59  ;;  %v10041_v54 = vld [vmem:[#allocation221_spill] sm:$0xff]  ;;  %3206 = vpow2.f32 %v5688_v38  ;;  %v10113_v38 = vld [vmem:[#allocation247_spill] sm:$0xff] }
 0x1cd   :  { %10026 = vst [vmem:[#allocation156_spill] sm:$0xff] %v5978_v27  ;;  %10030 = vst [vmem:[#allocation158_spill] sm:$0xff] %v5986_v0  ;;  %v5991_v47 = vmul.f32 1.442695, %v10032_v1  ;;  %v5996_v40 = vmul.f32 1.442695, %v10035_v25  ;;  %v10039_v27 = vsub.f32 %v10038_v7, %v5251_v32  ;;  %v10042_v0 = vsub.f32 %v10041_v54, %v5230_v8  ;;  %v6016_v25 = vpop.eup %3176 }
 0x1ce   :  { %v10044_v1 = vld [vmem:[#allocation222_spill] sm:$0xff]  ;;  %10047 = vst [vmem:[#allocation179_spill] sm:$0xff] %v6016_v25  ;;  %v10102_v20 = vld [vmem:[#allocation261_spill] sm:$0xff]  ;;  %3208 = vpow2.f32 %v5693_v2  ;;  %v10122_v2 = vsub.f32 %v9848_v50, %v5251_v32  ;;  %v10132_v50 = vsub.f32 %v9851_v43, %v5243_v36 }
 0x1cf   :  { %10033 = vst [vmem:[#allocation183_spill] sm:$0xff] %v5991_v47  ;;  %10036 = vst [vmem:[#allocation184_spill] sm:$0xff] %v5996_v40  ;;  %v6004_v12 = vmul.f32 1.442695, %v10039_v27  ;;  %v6009_v4 = vmul.f32 1.442695, %v10042_v0  ;;  %v10045_v47 = vsub.f32 %v10044_v1, %v5241_v63  ;;  %v10049_v40 = vsub.f32 %v10048_v3, %v5243_v36 }
 0x1d0   :  { %v10051_v27 = vld [vmem:[#allocation210_spill] sm:$0xff]  ;;  %v10054_v0 = vld [vmem:[#allocation211_spill] sm:$0xff]  ;;  %v10103_v29 = vsub.f32 %v10102_v20, %v5241_v63  ;;  %v10114_v20 = vsub.f32 %v10113_v38, %v5230_v8  ;;  %v6158_v38 = vmul.f32 1.442695, %v10122_v2  ;;  %v10141_v43 = vld [vmem:[#allocation265_spill] sm:$0xff] }
 0x1d1   :  { %10040 = vst [vmem:[#allocation186_spill] sm:$0xff] %v6004_v12  ;;  %10043 = vst [vmem:[#allocation173_spill] sm:$0xff] %v6009_v4  ;;  %v6014_v48 = vmul.f32 1.442695, %v10045_v47  ;;  %v6022_v7 = vmul.f32 1.442695, %v10049_v40  ;;  %v10052_v12 = vsub.f32 %v10051_v27, %v5251_v32  ;;  %v10055_v4 = vsub.f32 %v10054_v0, %v5230_v8  ;;  %v6034_v47 = vpop.eup %3178 }
 0x1d2   :  { %10057 = vst [vmem:[#allocation203_spill] sm:$0xff] %v6034_v47  ;;  %v10061_v40 = vld [vmem:[#allocation236_spill] sm:$0xff]  ;;  %3210 = vpow2.f32 %v5698_v37  ;;  %v6178_v37 = vmul.f32 1.442695, %v10132_v50  ;;  %v10133_v2 = vld [vmem:[#allocation270_spill] sm:$0xff] }
 0x1d3   :  { %10046 = vst [vmem:[#allocation177_spill] sm:$0xff] %v6014_v48  ;;  %10050 = vst [vmem:[#allocation180_spill] sm:$0xff] %v6022_v7  ;;  %v6027_v54 = vmul.f32 1.442695, %v10052_v12  ;;  %v6032_v1 = vmul.f32 1.442695, %v10055_v4  ;;  %v10059_v48 = vsub.f32 %v10058_v17, %v5241_v63  ;;  %v10062_v7 = vsub.f32 %v10061_v40, %v5243_v36  ;;  %v6052_v4 = vpop.eup %3180 }
 0x1d4   :  { %v10064_v12 = vld [vmem:[#allocation237_spill] sm:$0xff]  ;;  %10067 = vst [vmem:[#allocation192_spill] sm:$0xff] %v6052_v4  ;;  %v6058_v17 = vmul.f32 1.442695, %v10068_v58  ;;  %v6078_v58 = vmul.f32 1.442695, %v10080_v57  ;;  %3212 = vpow2.f32 %v5705_v6  ;;  %v10142_v6 = vsub.f32 %v10141_v43, %v5241_v63 }
 0x1d5   :  { %10053 = vst [vmem:[#allocation201_spill] sm:$0xff] %v6027_v54  ;;  %10056 = vst [vmem:[#allocation202_spill] sm:$0xff] %v6032_v1  ;;  %v6040_v3 = vmul.f32 1.442695, %v10059_v48  ;;  %v6045_v27 = vmul.f32 1.442695, %v10062_v7  ;;  %v10065_v54 = vsub.f32 %v10064_v12, %v5251_v32  ;;  %v2377_v43 = vadd.f32 %v5768_v53, %v5700_v39 }
 0x1d6   :  { %10069 = vst [vmem:[#allocation193_spill] sm:$0xff] %v6058_v17  ;;  %v10070_v48 = vld [vmem:[#allocation240_spill] sm:$0xff]  ;;  %v10073_v7 = vld [vmem:[#allocation226_spill] sm:$0xff]  ;;  %10081 = vst [vmem:[#allocation222_spill] sm:$0xff] %v6078_v58  ;;  %v6098_v57 = vmul.f32 1.442695, %v10092_v31 }
 0x1d7   :  { %10060 = vst [vmem:[#allocation207_spill] sm:$0xff] %v6040_v3  ;;  %10063 = vst [vmem:[#allocation189_spill] sm:$0xff] %v6045_v27  ;;  %v6050_v0 = vmul.f32 1.442695, %v10065_v54  ;;  %v10071_v3 = vsub.f32 %v10070_v48, %v5241_v63  ;;  %v10074_v27 = vsub.f32 %v10073_v7, %v5243_v36  ;;  %v6070_v54 = vpop.eup %3182  ;;  %v10078_v1 = vld [vmem:[#allocation20_spill] sm:$0xff]  ;;  %v10082_v48 = vld [vmem:[#allocation229_spill] sm:$0xff]  ;;  %3214 = vpow2.f32 %v5710_v62 }
 0x1d8   :  { %10076 = vst [vmem:[#allocation221_spill] sm:$0xff] %v6070_v54  ;;  %v10085_v7 = vld [vmem:[#allocation230_spill] sm:$0xff]  ;;  %v6090_v17 = vpop.eup %3184  ;;  %10093 = vst [vmem:[#allocation217_spill] sm:$0xff] %v6098_v57  ;;  %v10100_v58 = vld [vmem:[#allocation311_spill] sm:$0xff]  ;;  %v6118_v31 = vmul.f32 1.442695, %v10103_v29  ;;  %3216 = vpow2.f32 %v5715_v15 }
 0x1d9   :  { %10066 = vst [vmem:[#allocation191_spill] sm:$0xff] %v6050_v0  ;;  %v6063_v40 = vmul.f32 1.442695, %v10071_v3  ;;  %v6068_v12 = vmul.f32 1.442695, %v10074_v27  ;;  %v10077_v0 = vld [vmem:[#allocation309_spill] sm:$0xff]  ;;  %v10083_v3 = vsub.f32 %v10082_v48, %v5230_v8  ;;  %v10086_v27 = vsub.f32 %v10085_v7, %v5241_v63 }
 0x1da   :  { %vm944_vm0 = vcmp.eq.f32.partialorder %v10078_v1, %v10077_v0  ;;  %10088 = vst [vmem:[#allocation211_spill] sm:$0xff] %v6090_v17  ;;  %v10094_v48 = vsub.f32 %v5019_v22, %v5251_v32  ;;  %v10096_v7 = vld [vmem:[#allocation260_spill] sm:$0xff]  ;;  %v10104_v22 = vld [vmem:[#allocation245_spill] sm:$0xff]  ;;  %v6138_v29 = vmul.f32 1.442695, %v10114_v20 }
 0x1db   :  { %10072 = vst [vmem:[#allocation218_spill] sm:$0xff] %v6063_v40  ;;  %10075 = vst [vmem:[#allocation220_spill] sm:$0xff] %v6068_v12  ;;  %v6083_v40 = vmul.f32 1.442695, %v10083_v3  ;;  %v6088_v12 = vmul.f32 1.442695, %v10086_v27  ;;  %v10097_v27 = vsub.f32 %v10096_v7, %v5230_v8 }
 0x1dc   :  { %v6103_v3 = vmul.f32 1.442695, %v10094_v48  ;;  %v10101_v17 = vld [vmem:[#allocation24_spill] sm:$0xff]  ;;  %v10105_v48 = vsub.f32 %v10104_v22, %v5243_v36  ;;  %v10107_v7 = vld [vmem:[#allocation246_spill] sm:$0xff]  ;;  %10115 = vst [vmem:[#allocation229_spill] sm:$0xff] %v6138_v29  ;;  %v10116_v22 = vsub.f32 %v9847_v45, %v5241_v63  ;;  %10123 = vst [vmem:[#allocation260_spill] sm:$0xff] %v6158_v38 }
 0x1dd   :  { %10084 = vst [vmem:[#allocation209_spill] sm:$0xff] %v6083_v40  ;;  %10087 = vst [vmem:[#allocation210_spill] sm:$0xff] %v6088_v12  ;;  %v6108_v12 = vmul.f32 1.442695, %v10097_v27  ;;  %v6110_v40 = vpop.eup %3186  ;;  %vm946_vm2 = vcmp.eq.f32.partialorder %v10101_v17, %v10100_v58  ;;  %v10108_v27 = vsub.f32 %v10107_v7, %v5251_v32  ;;  %v10118_v7 = vsub.f32 %v5074_v42, %v5243_v36  ;;  %v10124_v45 = vld [vmem:[#allocation271_spill] sm:$0xff]  ;;  %v10127_v42 = vld [vmem:[#allocation272_spill] sm:$0xff] }
 0x1de   :  { %10095 = vst [vmem:[#allocation236_spill] sm:$0xff] %v6103_v3  ;;  %10099 = vst [vmem:[#allocation240_spill] sm:$0xff] %v6110_v40  ;;  %v6123_v3 = vmul.f32 1.442695, %v10105_v48  ;;  %v6130_v57 = vpop.eup %3188  ;;  %v10111_v40 = vld [vmem:[#allocation312_spill] sm:$0xff]  ;;  %v10125_v20 = vsub.f32 %v10124_v45, %v5230_v8  ;;  %v10131_v29 = vld [vmem:[#allocation34_spill] sm:$0xff]  ;;  %v10134_v45 = vsub.f32 %v10133_v2, %v5251_v32  ;;  %v2303_v2 = vadd.f32 %v5734_v24, %v5666_v23 }
 0x1df   :  { %10098 = vst [vmem:[#allocation237_spill] sm:$0xff] %v6108_v12  ;;  %v6128_v12 = vmul.f32 1.442695, %v10108_v27  ;;  %10110 = vst [vmem:[#allocation228_spill] sm:$0xff] %v6130_v57  ;;  %vm947_vm3 = vcmp.eq.f32.partialorder %v10112_v13, %v10111_v40  ;;  %v6143_v48 = vmul.f32 1.442695, %v10116_v22  ;;  %vm949_vm5 = vcmp.eq.f32.partialorder %v10131_v29, %v10089_v46 }
 0x1e0   :  { %10106 = vst [vmem:[#allocation226_spill] sm:$0xff] %v6123_v3  ;;  %v6148_v27 = vmul.f32 1.442695, %v10118_v7  ;;  %v10121_v3 = vld [vmem:[#allocation33_spill] sm:$0xff]  ;;  %v6163_v22 = vmul.f32 1.442695, %v10125_v20  ;;  %v10128_v7 = vsub.f32 %v10127_v42, %v5241_v63  ;;  %3218 = vpow2.f32 %v5722_v34 }
 0x1e1   :  { %10109 = vst [vmem:[#allocation20_spill] sm:$0xff] %v6128_v12  ;;  %10117 = vst [vmem:[#allocation230_spill] sm:$0xff] %v6143_v48  ;;  %v6150_v12 = vpop.eup %3190  ;;  %vm948_vm4 = vcmp.eq.f32.partialorder %v10121_v3, %v10077_v0  ;;  %v6183_v20 = vmul.f32 1.442695, %v10134_v45  ;;  %v10136_v42 = vld [vmem:[#allocation264_spill] sm:$0xff]  ;;  %v10140_v38 = vld [vmem:[#allocation38_spill] sm:$0xff]  ;;  %v2340_v45 = vadd.f32 %v5751_v44, %v5683_v21  ;;  %3220 = vpow2.f32 %v5727_v11 }
 0x1e2   :  { %10119 = vst [vmem:[#allocation22_spill] sm:$0xff] %v6148_v27  ;;  %10120 = vst [vmem:[#allocation257_spill] sm:$0xff] %v6150_v12  ;;  %v6168_v27 = vmul.f32 1.442695, %v10128_v7  ;;  %v6170_v48 = vpop.eup %3192  ;;  %v10137_v7 = vsub.f32 %v10136_v42, %v5230_v8  ;;  %vm950_vm6 = vcmp.eq.f32.partialorder %v10140_v38, %v10100_v58  ;;  %v6198_v50 = vmul.f32 1.442695, %v10142_v6 }
 0x1e3   :  { %10126 = vst [vmem:[#allocation24_spill] sm:$0xff] %v6163_v22  ;;  %10130 = vst [vmem:[#allocation245_spill] sm:$0xff] %v6170_v48  ;;  %v6190_v22 = vpop.eup %3194  ;;  %v2414_v6 = vadd.f32 %v5785_v41, %v5717_v19  ;;  %v10148_v21 = vld [vmem:[#allocation16_spill] sm:$0xff]  ;;  %v10149_v44 = vld [vmem:[#allocation281_spill] sm:$0xff]  ;;  %3222 = vpow2.f32 %v5732_v16 }
 0x1e4   :  { %10129 = vst [vmem:[#allocation261_spill] sm:$0xff] %v6168_v27  ;;  %10135 = vst [vmem:[#allocation246_spill] sm:$0xff] %v6183_v20  ;;  %v6188_v27 = vmul.f32 1.442695, %v10137_v7  ;;  %v6204_v42 = vpop.eup %3196  ;;  %v10144_v7 = vld [vmem:[#allocation40_spill] sm:$0xff]  ;;  %vm952_vm8 = vcmp.eq.f32.partialorder %v10148_v21, %v10077_v0  ;;  %v10150_v15 = vsub.f32 %v10149_v44, %v5251_v32  ;;  %v10152_v19 = vld [vmem:[#allocation17_spill] sm:$0xff]  ;;  %v2378_v32 = vadd.f32 %v5836_v55, %v2377_v43 }
 0x1e5   :  { %10139 = vst [vmem:[#allocation247_spill] sm:$0xff] %v6190_v22  ;;  %10143 = vst [vmem:[#allocation33_spill] sm:$0xff] %v6204_v42  ;;  %vm951_vm7 = vcmp.eq.f32.partialorder %v10144_v7, %v10111_v40  ;;  %v6218_v23 = vpop.eup %3198  ;;  %vm953_vm9 = vcmp.eq.f32.partialorder %v10152_v19, %v10089_v46  ;;  %v10153_v41 = vld [vmem:[#allocation274_spill] sm:$0xff]  ;;  %v2415_v44 = vadd.f32 %v5854_v5, %v2414_v6  ;;  %v10162_v43 = vld [vmem:[#allocation19_spill] sm:$0xff]  ;;  %3224 = vpow2.f32 %v5739_v56 }
 0x1e6   :  { %10138 = vst [vmem:[#allocation25_spill] sm:$0xff] %v6188_v27  ;;  %v10145_v27 = vld [vmem:[#allocation280_spill] sm:$0xff]  ;;  %10147 = vst [vmem:[#allocation271_spill] sm:$0xff] %v6218_v23  ;;  %v6226_v24 = vmul.f32 1.442695, %v10150_v15  ;;  %v10154_v39 = vsub.f32 %v10153_v41, %v5230_v8  ;;  %vm955_vm11 = vcmp.eq.f32.partialorder %v10162_v43, %v10111_v40  ;;  %v2379_v6 = vadd.f32 %v5908_v9, %v2378_v32 }
 0x1e7   :  { %v10146_v62 = vsub.f32 %v10145_v27, %v5243_v36  ;;  %v2304_v36 = vadd.f32 %v5802_v61, %v2303_v2  ;;  %v2341_v27 = vadd.f32 %v5819_v33, %v2340_v45  ;;  %v10157_v2 = vld [vmem:[#allocation18_spill] sm:$0xff]  ;;  %v10158_v45 = vld [vmem:[#allocation275_spill] sm:$0xff]  ;;  %v2416_v16 = vadd.f32 %v5926_v14, %v2415_v44  ;;  %v10163_v5 = vld [vmem:[#allocation12_spill] sm:$0xff] }
 0x1e8   :  { %v6238_v34 = vmul.f32 1.442695, %v10154_v39  ;;  %vm954_vm10 = vcmp.eq.f32.partialorder %v10157_v2, %v10100_v58  ;;  %v10159_v53 = vsub.f32 %v10158_v45, %v5241_v63  ;;  %v6265_v63 = vsel %vm944_vm0, %v10163_v5, 256  ;;  %v10167_v44 = vld [vmem:[#allocation27_spill] sm:$0xff]  ;;  %v10192_v55 = vld [vmem:[#allocation72_spill] sm:$0xff] }
 0x1e9   :  { %v6212_v20 = vmul.f32 1.442695, %v10146_v62  ;;  %v6230_v62 = vpop.eup %3200  ;;  %v2305_v8 = vadd.f32 %v5872_v10, %v2304_v36  ;;  %v2342_v39 = vadd.f32 %v5890_v30, %v2341_v27  ;;  %v10165_v36 = vld [vmem:[#allocation26_spill] sm:$0xff]  ;;  %3226 = vpow2.f32 %v5744_v28  ;;  %v10204_v33 = vld [vmem:[#allocation96_spill] sm:$0xff] }
 0x1ea   :  { %10151 = vst [vmem:[#allocation272_spill] sm:$0xff] %v6230_v62  ;;  %10155 = vst [vmem:[#allocation34_spill] sm:$0xff] %v6238_v34  ;;  %v6242_v15 = vpop.eup %3202  ;;  %v6250_v11 = vmul.f32 1.442695, %v10159_v53  ;;  %vm956_vm12 = vcmp.eq.f32.partialorder %v10165_v36, %v10077_v0  ;;  %v6278_v32 = vsel %vm945_vm1, %v10163_v5, 256  ;;  %vm957_vm13 = vcmp.eq.f32.partialorder %v10167_v44, %v10089_v46  ;;  %v10213_v61 = vld [vmem:[#allocation84_spill] sm:$0xff] }
 0x1eb   :  { %10156 = vst [vmem:[#allocation270_spill] sm:$0xff] %v6242_v15  ;;  %v6254_v41 = vpop.eup %3204  ;;  %v2306_v27 = vadd.f32 %v5944_v49, %v2305_v8  ;;  %v2343_v56 = vadd.f32 %v5962_v35, %v2342_v39  ;;  %3228 = vpow2.f32 %v5749_v60  ;;  %v2380_v45 = vadd.f32 %v5980_v52, %v2379_v6  ;;  %v10169_v39 = vld [vmem:[#allocation30_spill] sm:$0xff]  ;;  %v10209_v35 = vld [vmem:[#allocation83_spill] sm:$0xff]  ;;  %v10227_v34 = vld [vmem:[#allocation112_spill] sm:$0xff] }
 0x1ec   :  { %10160 = vst [vmem:[#allocation264_spill] sm:$0xff] %v6250_v11  ;;  %10161 = vst [vmem:[#allocation38_spill] sm:$0xff] %v6254_v41  ;;  %v6267_v53 = vpop.eup %3206  ;;  %v2417_v28 = vadd.f32 %v5998_v59, %v2416_v16  ;;  %v6291_v8 = vsel %vm946_vm2, %v10163_v5, 256  ;;  %vm958_vm14 = vcmp.eq.f32.partialorder %v10169_v39, %v10100_v58  ;;  %3230 = vpow2.f32 %v5756_v51  ;;  %v10171_v16 = vld [vmem:[#allocation31_spill] sm:$0xff]  ;;  %v10196_v59 = vld [vmem:[#allocation92_spill] sm:$0xff] }
 0x1ed   :  { %10164 = vst [vmem:[#allocation265_spill] sm:$0xff] %v6267_v53  ;;  %v6280_v1 = vpop.eup %3208  ;;  %v2307_v14 = vadd.f32 %v6016_v25, %v2306_v27  ;;  %v2344_v60 = vadd.f32 %v6034_v47, %v2343_v56  ;;  %v6304_v6 = vsel %vm947_vm3, %v10163_v5, 256  ;;  %vm959_vm15 = vcmp.eq.f32.partialorder %v10171_v16, %v10111_v40  ;;  %v10172_v27 = vld [vmem:[#allocation282_spill] sm:$0xff]  ;;  %v10174_v5 = vld [vmem:[#allocation43_spill] sm:$0xff]  ;;  %v10175_v47 = vld [vmem:[#allocation76_spill] sm:$0xff] }
 0x1ee   :  { %10166 = vst [vmem:[#allocation40_spill] sm:$0xff] %v6280_v1  ;;  %v6293_v18 = vpop.eup %3210  ;;  %3232 = vpow2.f32 %v5761_v26  ;;  %v2381_v9 = vadd.f32 %v6052_v4, %v2380_v45  ;;  %v2418_v51 = vadd.f32 %v6070_v54, %v2417_v28  ;;  %v6317_v56 = vsel %vm948_vm4, %v10172_v27, 256  ;;  %v10176_v25 = vld [vmem:[#allocation211_spill] sm:$0xff]  ;;  %v10177_v26 = vld [vmem:[#allocation240_spill] sm:$0xff]  ;;  %v10180_v54 = vld [vmem:[#allocation78_spill] sm:$0xff] }
 0x1ef   :  { %10168 = vst [vmem:[#allocation280_spill] sm:$0xff] %v6293_v18  ;;  %v6306_v17 = vpop.eup %3212  ;;  %vm960_vm0 = vcmp.eq.f32.partialorder %v10174_v5, %v10077_v0  ;;  %3234 = vpow2.f32 %v10175_v47  ;;  %v2308_v30 = vadd.f32 %v10176_v25, %v2307_v14  ;;  %v2345_v10 = vadd.f32 %v10177_v26, %v2344_v60  ;;  %v10179_v28 = vld [vmem:[#allocation44_spill] sm:$0xff]  ;;  %v10182_v60 = vld [vmem:[#allocation45_spill] sm:$0xff]  ;;  %v10200_v52 = vld [vmem:[#allocation94_spill] sm:$0xff] }
 0x1f0   :  { %10170 = vst [vmem:[#allocation16_spill] sm:$0xff] %v6306_v17  ;;  %v6319_v13 = vpop.eup %3214  ;;  %v6330_v45 = vsel %vm949_vm5, %v10172_v27, 256  ;;  %vm961_vm1 = vcmp.eq.f32.partialorder %v10179_v28, %v10089_v46  ;;  %3236 = vpow2.f32 %v10180_v54  ;;  %v2382_v4 = vadd.f32 %v6130_v57, %v2381_v9  ;;  %v10183_v26 = vld [vmem:[#allocation65_spill] sm:$0xff]  ;;  %v10187_v57 = vld [vmem:[#allocation66_spill] sm:$0xff]  ;;  %v10221_v11 = vld [vmem:[#allocation111_spill] sm:$0xff] }
 0x1f1   :  { %10173 = vst [vmem:[#allocation281_spill] sm:$0xff] %v6319_v13  ;;  %v6332_v3 = vpop.eup %3216  ;;  %v2419_v47 = vadd.f32 %v6150_v12, %v2418_v51  ;;  %v6343_v14 = vsel %vm950_vm6, %v10172_v27, 256  ;;  %vm962_vm2 = vcmp.eq.f32.partialorder %v10182_v60, %v10100_v58  ;;  %3238 = vpow2.f32 %v10183_v26  ;;  %v10185_v51 = vld [vmem:[#allocation47_spill] sm:$0xff]  ;;  %v10186_v12 = vld [vmem:[#allocation32_spill] sm:$0xff]  ;;  %v10217_v49 = vld [vmem:[#allocation86_spill] sm:$0xff] }
 0x1f2   :  { %10178 = vst [vmem:[#allocation17_spill] sm:$0xff] %v6332_v3  ;;  %v6345_v29 = vpop.eup %3218  ;;  %v2309_v25 = vadd.f32 %v6170_v48, %v2308_v30  ;;  %v2346_v54 = vadd.f32 %v6190_v22, %v2345_v10  ;;  %v6356_v9 = vsel %vm951_vm7, %v10172_v27, 256  ;;  %vm963_vm3 = vcmp.eq.f32.partialorder %v10185_v51, %v10111_v40  ;;  %v10188_v26 = vld [vmem:[#allocation28_spill] sm:$0xff]  ;;  %v10190_v22 = vld [vmem:[#allocation35_spill] sm:$0xff] }
 0x1f3   :  { %10181 = vst [vmem:[#allocation274_spill] sm:$0xff] %v6345_v29  ;;  %v6358_v38 = vpop.eup %3220  ;;  %vm964_vm4 = vcmp.eq.f32.partialorder %v10186_v12, %v10077_v0  ;;  %3240 = vpow2.f32 %v10187_v57  ;;  %v2383_v30 = vadd.f32 %v6204_v42, %v2382_v4  ;;  %v2420_v10 = vadd.f32 %v6218_v23, %v2419_v47  ;;  %v10191_v48 = vld [vmem:[#allocation36_spill] sm:$0xff]  ;;  %v10194_v23 = vld [vmem:[#allocation39_spill] sm:$0xff]  ;;  %v10195_v42 = vld [vmem:[#allocation61_spill] sm:$0xff] }
 0x1f4   :  { %10184 = vst [vmem:[#allocation18_spill] sm:$0xff] %v6358_v38  ;;  %v6371_v7 = vsel %vm952_vm8, %v10188_v26, 256  ;;  %v6373_v27 = vpop.eup %3222  ;;  %vm965_vm5 = vcmp.eq.f32.partialorder %v10190_v22, %v10089_v46  ;;  %vm966_vm6 = vcmp.eq.f32.partialorder %v10191_v48, %v10100_v58  ;;  %3242 = vpow2.f32 %v10192_v55  ;;  %v10238_v60 = vld [vmem:[#allocation283_spill] sm:$0xff]  ;;  %v10251_v48 = vld [vmem:[#allocation286_spill] sm:$0xff] }
 0x1f5   :  { %10189 = vst [vmem:[#allocation275_spill] sm:$0xff] %v6373_v27  ;;  %v2310_v4 = vadd.f32 %v6230_v62, %v2309_v25  ;;  %v2347_v57 = vadd.f32 %v6242_v15, %v2346_v54  ;;  %v6386_v21 = vsel %vm953_vm9, %v10188_v26, 256  ;;  %v6388_v47 = vpop.eup %3224  ;;  %vm967_vm7 = vcmp.eq.f32.partialorder %v10194_v23, %v10111_v40  ;;  %v10198_v15 = vld [vmem:[#allocation62_spill] sm:$0xff]  ;;  %v10199_v62 = vld [vmem:[#allocation63_spill] sm:$0xff] }
 0x1f6   :  { %10193 = vst [vmem:[#allocation19_spill] sm:$0xff] %v6388_v47  ;;  %3244 = vpow2.f32 %v10196_v59  ;;  %v2384_v55 = vadd.f32 %v6254_v41, %v2383_v30  ;;  %v2421_v25 = vadd.f32 %v6267_v53, %v2420_v10  ;;  %v6401_v19 = vsel %vm954_vm10, %v10188_v26, 256  ;;  %v6403_v54 = vpop.eup %3226  ;;  %v10202_v53 = vld [vmem:[#allocation64_spill] sm:$0xff]  ;;  %v10203_v41 = vld [vmem:[#allocation49_spill] sm:$0xff] }
 0x1f7   :  { %10197 = vst [vmem:[#allocation26_spill] sm:$0xff] %v6403_v54  ;;  %vm969_vm9 = vcmp.eq.f32.partialorder %v10198_v15, %v10089_v46  ;;  %3246 = vpow2.f32 %v10200_v52  ;;  %v2311_v59 = vadd.f32 %v6280_v1, %v2310_v4  ;;  %v2348_v30 = vadd.f32 %v6293_v18, %v2347_v57  ;;  %v6418_v10 = vpop.eup %3228  ;;  %v10205_v57 = vld [vmem:[#allocation29_spill] sm:$0xff]  ;;  %v10207_v18 = vld [vmem:[#allocation50_spill] sm:$0xff]  ;;  %v10208_v1 = vld [vmem:[#allocation55_spill] sm:$0xff] }
 0x1f8   :  { %v6416_v2 = vsel %vm955_vm11, %v10188_v26, 256  ;;  %10201 = vst [vmem:[#allocation27_spill] sm:$0xff] %v6418_v10  ;;  %vm971_vm10 = vcmp.eq.f32.partialorder %v10202_v53, %v10111_v40  ;;  %3248 = vpow2.f32 %v10204_v33  ;;  %v2385_v52 = vadd.f32 %v6306_v17, %v2384_v55  ;;  %v6433_v26 = vpop.eup %3230  ;;  %v10212_v17 = vld [vmem:[#allocation79_spill] sm:$0xff] }
 0x1f9   :  { %v2422_v4 = vadd.f32 %v6319_v13, %v2421_v25  ;;  %v6431_v43 = vsel %vm956_vm12, %v10205_v57, 256  ;;  %10206 = vst [vmem:[#allocation30_spill] sm:$0xff] %v6433_v26  ;;  %vm973_vm11 = vcmp.eq.f32.partialorder %v10207_v18, %v10089_v46  ;;  %3250 = vpow2.f32 %v10209_v35  ;;  %v6448_v25 = vpop.eup %3232  ;;  %v10211_v13 = vld [vmem:[#allocation56_spill] sm:$0xff] }
 0x1fa   :  { %v2312_v33 = vadd.f32 %v6332_v3, %v2311_v59  ;;  %v2349_v55 = vadd.f32 %v6345_v29, %v2348_v30  ;;  %v6446_v36 = vsel %vm957_vm13, %v10205_v57, 256  ;;  %10210 = vst [vmem:[#allocation31_spill] sm:$0xff] %v6448_v25  ;;  %vm975_vm12 = vcmp.eq.f32.partialorder %v10211_v13, %v10111_v40  ;;  %v6463_v30 = vpop.eup %3234  ;;  %v10215_v29 = vld [vmem:[#allocation80_spill] sm:$0xff]  ;;  %v10216_v3 = vld [vmem:[#allocation81_spill] sm:$0xff] }
 0x1fb   :  { %3252 = vpow2.f32 %v10213_v61  ;;  %v2386_v35 = vadd.f32 %v6358_v38, %v2385_v52  ;;  %v2423_v59 = vadd.f32 %v6373_v27, %v2422_v4  ;;  %v6461_v44 = vsel %vm958_vm14, %v10205_v57, 256  ;;  %10214 = vst [vmem:[#allocation282_spill] sm:$0xff] %v6463_v30  ;;  %v6478_v4 = vpop.eup %3236  ;;  %v10219_v27 = vld [vmem:[#allocation82_spill] sm:$0xff]  ;;  %v10220_v38 = vld [vmem:[#allocation67_spill] sm:$0xff] }
 0x1fc   :  { %vm977_vm13 = vcmp.eq.f32.partialorder %v10215_v29, %v10089_v46  ;;  %3254 = vpow2.f32 %v10217_v49  ;;  %v2313_v61 = vadd.f32 %v6388_v47, %v2312_v33  ;;  %v2350_v52 = vadd.f32 %v6403_v54, %v2349_v55  ;;  %10218 = vst [vmem:[#allocation43_spill] sm:$0xff] %v6478_v4  ;;  %v10222_v55 = vld [vmem:[#allocation284_spill] sm:$0xff]  ;;  %v10226_v47 = vld [vmem:[#allocation69_spill] sm:$0xff] }
 0x1fd   :  { %v6476_v39 = vsel %vm959_vm15, %v10205_v57, 256  ;;  %vm979_vm14 = vcmp.eq.f32.partialorder %v10219_v27, %v10111_v40  ;;  %3256 = vpow2.f32 %v10221_v11  ;;  %v2387_v49 = vadd.f32 %v6418_v10, %v2386_v35  ;;  %v6493_v57 = vpop.eup %3238  ;;  %v10225_v54 = vld [vmem:[#allocation68_spill] sm:$0xff]  ;;  %v10231_v10 = vld [vmem:[#allocation97_spill] sm:$0xff] }
 0x1fe   :  { %v2424_v33 = vadd.f32 %v6433_v26, %v2423_v59  ;;  %v6491_v16 = vsel %vm960_vm0, %v10222_v55, 256  ;;  %10224 = vst [vmem:[#allocation44_spill] sm:$0xff] %v6493_v57  ;;  %vm981_vm15 = vcmp.eq.f32.partialorder %v10225_v54, %v10089_v46  ;;  %3258 = vpow2.f32 %v10227_v34  ;;  %v6508_v59 = vpop.eup %3240  ;;  %v10230_v26 = vld [vmem:[#allocation70_spill] sm:$0xff] }
 0x1ff   :  { %10223 = vst [vmem:[#allocation76_spill] sm:$0xff] %v6491_v16  ;;  %v2314_v11 = vadd.f32 %v6448_v25, %v2313_v61  ;;  %v2351_v35 = vadd.f32 %v6463_v30, %v2350_v52  ;;  %v6506_v5 = vsel %vm961_vm1, %v10222_v55, 256  ;;  %10229 = vst [vmem:[#allocation45_spill] sm:$0xff] %v6508_v59  ;;  %vm983_vm0 = vcmp.eq.f32.partialorder %v10230_v26, %v10111_v40  ;;  %v10232_v16 = vld [vmem:[#allocation248_spill] sm:$0xff]  ;;  %v6523_v52 = vpop.eup %3242  ;;  %v10234_v30 = vld [vmem:[#allocation98_spill] sm:$0xff] }
 0x200   :  { %10228 = vst [vmem:[#allocation78_spill] sm:$0xff] %v6506_v5  ;;  %3260 = vpow2.f32 %v10232_v16  ;;  %v2388_v34 = vadd.f32 %v6478_v4, %v2387_v49  ;;  %v2425_v61 = vadd.f32 %v6493_v57, %v2424_v33  ;;  %v6521_v28 = vsel %vm962_vm2, %v10222_v55, 256  ;;  %10233 = vst [vmem:[#allocation65_spill] sm:$0xff] %v6523_v52  ;;  %v10235_v25 = vld [vmem:[#allocation99_spill] sm:$0xff]  ;;  %v10236_v5 = vld [vmem:[#allocation278_spill] sm:$0xff]  ;;  %v6543_v57 = vpop.eup %3244 }
 0x201   :  { %vm985_vm1 = vcmp.eq.f32.partialorder %v10234_v30, %v10089_v46  ;;  %3262 = vpow2.f32 %v10236_v5  ;;  %v2315_v49 = vadd.f32 %v6508_v59, %v2314_v11  ;;  %v6535_v33 = vsel %vm963_vm3, %v10222_v55, 256  ;;  %10240 = vst [vmem:[#allocation66_spill] sm:$0xff] %v6543_v57  ;;  %v10241_v4 = vld [vmem:[#allocation100_spill] sm:$0xff]  ;;  %v10242_v5 = vld [vmem:[#allocation87_spill] sm:$0xff]  ;;  %v10243_v11 = vld [vmem:[#allocation269_spill] sm:$0xff]  ;;  %v6563_v59 = vpop.eup %3246 }
 0x202   :  { %10237 = vst [vmem:[#allocation47_spill] sm:$0xff] %v6535_v33  ;;  %v6541_v16 = vsel %vm964_vm4, %v10238_v60, 256  ;;  %vm987_vm2 = vcmp.eq.f32.partialorder %v10241_v4, %v10111_v40  ;;  %vm988_vm8 = vcmp.eq.f32.partialorder %v10242_v5, %v10077_v0  ;;  %3264 = vpow2.f32 %v10243_v11  ;;  %10246 = vst [vmem:[#allocation36_spill] sm:$0xff] %v6563_v59  ;;  %v10248_v11 = vld [vmem:[#allocation89_spill] sm:$0xff]  ;;  %v10255_v33 = vld [vmem:[#allocation90_spill] sm:$0xff] }
 0x203   :  { %10239 = vst [vmem:[#allocation32_spill] sm:$0xff] %v6541_v16  ;;  %v2352_v51 = vadd.f32 %v6523_v52, %v2351_v35  ;;  %v6555_v55 = vsel %vm965_vm5, %v10238_v60, 256  ;;  %v6561_v12 = vsel %vm966_vm6, %v10238_v60, 256  ;;  %v10247_v16 = vld [vmem:[#allocation88_spill] sm:$0xff]  ;;  %v10249_v35 = vld [vmem:[#allocation114_spill] sm:$0xff]  ;;  %v2389_v22 = vadd.f32 %v6543_v57, %v2388_v34  ;;  %v10257_v34 = vld [vmem:[#allocation101_spill] sm:$0xff] }
 0x204   :  { %10244 = vst [vmem:[#allocation28_spill] sm:$0xff] %v6555_v55  ;;  %10245 = vst [vmem:[#allocation35_spill] sm:$0xff] %v6561_v12  ;;  %vm989_vm3 = vcmp.eq.f32.partialorder %v10247_v16, %v10089_v46  ;;  %3266 = vpow2.f32 %v10249_v35  ;;  %v6575_v52 = vsel %vm967_vm7, %v10238_v60, 256  ;;  %vm10252_vm5 = vcmp.eq.f32.partialorder %v10195_v42, %v10077_v0  ;;  %v6583_v55 = vpop.eup %3248  ;;  %v10256_v35 = vld [vmem:[#allocation115_spill] sm:$0xff] }
 0x205   :  { %10250 = vst [vmem:[#allocation72_spill] sm:$0xff] %v6575_v52  ;;  %v6581_v12 = vsel %vm10252_vm5, %v10251_v48, 256  ;;  %10254 = vst [vmem:[#allocation61_spill] sm:$0xff] %v6583_v55  ;;  %vm991_vm6 = vcmp.eq.f32.partialorder %v10255_v33, %v10111_v40  ;;  %3268 = vpow2.f32 %v10257_v34  ;;  %v2426_v23 = vadd.f32 %v6563_v59, %v2425_v61  ;;  %v6603_v57 = vpop.eup %3250  ;;  %v10263_v34 = vld [vmem:[#allocation117_spill] sm:$0xff]  ;;  %v10264_v61 = vld [vmem:[#allocation102_spill] sm:$0xff] }
 0x206   :  { %10253 = vst [vmem:[#allocation39_spill] sm:$0xff] %v6581_v12  ;;  %v6595_v60 = vsel %vm969_vm9, %v10251_v48, 256  ;;  %vm10259_vm7 = vcmp.eq.f32.partialorder %v10199_v62, %v10100_v58  ;;  %10261 = vst [vmem:[#allocation63_spill] sm:$0xff] %v6603_v57  ;;  %v10262_v12 = vld [vmem:[#allocation116_spill] sm:$0xff]  ;;  %3270 = vpow2.f32 %v10264_v61  ;;  %v2316_v15 = vadd.f32 %v6583_v55, %v2315_v49  ;;  %v10266_v62 = vld [vmem:[#allocation285_spill] sm:$0xff] }
 0x207   :  { %10258 = vst [vmem:[#allocation92_spill] sm:$0xff] %v6595_v60  ;;  %v6601_v42 = vsel %vm10259_vm7, %v10251_v48, 256  ;;  %vm993_vm5 = vcmp.eq.f32.partialorder %v10262_v12, %v10089_v46  ;;  %v6615_v59 = vsel %vm971_vm10, %v10251_v48, 256  ;;  %vm10267_vm9 = vcmp.eq.f32.partialorder %v10203_v41, %v10077_v0  ;;  %v6623_v60 = vpop.eup %3252  ;;  %v10270_v52 = vld [vmem:[#allocation118_spill] sm:$0xff]  ;;  %v10271_v61 = vld [vmem:[#allocation105_spill] sm:$0xff]  ;;  %v10272_v49 = vld [vmem:[#allocation104_spill] sm:$0xff] }
 0x208   :  { %10260 = vst [vmem:[#allocation62_spill] sm:$0xff] %v6601_v42  ;;  %10265 = vst [vmem:[#allocation94_spill] sm:$0xff] %v6615_v59  ;;  %v6621_v42 = vsel %vm10267_vm9, %v10266_v62, 256  ;;  %vm995_vm7 = vcmp.eq.f32.partialorder %v10270_v52, %v10111_v40  ;;  %3272 = vpow2.f32 %v10272_v49  ;;  %v2353_v53 = vadd.f32 %v6603_v57, %v2352_v51  ;;  %v6643_v55 = vpop.eup %3254  ;;  %v10278_v49 = vld [vmem:[#allocation107_spill] sm:$0xff]  ;;  %v10279_v51 = vld [vmem:[#allocation129_spill] sm:$0xff] }
 0x209   :  { %10268 = vst [vmem:[#allocation64_spill] sm:$0xff] %v6621_v42  ;;  %10269 = vst [vmem:[#allocation49_spill] sm:$0xff] %v6623_v60  ;;  %v6635_v48 = vsel %vm973_vm11, %v10266_v62, 256  ;;  %vm10274_vm10 = vcmp.eq.f32.partialorder %v10208_v1, %v10100_v58  ;;  %v10277_v42 = vld [vmem:[#allocation106_spill] sm:$0xff]  ;;  %3274 = vpow2.f32 %v10279_v51  ;;  %v2390_v18 = vadd.f32 %v6623_v60, %v2389_v22  ;;  %v10281_v1 = vld [vmem:[#allocation288_spill] sm:$0xff] }
 0x20a   :  { %10273 = vst [vmem:[#allocation96_spill] sm:$0xff] %v6635_v48  ;;  %v6641_v41 = vsel %vm10274_vm10, %v10266_v62, 256  ;;  %10276 = vst [vmem:[#allocation50_spill] sm:$0xff] %v6643_v55  ;;  %vm997_vm9 = vcmp.eq.f32.partialorder %v10277_v42, %v10089_v46  ;;  %v6655_v57 = vsel %vm975_vm12, %v10266_v62, 256  ;;  %vm10282_vm11 = vcmp.eq.f32.partialorder %v10212_v17, %v10077_v0  ;;  %v6663_v48 = vpop.eup %3256  ;;  %v10285_v59 = vld [vmem:[#allocation108_spill] sm:$0xff]  ;;  %v10286_v51 = vld [vmem:[#allocation133_spill] sm:$0xff] }
 0x20b   :  { %10275 = vst [vmem:[#allocation29_spill] sm:$0xff] %v6641_v41  ;;  %10280 = vst [vmem:[#allocation55_spill] sm:$0xff] %v6655_v57  ;;  %v6661_v41 = vsel %vm10282_vm11, %v10281_v1, 256  ;;  %vm999_vm10 = vcmp.eq.f32.partialorder %v10285_v59, %v10111_v40  ;;  %v10287_v22 = vld [vmem:[#allocation130_spill] sm:$0xff]  ;;  %v2427_v13 = vadd.f32 %v6643_v55, %v2426_v23  ;;  %v6675_v62 = vsel %vm977_vm13, %v10281_v1, 256  ;;  %v6683_v60 = vpop.eup %3258  ;;  %v10294_v23 = vld [vmem:[#allocation132_spill] sm:$0xff] }
 0x20c   :  { %10283 = vst [vmem:[#allocation83_spill] sm:$0xff] %v6661_v41  ;;  %10284 = vst [vmem:[#allocation56_spill] sm:$0xff] %v6663_v48  ;;  %3276 = vpow2.f32 %v10287_v22  ;;  %vm10289_vm12 = vcmp.eq.f32.partialorder %v10216_v3, %v10100_v58  ;;  %v10292_v41 = vld [vmem:[#allocation134_spill] sm:$0xff]  ;;  %v10293_v22 = vld [vmem:[#allocation136_spill] sm:$0xff]  ;;  %v2317_v29 = vadd.f32 %v6663_v48, %v2316_v15  ;;  %v6695_v55 = vsel %vm979_vm14, %v10281_v1, 256 }
 0x20d   :  { %10288 = vst [vmem:[#allocation79_spill] sm:$0xff] %v6675_v62  ;;  %v6681_v17 = vsel %vm10289_vm12, %v10281_v1, 256  ;;  %10291 = vst [vmem:[#allocation80_spill] sm:$0xff] %v6683_v60  ;;  %vm1001_vm11 = vcmp.eq.f32.partialorder %v10292_v41, %v10089_v46  ;;  %3278 = vpow2.f32 %v10294_v23  ;;  %v10296_v3 = vld [vmem:[#allocation287_spill] sm:$0xff]  ;;  %vm10297_vm13 = vcmp.eq.f32.partialorder %v10220_v38, %v10077_v0  ;;  %v6703_v62 = vpop.eup %3260  ;;  %v10300_v57 = vld [vmem:[#allocation137_spill] sm:$0xff] }
 0x20e   :  { %10290 = vst [vmem:[#allocation84_spill] sm:$0xff] %v6681_v17  ;;  %10295 = vst [vmem:[#allocation81_spill] sm:$0xff] %v6695_v55  ;;  %v6701_v17 = vsel %vm10297_vm13, %v10296_v3, 256  ;;  %vm1003_vm12 = vcmp.eq.f32.partialorder %v10300_v57, %v10111_v40  ;;  %v10301_v23 = vld [vmem:[#allocation123_spill] sm:$0xff]  ;;  %v2354_v27 = vadd.f32 %v6683_v60, %v2353_v53  ;;  %v6715_v1 = vsel %vm981_vm15, %v10296_v3, 256  ;;  %v6723_v48 = vpop.eup %3262  ;;  %v10309_v53 = vld [vmem:[#allocation120_spill] sm:$0xff] }
 0x20f   :  { %10298 = vst [vmem:[#allocation86_spill] sm:$0xff] %v6701_v17  ;;  %10299 = vst [vmem:[#allocation82_spill] sm:$0xff] %v6703_v62  ;;  %v10302_v15 = vld [vmem:[#allocation119_spill] sm:$0xff]  ;;  %vm10304_vm14 = vcmp.eq.f32.partialorder %v10226_v47, %v10100_v58  ;;  %v10307_v17 = vld [vmem:[#allocation124_spill] sm:$0xff]  ;;  %v2391_v54 = vadd.f32 %v6703_v62, %v2390_v18  ;;  %v6735_v60 = vsel %vm983_vm0, %v10296_v3, 256  ;;  %vm10312_vm15 = vcmp.eq.f32.partialorder %v10231_v10, %v10077_v0 }
 0x210   :  { %3280 = vpow2.f32 %v10302_v15  ;;  %10303 = vst [vmem:[#allocation67_spill] sm:$0xff] %v6715_v1  ;;  %v6721_v38 = vsel %vm10304_vm14, %v10296_v3, 256  ;;  %10306 = vst [vmem:[#allocation284_spill] sm:$0xff] %v6723_v48  ;;  %vm1005_vm13 = vcmp.eq.f32.partialorder %v10307_v17, %v10089_v46  ;;  %v10308_v15 = vld [vmem:[#allocation125_spill] sm:$0xff]  ;;  %v10311_v47 = vld [vmem:[#allocation290_spill] sm:$0xff]  ;;  %v6743_v1 = vpop.eup %3264  ;;  %v2428_v26 = vadd.f32 %v6723_v48, %v2427_v13 }
 0x211   :  { %10305 = vst [vmem:[#allocation111_spill] sm:$0xff] %v6721_v38  ;;  %3282 = vpow2.f32 %v10309_v53  ;;  %10310 = vst [vmem:[#allocation68_spill] sm:$0xff] %v6735_v60  ;;  %v6741_v38 = vsel %vm10312_vm15, %v10311_v47, 256  ;;  %v10315_v55 = vld [vmem:[#allocation126_spill] sm:$0xff]  ;;  %v10316_v53 = vld [vmem:[#allocation151_spill] sm:$0xff]  ;;  %v6755_v3 = vsel %vm985_vm1, %v10311_v47, 256  ;;  %vm10319_vm0 = vcmp.eq.f32.partialorder %v10235_v25, %v10100_v58  ;;  %v6763_v62 = vpop.eup %3266 }
 0x212   :  { %10313 = vst [vmem:[#allocation69_spill] sm:$0xff] %v6741_v38  ;;  %10314 = vst [vmem:[#allocation112_spill] sm:$0xff] %v6743_v1  ;;  %vm1007_vm14 = vcmp.eq.f32.partialorder %v10315_v55, %v10111_v40  ;;  %v10317_v18 = vld [vmem:[#allocation122_spill] sm:$0xff]  ;;  %v6761_v10 = vsel %vm10319_vm0, %v10311_v47, 256  ;;  %v10322_v38 = vld [vmem:[#allocation152_spill] sm:$0xff]  ;;  %v2318_v30 = vadd.f32 %v6743_v1, %v2317_v29  ;;  %v6775_v48 = vsel %vm987_vm2, %v10311_v47, 256 }
 0x213   :  { %3284 = vpow2.f32 %v10317_v18  ;;  %10318 = vst [vmem:[#allocation70_spill] sm:$0xff] %v6755_v3  ;;  %10320 = vst [vmem:[#allocation97_spill] sm:$0xff] %v6761_v10  ;;  %vm1009_vm15 = vcmp.eq.f32.partialorder %v10322_v38, %v10089_v46  ;;  %v10323_v18 = vld [vmem:[#allocation153_spill] sm:$0xff]  ;;  %v10324_v13 = vld [vmem:[#allocation147_spill] sm:$0xff]  ;;  %v6783_v3 = vpop.eup %3268  ;;  %v2355_v4 = vadd.f32 %v6763_v62, %v2354_v27 }
 0x214   :  { %10321 = vst [vmem:[#allocation248_spill] sm:$0xff] %v6763_v62  ;;  %vm1010_vm4 = vcmp.eq.f32.partialorder %v10323_v18, %v10100_v58  ;;  %3286 = vpow2.f32 %v10324_v13  ;;  %10325 = vst [vmem:[#allocation98_spill] sm:$0xff] %v6775_v48  ;;  %v10326_v25 = vld [vmem:[#allocation289_spill] sm:$0xff]  ;;  %v10329_v60 = vld [vmem:[#allocation154_spill] sm:$0xff]  ;;  %v6803_v1 = vpop.eup %3270  ;;  %v2392_v16 = vadd.f32 %v6783_v3, %v2391_v54 }
 0x215   :  { %v6781_v10 = vsel %vm988_vm8, %v10326_v25, 256  ;;  %10328 = vst [vmem:[#allocation278_spill] sm:$0xff] %v6783_v3  ;;  %vm1011_vm1 = vcmp.eq.f32.partialorder %v10329_v60, %v10111_v40  ;;  %v10330_v13 = vld [vmem:[#allocation141_spill] sm:$0xff]  ;;  %v10331_v29 = vld [vmem:[#allocation148_spill] sm:$0xff]  ;;  %v6795_v47 = vsel %vm989_vm3, %v10326_v25, 256  ;;  %vm10333_vm8 = vcmp.eq.f32.partialorder %v10248_v11, %v10100_v58  ;;  %10335 = vst [vmem:[#allocation87_spill] sm:$0xff] %v6803_v1 }
 0x216   :  { %10327 = vst [vmem:[#allocation99_spill] sm:$0xff] %v6781_v10  ;;  %3288 = vpow2.f32 %v10331_v29  ;;  %10332 = vst [vmem:[#allocation283_spill] sm:$0xff] %v6795_v47  ;;  %v6801_v5 = vsel %vm10333_vm8, %v10326_v25, 256  ;;  %v10336_v10 = vld [vmem:[#allocation142_spill] sm:$0xff]  ;;  %v10337_v29 = vld [vmem:[#allocation143_spill] sm:$0xff]  ;;  %v6815_v62 = vsel %vm991_vm6, %v10326_v25, 256  ;;  %vm10341_vm3 = vcmp.eq.f32.partialorder %v10256_v35, %v10077_v0  ;;  %v6823_v47 = vpop.eup %3272 }
 0x217   :  { %10334 = vst [vmem:[#allocation100_spill] sm:$0xff] %v6801_v5  ;;  %vm1013_vm2 = vcmp.eq.f32.partialorder %v10336_v10, %v10089_v46  ;;  %v10338_v27 = vld [vmem:[#allocation150_spill] sm:$0xff]  ;;  %10339 = vst [vmem:[#allocation269_spill] sm:$0xff] %v6815_v62  ;;  %v10340_v11 = vld [vmem:[#allocation292_spill] sm:$0xff]  ;;  %v2429_v33 = vadd.f32 %v6803_v1, %v2428_v26  ;;  %vm10348_vm6 = vcmp.eq.f32.partialorder %v10263_v34, %v10100_v58  ;;  %v6843_v3 = vpop.eup %3274 }
 0x218   :  { %3290 = vpow2.f32 %v10338_v27  ;;  %v6821_v5 = vsel %vm10341_vm3, %v10340_v11, 256  ;;  %10343 = vst [vmem:[#allocation89_spill] sm:$0xff] %v6823_v47  ;;  %v10344_v48 = vld [vmem:[#allocation144_spill] sm:$0xff]  ;;  %v10345_v27 = vld [vmem:[#allocation169_spill] sm:$0xff]  ;;  %v10346_v54 = vld [vmem:[#allocation135_spill] sm:$0xff]  ;;  %v6835_v25 = vsel %vm993_vm5, %v10340_v11, 256  ;;  %v2319_v12 = vadd.f32 %v6823_v47, %v2318_v30 }
 0x219   :  { %10342 = vst [vmem:[#allocation88_spill] sm:$0xff] %v6821_v5  ;;  %vm1015_vm8 = vcmp.eq.f32.partialorder %v10344_v48, %v10111_v40  ;;  %3292 = vpow2.f32 %v10346_v54  ;;  %10347 = vst [vmem:[#allocation114_spill] sm:$0xff] %v6835_v25  ;;  %v6841_v35 = vsel %vm10348_vm6, %v10340_v11, 256  ;;  %v10351_v5 = vld [vmem:[#allocation170_spill] sm:$0xff]  ;;  %v10352_v54 = vld [vmem:[#allocation171_spill] sm:$0xff]  ;;  %v6855_v1 = vsel %vm995_vm7, %v10340_v11, 256  ;;  %v6863_v25 = vpop.eup %3276 }
 0x21a   :  { %10349 = vst [vmem:[#allocation286_spill] sm:$0xff] %v6841_v35  ;;  %10350 = vst [vmem:[#allocation90_spill] sm:$0xff] %v6843_v3  ;;  %vm1017_vm3 = vcmp.eq.f32.partialorder %v10351_v5, %v10089_v46  ;;  %v10353_v26 = vld [vmem:[#allocation138_spill] sm:$0xff]  ;;  %v10355_v34 = vld [vmem:[#allocation291_spill] sm:$0xff]  ;;  %vm10356_vm5 = vcmp.eq.f32.partialorder %v10271_v61, %v10077_v0  ;;  %v2356_v52 = vadd.f32 %v6843_v3, %v2355_v4  ;;  %v6883_v47 = vpop.eup %3278 }
 0x21b   :  { %3294 = vpow2.f32 %v10353_v26  ;;  %10354 = vst [vmem:[#allocation115_spill] sm:$0xff] %v6855_v1  ;;  %v6861_v35 = vsel %vm10356_vm5, %v10355_v34, 256  ;;  %10358 = vst [vmem:[#allocation116_spill] sm:$0xff] %v6863_v25  ;;  %v10359_v62 = vld [vmem:[#allocation172_spill] sm:$0xff]  ;;  %v10360_v26 = vld [vmem:[#allocation159_spill] sm:$0xff]  ;;  %v6875_v11 = vsel %vm997_vm9, %v10355_v34, 256  ;;  %vm10363_vm7 = vcmp.eq.f32.partialorder %v10278_v49, %v10100_v58 }
 0x21c   :  { %10357 = vst [vmem:[#allocation101_spill] sm:$0xff] %v6861_v35  ;;  %vm1019_vm6 = vcmp.eq.f32.partialorder %v10359_v62, %v10111_v40  ;;  %v10361_v30 = vld [vmem:[#allocation140_spill] sm:$0xff]  ;;  %10362 = vst [vmem:[#allocation117_spill] sm:$0xff] %v6875_v11  ;;  %v6881_v61 = vsel %vm10363_vm7, %v10355_v34, 256  ;;  %v10368_v4 = vld [vmem:[#allocation165_spill] sm:$0xff]  ;;  %v2393_v42 = vadd.f32 %v6863_v25, %v2392_v16  ;;  %v6895_v3 = vsel %vm999_vm10, %v10355_v34, 256  ;;  %v6903_v11 = vpop.eup %3280 }
 0x21d   :  { %3296 = vpow2.f32 %v10361_v30  ;;  %10364 = vst [vmem:[#allocation102_spill] sm:$0xff] %v6881_v61  ;;  %10365 = vst [vmem:[#allocation285_spill] sm:$0xff] %v6883_v47  ;;  %v10366_v35 = vld [vmem:[#allocation160_spill] sm:$0xff]  ;;  %v10367_v30 = vld [vmem:[#allocation162_spill] sm:$0xff]  ;;  %vm10371_vm9 = vcmp.eq.f32.partialorder %v10286_v51, %v10077_v0  ;;  %v2430_v59 = vadd.f32 %v6883_v47, %v2429_v33  ;;  %vm10378_vm10 = vcmp.eq.f32.partialorder %v10293_v22, %v10100_v58  ;;  %v6923_v25 = vpop.eup %3282 }
 0x21e   :  { %vm1021_vm5 = vcmp.eq.f32.partialorder %v10366_v35, %v10089_v46  ;;  %3298 = vpow2.f32 %v10368_v4  ;;  %10369 = vst [vmem:[#allocation118_spill] sm:$0xff] %v6895_v3  ;;  %v10370_v49 = vld [vmem:[#allocation294_spill] sm:$0xff]  ;;  %10373 = vst [vmem:[#allocation104_spill] sm:$0xff] %v6903_v11  ;;  %v10374_v1 = vld [vmem:[#allocation163_spill] sm:$0xff]  ;;  %v2320_v41 = vadd.f32 %v6903_v11, %v2319_v12  ;;  %v2357_v57 = vadd.f32 %v6923_v25, %v2356_v52 }
 0x21f   :  { %v6901_v61 = vsel %vm10371_vm9, %v10370_v49, 256  ;;  %vm1023_vm7 = vcmp.eq.f32.partialorder %v10374_v1, %v10111_v40  ;;  %v10375_v4 = vld [vmem:[#allocation187_spill] sm:$0xff]  ;;  %v10376_v16 = vld [vmem:[#allocation166_spill] sm:$0xff]  ;;  %v6915_v34 = vsel %vm1001_vm11, %v10370_v49, 256  ;;  %v6921_v51 = vsel %vm10378_vm10, %v10370_v49, 256  ;;  %10380 = vst [vmem:[#allocation129_spill] sm:$0xff] %v6923_v25 }
 0x220   :  { %10372 = vst [vmem:[#allocation105_spill] sm:$0xff] %v6901_v61  ;;  %3300 = vpow2.f32 %v10376_v16  ;;  %10377 = vst [vmem:[#allocation106_spill] sm:$0xff] %v6915_v34  ;;  %v10381_v61 = vld [vmem:[#allocation188_spill] sm:$0xff]  ;;  %v10382_v16 = vld [vmem:[#allocation190_spill] sm:$0xff]  ;;  %v6935_v47 = vsel %vm1003_vm12, %v10370_v49, 256  ;;  %vm10386_vm11 = vcmp.eq.f32.partialorder %v10301_v23, %v10077_v0  ;;  %v6943_v34 = vpop.eup %3284  ;;  %vm10393_vm12 = vcmp.eq.f32.partialorder %v10308_v15, %v10100_v58 }
 0x221   :  { %10379 = vst [vmem:[#allocation107_spill] sm:$0xff] %v6921_v51  ;;  %vm1025_vm9 = vcmp.eq.f32.partialorder %v10381_v61, %v10089_v46  ;;  %v10383_v33 = vld [vmem:[#allocation168_spill] sm:$0xff]  ;;  %10384 = vst [vmem:[#allocation288_spill] sm:$0xff] %v6935_v47  ;;  %v10385_v22 = vld [vmem:[#allocation293_spill] sm:$0xff]  ;;  %v2394_v17 = vadd.f32 %v6943_v34, %v2393_v42 }
 0x222   :  { %3302 = vpow2.f32 %v10383_v33  ;;  %v6941_v51 = vsel %vm10386_vm11, %v10385_v22, 256  ;;  %10388 = vst [vmem:[#allocation133_spill] sm:$0xff] %v6943_v34  ;;  %v10389_v3 = vld [vmem:[#allocation194_spill] sm:$0xff]  ;;  %v10391_v12 = vld [vmem:[#allocation155_spill] sm:$0xff]  ;;  %v6955_v49 = vsel %vm1005_vm13, %v10385_v22, 256  ;;  %v6961_v23 = vsel %vm10393_vm12, %v10385_v22, 256 }
 0x223   :  { %10387 = vst [vmem:[#allocation108_spill] sm:$0xff] %v6941_v51  ;;  %vm1027_vm10 = vcmp.eq.f32.partialorder %v10389_v3, %v10111_v40  ;;  %v10390_v33 = vld [vmem:[#allocation174_spill] sm:$0xff]  ;;  %3304 = vpow2.f32 %v10391_v12  ;;  %10392 = vst [vmem:[#allocation130_spill] sm:$0xff] %v6955_v49  ;;  %v6963_v51 = vpop.eup %3286  ;;  %v10396_v47 = vld [vmem:[#allocation175_spill] sm:$0xff]  ;;  %v6975_v49 = vsel %vm1007_vm14, %v10385_v22, 256  ;;  %vm10401_vm13 = vcmp.eq.f32.partialorder %v10316_v53, %v10077_v0 }
 0x224   :  { %10394 = vst [vmem:[#allocation134_spill] sm:$0xff] %v6961_v23  ;;  %10395 = vst [vmem:[#allocation136_spill] sm:$0xff] %v6963_v51  ;;  %vm1029_vm11 = vcmp.eq.f32.partialorder %v10396_v47, %v10089_v46  ;;  %v10397_v12 = vld [vmem:[#allocation176_spill] sm:$0xff]  ;;  %v6983_v25 = vpop.eup %3288  ;;  %v10404_v11 = vld [vmem:[#allocation178_spill] sm:$0xff]  ;;  %v2431_v55 = vadd.f32 %v6963_v51, %v2430_v59 }
 0x225   :  { %v10398_v52 = vld [vmem:[#allocation156_spill] sm:$0xff]  ;;  %10399 = vst [vmem:[#allocation132_spill] sm:$0xff] %v6975_v49  ;;  %10403 = vst [vmem:[#allocation137_spill] sm:$0xff] %v6983_v25  ;;  %vm1031_vm12 = vcmp.eq.f32.partialorder %v10404_v11, %v10111_v40  ;;  %v10406_v42 = vld [vmem:[#allocation158_spill] sm:$0xff]  ;;  %v2321_v38 = vadd.f32 %v6983_v25, %v2320_v41 }
 0x226   :  { %3306 = vpow2.f32 %v10398_v52  ;;  %v10400_v15 = vld [vmem:[#allocation296_spill] sm:$0xff]  ;;  %v10410_v49 = vld [vmem:[#allocation205_spill] sm:$0xff]  ;;  %v10412_v59 = vld [vmem:[#allocation183_spill] sm:$0xff] }
 0x227   :  { %v6981_v23 = vsel %vm10401_vm13, %v10400_v15, 256  ;;  %v10405_v52 = vld [vmem:[#allocation204_spill] sm:$0xff]  ;;  %3308 = vpow2.f32 %v10406_v42  ;;  %v6995_v22 = vsel %vm1009_vm15, %v10400_v15, 256  ;;  %v7001_v53 = vsel %vm1010_vm4, %v10400_v15, 256  ;;  %v10411_v42 = vld [vmem:[#allocation206_spill] sm:$0xff]  ;;  %v10414_v18 = vld [vmem:[#allocation295_spill] sm:$0xff] }
 0x228   :  { %10402 = vst [vmem:[#allocation287_spill] sm:$0xff] %v6981_v23  ;;  %vm1032_vm0 = vcmp.eq.f32.partialorder %v10405_v52, %v10077_v0  ;;  %10407 = vst [vmem:[#allocation123_spill] sm:$0xff] %v6995_v22  ;;  %v7003_v23 = vpop.eup %3290  ;;  %vm1033_vm14 = vcmp.eq.f32.partialorder %v10410_v49, %v10089_v46  ;;  %3310 = vpow2.f32 %v10412_v59  ;;  %v7015_v22 = vsel %vm1011_vm1, %v10400_v15, 256  ;;  %v10418_v34 = vld [vmem:[#allocation208_spill] sm:$0xff]  ;;  %v10419_v59 = vld [vmem:[#allocation195_spill] sm:$0xff] }
 0x229   :  { %10408 = vst [vmem:[#allocation119_spill] sm:$0xff] %v7001_v53  ;;  %10409 = vst [vmem:[#allocation124_spill] sm:$0xff] %v7003_v23  ;;  %vm10415_vm4 = vcmp.eq.f32.partialorder %v10330_v13, %v10077_v0  ;;  %v7023_v51 = vpop.eup %3292  ;;  %vm1035_vm15 = vcmp.eq.f32.partialorder %v10418_v34, %v10111_v40  ;;  %v10420_v41 = vld [vmem:[#allocation184_spill] sm:$0xff]  ;;  %v2358_v60 = vadd.f32 %v7003_v23, %v2357_v57  ;;  %v7035_v15 = vsel %vm1013_vm2, %v10414_v18, 256  ;;  %v10427_v57 = vld [vmem:[#allocation186_spill] sm:$0xff] }
 0x22a   :  { %10413 = vst [vmem:[#allocation125_spill] sm:$0xff] %v7015_v22  ;;  %v7021_v53 = vsel %vm10415_vm4, %v10414_v18, 256  ;;  %10417 = vst [vmem:[#allocation290_spill] sm:$0xff] %v7023_v51  ;;  %3312 = vpow2.f32 %v10420_v41  ;;  %vm10422_vm1 = vcmp.eq.f32.partialorder %v10337_v29, %v10100_v58  ;;  %v10425_v22 = vld [vmem:[#allocation196_spill] sm:$0xff]  ;;  %v10426_v41 = vld [vmem:[#allocation197_spill] sm:$0xff]  ;;  %v2395_v10 = vadd.f32 %v7023_v51, %v2394_v17 }
 0x22b   :  { %10416 = vst [vmem:[#allocation120_spill] sm:$0xff] %v7021_v53  ;;  %10421 = vst [vmem:[#allocation126_spill] sm:$0xff] %v7035_v15  ;;  %v7041_v13 = vsel %vm10422_vm1, %v10414_v18, 256  ;;  %v7043_v53 = vpop.eup %3294  ;;  %vm1037_vm4 = vcmp.eq.f32.partialorder %v10425_v22, %v10089_v46  ;;  %3314 = vpow2.f32 %v10427_v57  ;;  %v7055_v15 = vsel %vm1015_vm8, %v10414_v18, 256  ;;  %v10429_v29 = vld [vmem:[#allocation298_spill] sm:$0xff]  ;;  %v10433_v25 = vld [vmem:[#allocation199_spill] sm:$0xff] }
 0x22c   :  { %10423 = vst [vmem:[#allocation151_spill] sm:$0xff] %v7041_v13  ;;  %10424 = vst [vmem:[#allocation122_spill] sm:$0xff] %v7043_v53  ;;  %vm10430_vm2 = vcmp.eq.f32.partialorder %v10345_v27, %v10077_v0  ;;  %v7063_v23 = vpop.eup %3296  ;;  %vm1039_vm1 = vcmp.eq.f32.partialorder %v10433_v25, %v10111_v40  ;;  %v10434_v57 = vld [vmem:[#allocation223_spill] sm:$0xff]  ;;  %v10435_v17 = vld [vmem:[#allocation173_spill] sm:$0xff]  ;;  %v2432_v48 = vadd.f32 %v7043_v53, %v2431_v55  ;;  %v7075_v18 = vsel %vm1017_vm3, %v10429_v29, 256 }
 0x22d   :  { %10428 = vst [vmem:[#allocation152_spill] sm:$0xff] %v7055_v15  ;;  %v7061_v13 = vsel %vm10430_vm2, %v10429_v29, 256  ;;  %10432 = vst [vmem:[#allocation147_spill] sm:$0xff] %v7063_v23  ;;  %3316 = vpow2.f32 %v10435_v17  ;;  %vm10437_vm8 = vcmp.eq.f32.partialorder %v10352_v54, %v10100_v58  ;;  %v10440_v15 = vld [vmem:[#allocation224_spill] sm:$0xff]  ;;  %v10441_v17 = vld [vmem:[#allocation225_spill] sm:$0xff]  ;;  %v2322_v5 = vadd.f32 %v7063_v23, %v2321_v38 }
 0x22e   :  { %10431 = vst [vmem:[#allocation153_spill] sm:$0xff] %v7061_v13  ;;  %10436 = vst [vmem:[#allocation289_spill] sm:$0xff] %v7075_v18  ;;  %v7081_v27 = vsel %vm10437_vm8, %v10429_v29, 256  ;;  %v7083_v13 = vpop.eup %3298  ;;  %vm1041_vm2 = vcmp.eq.f32.partialorder %v10440_v15, %v10089_v46  ;;  %v10442_v55 = vld [vmem:[#allocation177_spill] sm:$0xff]  ;;  %v7095_v18 = vsel %vm1019_vm6, %v10429_v29, 256  ;;  %vm10445_vm3 = vcmp.eq.f32.partialorder %v10360_v26, %v10077_v0  ;;  %v10448_v51 = vld [vmem:[#allocation227_spill] sm:$0xff] }
 0x22f   :  { %10438 = vst [vmem:[#allocation154_spill] sm:$0xff] %v7081_v27  ;;  %10439 = vst [vmem:[#allocation141_spill] sm:$0xff] %v7083_v13  ;;  %3318 = vpow2.f32 %v10442_v55  ;;  %v10444_v54 = vld [vmem:[#allocation297_spill] sm:$0xff]  ;;  %v7103_v53 = vpop.eup %3300  ;;  %vm1043_vm8 = vcmp.eq.f32.partialorder %v10448_v51, %v10111_v40  ;;  %v10449_v55 = vld [vmem:[#allocation212_spill] sm:$0xff]  ;;  %v2359_v62 = vadd.f32 %v7083_v13, %v2358_v60  ;;  %vm10452_vm6 = vcmp.eq.f32.partialorder %v10367_v30, %v10100_v58 }
 0x230   :  { %10443 = vst [vmem:[#allocation148_spill] sm:$0xff] %v7095_v18  ;;  %v7101_v27 = vsel %vm10445_vm3, %v10444_v54, 256  ;;  %10447 = vst [vmem:[#allocation143_spill] sm:$0xff] %v7103_v53  ;;  %v10450_v38 = vld [vmem:[#allocation180_spill] sm:$0xff]  ;;  %v7115_v29 = vsel %vm1021_vm5, %v10444_v54, 256  ;;  %v7121_v26 = vsel %vm10452_vm6, %v10444_v54, 256  ;;  %v2396_v35 = vadd.f32 %v7103_v53, %v2395_v10 }
 0x231   :  { %10446 = vst [vmem:[#allocation142_spill] sm:$0xff] %v7101_v27  ;;  %3320 = vpow2.f32 %v10450_v38  ;;  %10451 = vst [vmem:[#allocation150_spill] sm:$0xff] %v7115_v29  ;;  %v7123_v27 = vpop.eup %3302  ;;  %v10455_v18 = vld [vmem:[#allocation213_spill] sm:$0xff]  ;;  %v10456_v38 = vld [vmem:[#allocation214_spill] sm:$0xff]  ;;  %v7135_v29 = vsel %vm1023_vm7, %v10444_v54, 256  ;;  %vm10460_vm5 = vcmp.eq.f32.partialorder %v10375_v4, %v10077_v0  ;;  %vm10467_vm7 = vcmp.eq.f32.partialorder %v10382_v16, %v10100_v58 }
 0x232   :  { %10453 = vst [vmem:[#allocation292_spill] sm:$0xff] %v7121_v26  ;;  %10454 = vst [vmem:[#allocation144_spill] sm:$0xff] %v7123_v27  ;;  %vm1045_vm3 = vcmp.eq.f32.partialorder %v10455_v18, %v10089_v46  ;;  %v10457_v60 = vld [vmem:[#allocation201_spill] sm:$0xff]  ;;  %v10459_v30 = vld [vmem:[#allocation300_spill] sm:$0xff]  ;;  %v7143_v13 = vpop.eup %3304  ;;  %v2433_v1 = vadd.f32 %v7123_v27, %v2432_v48 }
 0x233   :  { %3322 = vpow2.f32 %v10457_v60  ;;  %10458 = vst [vmem:[#allocation169_spill] sm:$0xff] %v7135_v29  ;;  %v7141_v26 = vsel %vm10460_vm5, %v10459_v30, 256  ;;  %10462 = vst [vmem:[#allocation170_spill] sm:$0xff] %v7143_v13  ;;  %v10463_v23 = vld [vmem:[#allocation215_spill] sm:$0xff]  ;;  %v10464_v60 = vld [vmem:[#allocation241_spill] sm:$0xff]  ;;  %v7155_v54 = vsel %vm1025_vm9, %v10459_v30, 256  ;;  %v2323_v61 = vadd.f32 %v7143_v13, %v2322_v5 }
 0x234   :  { %10461 = vst [vmem:[#allocation135_spill] sm:$0xff] %v7141_v26  ;;  %vm1047_vm6 = vcmp.eq.f32.partialorder %v10463_v23, %v10111_v40  ;;  %v10465_v10 = vld [vmem:[#allocation202_spill] sm:$0xff]  ;;  %10466 = vst [vmem:[#allocation171_spill] sm:$0xff] %v7155_v54  ;;  %v7161_v4 = vsel %vm10467_vm7, %v10459_v30, 256  ;;  %v7163_v26 = vpop.eup %3306  ;;  %v10472_v48 = vld [vmem:[#allocation207_spill] sm:$0xff]  ;;  %v7175_v54 = vsel %vm1027_vm10, %v10459_v30, 256  ;;  %vm10475_vm9 = vcmp.eq.f32.partialorder %v10390_v33, %v10077_v0 }
 0x235   :  { %3324 = vpow2.f32 %v10465_v10  ;;  %10468 = vst [vmem:[#allocation138_spill] sm:$0xff] %v7161_v4  ;;  %10469 = vst [vmem:[#allocation291_spill] sm:$0xff] %v7163_v26  ;;  %v10470_v29 = vld [vmem:[#allocation242_spill] sm:$0xff]  ;;  %v10471_v10 = vld [vmem:[#allocation243_spill] sm:$0xff]  ;;  %v7183_v27 = vpop.eup %3308  ;;  %v2360_v3 = vadd.f32 %v7163_v26, %v2359_v62  ;;  %vm10482_vm10 = vcmp.eq.f32.partialorder %v10397_v12, %v10100_v58 }
 0x236   :  { %vm1049_vm5 = vcmp.eq.f32.partialorder %v10470_v29, %v10089_v46  ;;  %3326 = vpow2.f32 %v10472_v48  ;;  %10473 = vst [vmem:[#allocation172_spill] sm:$0xff] %v7175_v54  ;;  %v10474_v16 = vld [vmem:[#allocation299_spill] sm:$0xff]  ;;  %10477 = vst [vmem:[#allocation140_spill] sm:$0xff] %v7183_v27  ;;  %v10478_v53 = vld [vmem:[#allocation244_spill] sm:$0xff]  ;;  %v2397_v47 = vadd.f32 %v7183_v27, %v2396_v35 }
 0x237   :  { %v7181_v4 = vsel %vm10475_vm9, %v10474_v16, 256  ;;  %vm1051_vm7 = vcmp.eq.f32.partialorder %v10478_v53, %v10111_v40  ;;  %v10479_v48 = vld [vmem:[#allocation231_spill] sm:$0xff]  ;;  %v10480_v5 = vld [vmem:[#allocation189_spill] sm:$0xff]  ;;  %v7195_v30 = vsel %vm1029_vm11, %v10474_v16, 256  ;;  %v7201_v33 = vsel %vm10482_vm10, %v10474_v16, 256  ;;  %v10485_v54 = vld [vmem:[#allocation232_spill] sm:$0xff] }
 0x238   :  { %10476 = vst [vmem:[#allocation159_spill] sm:$0xff] %v7181_v4  ;;  %3328 = vpow2.f32 %v10480_v5  ;;  %10481 = vst [vmem:[#allocation160_spill] sm:$0xff] %v7195_v30  ;;  %v7203_v4 = vpop.eup %3310  ;;  %vm1053_vm9 = vcmp.eq.f32.partialorder %v10485_v54, %v10089_v46  ;;  %v10486_v5 = vld [vmem:[#allocation233_spill] sm:$0xff]  ;;  %v10487_v62 = vld [vmem:[#allocation191_spill] sm:$0xff]  ;;  %v7215_v30 = vsel %vm1031_vm12, %v10474_v16, 256 }
 0x239   :  { %10483 = vst [vmem:[#allocation162_spill] sm:$0xff] %v7201_v33  ;;  %10484 = vst [vmem:[#allocation165_spill] sm:$0xff] %v7203_v4  ;;  %vm1054_vm13 = vcmp.eq.f32.partialorder %v10486_v5, %v10100_v58  ;;  %3330 = vpow2.f32 %v10487_v62  ;;  %v10489_v12 = vld [vmem:[#allocation302_spill] sm:$0xff]  ;;  %v7223_v26 = vpop.eup %3312  ;;  %v10493_v35 = vld [vmem:[#allocation193_spill] sm:$0xff]  ;;  %v2434_v11 = vadd.f32 %v7203_v4, %v2433_v1 }
 0x23a   :  { %10488 = vst [vmem:[#allocation294_spill] sm:$0xff] %v7215_v30  ;;  %v7221_v33 = vsel %vm1032_vm0, %v10489_v12, 256  ;;  %v10491_v13 = vld [vmem:[#allocation234_spill] sm:$0xff]  ;;  %3332 = vpow2.f32 %v10493_v35  ;;  %v7235_v16 = vsel %vm1033_vm14, %v10489_v12, 256  ;;  %vm10495_vm0 = vcmp.eq.f32.partialorder %v10411_v42, %v10100_v58  ;;  %v10497_v30 = vld [vmem:[#allocation263_spill] sm:$0xff]  ;;  %v10501_v42 = vld [vmem:[#allocation301_spill] sm:$0xff] }
 0x23b   :  { %10490 = vst [vmem:[#allocation163_spill] sm:$0xff] %v7221_v33  ;;  %vm1055_vm11 = vcmp.eq.f32.partialorder %v10491_v13, %v10111_v40  ;;  %v10492_v62 = vld [vmem:[#allocation262_spill] sm:$0xff]  ;;  %10494 = vst [vmem:[#allocation187_spill] sm:$0xff] %v7235_v16  ;;  %v7241_v52 = vsel %vm10495_vm0, %v10489_v12, 256  ;;  %v7243_v33 = vpop.eup %3314  ;;  %vm1057_vm12 = vcmp.eq.f32.partialorder %v10497_v30, %v10089_v46  ;;  %v10498_v35 = vld [vmem:[#allocation255_spill] sm:$0xff]  ;;  %v2324_v49 = vadd.f32 %v7223_v26, %v2323_v61 }
 0x23c   :  { %10496 = vst [vmem:[#allocation166_spill] sm:$0xff] %v7241_v52  ;;  %vm1058_vm10 = vcmp.eq.f32.partialorder %v10498_v35, %v10100_v58  ;;  %v10499_v1 = vld [vmem:[#allocation218_spill] sm:$0xff]  ;;  %v7255_v16 = vsel %vm1035_vm15, %v10489_v12, 256  ;;  %vm10502_vm14 = vcmp.eq.f32.partialorder %v10419_v59, %v10077_v0  ;;  %v7263_v4 = vpop.eup %3316  ;;  %v10504_v27 = vld [vmem:[#allocation256_spill] sm:$0xff]  ;;  %v2361_v61 = vadd.f32 %v7243_v33, %v2360_v3  ;;  %v10520_v15 = vld [vmem:[#allocation303_spill] sm:$0xff] }
 0x23d   :  { %3334 = vpow2.f32 %v10499_v1  ;;  %10500 = vst [vmem:[#allocation188_spill] sm:$0xff] %v7255_v16  ;;  %v7261_v52 = vsel %vm10502_vm14, %v10501_v42, 256  ;;  %vm1059_vm0 = vcmp.eq.f32.partialorder %v10504_v27, %v10111_v40  ;;  %v10505_v1 = vld [vmem:[#allocation220_spill] sm:$0xff]  ;;  %v7273_v34 = vsel %vm1037_vm4, %v10501_v42, 256  ;;  %v7281_v12 = vpop.eup %3318  ;;  %v10529_v18 = vld [vmem:[#allocation306_spill] sm:$0xff]  ;;  %v10537_v29 = vld [vmem:[#allocation305_spill] sm:$0xff] }
 0x23e   :  { %10503 = vst [vmem:[#allocation190_spill] sm:$0xff] %v7261_v52  ;;  %3336 = vpow2.f32 %v10505_v1  ;;  %10506 = vst [vmem:[#allocation168_spill] sm:$0xff] %v7273_v34  ;;  %vm10507_vm15 = vcmp.eq.f32.partialorder %v10426_v41, %v10100_v58  ;;  %v10509_v52 = vld [vmem:[#allocation222_spill] sm:$0xff]  ;;  %v2398_v1 = vadd.f32 %v7263_v4, %v2397_v47  ;;  %v7289_v3 = vsel %vm1039_vm1, %v10501_v42, 256  ;;  %v10511_v22 = vld [vmem:[#allocation304_spill] sm:$0xff]  ;;  %v7297_v41 = vpop.eup %3320 }
 0x23f   :  { %v7279_v59 = vsel %vm10507_vm15, %v10501_v42, 256  ;;  %3338 = vpow2.f32 %v10509_v52  ;;  %10510 = vst [vmem:[#allocation194_spill] sm:$0xff] %v7289_v3  ;;  %vm10512_vm4 = vcmp.eq.f32.partialorder %v10434_v57, %v10077_v0  ;;  %v2435_v52 = vadd.f32 %v7281_v12, %v2434_v11  ;;  %v7313_v57 = vpop.eup %3322  ;;  %v10518_v42 = vld [vmem:[#allocation210_spill] sm:$0xff]  ;;  %v10545_v54 = vld [vmem:[#allocation308_spill] sm:$0xff] }
 0x240   :  { %10508 = vst [vmem:[#allocation293_spill] sm:$0xff] %v7279_v59  ;;  %v7295_v34 = vsel %vm10512_vm4, %v10511_v22, 256  ;;  %v10514_v59 = vld [vmem:[#allocation209_spill] sm:$0xff]  ;;  %v7305_v47 = vsel %vm1041_vm2, %v10511_v22, 256  ;;  %vm10516_vm1 = vcmp.eq.f32.partialorder %v10441_v17, %v10100_v58  ;;  %v7321_v11 = vsel %vm1043_vm8, %v10511_v22, 256  ;;  %v7329_v17 = vpop.eup %3324  ;;  %v10556_v35 = vld [vmem:[#allocation22_spill] sm:$0xff] }
 0x241   :  { %10513 = vst [vmem:[#allocation174_spill] sm:$0xff] %v7295_v34  ;;  %3340 = vpow2.f32 %v10514_v59  ;;  %10515 = vst [vmem:[#allocation155_spill] sm:$0xff] %v7305_v47  ;;  %v7311_v25 = vsel %vm10516_vm1, %v10511_v22, 256  ;;  %v2325_v59 = vadd.f32 %v7297_v41, %v2324_v49  ;;  %vm10521_vm2 = vcmp.eq.f32.partialorder %v10449_v55, %v10077_v0  ;;  %v7345_v55 = vpop.eup %3326  ;;  %v10527_v22 = vld [vmem:[#allocation236_spill] sm:$0xff] }
 0x242   :  { %10517 = vst [vmem:[#allocation175_spill] sm:$0xff] %v7311_v25  ;;  %3342 = vpow2.f32 %v10518_v42  ;;  %10519 = vst [vmem:[#allocation176_spill] sm:$0xff] %v7321_v11  ;;  %v7327_v47 = vsel %vm10521_vm2, %v10520_v15, 256  ;;  %v10523_v25 = vld [vmem:[#allocation217_spill] sm:$0xff]  ;;  %v2362_v42 = vadd.f32 %v7313_v57, %v2361_v61  ;;  %v7337_v49 = vsel %vm1045_vm3, %v10520_v15, 256  ;;  %v10558_v27 = vld [vmem:[#allocation260_spill] sm:$0xff] }
 0x243   :  { %10522 = vst [vmem:[#allocation156_spill] sm:$0xff] %v7327_v47  ;;  %3344 = vpow2.f32 %v10523_v25  ;;  %10524 = vst [vmem:[#allocation296_spill] sm:$0xff] %v7337_v49  ;;  %vm10525_vm8 = vcmp.eq.f32.partialorder %v10456_v38, %v10100_v58  ;;  %v2399_v25 = vadd.f32 %v7329_v17, %v2398_v1  ;;  %v7353_v61 = vsel %vm1047_vm6, %v10520_v15, 256  ;;  %v7361_v38 = vpop.eup %3328  ;;  %v10591_v11 = vld [vmem:[#allocation46_spill] sm:$0xff] }
 0x244   :  { %v7343_v51 = vsel %vm10525_vm8, %v10520_v15, 256  ;;  %3346 = vpow2.f32 %v10527_v22  ;;  %10528 = vst [vmem:[#allocation204_spill] sm:$0xff] %v7353_v61  ;;  %vm10530_vm3 = vcmp.eq.f32.partialorder %v10464_v60, %v10077_v0  ;;  %v2436_v22 = vadd.f32 %v7345_v55, %v2435_v52  ;;  %v7377_v60 = vpop.eup %3330 }
 0x245   :  { %10526 = vst [vmem:[#allocation178_spill] sm:$0xff] %v7343_v51  ;;  %v7359_v49 = vsel %vm10530_vm3, %v10529_v18, 256  ;;  %v10532_v51 = vld [vmem:[#allocation237_spill] sm:$0xff]  ;;  %v7369_v1 = vsel %vm1049_vm5, %v10529_v18, 256  ;;  %vm10534_vm6 = vcmp.eq.f32.partialorder %v10471_v10, %v10100_v58  ;;  %v2326_v15 = vadd.f32 %v7361_v38, %v2325_v59  ;;  %v7393_v10 = vpop.eup %3332 }
 0x246   :  { %10531 = vst [vmem:[#allocation158_spill] sm:$0xff] %v7359_v49  ;;  %3348 = vpow2.f32 %v10532_v51  ;;  %10533 = vst [vmem:[#allocation205_spill] sm:$0xff] %v7369_v1  ;;  %v7375_v23 = vsel %vm10534_vm6, %v10529_v18, 256  ;;  %v7385_v52 = vsel %vm1051_vm7, %v10529_v18, 256  ;;  %vm10538_vm5 = vcmp.eq.f32.partialorder %v10479_v48, %v10077_v0  ;;  %v10543_v18 = vld [vmem:[#allocation20_spill] sm:$0xff]  ;;  %v10582_v1 = vld [vmem:[#allocation39_spill] sm:$0xff] }
 0x247   :  { %10535 = vst [vmem:[#allocation206_spill] sm:$0xff] %v7375_v23  ;;  %3350 = vpow2.f32 %v6118_v31  ;;  %10536 = vst [vmem:[#allocation183_spill] sm:$0xff] %v7385_v52  ;;  %v7391_v51 = vsel %vm10538_vm5, %v10537_v29, 256  ;;  %v10540_v23 = vld [vmem:[#allocation226_spill] sm:$0xff]  ;;  %v2363_v31 = vadd.f32 %v7377_v60, %v2362_v42  ;;  %v7401_v59 = vsel %vm1053_vm9, %v10537_v29, 256  ;;  %v7409_v48 = vpop.eup %3334  ;;  %v10583_v49 = vld [vmem:[#allocation92_spill] sm:$0xff] }
 0x248   :  { %10539 = vst [vmem:[#allocation295_spill] sm:$0xff] %v7391_v51  ;;  %3352 = vpow2.f32 %v10540_v23  ;;  %10541 = vst [vmem:[#allocation208_spill] sm:$0xff] %v7401_v59  ;;  %v7407_v53 = vsel %vm1054_vm13, %v10537_v29, 256  ;;  %v2400_v23 = vadd.f32 %v7393_v10, %v2399_v25  ;;  %v7417_v42 = vsel %vm1055_vm11, %v10537_v29, 256  ;;  %v7425_v5 = vpop.eup %3336  ;;  %v10553_v29 = vld [vmem:[#allocation230_spill] sm:$0xff]  ;;  %v10577_v51 = vld [vmem:[#allocation35_spill] sm:$0xff] }
 0x249   :  { %10542 = vst [vmem:[#allocation195_spill] sm:$0xff] %v7407_v53  ;;  %3354 = vpow2.f32 %v10543_v18  ;;  %10544 = vst [vmem:[#allocation184_spill] sm:$0xff] %v7417_v42  ;;  %vm10546_vm7 = vcmp.eq.f32.partialorder %v10492_v62, %v10077_v0  ;;  %v10549_v53 = vld [vmem:[#allocation229_spill] sm:$0xff]  ;;  %v2437_v18 = vadd.f32 %v7409_v48, %v2436_v22  ;;  %v7433_v25 = vsel %vm1057_vm12, %v10545_v54, 256  ;;  %v7441_v62 = vpop.eup %3338 }
 0x24a   :  { %v7423_v59 = vsel %vm10546_vm7, %v10545_v54, 256  ;;  %10548 = vst [vmem:[#allocation197_spill] sm:$0xff] %v7425_v5  ;;  %3356 = vpow2.f32 %v10549_v53  ;;  %10550 = vst [vmem:[#allocation186_spill] sm:$0xff] %v7433_v25  ;;  %v7439_v13 = vsel %vm1058_vm10, %v10545_v54, 256  ;;  %v2327_v53 = vadd.f32 %v7425_v5, %v2326_v15 }
 0x24b   :  { %10547 = vst [vmem:[#allocation196_spill] sm:$0xff] %v7423_v59  ;;  %10551 = vst [vmem:[#allocation298_spill] sm:$0xff] %v7439_v13  ;;  %3358 = vpow2.f32 %v10553_v29  ;;  %v7449_v22 = vsel %vm1059_vm0, %v10545_v54, 256  ;;  %vm1200_vm13 = vcmp.lt.s32.totalorder %v6265_v63, %v6317_v56  ;;  %v7453_v30 = vpop.eup %3340  ;;  %v2364_v13 = vadd.f32 %v7441_v62, %v2363_v31  ;;  %v10559_v31 = vld [vmem:[#allocation24_spill] sm:$0xff] }
 0x24c   :  { %10552 = vst [vmem:[#allocation199_spill] sm:$0xff] %v7441_v62  ;;  %10554 = vst [vmem:[#allocation223_spill] sm:$0xff] %v7449_v22  ;;  %3360 = vpow2.f32 %v10556_v35  ;;  %vm1271_vm9 = vcmp.lt.s32.totalorder %v6278_v32, %v6330_v45  ;;  %vm1342_vm11 = vcmp.lt.s32.totalorder %v6291_v8, %v6343_v14  ;;  %v7461_v15 = vpop.eup %3342  ;;  %v2401_v54 = vadd.f32 %v7453_v30, %v2400_v23  ;;  %v10560_v23 = vld [vmem:[#allocation261_spill] sm:$0xff] }
 0x24d   :  { %10555 = vst [vmem:[#allocation173_spill] sm:$0xff] %v7453_v30  ;;  %10557 = vst [vmem:[#allocation224_spill] sm:$0xff] %v7461_v15  ;;  %3362 = vpow2.f32 %v10558_v27  ;;  %vm1413_vm10 = vcmp.lt.s32.totalorder %v6304_v6, %v6356_v9  ;;  %v1201_v29 = vsel %vm1200_vm13, %v6265_v63, %v6317_v56  ;;  %v7469_v35 = vpop.eup %3344  ;;  %v2438_v22 = vadd.f32 %v7461_v15, %v2437_v18  ;;  %v10563_v18 = vld [vmem:[#allocation25_spill] sm:$0xff] }
 0x24e   :  { %3364 = vpow2.f32 %v10559_v31  ;;  %v1272_v25 = vsel %vm1271_vm9, %v6278_v32, %v6330_v45  ;;  %v1343_v27 = vsel %vm1342_vm11, %v6291_v8, %v6343_v14  ;;  %v7477_v59 = vpop.eup %3346  ;;  %v2328_v42 = vadd.f32 %v7469_v35, %v2327_v53  ;;  %v10561_v45 = vld [vmem:[#allocation246_spill] sm:$0xff]  ;;  %v10664_v62 = vld [vmem:[#allocation73_spill] sm:$0xff] }
 0x24f   :  { %3366 = vpow2.f32 %v10560_v23  ;;  %v1414_v63 = vsel %vm1413_vm10, %v6304_v6, %v6356_v9  ;;  %vm1202_vm12 = vcmp.lt.s32.totalorder %v1201_v29, %v6371_v7  ;;  %v2365_v32 = vadd.f32 %v7477_v59, %v2364_v13 }
 0x250   :  { %v7484_v56 = vpop.eup %3348  ;;  %3368 = vpow2.f32 %v6178_v37  ;;  %vm1273_vm14 = vcmp.lt.s32.totalorder %v1272_v25, %v6386_v21  ;;  %vm1344_vm0 = vcmp.lt.s32.totalorder %v1343_v27, %v6401_v19  ;;  %vm1415_vm15 = vcmp.lt.s32.totalorder %v1414_v63, %v6416_v2 }
 0x251   :  { %v7490_v8 = vpop.eup %3350  ;;  %3370 = vpow2.f32 %v10561_v45  ;;  %v2402_v14 = vadd.f32 %v7484_v56, %v2401_v54  ;;  %v1203_v6 = vsel %vm1202_vm12, %v1201_v29, %v6371_v7  ;;  %v1274_v13 = vsel %vm1273_vm14, %v1272_v25, %v6386_v21  ;;  %v10569_v45 = vld [vmem:[#allocation76_spill] sm:$0xff] }
 0x252   :  { %v7496_v9 = vpop.eup %3352  ;;  %3372 = vpow2.f32 %v10563_v18  ;;  %v2439_v37 = vadd.f32 %v7490_v8, %v2438_v22  ;;  %v1345_v53 = vsel %vm1344_vm0, %v1343_v27, %v6401_v19  ;;  %v1416_v23 = vsel %vm1415_vm15, %v1414_v63, %v6416_v2  ;;  %v10568_v63 = vld [vmem:[#allocation264_spill] sm:$0xff] }
 0x253   :  { %10562 = vst [vmem:[#allocation225_spill] sm:$0xff] %v7496_v9  ;;  %v7502_v31 = vpop.eup %3354  ;;  %3374 = vpow2.f32 %v6198_v50  ;;  %v2329_v54 = vadd.f32 %v7496_v9, %v2328_v42  ;;  %vm1204_vm4 = vcmp.lt.s32.totalorder %v1203_v6, %v6431_v43  ;;  %vm1275_vm1 = vcmp.lt.s32.totalorder %v1274_v13, %v6446_v36  ;;  %v10567_v42 = vld [vmem:[#allocation34_spill] sm:$0xff] }
 0x254   :  { %10564 = vst [vmem:[#allocation177_spill] sm:$0xff] %v7502_v31  ;;  %v7508_v7 = vpop.eup %3356  ;;  %3376 = vpow2.f32 %v6212_v20  ;;  %v2366_v22 = vadd.f32 %v7502_v31, %v2365_v32  ;;  %vm1346_vm2 = vcmp.lt.s32.totalorder %v1345_v53, %v6461_v44  ;;  %vm1417_vm8 = vcmp.lt.s32.totalorder %v1416_v23, %v6476_v39 }
 0x255   :  { %10565 = vst [vmem:[#allocation297_spill] sm:$0xff] %v7508_v7  ;;  %v7514_v21 = vpop.eup %3358  ;;  %3378 = vpow2.f32 %v6226_v24  ;;  %v2403_v50 = vadd.f32 %v7508_v7, %v2402_v14  ;;  %v1205_v19 = vsel %vm1204_vm4, %v1203_v6, %v6431_v43  ;;  %v1276_v25 = vsel %vm1275_vm1, %v1274_v13, %v6446_v36  ;;  %v10570_v6 = vld [vmem:[#allocation78_spill] sm:$0xff]  ;;  %v10571_v36 = vld [vmem:[#allocation47_spill] sm:$0xff] }
 0x256   :  { %10566 = vst [vmem:[#allocation227_spill] sm:$0xff] %v7514_v21  ;;  %v7520_v2 = vpop.eup %3360  ;;  %3380 = vpow2.f32 %v10567_v42  ;;  %v2440_v20 = vadd.f32 %v7514_v21, %v2439_v37  ;;  %v1347_v29 = vsel %vm1346_vm2, %v1345_v53, %v6461_v44  ;;  %v1418_v32 = vsel %vm1417_vm8, %v1416_v23, %v6476_v39  ;;  %v10575_v42 = vld [vmem:[#allocation28_spill] sm:$0xff] }
 0x257   :  { %v7526_v27 = vpop.eup %3362  ;;  %3382 = vpow2.f32 %v10568_v63  ;;  %v2330_v24 = vadd.f32 %v7520_v2, %v2329_v54  ;;  %vm1206_vm3 = vcmp.lt.s32.totalorder %v1205_v19, %v10569_v45  ;;  %vm1277_vm6 = vcmp.lt.s32.totalorder %v1276_v25, %v10570_v6 }
 0x258   :  { %v7532_v43 = vpop.eup %3364  ;;  %v2367_v14 = vadd.f32 %v7526_v27, %v2366_v22  ;;  %vm1348_vm5 = vcmp.lt.s32.totalorder %v1347_v29, %v6521_v28  ;;  %vm1419_vm7 = vcmp.lt.s32.totalorder %v1418_v32, %v10571_v36  ;;  %v1207_v37 = vsel %vm1206_vm3, %v1205_v19, %v10569_v45  ;;  %v10574_v22 = vld [vmem:[#allocation32_spill] sm:$0xff] }
 0x259   :  { %v7538_v44 = vpop.eup %3366  ;;  %v2404_v18 = vadd.f32 %v7532_v43, %v2403_v50  ;;  %v1278_v39 = vsel %vm1277_vm6, %v1276_v25, %v10570_v6  ;;  %v1349_v13 = vsel %vm1348_vm5, %v1347_v29, %v6521_v28  ;;  %v1420_v23 = vsel %vm1419_vm7, %v1418_v32, %v10571_v36  ;;  %v10578_v19 = vld [vmem:[#allocation72_spill] sm:$0xff]  ;;  %v10581_v36 = vld [vmem:[#allocation58_spill] sm:$0xff] }
 0x25a   :  { %10572 = vst [vmem:[#allocation212_spill] sm:$0xff] %v7538_v44  ;;  %v7544_v53 = vpop.eup %3368  ;;  %v2441_v54 = vadd.f32 %v7538_v44, %v2440_v20  ;;  %vm1208_vm13 = vcmp.lt.s32.totalorder %v1207_v37, %v10574_v22  ;;  %vm1279_vm9 = vcmp.lt.s32.totalorder %v1278_v39, %v10575_v42  ;;  %vm1350_vm11 = vcmp.lt.s32.totalorder %v1349_v13, %v10577_v51 }
 0x25b   :  { %10573 = vst [vmem:[#allocation180_spill] sm:$0xff] %v7544_v53  ;;  %v7550_v63 = vpop.eup %3370  ;;  %v2331_v50 = vadd.f32 %v7544_v53, %v2330_v24  ;;  %vm1421_vm10 = vcmp.lt.s32.totalorder %v1420_v23, %v10578_v19  ;;  %v1209_v28 = vsel %vm1208_vm13, %v1207_v37, %v10574_v22  ;;  %v1280_v29 = vsel %vm1279_vm9, %v1278_v39, %v10575_v42  ;;  %v10585_v22 = vld [vmem:[#allocation59_spill] sm:$0xff]  ;;  %v10586_v42 = vld [vmem:[#allocation62_spill] sm:$0xff] }
 0x25c   :  { %10576 = vst [vmem:[#allocation213_spill] sm:$0xff] %v7550_v63  ;;  %v7556_v25 = vpop.eup %3372  ;;  %v2368_v20 = vadd.f32 %v7550_v63, %v2367_v14  ;;  %v1351_v32 = vsel %vm1350_vm11, %v1349_v13, %v10577_v51  ;;  %v1422_v45 = vsel %vm1421_vm10, %v1420_v23, %v10578_v19  ;;  %vm1210_vm12 = vcmp.lt.s32.totalorder %v1209_v28, %v10582_v1  ;;  %v10587_v51 = vld [vmem:[#allocation94_spill] sm:$0xff] }
 0x25d   :  { %10579 = vst [vmem:[#allocation214_spill] sm:$0xff] %v7556_v25  ;;  %v7562_v6 = vpop.eup %3374  ;;  %v2332_v24 = vadd.f32 %v10581_v36, %v2331_v50  ;;  %v2405_v52 = vadd.f32 %v7556_v25, %v2404_v18  ;;  %vm1281_vm14 = vcmp.lt.s32.totalorder %v1280_v29, %v10583_v49  ;;  %vm1352_vm0 = vcmp.lt.s32.totalorder %v1351_v32, %v10586_v42  ;;  %v10589_v50 = vld [vmem:[#allocation42_spill] sm:$0xff]  ;;  %v10597_v25 = vld [vmem:[#allocation83_spill] sm:$0xff]  ;;  %v10646_v36 = vld [vmem:[#allocation37_spill] sm:$0xff] }
 0x25e   :  { %10580 = vst [vmem:[#allocation201_spill] sm:$0xff] %v7562_v6  ;;  %v7568_v37 = vpop.eup %3376  ;;  %v2369_v14 = vadd.f32 %v10585_v22, %v2368_v20  ;;  %v2442_v39 = vadd.f32 %v7562_v6, %v2441_v54  ;;  %vm1423_vm15 = vcmp.lt.s32.totalorder %v1422_v45, %v10587_v51  ;;  %v1211_v19 = vsel %vm1210_vm12, %v1209_v28, %v10582_v1  ;;  %v10594_v1 = vld [vmem:[#allocation96_spill] sm:$0xff] }
 0x25f   :  { %10584 = vst [vmem:[#allocation300_spill] sm:$0xff] %v7568_v37  ;;  %v7574_v13 = vpop.eup %3378  ;;  %v2333_v23 = vadd.f32 %v7568_v37, %v2332_v24  ;;  %v2406_v18 = vadd.f32 %v10589_v50, %v2405_v52  ;;  %v1282_v61 = vsel %vm1281_vm14, %v1280_v29, %v10583_v49  ;;  %v1353_v34 = vsel %vm1352_vm0, %v1351_v32, %v10586_v42  ;;  %v10593_v52 = vld [vmem:[#allocation64_spill] sm:$0xff]  ;;  %v10595_v29 = vld [vmem:[#allocation29_spill] sm:$0xff] }
 0x260   :  { %10588 = vst [vmem:[#allocation215_spill] sm:$0xff] %v7574_v13  ;;  %v7580_v47 = vpop.eup %3380  ;;  %v2370_v20 = vadd.f32 %v7574_v13, %v2369_v14  ;;  %v2443_v54 = vadd.f32 %v10591_v11, %v2442_v39  ;;  %v1424_v3 = vsel %vm1423_vm15, %v1422_v45, %v10587_v51  ;;  %vm1212_vm4 = vcmp.lt.s32.totalorder %v1211_v19, %v10593_v52  ;;  %v10596_v14 = vld [vmem:[#allocation55_spill] sm:$0xff]  ;;  %v10645_v50 = vld [vmem:[#allocation185_spill] sm:$0xff] }
 0x261   :  { %10590 = vst [vmem:[#allocation241_spill] sm:$0xff] %v7580_v47  ;;  %v7586_v16 = vpop.eup %3382  ;;  %v2334_v40 = vrot.slane %v2333_v23, 4  ;;  %v2407_v24 = vadd.f32 %v7580_v47, %v2406_v18  ;;  %vm1283_vm1 = vcmp.lt.s32.totalorder %v1282_v61, %v10594_v1  ;;  %vm1354_vm2 = vcmp.lt.s32.totalorder %v1353_v34, %v10595_v29 }
 0x262   :  { %10592 = vst [vmem:[#allocation202_spill] sm:$0xff] %v7586_v16  ;;  %v2371_v49 = vrot.slane %v2370_v20, 4  ;;  %v2444_v28 = vadd.f32 %v7586_v16, %v2443_v54  ;;  %vm1425_vm8 = vcmp.lt.s32.totalorder %v1424_v3, %v10596_v14  ;;  %v1213_v45 = vsel %vm1212_vm4, %v1211_v19, %v10593_v52  ;;  %v10598_v54 = vld [vmem:[#allocation79_spill] sm:$0xff] }
 0x263   :  { %v2335_v39 = vadd.f32 %v2334_v40, %v2333_v23  ;;  %v2408_v32 = vrot.slane %v2407_v24, 4  ;;  %v1284_v42 = vsel %vm1283_vm1, %v1282_v61, %v10594_v1  ;;  %v1355_v18 = vsel %vm1354_vm2, %v1353_v34, %v10595_v29  ;;  %v10599_v40 = vld [vmem:[#allocation84_spill] sm:$0xff]  ;;  %v10600_v23 = vld [vmem:[#allocation81_spill] sm:$0xff] }
 0x264   :  { %v2372_v51 = vadd.f32 %v2371_v49, %v2370_v20  ;;  %v2445_v13 = vrot.slane %v2444_v28, 4  ;;  %v1426_v47 = vsel %vm1425_vm8, %v1424_v3, %v10596_v14  ;;  %vm1214_vm3 = vcmp.lt.s32.totalorder %v1213_v45, %v10597_v25  ;;  %v10601_v14 = vld [vmem:[#allocation86_spill] sm:$0xff] }
 0x265   :  { %v2336_v37 = vrot.slane %v2335_v39, 2  ;;  %v2409_v6 = vadd.f32 %v2408_v32, %v2407_v24  ;;  %vm1285_vm6 = vcmp.lt.s32.totalorder %v1284_v42, %v10598_v54  ;;  %vm1356_vm5 = vcmp.lt.s32.totalorder %v1355_v18, %v10599_v40 }
 0x266   :  { %v2373_v16 = vrot.slane %v2372_v51, 2  ;;  %v2446_v63 = vadd.f32 %v2445_v13, %v2444_v28  ;;  %vm1427_vm7 = vcmp.lt.s32.totalorder %v1426_v47, %v10600_v23  ;;  %v1215_v20 = vsel %vm1214_vm3, %v1213_v45, %v10597_v25  ;;  %v10602_v13 = vld [vmem:[#allocation67_spill] sm:$0xff]  ;;  %v10605_v25 = vld [vmem:[#allocation253_spill] sm:$0xff] }
 0x267   :  { %v2337_v19 = vadd.f32 %v2336_v37, %v2335_v39  ;;  %v2410_v61 = vrot.slane %v2409_v6, 2  ;;  %v1286_v34 = vsel %vm1285_vm6, %v1284_v42, %v10598_v54  ;;  %v1357_v24 = vsel %vm1356_vm5, %v1355_v18, %v10599_v40  ;;  %v10603_v37 = vld [vmem:[#allocation111_spill] sm:$0xff]  ;;  %v10604_v39 = vld [vmem:[#allocation68_spill] sm:$0xff] }
 0x268   :  { %v2374_v52 = vadd.f32 %v2373_v16, %v2372_v51  ;;  %v2447_v3 = vrot.slane %v2446_v63, 2  ;;  %v1428_v1 = vsel %vm1427_vm7, %v1426_v47, %v10600_v23  ;;  %vm1216_vm13 = vcmp.lt.s32.totalorder %v1215_v20, %v10601_v14  ;;  %v10606_v16 = vld [vmem:[#allocation254_spill] sm:$0xff]  ;;  %v10607_v23 = vld [vmem:[#allocation69_spill] sm:$0xff] }
 0x269   :  { %v2338_v49 = vrot.slane %v2337_v19, 1  ;;  %v2411_v29 = vadd.f32 %v2410_v61, %v2409_v6  ;;  %vm1287_vm9 = vcmp.lt.s32.totalorder %v1286_v34, %v10602_v13  ;;  %vm1358_vm11 = vcmp.lt.s32.totalorder %v1357_v24, %v10603_v37  ;;  %v10608_v61 = vld [vmem:[#allocation70_spill] sm:$0xff] }
 0x26a   :  { %v2375_v28 = vrot.slane %v2374_v52, 1  ;;  %v2448_v32 = vadd.f32 %v2447_v3, %v2446_v63  ;;  %vm1429_vm10 = vcmp.lt.s32.totalorder %v1428_v1, %v10604_v39  ;;  %vm1060_vm12 = vcmp.eq.f32.partialorder %v10605_v25, %v10077_v0 }
 0x26b   :  { %vm1061_vm14 = vcmp.eq.f32.partialorder %v10606_v16, %v10089_v46  ;;  %v2339_v45 = vadd.f32 %v2338_v49, %v2337_v19  ;;  %v2412_v47 = vrot.slane %v2411_v29, 1  ;;  %v1217_v6 = vsel %vm1216_vm13, %v1215_v20, %v10601_v14  ;;  %v10609_v19 = vld [vmem:[#allocation97_spill] sm:$0xff]  ;;  %v10610_v49 = vld [vmem:[#allocation98_spill] sm:$0xff]  ;;  %v10613_v14 = vld [vmem:[#allocation100_spill] sm:$0xff] }
 0x26c   :  { %v1288_v42 = vsel %vm1287_vm9, %v1286_v34, %v10602_v13  ;;  %v2376_v51 = vadd.f32 %v2375_v28, %v2374_v52  ;;  %v2449_v18 = vrot.slane %v2448_v32, 1  ;;  %v1359_v63 = vsel %vm1358_vm11, %v1357_v24, %v10603_v37  ;;  %v10614_v13 = vld [vmem:[#allocation269_spill] sm:$0xff]  ;;  %v10642_v46 = vld [vmem:[#allocation71_spill] sm:$0xff] }
 0x26d   :  { %v1430_v54 = vsel %vm1429_vm10, %v1428_v1, %v10604_v39  ;;  %v2413_v40 = vadd.f32 %v2412_v47, %v2411_v29  ;;  %3384 = vrcp.f32 %v2339_v45  ;;  %vm1218_vm0 = vcmp.lt.s32.totalorder %v1217_v6, %v10607_v23  ;;  %v10611_v1 = vld [vmem:[#allocation99_spill] sm:$0xff]  ;;  %v10615_v45 = vld [vmem:[#allocation88_spill] sm:$0xff]  ;;  %v10616_v47 = vld [vmem:[#allocation114_spill] sm:$0xff] }
 0x26e   :  { %vm1289_vm15 = vcmp.lt.s32.totalorder %v1288_v42, %v10608_v61  ;;  %v2450_v3 = vadd.f32 %v2449_v18, %v2448_v32  ;;  %3386 = vrcp.f32 %v2376_v51  ;;  %vm1360_vm4 = vcmp.lt.s32.totalorder %v1359_v63, %v10609_v19  ;;  %v10612_v29 = vld [vmem:[#allocation283_spill] sm:$0xff] }
 0x26f   :  { %vm1431_vm1 = vcmp.lt.s32.totalorder %v1430_v54, %v10610_v49  ;;  %3388 = vrcp.f32 %v2413_v40  ;;  %v1219_v20 = vsel %vm1218_vm0, %v1217_v6, %v10607_v23  ;;  %v1290_v34 = vsel %vm1289_vm15, %v1288_v42, %v10608_v61  ;;  %v10617_v6 = vld [vmem:[#allocation286_spill] sm:$0xff]  ;;  %v10618_v42 = vld [vmem:[#allocation115_spill] sm:$0xff]  ;;  %v10619_v40 = vld [vmem:[#allocation101_spill] sm:$0xff] }
 0x270   :  { %v1361_v52 = vsel %vm1360_vm4, %v1359_v63, %v10609_v19  ;;  %3390 = vrcp.f32 %v2450_v3  ;;  %v1432_v24 = vsel %vm1431_vm1, %v1430_v54, %v10610_v49  ;;  %vm1220_vm2 = vcmp.lt.s32.totalorder %v1219_v20, %v10611_v1  ;;  %v10620_v23 = vld [vmem:[#allocation117_spill] sm:$0xff]  ;;  %v10621_v61 = vld [vmem:[#allocation102_spill] sm:$0xff] }
 0x271   :  { %vm1291_vm8 = vcmp.lt.s32.totalorder %v1290_v34, %v10612_v29  ;;  %vm1362_vm3 = vcmp.lt.s32.totalorder %v1361_v52, %v10613_v14  ;;  %vm1433_vm6 = vcmp.lt.s32.totalorder %v1432_v24, %v10614_v13  ;;  %v1221_v28 = vsel %vm1220_vm2, %v1219_v20, %v10611_v1  ;;  %v10622_v3 = vld [vmem:[#allocation118_spill] sm:$0xff]  ;;  %v10623_v20 = vld [vmem:[#allocation307_spill] sm:$0xff] }
 0x272   :  { %v1292_v32 = vsel %vm1291_vm8, %v1290_v34, %v10612_v29  ;;  %v1363_v37 = vsel %vm1362_vm3, %v1361_v52, %v10613_v14  ;;  %v1434_v39 = vsel %vm1433_vm6, %v1432_v24, %v10614_v13  ;;  %vm1222_vm5 = vcmp.lt.s32.totalorder %v1221_v28, %v10615_v45  ;;  %v10626_v24 = vld [vmem:[#allocation105_spill] sm:$0xff]  ;;  %v10627_v1 = vld [vmem:[#allocation106_spill] sm:$0xff] }
 0x273   :  { %vm1293_vm7 = vcmp.lt.s32.totalorder %v1292_v32, %v10616_v47  ;;  %vm1364_vm13 = vcmp.lt.s32.totalorder %v1363_v37, %v10617_v6  ;;  %vm1435_vm9 = vcmp.lt.s32.totalorder %v1434_v39, %v10618_v42  ;;  %v1223_v51 = vsel %vm1222_vm5, %v1221_v28, %v10615_v45 }
 0x274   :  { %v1294_v18 = vsel %vm1293_vm7, %v1292_v32, %v10616_v47  ;;  %v1365_v63 = vsel %vm1364_vm13, %v1363_v37, %v10617_v6  ;;  %v1436_v54 = vsel %vm1435_vm9, %v1434_v39, %v10618_v42  ;;  %vm1224_vm11 = vcmp.lt.s32.totalorder %v1223_v51, %v10619_v40  ;;  %v10630_v32 = vld [vmem:[#allocation53_spill] sm:$0xff]  ;;  %v10631_v39 = vld [vmem:[#allocation60_spill] sm:$0xff]  ;;  %v10632_v47 = vld [vmem:[#allocation139_spill] sm:$0xff] }
 0x275   :  { %vm1295_vm10 = vcmp.lt.s32.totalorder %v1294_v18, %v10620_v23  ;;  %vm1366_vm0 = vcmp.lt.s32.totalorder %v1365_v63, %v10621_v61  ;;  %vm1437_vm15 = vcmp.lt.s32.totalorder %v1436_v54, %v10622_v3  ;;  %v1225_v19 = vsel %vm1224_vm11, %v1223_v51, %v10619_v40  ;;  %v10633_v42 = vld [vmem:[#allocation95_spill] sm:$0xff]  ;;  %v10635_v40 = vld [vmem:[#allocation48_spill] sm:$0xff] }
 0x276   :  { %v1296_v49 = vsel %vm1295_vm10, %v1294_v18, %v10620_v23  ;;  %v7652_v34 = vsel %vm1060_vm12, %v10623_v20, 256  ;;  %v7658_v52 = vsel %vm1061_vm14, %v10623_v20, 256  ;;  %vm1226_vm4 = vcmp.lt.s32.totalorder %v1225_v19, %v10626_v24  ;;  %v10643_v20 = vld [vmem:[#allocation52_spill] sm:$0xff] }
 0x277   :  { %10624 = vst [vmem:[#allocation242_spill] sm:$0xff] %v7652_v34  ;;  %10625 = vst [vmem:[#allocation243_spill] sm:$0xff] %v7658_v52  ;;  %vm1297_vm1 = vcmp.lt.s32.totalorder %v1296_v49, %v10627_v1  ;;  %v7662_v29 = vpop.eup %3384  ;;  %v7665_v14 = vsel %vm1366_vm0, %v1365_v63, %v10621_v61  ;;  %v7668_v13 = vsel %vm1437_vm15, %v1436_v54, %v10622_v3  ;;  %v10634_v63 = vld [vmem:[#allocation75_spill] sm:$0xff] }
 0x278   :  { %v7671_v25 = vsel %vm1226_vm4, %v1225_v19, %v10626_v24  ;;  %v7674_v28 = vsel %vm1297_vm1, %v1296_v49, %v10627_v1  ;;  %v7676_v16 = vpop.eup %3386  ;;  %v2463_v37 = vmul.f32 %v7662_v29, %v10630_v32  ;;  %v2459_v45 = vmul.f32 %v7662_v29, %v10631_v39  ;;  %v10636_v61 = vld [vmem:[#allocation167_spill] sm:$0xff]  ;;  %v10637_v19 = vld [vmem:[#allocation85_spill] sm:$0xff] }
 0x279   :  { %10628 = vst [vmem:[#allocation207_spill] sm:$0xff] %v7671_v25  ;;  %10629 = vst [vmem:[#allocation299_spill] sm:$0xff] %v7674_v28  ;;  %v2475_v6 = vmul.f32 %v7662_v29, %v10632_v47  ;;  %v2467_v51 = vmul.f32 %v7662_v29, %v10633_v42  ;;  %v7686_v18 = vpop.eup %3388  ;;  %v2464_v54 = vmul.f32 %v7676_v16, %v10634_v63  ;;  %v10638_v1 = vld [vmem:[#allocation77_spill] sm:$0xff]  ;;  %v10639_v39 = vld [vmem:[#allocation23_spill] sm:$0xff] }
 0x27a   :  { %v2460_v23 = vmul.f32 %v7676_v16, %v10635_v40  ;;  %v2476_v3 = vmul.f32 %v7676_v16, %v10636_v61  ;;  %v2468_v49 = vmul.f32 %v7676_v16, %v10637_v19  ;;  %v7696_v24 = vpop.eup %3390  ;;  %v2465_v32 = vmul.f32 %v7686_v18, %v10638_v1  ;;  %v10640_v42 = vld [vmem:[#allocation51_spill] sm:$0xff] }
 0x27b   :  { %v2591_v47 = vmul.f32 %v2463_v37, %v10639_v39  ;;  %v2461_v52 = vmul.f32 %v7686_v18, %v10640_v42  ;;  %v10641_v63 = vld [vmem:[#allocation15_spill] sm:$0xff]  ;;  %v2466_v40 = vmul.f32 %v7696_v24, %v10642_v46  ;;  %v2592_v61 = vmul.f32 %v2464_v54, %v10639_v39 }
 0x27c   :  { %v2587_v34 = vmul.f32 %v2459_v45, %v10641_v63  ;;  %v2898_v0 = vadd.f32 %v2464_v54, %v2463_v37  ;;  %v2462_v19 = vmul.f32 %v7696_v24, %v10643_v20  ;;  %v2593_v58 = vmul.f32 %v2465_v32, %v10639_v39  ;;  %v10644_v37 = vld [vmem:[#allocation157_spill] sm:$0xff] }
 0x27d   :  { %v2588_v1 = vmul.f32 %v2460_v23, %v10641_v63  ;;  %v2589_v53 = vmul.f32 %v2461_v52, %v10641_v63  ;;  %v2893_v28 = vadd.f32 %v2460_v23, %v2459_v45  ;;  %v2594_v42 = vmul.f32 %v2466_v40, %v10639_v39 }
 0x27e   :  { %v2899_v25 = vadd.f32 %v2898_v0, %v2465_v32  ;;  %v2590_v21 = vmul.f32 %v2462_v19, %v10641_v63  ;;  %v2715_v7 = vadd.f32 %v2591_v47, %v2587_v34  ;;  %v2477_v54 = vmul.f32 %v7686_v18, %v10644_v37  ;;  %v10650_v47 = vld [vmem:[#allocation211_spill] sm:$0xff]  ;;  %v10652_v37 = vld [vmem:[#allocation228_spill] sm:$0xff] }
 0x27f   :  { %v2752_v46 = vadd.f32 %v2592_v61, %v2588_v1  ;;  %v2789_v31 = vadd.f32 %v2593_v58, %v2589_v53  ;;  %v2894_v9 = vadd.f32 %v2893_v28, %v2461_v52  ;;  %v2478_v22 = vmul.f32 %v7696_v24, %v10645_v50  ;;  %v10647_v52 = vld [vmem:[#allocation238_spill] sm:$0xff]  ;;  %v10649_v28 = vld [vmem:[#allocation13_spill] sm:$0xff] }
 0x280   :  { %v2900_v20 = vadd.f32 %v2899_v25, %v2466_v40  ;;  %v2826_v11 = vadd.f32 %v2594_v42, %v2590_v21  ;;  %v7719_v15 = vmul.f32 %v2475_v6, %v10646_v36  ;;  %v7722_v0 = vmul.f32 %v2476_v3, %v10646_v36  ;;  %v10648_v25 = vld [vmem:[#allocation113_spill] sm:$0xff]  ;;  %v10651_v40 = vld [vmem:[#allocation240_spill] sm:$0xff] }
 0x281   :  { %v2895_v45 = vadd.f32 %v2894_v9, %v2462_v19  ;;  %v7725_v34 = vmul.f32 %v2477_v54, %v10646_v36  ;;  %v2913_v58 = vadd.f32 %v2476_v3, %v2475_v6  ;;  %v7728_v53 = vmul.f32 %v2478_v22, %v10646_v36 }
 0x282   :  { %2901 = vadd.xlane.f32.xlu1 %v2900_v20  ;;  %v2469_v21 = vmul.f32 %v7686_v18, %v10647_v52  ;;  %v2470_v50 = vmul.f32 %v7696_v24, %v10648_v25  ;;  %v2595_v23 = vmul.f32 %v2467_v51, %v10649_v28  ;;  %v2596_v32 = vmul.f32 %v2468_v49, %v10649_v28 }
 0x283   :  { %2896 = vadd.xlane.f32.xlu0 %v2895_v45  ;;  %v2914_v9 = vadd.f32 %v2913_v58, %v2477_v54  ;;  %v2903_v39 = vadd.f32 %v2468_v49, %v2467_v51  ;;  %v2483_v6 = vmul.f32 %v7662_v29, %v10650_v47  ;;  %v2484_v61 = vmul.f32 %v7676_v16, %v10651_v40  ;;  %v10653_v51 = vld [vmem:[#allocation257_spill] sm:$0xff]  ;;  %v10654_v58 = vld [vmem:[#allocation54_spill] sm:$0xff] }
 0x284   :  { %v2597_v3 = vmul.f32 %v2469_v21, %v10649_v28  ;;  %v2598_v36 = vmul.f32 %v2470_v50, %v10649_v28  ;;  %v2716_v63 = vadd.f32 %v2715_v7, %v2595_v23  ;;  %v2753_v1 = vadd.f32 %v2752_v46, %v2596_v32  ;;  %v10656_v28 = vld [vmem:[#allocation131_spill] sm:$0xff] }
 0x285   :  { %v2915_v19 = vadd.f32 %v2914_v9, %v2478_v22  ;;  %v2904_v42 = vadd.f32 %v2903_v39, %v2469_v21  ;;  %v2485_v54 = vmul.f32 %v7686_v18, %v10652_v37  ;;  %v2486_v49 = vmul.f32 %v7696_v24, %v10653_v51  ;;  %v10657_v9 = vld [vmem:[#allocation121_spill] sm:$0xff] }
 0x286   :  { %v2790_v20 = vadd.f32 %v2789_v31, %v2597_v3  ;;  %v2827_v45 = vadd.f32 %v2826_v11, %v2598_v36  ;;  %v7747_v52 = vmul.f32 %v2483_v6, %v10654_v58  ;;  %v7750_v7 = vmul.f32 %v2484_v61, %v10654_v58  ;;  %v10655_v31 = vld [vmem:[#allocation103_spill] sm:$0xff]  ;;  %v10658_v39 = vld [vmem:[#allocation149_spill] sm:$0xff]  ;;  %v10659_v3 = vld [vmem:[#allocation272_spill] sm:$0xff] }
 0x287   :  { %2916 = vadd.xlane.f32.xlu1 %v2915_v19  ;;  %v2905_v25 = vadd.f32 %v2904_v42, %v2470_v50  ;;  %v7753_v22 = vmul.f32 %v2485_v54, %v10654_v58  ;;  %v2923_v46 = vadd.f32 %v2484_v61, %v2483_v6  ;;  %v7756_v21 = vmul.f32 %v2486_v49, %v10654_v58  ;;  %v10660_v36 = vld [vmem:[#allocation270_spill] sm:$0xff] }
 0x288   :  { %v2471_v11 = vmul.f32 %v7662_v29, %v10655_v31  ;;  %v2472_v23 = vmul.f32 %v7676_v16, %v10656_v28  ;;  %v2473_v32 = vmul.f32 %v7686_v18, %v10657_v9  ;;  %v2474_v47 = vmul.f32 %v7696_v24, %v10658_v39  ;;  %v10661_v61 = vld [vmem:[#allocation14_spill] sm:$0xff]  ;;  %v10663_v31 = vld [vmem:[#allocation265_spill] sm:$0xff] }
 0x289   :  { %2906 = vadd.xlane.f32.xlu0 %v2905_v25  ;;  %v2924_v50 = vadd.f32 %v2923_v46, %v2485_v54  ;;  %v2491_v6 = vmul.f32 %v7662_v29, %v10659_v3  ;;  %v2492_v40 = vmul.f32 %v7676_v16, %v10660_v36  ;;  %v10662_v54 = vld [vmem:[#allocation38_spill] sm:$0xff]  ;;  %v2494_v28 = vmul.f32 %v7696_v24, %v10663_v31 }
 0x28a   :  { %v2599_v19 = vmul.f32 %v2471_v11, %v10661_v61  ;;  %v2600_v42 = vmul.f32 %v2472_v23, %v10661_v61  ;;  %v2601_v37 = vmul.f32 %v2473_v32, %v10661_v61  ;;  %v2908_v51 = vadd.f32 %v2472_v23, %v2471_v11 }
 0x28b   :  { %v2925_v58 = vadd.f32 %v2924_v50, %v2486_v49  ;;  %v2602_v25 = vmul.f32 %v2474_v47, %v10661_v61  ;;  %v2493_v46 = vmul.f32 %v7686_v18, %v10662_v54  ;;  %v7779_v5 = vmul.f32 %v2491_v6, %v10664_v62 }
 0x28c   :  { %v2754_v9 = vadd.f32 %v2753_v1, %v2600_v42  ;;  %v2791_v39 = vadd.f32 %v2790_v20, %v2601_v37  ;;  %v2909_v3 = vadd.f32 %v2908_v51, %v2473_v32  ;;  %v2717_v36 = vadd.f32 %v2716_v63, %v2599_v19  ;;  %v10665_v1 = vld [vmem:[#allocation179_spill] sm:$0xff]  ;;  %v10667_v32 = vld [vmem:[#allocation192_spill] sm:$0xff]  ;;  %v10668_v42 = vld [vmem:[#allocation221_spill] sm:$0xff] }
 0x28d   :  { %2926 = vadd.xlane.f32.xlu1 %v2925_v58  ;;  %v2828_v30 = vadd.f32 %v2827_v45, %v2602_v25  ;;  %v7782_v11 = vmul.f32 %v2492_v40, %v10664_v62  ;;  %v7785_v49 = vmul.f32 %v2493_v46, %v10664_v62  ;;  %v7788_v50 = vmul.f32 %v2494_v28, %v10664_v62  ;;  %v10666_v63 = vld [vmem:[#allocation203_spill] sm:$0xff]  ;;  %v10669_v58 = vld [vmem:[#allocation21_spill] sm:$0xff] }
 0x28e   :  { %v2910_v23 = vadd.f32 %v2909_v3, %v2474_v47  ;;  %v2933_v61 = vadd.f32 %v2492_v40, %v2491_v6  ;;  %v2479_v20 = vmul.f32 %v7662_v29, %v10665_v1  ;;  %v2480_v45 = vmul.f32 %v7676_v16, %v10666_v63 }
 0x28f   :  { %v2481_v19 = vmul.f32 %v7686_v18, %v10667_v32  ;;  %v2482_v37 = vmul.f32 %v7696_v24, %v10668_v42  ;;  %v2755_v51 = vadd.f32 %v2754_v9, %v7722_v0  ;;  %v2792_v6 = vadd.f32 %v2791_v39, %v7725_v34  ;;  %v10670_v32 = vld [vmem:[#allocation17_spill] sm:$0xff] }
 0x290   :  { %2911 = vadd.xlane.f32.xlu0 %v2910_v23  ;;  %v2934_v47 = vadd.f32 %v2933_v61, %v2493_v46  ;;  %v2607_v62 = vmul.f32 %v2479_v20, %v10669_v58  ;;  %v2829_v40 = vadd.f32 %v2828_v30, %v7728_v53  ;;  %v2608_v25 = vmul.f32 %v2480_v45, %v10669_v58  ;;  %v10671_v46 = vld [vmem:[#allocation274_spill] sm:$0xff] }
 0x291   :  { %v2609_v54 = vmul.f32 %v2481_v19, %v10669_v58  ;;  %v2610_v31 = vmul.f32 %v2482_v37, %v10669_v58  ;;  %v2918_v3 = vadd.f32 %v2480_v45, %v2479_v20  ;;  %v2718_v63 = vadd.f32 %v2717_v36, %v7719_v15  ;;  %v10672_v61 = vld [vmem:[#allocation18_spill] sm:$0xff]  ;;  %v10673_v58 = vld [vmem:[#allocation275_spill] sm:$0xff] }
 0x292   :  { %v2935_v1 = vadd.f32 %v2934_v47, %v2494_v28  ;;  %v2499_v0 = vmul.f32 %v7662_v29, %v10670_v32  ;;  %v2500_v9 = vmul.f32 %v7676_v16, %v10671_v46  ;;  %v2756_v23 = vadd.f32 %v2755_v51, %v2608_v25  ;;  %v10674_v20 = vld [vmem:[#allocation91_spill] sm:$0xff]  ;;  %v10675_v51 = vld [vmem:[#allocation245_spill] sm:$0xff] }
 0x293   :  { %v2793_v34 = vadd.f32 %v2792_v6, %v2609_v54  ;;  %v2830_v39 = vadd.f32 %v2829_v40, %v2610_v31  ;;  %v2919_v30 = vadd.f32 %v2918_v3, %v2481_v19  ;;  %v2719_v53 = vadd.f32 %v2718_v63, %v2607_v62  ;;  %v10676_v40 = vld [vmem:[#allocation247_spill] sm:$0xff]  ;;  %v10677_v54 = vld [vmem:[#allocation33_spill] sm:$0xff] }
 0x294   :  { %2936 = vadd.xlane.f32.xlu1 %v2935_v1  ;;  %v2501_v42 = vmul.f32 %v7686_v18, %v10672_v61  ;;  %v2502_v28 = vmul.f32 %v7696_v24, %v10673_v58  ;;  %v7815_v15 = vmul.f32 %v2499_v0, %v10674_v20  ;;  %v7818_v45 = vmul.f32 %v2500_v9, %v10674_v20  ;;  %v10678_v3 = vld [vmem:[#allocation271_spill] sm:$0xff]  ;;  %v10679_v63 = vld [vmem:[#allocation41_spill] sm:$0xff] }
 0x295   :  { %v2920_v36 = vadd.f32 %v2919_v30, %v2482_v37  ;;  %v2943_v47 = vadd.f32 %v2500_v9, %v2499_v0  ;;  %v2487_v6 = vmul.f32 %v7662_v29, %v10675_v51  ;;  %v2488_v25 = vmul.f32 %v7676_v16, %v10676_v40  ;;  %v10680_v40 = vld [vmem:[#allocation31_spill] sm:$0xff] }
 0x296   :  { %v7823_v19 = vmul.f32 %v2501_v42, %v10674_v20  ;;  %v7826_v62 = vmul.f32 %v2502_v28, %v10674_v20  ;;  %v2489_v31 = vmul.f32 %v7686_v18, %v10677_v54  ;;  %v2490_v1 = vmul.f32 %v7696_v24, %v10678_v3 }
 0x297   :  { %2921 = vadd.xlane.f32.xlu0 %v2920_v36  ;;  %v2944_v37 = vadd.f32 %v2943_v47, %v2501_v42  ;;  %v2615_v32 = vmul.f32 %v2487_v6, %v10679_v63  ;;  %v2757_v0 = vadd.f32 %v2756_v23, %v7750_v7  ;;  %v2616_v46 = vmul.f32 %v2488_v25, %v10679_v63  ;;  %v10681_v7 = vld [vmem:[#allocation282_spill] sm:$0xff] }
 0x298   :  { %v2617_v9 = vmul.f32 %v2489_v31, %v10679_v63  ;;  %v2794_v30 = vadd.f32 %v2793_v34, %v7753_v22  ;;  %v2831_v61 = vadd.f32 %v2830_v39, %v7756_v21  ;;  %v2618_v20 = vmul.f32 %v2490_v1, %v10679_v63  ;;  %v10682_v34 = vld [vmem:[#allocation43_spill] sm:$0xff]  ;;  %v10683_v39 = vld [vmem:[#allocation44_spill] sm:$0xff] }
 0x299   :  { %v2945_v58 = vadd.f32 %v2944_v37, %v2502_v28  ;;  %v2928_v36 = vadd.f32 %v2488_v25, %v2487_v6  ;;  %v2720_v42 = vadd.f32 %v2719_v53, %v7747_v52  ;;  %v2758_v47 = vadd.f32 %v2757_v0, %v2616_v46  ;;  %v10684_v6 = vld [vmem:[#allocation109_spill] sm:$0xff]  ;;  %v10685_v0 = vld [vmem:[#allocation40_spill] sm:$0xff] }
 0x29a   :  { %v2795_v51 = vadd.f32 %v2794_v30, %v2617_v9  ;;  %v2507_v54 = vmul.f32 %v7662_v29, %v10680_v40  ;;  %v2508_v23 = vmul.f32 %v7676_v16, %v10681_v7  ;;  %v2832_v3 = vadd.f32 %v2831_v61, %v2618_v20  ;;  %v10687_v61 = vld [vmem:[#allocation16_spill] sm:$0xff]  ;;  %v10688_v20 = vld [vmem:[#allocation281_spill] sm:$0xff] }
 0x29b   :  { %2946 = vadd.xlane.f32.xlu1 %v2945_v58  ;;  %v2929_v44 = vadd.f32 %v2928_v36, %v2489_v31  ;;  %v2721_v22 = vadd.f32 %v2720_v42, %v2615_v32  ;;  %v2509_v21 = vmul.f32 %v7686_v18, %v10682_v34  ;;  %v2510_v28 = vmul.f32 %v7696_v24, %v10683_v39  ;;  %v10686_v32 = vld [vmem:[#allocation280_spill] sm:$0xff] }
 0x29c   :  { %v7851_v52 = vmul.f32 %v2507_v54, %v10684_v6  ;;  %v7854_v53 = vmul.f32 %v2508_v23, %v10684_v6  ;;  %v2953_v25 = vadd.f32 %v2508_v23, %v2507_v54  ;;  %v2495_v31 = vmul.f32 %v7662_v29, %v10685_v0 }
 0x29d   :  { %v2930_v37 = vadd.f32 %v2929_v44, %v2490_v1  ;;  %v7857_v63 = vmul.f32 %v2509_v21, %v10684_v6  ;;  %v2496_v46 = vmul.f32 %v7676_v16, %v10686_v32  ;;  %v7864_v9 = vmul.f32 %v2510_v28, %v10684_v6  ;;  %v10689_v44 = vld [vmem:[#allocation57_spill] sm:$0xff] }
 0x29e   :  { %v2954_v30 = vadd.f32 %v2953_v25, %v2509_v21  ;;  %v2497_v58 = vmul.f32 %v7686_v18, %v10687_v61  ;;  %v2498_v36 = vmul.f32 %v7696_v24, %v10688_v20  ;;  %v2623_v1 = vmul.f32 %v2495_v31, %v10689_v44  ;;  %v10693_v20 = vld [vmem:[#allocation50_spill] sm:$0xff] }
 0x29f   :  { %2931 = vadd.xlane.f32.xlu0 %v2930_v37  ;;  %v2624_v42 = vmul.f32 %v2496_v46, %v10689_v44  ;;  %v2759_v40 = vadd.f32 %v2758_v47, %v7782_v11  ;;  %v2796_v54 = vadd.f32 %v2795_v51, %v7785_v49  ;;  %v2833_v21 = vadd.f32 %v2832_v3, %v7788_v50  ;;  %v10690_v37 = vld [vmem:[#allocation61_spill] sm:$0xff]  ;;  %v10691_v11 = vld [vmem:[#allocation63_spill] sm:$0xff] }
 0x2a0   :  { %v2955_v7 = vadd.f32 %v2954_v30, %v2510_v28  ;;  %v2625_v23 = vmul.f32 %v2497_v58, %v10689_v44  ;;  %v2626_v34 = vmul.f32 %v2498_v36, %v10689_v44  ;;  %v2938_v6 = vadd.f32 %v2496_v46, %v2495_v31  ;;  %v10692_v47 = vld [vmem:[#allocation49_spill] sm:$0xff]  ;;  %v10694_v3 = vld [vmem:[#allocation127_spill] sm:$0xff] }
 0x2a1   :  { %v2760_v39 = vadd.f32 %v2759_v40, %v2624_v42  ;;  %v2722_v25 = vadd.f32 %v2721_v22, %v7779_v5  ;;  %v2515_v0 = vmul.f32 %v7662_v29, %v10690_v37  ;;  %v2516_v49 = vmul.f32 %v7676_v16, %v10691_v11  ;;  %v10695_v44 = vld [vmem:[#allocation19_spill] sm:$0xff] }
 0x2a2   :  { %2956 = vadd.xlane.f32.xlu1 %v2955_v7  ;;  %v2797_v32 = vadd.f32 %v2796_v54, %v2625_v23  ;;  %v2834_v61 = vadd.f32 %v2833_v21, %v2626_v34  ;;  %v2517_v51 = vmul.f32 %v7686_v18, %v10692_v47  ;;  %v2939_v28 = vadd.f32 %v2938_v6, %v2497_v58  ;;  %v10697_v7 = vld [vmem:[#allocation27_spill] sm:$0xff]  ;;  %v10698_v21 = vld [vmem:[#allocation30_spill] sm:$0xff] }
 0x2a3   :  { %v2723_v30 = vadd.f32 %v2722_v25, %v2623_v1  ;;  %v2518_v50 = vmul.f32 %v7696_v24, %v10693_v20  ;;  %v7887_v31 = vmul.f32 %v2515_v0, %v10694_v3  ;;  %v7890_v5 = vmul.f32 %v2516_v49, %v10694_v3  ;;  %v10696_v1 = vld [vmem:[#allocation26_spill] sm:$0xff] }
 0x2a4   :  { %v7893_v22 = vmul.f32 %v2517_v51, %v10694_v3  ;;  %v2963_v46 = vadd.f32 %v2516_v49, %v2515_v0  ;;  %v2503_v42 = vmul.f32 %v7662_v29, %v10695_v44  ;;  %v2940_v40 = vadd.f32 %v2939_v28, %v2498_v36  ;;  %v10699_v25 = vld [vmem:[#allocation74_spill] sm:$0xff] }
 0x2a5   :  { %v7898_v58 = vmul.f32 %v2518_v50, %v10694_v3  ;;  %v2504_v54 = vmul.f32 %v7676_v16, %v10696_v1  ;;  %v2505_v23 = vmul.f32 %v7686_v18, %v10697_v7  ;;  %v2506_v6 = vmul.f32 %v7696_v24, %v10698_v21  ;;  %v10700_v1 = vld [vmem:[#allocation112_spill] sm:$0xff] }
 0x2a6   :  { %v2964_v34 = vadd.f32 %v2963_v46, %v2517_v51  ;;  %v2631_v37 = vmul.f32 %v2503_v42, %v10699_v25  ;;  %v2761_v0 = vadd.f32 %v2760_v39, %v7818_v45  ;;  %2941 = vadd.xlane.f32.xlu0 %v2940_v40  ;;  %v2798_v49 = vadd.f32 %v2797_v32, %v7823_v19  ;;  %v10701_v39 = vld [vmem:[#allocation248_spill] sm:$0xff]  ;;  %v10702_v32 = vld [vmem:[#allocation278_spill] sm:$0xff] }
 0x2a7   :  { %v2632_v36 = vmul.f32 %v2504_v54, %v10699_v25  ;;  %v2633_v11 = vmul.f32 %v2505_v23, %v10699_v25  ;;  %v2835_v47 = vadd.f32 %v2834_v61, %v7826_v62  ;;  %v2634_v20 = vmul.f32 %v2506_v6, %v10699_v25  ;;  %v10703_v61 = vld [vmem:[#allocation87_spill] sm:$0xff] }
 0x2a8   :  { %v2965_v28 = vadd.f32 %v2964_v34, %v2518_v50  ;;  %v2948_v51 = vadd.f32 %v2504_v54, %v2503_v42  ;;  %v2724_v3 = vadd.f32 %v2723_v30, %v7815_v15  ;;  %v2523_v45 = vmul.f32 %v7662_v29, %v10700_v1  ;;  %v10704_v42 = vld [vmem:[#allocation145_spill] sm:$0xff] }
 0x2a9   :  { %v2762_v46 = vadd.f32 %v2761_v0, %v2632_v36  ;;  %v2799_v44 = vadd.f32 %v2798_v49, %v2633_v11  ;;  %v2524_v40 = vmul.f32 %v7676_v16, %v10701_v39  ;;  %v2836_v7 = vadd.f32 %v2835_v47, %v2634_v20  ;;  %v10705_v0 = vld [vmem:[#allocation45_spill] sm:$0xff]  ;;  %v10707_v47 = vld [vmem:[#allocation66_spill] sm:$0xff]  ;;  %v10708_v20 = vld [vmem:[#allocation36_spill] sm:$0xff] }
 0x2aa   :  { %2966 = vadd.xlane.f32.xlu1 %v2965_v28  ;;  %v2949_v21 = vadd.f32 %v2948_v51, %v2505_v23  ;;  %v2725_v19 = vadd.f32 %v2724_v3, %v2631_v37  ;;  %v2525_v62 = vmul.f32 %v7686_v18, %v10702_v32  ;;  %v2526_v50 = vmul.f32 %v7696_v24, %v10703_v61  ;;  %v10706_v37 = vld [vmem:[#allocation65_spill] sm:$0xff] }
 0x2ab   :  { %v7923_v15 = vmul.f32 %v2523_v45, %v10704_v42  ;;  %v7926_v30 = vmul.f32 %v2524_v40, %v10704_v42  ;;  %v2973_v54 = vadd.f32 %v2524_v40, %v2523_v45  ;;  %v2511_v23 = vmul.f32 %v7662_v29, %v10705_v0 }
 0x2ac   :  { %v2950_v34 = vadd.f32 %v2949_v21, %v2506_v6  ;;  %v7929_v25 = vmul.f32 %v2525_v62, %v10704_v42  ;;  %v2512_v36 = vmul.f32 %v7676_v16, %v10706_v37  ;;  %v7936_v11 = vmul.f32 %v2526_v50, %v10704_v42  ;;  %v10709_v6 = vld [vmem:[#allocation93_spill] sm:$0xff] }
 0x2ad   :  { %v2974_v49 = vadd.f32 %v2973_v54, %v2525_v62  ;;  %v2513_v28 = vmul.f32 %v7686_v18, %v10707_v47  ;;  %v2514_v51 = vmul.f32 %v7696_v24, %v10708_v20  ;;  %v2639_v3 = vmul.f32 %v2511_v23, %v10709_v6  ;;  %v10713_v20 = vld [vmem:[#allocation136_spill] sm:$0xff] }
 0x2ae   :  { %2951 = vadd.xlane.f32.xlu0 %v2950_v34  ;;  %v2640_v1 = vmul.f32 %v2512_v36, %v10709_v6  ;;  %v2763_v45 = vadd.f32 %v2762_v46, %v7854_v53  ;;  %v2800_v39 = vadd.f32 %v2799_v44, %v7857_v63  ;;  %v2837_v62 = vadd.f32 %v2836_v7, %v7864_v9  ;;  %v10710_v34 = vld [vmem:[#allocation104_spill] sm:$0xff]  ;;  %v10711_v53 = vld [vmem:[#allocation129_spill] sm:$0xff] }
 0x2af   :  { %v2975_v40 = vadd.f32 %v2974_v49, %v2526_v50  ;;  %v2641_v21 = vmul.f32 %v2513_v28, %v10709_v6  ;;  %v2642_v32 = vmul.f32 %v2514_v51, %v10709_v6  ;;  %v2958_v42 = vadd.f32 %v2512_v36, %v2511_v23  ;;  %v10712_v46 = vld [vmem:[#allocation133_spill] sm:$0xff]  ;;  %v10715_v6 = vld [vmem:[#allocation56_spill] sm:$0xff] }
 0x2b0   :  { %v2764_v61 = vadd.f32 %v2763_v45, %v2640_v1  ;;  %v2726_v54 = vadd.f32 %v2725_v19, %v7851_v52  ;;  %v2531_v0 = vmul.f32 %v7662_v29, %v10710_v34  ;;  %v2532_v63 = vmul.f32 %v7676_v16, %v10711_v53  ;;  %v10714_v7 = vld [vmem:[#allocation161_spill] sm:$0xff] }
 0x2b1   :  { %2976 = vadd.xlane.f32.xlu1 %v2975_v40  ;;  %v2801_v37 = vadd.f32 %v2800_v39, %v2641_v21  ;;  %v2838_v47 = vadd.f32 %v2837_v62, %v2642_v32  ;;  %v2533_v44 = vmul.f32 %v7686_v18, %v10712_v46  ;;  %v2959_v50 = vadd.f32 %v2958_v42, %v2513_v28  ;;  %v10717_v40 = vld [vmem:[#allocation82_spill] sm:$0xff]  ;;  %v10718_v62 = vld [vmem:[#allocation284_spill] sm:$0xff] }
 0x2b2   :  { %v2727_v49 = vadd.f32 %v2726_v54, %v2639_v3  ;;  %v2534_v9 = vmul.f32 %v7696_v24, %v10713_v20  ;;  %v7959_v23 = vmul.f32 %v2531_v0, %v10714_v7  ;;  %v7962_v52 = vmul.f32 %v2532_v63, %v10714_v7  ;;  %v10716_v3 = vld [vmem:[#allocation80_spill] sm:$0xff]  ;;  %v10719_v54 = vld [vmem:[#allocation110_spill] sm:$0xff] }
 0x2b3   :  { %v7965_v19 = vmul.f32 %v2533_v44, %v10714_v7  ;;  %v2983_v36 = vadd.f32 %v2532_v63, %v2531_v0  ;;  %v2519_v1 = vmul.f32 %v7662_v29, %v10715_v6  ;;  %v2960_v45 = vadd.f32 %v2959_v50, %v2514_v51 }
 0x2b4   :  { %v7970_v28 = vmul.f32 %v2534_v9, %v10714_v7  ;;  %v2520_v39 = vmul.f32 %v7676_v16, %v10716_v3  ;;  %v2521_v21 = vmul.f32 %v7686_v18, %v10717_v40  ;;  %v2522_v42 = vmul.f32 %v7696_v24, %v10718_v62  ;;  %v10720_v3 = vld [vmem:[#allocation147_spill] sm:$0xff] }
 0x2b5   :  { %v2984_v32 = vadd.f32 %v2983_v36, %v2533_v44  ;;  %v2647_v34 = vmul.f32 %v2519_v1, %v10719_v54  ;;  %v2765_v0 = vadd.f32 %v2764_v61, %v7890_v5  ;;  %2961 = vadd.xlane.f32.xlu0 %v2960_v45  ;;  %v2802_v63 = vadd.f32 %v2801_v37, %v7893_v22  ;;  %v10721_v61 = vld [vmem:[#allocation141_spill] sm:$0xff]  ;;  %v10722_v37 = vld [vmem:[#allocation143_spill] sm:$0xff] }
 0x2b6   :  { %v2648_v51 = vmul.f32 %v2520_v39, %v10719_v54  ;;  %v2649_v53 = vmul.f32 %v2521_v21, %v10719_v54  ;;  %v2839_v46 = vadd.f32 %v2838_v47, %v7898_v58  ;;  %v2650_v20 = vmul.f32 %v2522_v42, %v10719_v54  ;;  %v10723_v47 = vld [vmem:[#allocation144_spill] sm:$0xff] }
 0x2b7   :  { %v2985_v50 = vadd.f32 %v2984_v32, %v2534_v9  ;;  %v2968_v44 = vadd.f32 %v2520_v39, %v2519_v1  ;;  %v2728_v7 = vadd.f32 %v2727_v49, %v7887_v31  ;;  %v2539_v5 = vmul.f32 %v7662_v29, %v10720_v3  ;;  %v10724_v1 = vld [vmem:[#allocation181_spill] sm:$0xff] }
 0x2b8   :  { %v2766_v36 = vadd.f32 %v2765_v0, %v2648_v51  ;;  %v2803_v6 = vadd.f32 %v2802_v63, %v2649_v53  ;;  %v2540_v45 = vmul.f32 %v7676_v16, %v10721_v61  ;;  %v2840_v40 = vadd.f32 %v2839_v46, %v2650_v20  ;;  %v10725_v0 = vld [vmem:[#allocation89_spill] sm:$0xff]  ;;  %v10727_v46 = vld [vmem:[#allocation116_spill] sm:$0xff] }
 0x2b9   :  { %2986 = vadd.xlane.f32.xlu1 %v2985_v50  ;;  %v2969_v62 = vadd.f32 %v2968_v44, %v2521_v21  ;;  %v2729_v22 = vadd.f32 %v2728_v7, %v2647_v34  ;;  %v2541_v58 = vmul.f32 %v7686_v18, %v10722_v37  ;;  %v2542_v9 = vmul.f32 %v7696_v24, %v10723_v47  ;;  %v10726_v34 = vld [vmem:[#allocation90_spill] sm:$0xff]  ;;  %v10728_v20 = vld [vmem:[#allocation285_spill] sm:$0xff] }
 0x2ba   :  { %v7995_v31 = vmul.f32 %v2539_v5, %v10724_v1  ;;  %v7998_v49 = vmul.f32 %v2540_v45, %v10724_v1  ;;  %v2993_v39 = vadd.f32 %v2540_v45, %v2539_v5  ;;  %v2527_v21 = vmul.f32 %v7662_v29, %v10725_v0 }
 0x2bb   :  { %v2970_v32 = vadd.f32 %v2969_v62, %v2522_v42  ;;  %v8001_v54 = vmul.f32 %v2541_v58, %v10724_v1  ;;  %v2528_v51 = vmul.f32 %v7676_v16, %v10726_v34  ;;  %v8008_v53 = vmul.f32 %v2542_v9, %v10724_v1  ;;  %v10729_v42 = vld [vmem:[#allocation128_spill] sm:$0xff] }
 0x2bc   :  { %v2994_v63 = vadd.f32 %v2993_v39, %v2541_v58  ;;  %v2529_v50 = vmul.f32 %v7686_v18, %v10727_v46  ;;  %v2530_v44 = vmul.f32 %v7696_v24, %v10728_v20  ;;  %v2655_v7 = vmul.f32 %v2527_v21, %v10729_v42  ;;  %v10733_v46 = vld [vmem:[#allocation290_spill] sm:$0xff] }
 0x2bd   :  { %2971 = vadd.xlane.f32.xlu0 %v2970_v32  ;;  %v2656_v3 = vmul.f32 %v2528_v51, %v10729_v42  ;;  %v2767_v5 = vadd.f32 %v2766_v36, %v7926_v30  ;;  %v2804_v61 = vadd.f32 %v2803_v6, %v7929_v25  ;;  %v2841_v58 = vadd.f32 %v2840_v40, %v7936_v11  ;;  %v10730_v40 = vld [vmem:[#allocation198_spill] sm:$0xff] }
 0x2be   :  { %v2995_v45 = vadd.f32 %v2994_v63, %v2542_v9  ;;  %v2657_v62 = vmul.f32 %v2529_v50, %v10729_v42  ;;  %v2658_v37 = vmul.f32 %v2530_v44, %v10729_v42  ;;  %v2978_v1 = vadd.f32 %v2528_v51, %v2527_v21  ;;  %v10731_v21 = vld [vmem:[#allocation137_spill] sm:$0xff]  ;;  %v10732_v63 = vld [vmem:[#allocation124_spill] sm:$0xff]  ;;  %v10734_v42 = vld [vmem:[#allocation122_spill] sm:$0xff] }
 0x2bf   :  { %v2768_v47 = vadd.f32 %v2767_v5, %v2656_v3  ;;  %v2730_v39 = vadd.f32 %v2729_v22, %v7923_v15  ;;  %v2547_v32 = vmul.f32 %v7662_v29, %v7223_v26  ;;  %v2548_v30 = vmul.f32 %v7676_v16, %v7243_v33  ;;  %v10735_v3 = vld [vmem:[#allocation146_spill] sm:$0xff] }
 0x2c0   :  { %2996 = vadd.xlane.f32.xlu1 %v2995_v45  ;;  %v2805_v0 = vadd.f32 %v2804_v61, %v2657_v62  ;;  %v2842_v34 = vadd.f32 %v2841_v58, %v2658_v37  ;;  %v2549_v25 = vmul.f32 %v7686_v18, %v7263_v4  ;;  %v2979_v36 = vadd.f32 %v2978_v1, %v2529_v50 }
 0x2c1   :  { %v2731_v6 = vadd.f32 %v2730_v39, %v2655_v7  ;;  %v2550_v11 = vmul.f32 %v7696_v24, %v7281_v12  ;;  %v8031_v9 = vmul.f32 %v2547_v32, %v10730_v40  ;;  %v8034_v15 = vmul.f32 %v2548_v30, %v10730_v40 }
 0x2c2   :  { %v8037_v26 = vmul.f32 %v2549_v25, %v10730_v40  ;;  %v3003_v22 = vadd.f32 %v2548_v30, %v2547_v32  ;;  %v2535_v33 = vmul.f32 %v7662_v29, %v10731_v21  ;;  %v2980_v51 = vadd.f32 %v2979_v36, %v2530_v44 }
 0x2c3   :  { %v8042_v4 = vmul.f32 %v2550_v11, %v10730_v40  ;;  %v2536_v12 = vmul.f32 %v7676_v16, %v10732_v63  ;;  %v2537_v50 = vmul.f32 %v7686_v18, %v10733_v46  ;;  %v2538_v7 = vmul.f32 %v7696_v24, %v10734_v42  ;;  %v10739_v63 = vld [vmem:[#allocation140_spill] sm:$0xff]  ;;  %v10740_v46 = vld [vmem:[#allocation165_spill] sm:$0xff] }
 0x2c4   :  { %v3004_v20 = vadd.f32 %v3003_v22, %v2549_v25  ;;  %v2663_v5 = vmul.f32 %v2535_v33, %v10735_v3  ;;  %v2769_v61 = vadd.f32 %v2768_v47, %v7962_v52  ;;  %2981 = vadd.xlane.f32.xlu0 %v2980_v51  ;;  %v2806_v62 = vadd.f32 %v2805_v0, %v7965_v19  ;;  %v10737_v22 = vld [vmem:[#allocation170_spill] sm:$0xff] }
 0x2c5   :  { %v2664_v44 = vmul.f32 %v2536_v12, %v10735_v3  ;;  %v2665_v45 = vmul.f32 %v2537_v50, %v10735_v3  ;;  %v2843_v37 = vadd.f32 %v2842_v34, %v7970_v28  ;;  %v2666_v1 = vmul.f32 %v2538_v7, %v10735_v3  ;;  %v10736_v34 = vld [vmem:[#allocation216_spill] sm:$0xff] }
 0x2c6   :  { %v3005_v58 = vadd.f32 %v3004_v20, %v2550_v11  ;;  %v2988_v39 = vadd.f32 %v2536_v12, %v2535_v33  ;;  %v2732_v32 = vadd.f32 %v2731_v6, %v7959_v23  ;;  %v2555_v52 = vmul.f32 %v7662_v29, %v7361_v38  ;;  %v10738_v33 = vld [vmem:[#allocation291_spill] sm:$0xff]  ;;  %v10741_v20 = vld [vmem:[#allocation164_spill] sm:$0xff] }
 0x2c7   :  { %v2770_v30 = vadd.f32 %v2769_v61, %v2664_v44  ;;  %v2807_v25 = vadd.f32 %v2806_v62, %v2665_v45  ;;  %v2556_v47 = vmul.f32 %v7676_v16, %v7377_v60  ;;  %v2844_v36 = vadd.f32 %v2843_v37, %v2666_v1 }
 0x2c8   :  { %3006 = vadd.xlane.f32.xlu1 %v3005_v58  ;;  %v2989_v40 = vadd.f32 %v2988_v39, %v2537_v50  ;;  %v2733_v19 = vadd.f32 %v2732_v32, %v2663_v5  ;;  %v2557_v28 = vmul.f32 %v7686_v18, %v7393_v10  ;;  %v2558_v0 = vmul.f32 %v7696_v24, %v7409_v48 }
 0x2c9   :  { %v8067_v23 = vmul.f32 %v2555_v52, %v10736_v34  ;;  %v8070_v6 = vmul.f32 %v2556_v47, %v10736_v34  ;;  %v3013_v38 = vadd.f32 %v2556_v47, %v2555_v52  ;;  %v2543_v21 = vmul.f32 %v7662_v29, %v10737_v22  ;;  %v10742_v47 = vld [vmem:[#allocation235_spill] sm:$0xff] }
 0x2ca   :  { %v2990_v11 = vadd.f32 %v2989_v40, %v2538_v7  ;;  %v8073_v60 = vmul.f32 %v2557_v28, %v10736_v34  ;;  %v2544_v10 = vmul.f32 %v7676_v16, %v10738_v33  ;;  %v8080_v51 = vmul.f32 %v2558_v0, %v10736_v34 }
 0x2cb   :  { %v3014_v48 = vadd.f32 %v3013_v38, %v2557_v28  ;;  %v2545_v12 = vmul.f32 %v7686_v18, %v10739_v63  ;;  %v2546_v50 = vmul.f32 %v7696_v24, %v10740_v46  ;;  %v2671_v42 = vmul.f32 %v2543_v21, %v10741_v20  ;;  %v10743_v38 = vld [vmem:[#allocation182_spill] sm:$0xff] }
 0x2cc   :  { %2991 = vadd.xlane.f32.xlu0 %v2990_v11  ;;  %v2672_v7 = vmul.f32 %v2544_v10, %v10741_v20  ;;  %v2771_v3 = vadd.f32 %v2770_v30, %v7998_v49  ;;  %v2808_v5 = vadd.f32 %v2807_v25, %v8001_v54  ;;  %v2845_v62 = vadd.f32 %v2844_v36, %v8008_v53 }
 0x2cd   :  { %v3015_v61 = vadd.f32 %v3014_v48, %v2558_v0  ;;  %v2673_v44 = vmul.f32 %v2545_v12, %v10741_v20  ;;  %v2674_v45 = vmul.f32 %v2546_v50, %v10741_v20  ;;  %v2998_v58 = vadd.f32 %v2544_v10, %v2543_v21 }
 0x2ce   :  { %v2772_v37 = vadd.f32 %v2771_v3, %v2672_v7  ;;  %v2734_v1 = vadd.f32 %v2733_v19, %v7995_v31  ;;  %v2563_v39 = vmul.f32 %v7662_v29, %v7469_v35  ;;  %v2564_v49 = vmul.f32 %v7676_v16, %v7477_v59  ;;  %v10746_v7 = vld [vmem:[#allocation212_spill] sm:$0xff] }
 0x2cf   :  { %3016 = vadd.xlane.f32.xlu1 %v3015_v61  ;;  %v2809_v32 = vadd.f32 %v2808_v5, %v2673_v44  ;;  %v2846_v52 = vadd.f32 %v2845_v62, %v2674_v45  ;;  %v2565_v54 = vmul.f32 %v7686_v18, %v7484_v56  ;;  %v2999_v30 = vadd.f32 %v2998_v58, %v2545_v12  ;;  %v10747_v5 = vld [vmem:[#allocation249_spill] sm:$0xff]  ;;  %v10749_v58 = vld [vmem:[#allocation199_spill] sm:$0xff] }
 0x2d0   :  { %v2735_v25 = vadd.f32 %v2734_v1, %v2671_v42  ;;  %v2566_v53 = vmul.f32 %v7696_v24, %v7490_v8  ;;  %v8103_v36 = vmul.f32 %v2563_v39, %v10742_v47  ;;  %v8106_v31 = vmul.f32 %v2564_v49, %v10742_v47  ;;  %v10748_v62 = vld [vmem:[#allocation197_spill] sm:$0xff] }
 0x2d1   :  { %v8109_v35 = vmul.f32 %v2565_v54, %v10742_v47  ;;  %v3023_v40 = vadd.f32 %v2564_v49, %v2563_v39  ;;  %v2551_v59 = vmul.f32 %v7662_v29, %v7297_v41  ;;  %v3000_v19 = vadd.f32 %v2999_v30, %v2546_v50  ;;  %v10751_v49 = vld [vmem:[#allocation224_spill] sm:$0xff] }
 0x2d2   :  { %v8114_v56 = vmul.f32 %v2566_v53, %v10742_v47  ;;  %v2552_v8 = vmul.f32 %v7676_v16, %v7313_v57  ;;  %v2553_v28 = vmul.f32 %v7686_v18, %v7329_v17  ;;  %v2554_v34 = vmul.f32 %v7696_v24, %v7345_v55  ;;  %v10744_v55 = vld [vmem:[#allocation107_spill] sm:$0xff]  ;;  %v10752_v30 = vld [vmem:[#allocation200_spill] sm:$0xff] }
 0x2d3   :  { %v3024_v0 = vadd.f32 %v3023_v40, %v2565_v54  ;;  %v2679_v11 = vmul.f32 %v2551_v59, %v10743_v38  ;;  %v2773_v22 = vadd.f32 %v2772_v37, %v8034_v15  ;;  %3001 = vadd.xlane.f32.xlu0 %v3000_v19  ;;  %v2810_v33 = vadd.f32 %v2809_v32, %v8037_v26  ;;  %v10745_v26 = vld [vmem:[#allocation288_spill] sm:$0xff]  ;;  %v10750_v32 = vld [vmem:[#allocation173_spill] sm:$0xff] }
 0x2d4   :  { %v2680_v41 = vmul.f32 %v2552_v8, %v10743_v38  ;;  %v2681_v21 = vmul.f32 %v2553_v28, %v10743_v38  ;;  %v2847_v57 = vadd.f32 %v2846_v52, %v8042_v4  ;;  %v2682_v17 = vmul.f32 %v2554_v34, %v10743_v38 }
 0x2d5   :  { %v3025_v10 = vadd.f32 %v3024_v0, %v2566_v53  ;;  %v3008_v48 = vadd.f32 %v2552_v8, %v2551_v59  ;;  %v2736_v63 = vadd.f32 %v2735_v25, %v8031_v9  ;;  %vm1368_vm12 = vcmp.lt.s32.totalorder %v7665_v14, %v10744_v55 }
 0x2d6   :  { %v2774_v12 = vadd.f32 %v2773_v22, %v2680_v41  ;;  %v2811_v15 = vadd.f32 %v2810_v33, %v2681_v21  ;;  %v2571_v46 = vmul.f32 %v7662_v29, %v7520_v2  ;;  %v2572_v50 = vmul.f32 %v7676_v16, %v7526_v27  ;;  %v10755_v33 = vld [vmem:[#allocation42_spill] sm:$0xff] }
 0x2d7   :  { %vm1439_vm14 = vcmp.lt.s32.totalorder %v7668_v13, %v10745_v26  ;;  %3026 = vadd.xlane.f32.xlu1 %v3025_v10  ;;  %v2848_v4 = vadd.f32 %v2847_v57, %v2682_v17  ;;  %v3009_v20 = vadd.f32 %v3008_v48, %v2553_v28  ;;  %v2737_v42 = vadd.f32 %v2736_v63, %v2679_v11  ;;  %v10753_v11 = vld [vmem:[#allocation58_spill] sm:$0xff] }
 0x2d8   :  { %v2573_v9 = vmul.f32 %v7686_v18, %v7532_v43  ;;  %v2574_v3 = vmul.f32 %v7696_v24, %v10746_v7  ;;  %v8143_v61 = vmul.f32 %v2571_v46, %v10747_v5  ;;  %v8146_v2 = vmul.f32 %v2572_v50, %v10747_v5  ;;  %v10756_v48 = vld [vmem:[#allocation46_spill] sm:$0xff] }
 0x2d9   :  { %v3033_v27 = vadd.f32 %v2572_v50, %v2571_v46  ;;  %v3010_v44 = vadd.f32 %v3009_v20, %v2554_v34  ;;  %v2559_v37 = vmul.f32 %v7662_v29, %v10748_v62  ;;  %v2560_v43 = vmul.f32 %v7676_v16, %v10749_v58  ;;  %v10757_v63 = vld [vmem:[#allocation266_spill] sm:$0xff] }
 0x2da   :  { %v8149_v45 = vmul.f32 %v2573_v9, %v10747_v5  ;;  %v8156_v1 = vmul.f32 %v2574_v3, %v10747_v5  ;;  %v2561_v52 = vmul.f32 %v7686_v18, %v10750_v32  ;;  %v2562_v54 = vmul.f32 %v7696_v24, %v10751_v49  ;;  %v10759_v5 = vld [vmem:[#allocation177_spill] sm:$0xff] }
 0x2db   :  { %v3034_v39 = vadd.f32 %v3033_v27, %v2573_v9  ;;  %3011 = vadd.xlane.f32.xlu0 %v3010_v44  ;;  %v2687_v25 = vmul.f32 %v2559_v37, %v10752_v30  ;;  %v2688_v53 = vmul.f32 %v2560_v43, %v10752_v30  ;;  %v2775_v47 = vadd.f32 %v2774_v12, %v8070_v6  ;;  %v10754_v6 = vld [vmem:[#allocation59_spill] sm:$0xff]  ;;  %v10758_v9 = vld [vmem:[#allocation225_spill] sm:$0xff] }
 0x2dc   :  { %v2812_v40 = vadd.f32 %v2811_v15, %v8073_v60  ;;  %v2689_v19 = vmul.f32 %v2561_v52, %v10752_v30  ;;  %v2690_v8 = vmul.f32 %v2562_v54, %v10752_v30  ;;  %v2849_v28 = vadd.f32 %v2848_v4, %v8080_v51  ;;  %v10760_v44 = vld [vmem:[#allocation297_spill] sm:$0xff] }
 0x2dd   :  { %v3035_v59 = vadd.f32 %v3034_v39, %v2574_v3  ;;  %v2776_v0 = vadd.f32 %v2775_v47, %v2688_v53  ;;  %v3018_v34 = vadd.f32 %v2560_v43, %v2559_v37  ;;  %v2738_v38 = vadd.f32 %v2737_v42, %v8067_v23  ;;  %v10762_v37 = vld [vmem:[#allocation219_spill] sm:$0xff]  ;;  %v10765_v47 = vld [vmem:[#allocation130_spill] sm:$0xff] }
 0x2de   :  { %v2579_v22 = vmul.f32 %v7662_v29, %v10753_v11  ;;  %v2813_v41 = vadd.f32 %v2812_v40, %v2689_v19  ;;  %v2850_v21 = vadd.f32 %v2849_v28, %v2690_v8  ;;  %v2580_v60 = vmul.f32 %v7676_v16, %v10754_v6  ;;  %v10764_v53 = vld [vmem:[#allocation207_spill] sm:$0xff]  ;;  %v10768_v28 = vld [vmem:[#allocation132_spill] sm:$0xff]  ;;  %v10772_v11 = vld [vmem:[#allocation213_spill] sm:$0xff] }
 0x2df   :  { %3036 = vadd.xlane.f32.xlu1 %v3035_v59  ;;  %v2581_v57 = vmul.f32 %v7686_v18, %v10755_v33  ;;  %v3019_v10 = vadd.f32 %v3018_v34, %v2561_v52  ;;  %v2739_v17 = vadd.f32 %v2738_v38, %v2687_v25  ;;  %v2582_v51 = vmul.f32 %v7696_v24, %v10756_v48  ;;  %v10763_v25 = vld [vmem:[#allocation108_spill] sm:$0xff]  ;;  %v10766_v40 = vld [vmem:[#allocation299_spill] sm:$0xff]  ;;  %v10767_v59 = vld [vmem:[#allocation134_spill] sm:$0xff] }
 0x2e0   :  { %v8179_v12 = vmul.f32 %v2579_v22, %v10757_v63  ;;  %v8182_v23 = vmul.f32 %v2580_v60, %v10757_v63  ;;  %v3043_v46 = vadd.f32 %v2580_v60, %v2579_v22  ;;  %v1369_v50 = vsel %vm1368_vm12, %v7665_v14, %v10744_v55  ;;  %v10761_v55 = vld [vmem:[#allocation227_spill] sm:$0xff]  ;;  %v10771_v38 = vld [vmem:[#allocation250_spill] sm:$0xff]  ;;  %v10774_v6 = vld [vmem:[#allocation201_spill] sm:$0xff] }
 0x2e1   :  { %v8185_v15 = vmul.f32 %v2581_v57, %v10757_v63  ;;  %v3020_v4 = vadd.f32 %v3019_v10, %v2562_v54  ;;  %v8193_v20 = vmul.f32 %v2582_v51, %v10757_v63  ;;  %v1440_v42 = vsel %vm1439_vm14, %v7668_v13, %v10745_v26  ;;  %v10775_v10 = vld [vmem:[#allocation239_spill] sm:$0xff] }
 0x2e2   :  { %v2567_v7 = vmul.f32 %v7662_v29, %v10758_v9  ;;  %v3044_v3 = vadd.f32 %v3043_v46, %v2581_v57  ;;  %v2568_v27 = vmul.f32 %v7676_v16, %v10759_v5  ;;  %v2569_v14 = vmul.f32 %v7686_v18, %v10760_v44 }
 0x2e3   :  { %v2570_v62 = vmul.f32 %v7696_v24, %v10761_v55  ;;  %3021 = vadd.xlane.f32.xlu0 %v3020_v4  ;;  %v2777_v43 = vadd.f32 %v2776_v0, %v8106_v31  ;;  %v2814_v13 = vadd.f32 %v2813_v41, %v8109_v35  ;;  %v2851_v26 = vadd.f32 %v2850_v21, %v8114_v56  ;;  %v10769_v0 = vld [vmem:[#allocation180_spill] sm:$0xff]  ;;  %v10773_v41 = vld [vmem:[#allocation214_spill] sm:$0xff] }
 0x2e4   :  { %v2695_v58 = vmul.f32 %v2567_v7, %v10762_v37  ;;  %v3045_v39 = vadd.f32 %v3044_v3, %v2582_v51  ;;  %v2696_v32 = vmul.f32 %v2568_v27, %v10762_v37  ;;  %v2697_v52 = vmul.f32 %v2569_v14, %v10762_v37  ;;  %v10776_v55 = vld [vmem:[#allocation300_spill] sm:$0xff] }
 0x2e5   :  { %v2698_v49 = vmul.f32 %v2570_v62, %v10762_v37  ;;  %v3028_v54 = vadd.f32 %v2568_v27, %v2567_v7  ;;  %v2740_v30 = vadd.f32 %v2739_v17, %v8103_v36  ;;  %vm1228_vm2 = vcmp.lt.s32.totalorder %v10764_v53, %v10763_v25  ;;  %v10770_v36 = vld [vmem:[#allocation311_spill] sm:$0xff] }
 0x2e6   :  { %vm1299_vm8 = vcmp.lt.s32.totalorder %v10766_v40, %v10765_v47  ;;  %3046 = vadd.xlane.f32.xlu1 %v3045_v39  ;;  %v2778_v31 = vadd.f32 %v2777_v43, %v2696_v32  ;;  %v2815_v35 = vadd.f32 %v2814_v13, %v2697_v52  ;;  %vm1370_vm3 = vcmp.lt.s32.totalorder %v1369_v50, %v10767_v59  ;;  %v10777_v37 = vld [vmem:[#allocation215_spill] sm:$0xff]  ;;  %v10778_v43 = vld [vmem:[#allocation312_spill] sm:$0xff]  ;;  %v10781_v32 = vld [vmem:[#allocation202_spill] sm:$0xff] }
 0x2e7   :  { %v2852_v56 = vadd.f32 %v2851_v26, %v2698_v49  ;;  %v3029_v19 = vadd.f32 %v3028_v54, %v2569_v14  ;;  %v2741_v8 = vadd.f32 %v2740_v30, %v2695_v58  ;;  %vm1441_vm6 = vcmp.lt.s32.totalorder %v1440_v42, %v10768_v28  ;;  %v10779_v13 = vld [vmem:[#allocation251_spill] sm:$0xff]  ;;  %v10782_v54 = vld [vmem:[#allocation252_spill] sm:$0xff] }
 0x2e8   :  { %v2575_v34 = vmul.f32 %v7662_v29, %v10769_v0  ;;  %vm1062_vm5 = vcmp.eq.f32.partialorder %v10771_v38, %v10770_v36  ;;  %v2576_v22 = vmul.f32 %v7676_v16, %v10772_v11  ;;  %v2577_v21 = vmul.f32 %v7686_v18, %v10773_v41 }
 0x2e9   :  { %v2578_v60 = vmul.f32 %v7696_v24, %v10774_v6  ;;  %v2779_v33 = vadd.f32 %v2778_v31, %v8146_v2  ;;  %v3030_v57 = vadd.f32 %v3029_v19, %v2570_v62  ;;  %v2816_v48 = vadd.f32 %v2815_v35, %v8149_v45  ;;  %v10785_v31 = vld [vmem:[#allocation119_spill] sm:$0xff] }
 0x2ea   :  { %v2703_v17 = vmul.f32 %v2575_v34, %v10775_v10  ;;  %v2853_v51 = vadd.f32 %v2852_v56, %v8156_v1  ;;  %v2704_v63 = vmul.f32 %v2576_v22, %v10775_v10  ;;  %v2705_v46 = vmul.f32 %v2577_v21, %v10775_v10 }
 0x2eb   :  { %v2706_v4 = vmul.f32 %v2578_v60, %v10775_v10  ;;  %v3038_v9 = vadd.f32 %v2576_v22, %v2575_v34  ;;  %3031 = vadd.xlane.f32.xlu0 %v3030_v57  ;;  %v2742_v7 = vadd.f32 %v2741_v8, %v8143_v61  ;;  %v1229_v2 = vsel %vm1228_vm2, %v10764_v53, %v10763_v25  ;;  %v10788_v10 = vld [vmem:[#allocation120_spill] sm:$0xff] }
 0x2ec   :  { %v1300_v45 = vsel %vm1299_vm8, %v10766_v40, %v10765_v47  ;;  %v1371_v1 = vsel %vm1370_vm3, %v1369_v50, %v10767_v59  ;;  %v2780_v3 = vadd.f32 %v2779_v33, %v2704_v63  ;;  %v2817_v5 = vadd.f32 %v2816_v48, %v2705_v46  ;;  %v10780_v50 = vld [vmem:[#allocation241_spill] sm:$0xff]  ;;  %v10789_v48 = vld [vmem:[#allocation126_spill] sm:$0xff]  ;;  %v10791_v63 = vld [vmem:[#allocation152_spill] sm:$0xff] }
 0x2ed   :  { %v2854_v27 = vadd.f32 %v2853_v51, %v2706_v4  ;;  %v3039_v61 = vadd.f32 %v3038_v9, %v2577_v21  ;;  %v2743_v44 = vadd.f32 %v2742_v7, %v2703_v17  ;;  %v1442_v14 = vsel %vm1441_vm6, %v1440_v42, %v10768_v28  ;;  %v10787_v28 = vld [vmem:[#allocation125_spill] sm:$0xff]  ;;  %v10790_v51 = vld [vmem:[#allocation151_spill] sm:$0xff] }
 0x2ee   :  { %v2583_v62 = vmul.f32 %v7662_v29, %v10776_v55  ;;  %v2584_v58 = vmul.f32 %v7676_v16, %v10777_v37  ;;  %vm1063_vm7 = vcmp.eq.f32.partialorder %v10779_v13, %v10778_v43  ;;  %v2585_v39 = vmul.f32 %v7686_v18, %v10780_v50  ;;  %v10794_v55 = vld [vmem:[#allocation154_spill] sm:$0xff] }
 0x2ef   :  { %v3040_v26 = vadd.f32 %v3039_v61, %v2578_v60  ;;  %v2586_v52 = vmul.f32 %v7696_v24, %v10781_v32  ;;  %v2781_v49 = vadd.f32 %v2780_v3, %v8182_v23  ;;  %v2818_v29 = vadd.f32 %v2817_v5, %v8185_v15  ;;  %v10783_v24 = vld [vmem:[#allocation287_spill] sm:$0xff]  ;;  %v10796_v32 = vld [vmem:[#allocation142_spill] sm:$0xff] }
 0x2f0   :  { %v2711_v42 = vmul.f32 %v2583_v62, %v10782_v54  ;;  %v2712_v30 = vmul.f32 %v2584_v58, %v10782_v54  ;;  %v2855_v16 = vadd.f32 %v2854_v27, %v8193_v20  ;;  %v2713_v25 = vmul.f32 %v2585_v39, %v10782_v54  ;;  %v10784_v23 = vld [vmem:[#allocation123_spill] sm:$0xff] }
 0x2f1   :  { %3041 = vadd.xlane.f32.xlu0 %v3040_v26  ;;  %v2714_v53 = vmul.f32 %v2586_v52, %v10782_v54  ;;  %v3048_v47 = vadd.f32 %v2584_v58, %v2583_v62  ;;  %v2744_v18 = vadd.f32 %v2743_v44, %v8179_v12  ;;  %vm1230_vm13 = vcmp.lt.s32.totalorder %v1229_v2, %v10783_v24  ;;  %v10786_v20 = vld [vmem:[#allocation307_spill] sm:$0xff]  ;;  %v10792_v44 = vld [vmem:[#allocation153_spill] sm:$0xff]  ;;  %v10795_v62 = vld [vmem:[#allocation148_spill] sm:$0xff] }
 0x2f2   :  { %v2782_v40 = vadd.f32 %v2781_v49, %v2712_v30  ;;  %vm1301_vm9 = vcmp.lt.s32.totalorder %v1300_v45, %v10784_v23  ;;  %vm1372_vm11 = vcmp.lt.s32.totalorder %v1371_v1, %v10785_v31  ;;  %v2819_v35 = vadd.f32 %v2818_v29, %v2713_v25  ;;  %v10798_v49 = vld [vmem:[#allocation292_spill] sm:$0xff] }
 0x2f3   :  { %v2856_v56 = vadd.f32 %v2855_v16, %v2714_v53  ;;  %v3049_v15 = vadd.f32 %v3048_v47, %v2585_v39  ;;  %v2745_v59 = vadd.f32 %v2744_v18, %v2711_v42  ;;  %v8281_v19 = vsel %vm1062_vm5, %v10786_v20, 256  ;;  %v10799_v42 = vld [vmem:[#allocation169_spill] sm:$0xff]  ;;  %v10800_v53 = vld [vmem:[#allocation135_spill] sm:$0xff]  ;;  %v10802_v18 = vld [vmem:[#allocation138_spill] sm:$0xff] }
 0x2f4   :  { %v2783_v8 = vrot.slane %v2782_v40, 4  ;;  %vm1443_vm10 = vcmp.lt.s32.totalorder %v1442_v14, %v10787_v28  ;;  %v1231_v12 = vsel %vm1230_vm13, %v1229_v2, %v10783_v24  ;;  %v2820_v0 = vrot.slane %v2819_v35, 4  ;;  %v10801_v47 = vld [vmem:[#allocation171_spill] sm:$0xff] }
 0x2f5   :  { %v2857_v34 = vrot.slane %v2856_v56, 4  ;;  %v3050_v11 = vadd.f32 %v3049_v15, %v2586_v52  ;;  %v2746_v22 = vrot.slane %v2745_v59, 4  ;;  %v1302_v21 = vsel %vm1301_vm9, %v1300_v45, %v10784_v23  ;;  %v10797_v52 = vld [vmem:[#allocation150_spill] sm:$0xff]  ;;  %v10805_v15 = vld [vmem:[#allocation160_spill] sm:$0xff] }
 0x2f6   :  { %v2784_v41 = vadd.f32 %v2783_v8, %v2782_v40  ;;  %v1373_v6 = vsel %vm1372_vm11, %v1371_v1, %v10785_v31  ;;  %v1444_v60 = vsel %vm1443_vm10, %v1442_v14, %v10787_v28  ;;  %v2821_v33 = vadd.f32 %v2820_v0, %v2819_v35  ;;  %v10793_v14 = vld [vmem:[#allocation289_spill] sm:$0xff]  ;;  %v10803_v40 = vld [vmem:[#allocation172_spill] sm:$0xff] }
 0x2f7   :  { %v2858_v38 = vadd.f32 %v2857_v34, %v2856_v56  ;;  %3051 = vadd.xlane.f32.xlu0 %v3050_v11  ;;  %v2747_v57 = vadd.f32 %v2746_v22, %v2745_v59  ;;  %vm1232_vm0 = vcmp.lt.s32.totalorder %v1231_v12, %v10788_v10  ;;  %vm1303_vm15 = vcmp.lt.s32.totalorder %v1302_v21, %v10789_v48  ;;  %v10804_v56 = vld [vmem:[#allocation159_spill] sm:$0xff]  ;;  %v10806_v59 = vld [vmem:[#allocation162_spill] sm:$0xff] }
 0x2f8   :  { %v2785_v17 = vrot.slane %v2784_v41, 2  ;;  %vm1374_vm4 = vcmp.lt.s32.totalorder %v1373_v6, %v10790_v51  ;;  %vm1445_vm1 = vcmp.lt.s32.totalorder %v1444_v60, %v10791_v63  ;;  %v2822_v46 = vrot.slane %v2821_v33, 2  ;;  %v10808_v34 = vld [vmem:[#allocation163_spill] sm:$0xff]  ;;  %v10810_v22 = vld [vmem:[#allocation166_spill] sm:$0xff] }
 0x2f9   :  { %v2859_v4 = vrot.slane %v2858_v38, 2  ;;  %v2748_v9 = vrot.slane %v2747_v57, 2  ;;  %v1233_v7 = vsel %vm1232_vm0, %v1231_v12, %v10788_v10  ;;  %v8297_v2 = vsel %vm1063_vm7, %v10786_v20, 256  ;;  %v10807_v20 = vld [vmem:[#allocation294_spill] sm:$0xff]  ;;  %v10809_v11 = vld [vmem:[#allocation187_spill] sm:$0xff]  ;;  %v10814_v10 = vld [vmem:[#allocation293_spill] sm:$0xff] }
 0x2fa   :  { %v1304_v45 = vsel %vm1303_vm15, %v1302_v21, %v10789_v48  ;;  %v1375_v1 = vsel %vm1374_vm4, %v1373_v6, %v10790_v51  ;;  %v1446_v3 = vsel %vm1445_vm1, %v1444_v60, %v10791_v63  ;;  %v8302_v5 = vadd.f32 %v2785_v17, %v2784_v41  ;;  %v10811_v41 = vld [vmem:[#allocation188_spill] sm:$0xff]  ;;  %v10815_v17 = vld [vmem:[#allocation194_spill] sm:$0xff] }
 0x2fb   :  { %v8304_v27 = vadd.f32 %v2822_v46, %v2821_v33  ;;  %v8306_v61 = vadd.f32 %v2859_v4, %v2858_v38  ;;  %vm1234_vm12 = vcmp.lt.s32.totalorder %v1233_v7, %v10792_v44  ;;  %vm1305_vm14 = vcmp.lt.s32.totalorder %v1304_v45, %v10793_v14  ;;  %v10812_v38 = vld [vmem:[#allocation190_spill] sm:$0xff] }
 0x2fc   :  { %vm1376_vm2 = vcmp.lt.s32.totalorder %v1375_v1, %v10794_v55  ;;  %vm1447_vm8 = vcmp.lt.s32.totalorder %v1446_v3, %v10795_v62  ;;  %v1235_v37 = vsel %vm1234_vm12, %v1233_v7, %v10792_v44  ;;  %v8314_v13 = vadd.f32 %v2748_v9, %v2747_v57  ;;  %v10813_v57 = vld [vmem:[#allocation168_spill] sm:$0xff]  ;;  %v10816_v4 = vld [vmem:[#allocation174_spill] sm:$0xff]  ;;  %v10817_v9 = vld [vmem:[#allocation155_spill] sm:$0xff] }
 0x2fd   :  { %v2824_v58 = vrot.slane %v8304_v27, 1  ;;  %v1306_v26 = vsel %vm1305_vm14, %v1304_v45, %v10793_v14  ;;  %v1377_v50 = vsel %vm1376_vm2, %v1375_v1, %v10794_v55  ;;  %v1448_v39 = vsel %vm1447_vm8, %v1446_v3, %v10795_v62  ;;  %v10818_v7 = vld [vmem:[#allocation175_spill] sm:$0xff]  ;;  %v10819_v45 = vld [vmem:[#allocation176_spill] sm:$0xff]  ;;  %v10820_v44 = vld [vmem:[#allocation309_spill] sm:$0xff] }
 0x2fe   :  { %vm1236_vm3 = vcmp.lt.s32.totalorder %v1235_v37, %v10796_v32  ;;  %vm1307_vm6 = vcmp.lt.s32.totalorder %v1306_v26, %v10797_v52  ;;  %vm1378_vm5 = vcmp.lt.s32.totalorder %v1377_v50, %v10798_v49  ;;  %v2861_v54 = vrot.slane %v8306_v61, 1  ;;  %v10821_v14 = vld [vmem:[#allocation276_spill] sm:$0xff]  ;;  %v10822_v55 = vld [vmem:[#allocation310_spill] sm:$0xff]  ;;  %v10823_v62 = vld [vmem:[#allocation279_spill] sm:$0xff] }
 0x2ff   :  { %vm1449_vm7 = vcmp.lt.s32.totalorder %v1448_v39, %v10799_v42  ;;  %v1237_v30 = vsel %vm1236_vm3, %v1235_v37, %v10796_v32  ;;  %v1308_v29 = vsel %vm1307_vm6, %v1306_v26, %v10797_v52  ;;  %v1379_v16 = vsel %vm1378_vm5, %v1377_v50, %v10798_v49  ;;  %v10824_v50 = vld [vmem:[#allocation156_spill] sm:$0xff]  ;;  %v10826_v32 = vld [vmem:[#allocation273_spill] sm:$0xff]  ;;  %v10828_v49 = vld [vmem:[#allocation178_spill] sm:$0xff] }
 0x300   :  { %v1450_v25 = vsel %vm1449_vm7, %v1448_v39, %v10799_v42  ;;  %vm1238_vm13 = vcmp.lt.s32.totalorder %v1237_v30, %v10800_v53  ;;  %vm1309_vm9 = vcmp.lt.s32.totalorder %v1308_v29, %v10801_v47  ;;  %vm1380_vm11 = vcmp.lt.s32.totalorder %v1379_v16, %v10802_v18  ;;  %v10825_v39 = vld [vmem:[#allocation296_spill] sm:$0xff]  ;;  %v10827_v52 = vld [vmem:[#allocation277_spill] sm:$0xff] }
 0x301   :  { %vm1451_vm10 = vcmp.lt.s32.totalorder %v1450_v25, %v10803_v40  ;;  %v1239_v24 = vsel %vm1238_vm13, %v1237_v30, %v10800_v53  ;;  %v1310_v23 = vsel %vm1309_vm9, %v1308_v29, %v10801_v47  ;;  %v1381_v31 = vsel %vm1380_vm11, %v1379_v16, %v10802_v18  ;;  %v10829_v42 = vld [vmem:[#allocation204_spill] sm:$0xff]  ;;  %v10830_v53 = vld [vmem:[#allocation158_spill] sm:$0xff]  ;;  %v10831_v47 = vld [vmem:[#allocation205_spill] sm:$0xff] }
 0x302   :  { %v1452_v35 = vsel %vm1451_vm10, %v1450_v25, %v10803_v40  ;;  %vm1240_vm0 = vcmp.lt.s32.totalorder %v1239_v24, %v10804_v56  ;;  %vm1311_vm15 = vcmp.lt.s32.totalorder %v1310_v23, %v10805_v15  ;;  %vm1382_vm4 = vcmp.lt.s32.totalorder %v1381_v31, %v10806_v59  ;;  %v10832_v18 = vld [vmem:[#allocation206_spill] sm:$0xff]  ;;  %v10833_v40 = vld [vmem:[#allocation183_spill] sm:$0xff] }
 0x303   :  { %vm1453_vm1 = vcmp.lt.s32.totalorder %v1452_v35, %v10807_v20  ;;  %v1241_v8 = vsel %vm1240_vm0, %v1239_v24, %v10804_v56  ;;  %v1312_v28 = vsel %vm1311_vm15, %v1310_v23, %v10805_v15  ;;  %v1383_v12 = vsel %vm1382_vm4, %v1381_v31, %v10806_v59  ;;  %v10834_v56 = vld [vmem:[#allocation295_spill] sm:$0xff]  ;;  %v10835_v15 = vld [vmem:[#allocation208_spill] sm:$0xff] }
 0x304   :  { %v1454_v0 = vsel %vm1453_vm1, %v1452_v35, %v10807_v20  ;;  %vm1242_vm12 = vcmp.lt.s32.totalorder %v1241_v8, %v10808_v34  ;;  %vm1313_vm14 = vcmp.lt.s32.totalorder %v1312_v28, %v10809_v11  ;;  %vm1384_vm2 = vcmp.lt.s32.totalorder %v1383_v12, %v10810_v22  ;;  %v10836_v59 = vld [vmem:[#allocation195_spill] sm:$0xff]  ;;  %v10837_v20 = vld [vmem:[#allocation184_spill] sm:$0xff] }
 0x305   :  { %vm1455_vm8 = vcmp.lt.s32.totalorder %v1454_v0, %v10811_v41  ;;  %v1243_v21 = vsel %vm1242_vm12, %v1241_v8, %v10808_v34  ;;  %v1314_v6 = vsel %vm1313_vm14, %v1312_v28, %v10809_v11  ;;  %vm3053_vm3 = vcmask 7168  }
 0x306   :  { %v1385_v60 = vsel %vm1384_vm2, %v1383_v12, %v10810_v22  ;;  %v1456_v33 = vsel %vm1455_vm8, %v1454_v0, %v10811_v41  ;;  %vm1244_vm6 = vcmp.lt.s32.totalorder %v1243_v21, %v10812_v38  ;;  %vm1315_vm5 = vcmp.lt.s32.totalorder %v1314_v6, %v10813_v57  ;;  %v10838_v22 = vld [vmem:[#allocation196_spill] sm:$0xff] }
 0x307   :  { %vm1386_vm7 = vcmp.lt.s32.totalorder %v1385_v60, %v10814_v10  ;;  %vm1457_vm13 = vcmp.lt.s32.totalorder %v1456_v33, %v10815_v17  ;;  %v1245_v48 = vsel %vm1244_vm6, %v1243_v21, %v10812_v38  ;;  %v1316_v51 = vsel %vm1315_vm5, %v1314_v6, %v10813_v57  ;;  %v10839_v21 = vld [vmem:[#allocation186_spill] sm:$0xff] }
 0x308   :  { %v1387_v63 = vsel %vm1386_vm7, %v1385_v60, %v10814_v10  ;;  %v1458_v46 = vsel %vm1457_vm13, %v1456_v33, %v10815_v17  ;;  %vm1246_vm9 = vcmp.lt.s32.totalorder %v1245_v48, %v10816_v4  ;;  %vm1317_vm11 = vcmp.lt.s32.totalorder %v1316_v51, %v10817_v9  ;;  %v10840_v6 = vld [vmem:[#allocation298_spill] sm:$0xff]  ;;  %v10841_v60 = vld [vmem:[#allocation223_spill] sm:$0xff]  ;;  %v10842_v10 = vld [vmem:[#allocation12_spill] sm:$0xff] }
 0x309   :  { %vm1388_vm10 = vcmp.lt.s32.totalorder %v1387_v63, %v10818_v7  ;;  %vm1459_vm0 = vcmp.lt.s32.totalorder %v1458_v46, %v10819_v45  ;;  %v1247_v1 = vsel %vm1246_vm9, %v1245_v48, %v10816_v4  ;;  %v1318_v3 = vsel %vm1317_vm11, %v1316_v51, %v10817_v9  ;;  %v10843_v51 = vld [vmem:[#allocation267_spill] sm:$0xff] }
 0x30a   :  { %vm1064_vm15 = vcmp.eq.f32.partialorder %v10821_v14, %v10820_v44  ;;  %vm1065_vm4 = vcmp.eq.f32.partialorder %v10823_v62, %v10822_v55  ;;  %v1389_v37 = vsel %vm1388_vm10, %v1387_v63, %v10818_v7  ;;  %v1460_v26 = vsel %vm1459_vm0, %v1458_v46, %v10819_v45  ;;  %v10844_v63 = vld [vmem:[#allocation268_spill] sm:$0xff] }
 0x30b   :  { %vm1248_vm1 = vcmp.lt.s32.totalorder %v1247_v1, %v10824_v50  ;;  %vm1319_vm12 = vcmp.lt.s32.totalorder %v1318_v3, %v10825_v39  ;;  %vm1066_vm14 = vcmp.eq.f32.partialorder %v10826_v32, %v10770_v36  ;;  %vm1067_vm2 = vcmp.eq.f32.partialorder %v10827_v52, %v10778_v43  ;;  %v10850_v32 = vld [vmem:[#allocation242_spill] sm:$0xff]  ;;  %v10851_v52 = vld [vmem:[#allocation243_spill] sm:$0xff] }
 0x30c   :  { %vm1390_vm8 = vcmp.lt.s32.totalorder %v1389_v37, %v10828_v49  ;;  %vm1461_vm6 = vcmp.lt.s32.totalorder %v1460_v26, %v10829_v42  ;;  %v1249_v30 = vsel %vm1248_vm1, %v1247_v1, %v10824_v50  ;;  %v1320_v29 = vsel %vm1319_vm12, %v1318_v3, %v10825_v39  ;;  %v10849_v3 = vld [vmem:[#allocation259_spill] sm:$0xff] }
 0x30d   :  { %v1391_v16 = vsel %vm1390_vm8, %v1389_v37, %v10828_v49  ;;  %v1462_v25 = vsel %vm1461_vm6, %v1460_v26, %v10829_v42  ;;  %vm1250_vm5 = vcmp.lt.s32.totalorder %v1249_v30, %v10830_v53  ;;  %vm1321_vm7 = vcmp.lt.s32.totalorder %v1320_v29, %v10831_v47 }
 0x30e   :  { %vm1392_vm13 = vcmp.lt.s32.totalorder %v1391_v16, %v10832_v18  ;;  %vm1463_vm9 = vcmp.lt.s32.totalorder %v1462_v25, %v10833_v40  ;;  %v1251_v24 = vsel %vm1250_vm5, %v1249_v30, %v10830_v53  ;;  %v1322_v23 = vsel %vm1321_vm7, %v1320_v29, %v10831_v47 }
 0x30f   :  { %v1393_v31 = vsel %vm1392_vm13, %v1391_v16, %v10832_v18  ;;  %v1464_v35 = vsel %vm1463_vm9, %v1462_v25, %v10833_v40  ;;  %vm1252_vm11 = vcmp.lt.s32.totalorder %v1251_v24, %v10834_v56  ;;  %vm1323_vm10 = vcmp.lt.s32.totalorder %v1322_v23, %v10835_v15  ;;  %v2902_v0 = vpop.xlane.xlu1 %2901 }
 0x310   :  { %vm1394_vm0 = vcmp.lt.s32.totalorder %v1393_v31, %v10836_v59  ;;  %vm1465_vm1 = vcmp.lt.s32.totalorder %v1464_v35, %v10837_v20  ;;  %v1253_v8 = vsel %vm1252_vm11, %v1251_v24, %v10834_v56  ;;  %v1324_v28 = vsel %vm1323_vm10, %v1322_v23, %v10835_v15  ;;  %3055 = vst.msk [vmem:[%s8640_s6 + $0x8] sm:$0xff] %vm3053_vm3, %v2902_v0  ;;  %v2897_v41 = vpop.xlane.xlu0 %2896 }
 0x311   :  { %v2862_v12 = vadd.f32 %v2861_v54, %v8306_v61  ;;  %v1395_v34 = vsel %vm1394_vm0, %v1393_v31, %v10836_v59  ;;  %v1466_v11 = vsel %vm1465_vm1, %v1464_v35, %v10837_v20  ;;  %vm1254_vm12 = vcmp.lt.s32.totalorder %v1253_v8, %v10838_v22  ;;  %3054 = vst.msk [vmem:[%s8640_s6] sm:$0xff] %vm3053_vm3, %v2897_v41 }
 0x312   :  { %vm1325_vm8 = vcmp.lt.s32.totalorder %v1324_v28, %v10839_v21  ;;  %vm1396_vm6 = vcmp.lt.s32.totalorder %v1395_v34, %v10840_v6  ;;  %vm1467_vm5 = vcmp.lt.s32.totalorder %v1466_v11, %v10841_v60  ;;  %v3468_v61 = vmov 1966171168  }
 0x313   :  { %v1487_v54 = vunpack.c.l.s4 %v3468_v61  ;;  %v2750_v33 = vrot.slane %v8314_v13, 1  ;;  %v2787_v38 = vrot.slane %v8302_v5, 1  ;;  %v2825_v57 = vadd.f32 %v2824_v58, %v8304_v27  ;;  %v10848_v58 = vld [vmem:[#allocation258_spill] sm:$0xff] }
 0x314   :  { %v794_v17 = vadd.s32 240, %v10842_v10  ;;  %v795_v48 = vadd.s32 248, %v10842_v10  ;;  %vm1068_vm7 = vcmp.eq.f32.partialorder %v10843_v51, %v10820_v44  ;;  %vm1069_vm13 = vcmp.eq.f32.partialorder %v10844_v63, %v10822_v55  ;;  %v2917_v45 = vpop.xlane.xlu1 %2916 }
 0x315   :  { %v1488_v46 = vunpack.c.0.s8 %v1487_v54  ;;  %v2751_v4 = vadd.f32 %v2750_v33, %v8314_v13  ;;  %v2788_v9 = vadd.f32 %v2787_v38, %v8302_v5  ;;  %v2868_v7 = vcombine.low %v2825_v57, %v2862_v12  ;;  %3058 = vst.msk [vmem:[%s8640_s6 + $0x20] sm:$0xff] %vm3053_vm3, %v2917_v45 }
 0x316   :  { %v10845_v1 = vlaneseq  ;;  %vm1070_vm11 = vcmp.eq.f32.partialorder %v10848_v58, %v10770_v36  ;;  %vm1071_vm10 = vcmp.eq.f32.partialorder %v10849_v3, %v10778_v43  ;;  %v1192_v37 = vsel %vm1064_vm15, %v794_v17, 256  ;;  %v2907_v39 = vpop.xlane.xlu0 %2906 }
 0x317   :  { %v1193_v5 = vsel %vm1065_vm4, %v794_v17, 256  ;;  %v8448_v13 = vsub.s32 %v1488_v46, %v10842_v10  ;;  %v2867_v26 = vcombine.low %v2751_v4, %v2788_v9  ;;  %v1194_v50 = vsel %vm1066_vm14, %v794_v17, 256  ;;  %3056 = vst.msk [vmem:[%s8640_s6 + $0x10] sm:$0xff] %vm3053_vm3, %v2907_v39 }
 0x318   :  { %vm8429_vm9 = vcmp.lt.s32.totalorder %v10845_v1, 512  ;;  %v1195_v14 = vsel %vm1067_vm2, %v794_v17, 256  ;;  %v1196_v62 = vsel %vm1068_vm7, %v795_v48, 256  ;;  %v1197_v49 = vsel %vm1069_vm13, %v795_v48, 256 }
 0x319   :  { %v1198_v42 = vsel %vm1070_vm11, %v795_v48, 256  ;;  %v1199_v30 = vsel %vm1071_vm10, %v795_v48, 256  ;;  %v2875_v36 = vrot.slane %v2867_v26, %v8448_v13  ;;  %v2882_v43 = vrot.slane %v2868_v7, %v8448_v13 }
 0x31a   :  { %v1255_v44 = vsel %vm1254_vm12, %v1253_v8, %v10838_v22  ;;  %v1326_v55 = vsel %vm1325_vm8, %v1324_v28, %v10839_v21  ;;  %v1397_v29 = vsel %vm1396_vm6, %v1395_v34, %v10840_v6  ;;  %v1468_v16 = vsel %vm1467_vm5, %v1466_v11, %v10841_v60  ;;  %v2927_v18 = vpop.xlane.xlu1 %2926 }
 0x31b   :  { %vm1256_vm15 = vcmp.lt.s32.totalorder %v1255_v44, %v10850_v32  ;;  %vm1327_vm4 = vcmp.lt.s32.totalorder %v1326_v55, %v10851_v52  ;;  %v2883_v25 = vcombine.low %v2875_v36, %v2882_v43  ;;  %vm1398_vm14 = vcmp.lt.s32.totalorder %v1397_v29, %v8281_v19  ;;  %3060 = vst.msk [vmem:[%s8640_s6 + $0x30] sm:$0xff] %vm3053_vm3, %v2927_v18 }
 0x31c   :  { %v1257_v53 = vsel %vm1256_vm15, %v1255_v44, %v10850_v32  ;;  %v1328_v47 = vsel %vm1327_vm4, %v1326_v55, %v10851_v52  ;;  %v1399_v40 = vsel %vm1398_vm14, %v1397_v29, %v8281_v19  ;;  %vm1469_vm1 = vcmp.lt.s32.totalorder %v1468_v16, %v8297_v2 }
 0x31d   :  { %vm1258_vm2 = vcmp.lt.s32.totalorder %v1257_v53, %v1192_v37  ;;  %vm1329_vm0 = vcmp.lt.s32.totalorder %v1328_v47, %v1193_v5  ;;  %v2890_v24 = vrot.slane %v2883_v25, %v8448_v13  ;;  %vm1400_vm12 = vcmp.lt.s32.totalorder %v1399_v40, %v1194_v50  ;;  %v2912_v15 = vpop.xlane.xlu0 %2911 }
 0x31e   :  { %v1259_v23 = vsel %vm1258_vm2, %v1257_v53, %v1192_v37  ;;  %v1330_v31 = vsel %vm1329_vm0, %v1328_v47, %v1193_v5  ;;  %v1401_v35 = vsel %vm1400_vm12, %v1399_v40, %v1194_v50  ;;  %v1470_v56 = vsel %vm1469_vm1, %v1468_v16, %v8297_v2  ;;  %3057 = vst.msk [vmem:[%s8640_s6 + $0x18] sm:$0xff] %vm3053_vm3, %v2912_v15 }
 0x31f   :  { %vm1260_vm8 = vcmp.lt.s32.totalorder %v1259_v23, %v1196_v62  ;;  %vm1331_vm6 = vcmp.lt.s32.totalorder %v1330_v31, %v1197_v49  ;;  %2892 = vst.msk [vmem:[#allocation6] sm:$0xf] %vm8429_vm9, %v2890_v24  ;;  %vm1402_vm5 = vcmp.lt.s32.totalorder %v1401_v35, %v1198_v42  ;;  %vm1471_vm7 = vcmp.lt.s32.totalorder %v1470_v56, %v1195_v14 }
 0x320   :  { %v1261_v19 = vsel %vm1260_vm8, %v1259_v23, %v1196_v62  ;;  %v1332_v59 = vsel %vm1331_vm6, %v1330_v31, %v1197_v49 }
 0x321   :  { %3425 = shalt.err (!%p3422_p12)
}
 0x322   :  { %s3426_s17 = scalar_lea.hbm %s8638_s4, 64 }
 0x323   :  { %p3427_p13 = scmp.ne.s32.totalorder %s8638_s4, %s3426_s17  ;;  %p3430_p0 = scmp.lt.u32.totalorder %s3426_s17, %s8638_s4 }
 0x325   :  { %p3432_p1 = pnand %p3430_p0, %p3427_p13 }
 0x327   :  { %3435 = shalt.err (!%p3432_p1)
}
 0x328   :  { %3095 = dma.vmem_to_hbm [thread:$0]  %s3093_s10, 64, %s8638_s4, [#allocation5]   ;;  %v1262_v2 = vrot.slane %v1261_v19, 4  ;;  %v1333_v20 = vrot.slane %v1332_v59, 4  ;;  %v1403_v8 = vsel %vm1402_vm5, %v1401_v35, %v1198_v42  ;;  %v1472_v28 = vsel %vm1471_vm7, %v1470_v56, %v1195_v14  ;;  %v2937_v34 = vpop.xlane.xlu1 %2936  ;;  %v2922_v54 = vpop.xlane.xlu0 %2921 }
 0x329   :  { %v1404_v12 = vrot.slane %v1403_v8, 4  ;;  %vm1473_vm13 = vcmp.lt.s32.totalorder %v1472_v28, %v1199_v30  ;;  %3062 = vst.msk [vmem:[%s8640_s6 + $0x40] sm:$0xff] %vm3053_vm3, %v2937_v34  ;;  %3059 = vst.msk [vmem:[%s8640_s6 + $0x28] sm:$0xff] %vm3053_vm3, %v2922_v54  ;;  %s3470_s30 = smov [#allocation7]  }
 0x32a   :  { %vm1263_vm11 = vcmp.lt.s32.totalorder %v1261_v19, %v1262_v2  ;;  %vm1334_vm10 = vcmp.lt.s32.totalorder %v1332_v59, %v1333_v20  ;;  %v1474_v0 = vsel %vm1473_vm13, %v1472_v28, %v1199_v30  ;;  %s3102_s7 = sshll.u32 %s3470_s30, 4  ;;  %s3103_s7 = int_to_ptr.vmem [resolvable:$true] %s3102_s7 }
 0x32b   :  { %v1264_v11 = vsel %vm1263_vm11, %v1261_v19, %v1262_v2  ;;  %v1335_v22 = vsel %vm1334_vm10, %v1332_v59, %v1333_v20  ;;  %vm1405_vm15 = vcmp.lt.s32.totalorder %v1403_v8, %v1404_v12  ;;  %v1475_v41 = vrot.slane %v1474_v0, 4  ;;  %s3436_s10 = scalar_lea.vmem %s3103_s7, 64  ;;  %p3441_p3 = scmp.lt.s32.totalorder %s3103_s7, %s3103_s7 }
 0x32c   :  { %v1265_v21 = vrot.slane %v1264_v11, 2  ;;  %v1336_v6 = vrot.slane %v1335_v22, 2  ;;  %v1406_v60 = vsel %vm1405_vm15, %v1403_v8, %v1404_v12  ;;  %v2947_v46 = vpop.xlane.xlu1 %2946  ;;  %v2932_v3 = vpop.xlane.xlu0 %2931  ;;  %p3437_p2 = scmp.ne.s32.totalorder %s3103_s7, %s3436_s10  ;;  %p3442_p4 = scmp.lt.s32.totalorder %s3436_s10, %s3436_s10 }
 0x32d   :  { %v1407_v61 = vrot.slane %v1406_v60, 2  ;;  %vm1476_vm4 = vcmp.lt.s32.totalorder %v1474_v0, %v1475_v41  ;;  %3064 = vst.msk [vmem:[%s8640_s6 + $0x50] sm:$0xff] %vm3053_vm3, %v2947_v46  ;;  %3061 = vst.msk [vmem:[%s8640_s6 + $0x38] sm:$0xff] %vm3053_vm3, %v2932_v3 }
 0x32e   :  { %vm1266_vm14 = vcmp.lt.s32.totalorder %v1264_v11, %v1265_v21  ;;  %vm1337_vm2 = vcmp.lt.s32.totalorder %v1335_v22, %v1336_v6  ;;  %v1477_v33 = vsel %vm1476_vm4, %v1474_v0, %v1475_v41  ;;  %p3443_p5 = por %p3442_p4, %p3441_p3 }
 0x32f   :  { %v1267_v38 = vsel %vm1266_vm14, %v1264_v11, %v1265_v21  ;;  %v1338_v57 = vsel %vm1337_vm2, %v1335_v22, %v1336_v6  ;;  %vm1408_vm0 = vcmp.lt.s32.totalorder %v1406_v60, %v1407_v61  ;;  %v1478_v10 = vrot.slane %v1477_v33, 2 }
 0x330   :  { %v1268_v17 = vrot.slane %v1267_v38, 1  ;;  %v1339_v48 = vrot.slane %v1338_v57, 1  ;;  %v1409_v51 = vsel %vm1408_vm0, %v1406_v60, %v1407_v61  ;;  %v2957_v50 = vpop.xlane.xlu1 %2956  ;;  %p3444_p6 = pnand %p3443_p5, %p3437_p2 }
 0x331   :  { %v1410_v63 = vrot.slane %v1409_v51, 1  ;;  %vm1479_vm1 = vcmp.lt.s32.totalorder %v1477_v33, %v1478_v10  ;;  %3066 = vst.msk [vmem:[%s8640_s6 + $0x60] sm:$0xff] %vm3053_vm3, %v2957_v50 }
 0x332   :  { %vm1269_vm12 = vcmp.lt.s32.totalorder %v1267_v38, %v1268_v17  ;;  %vm1340_vm8 = vcmp.lt.s32.totalorder %v1338_v57, %v1339_v48  ;;  %v1480_v4 = vsel %vm1479_vm1, %v1477_v33, %v1478_v10 }
 0x333   :  { %v1270_v9 = vsel %vm1269_vm12, %v1267_v38, %v1268_v17  ;;  %v1341_v7 = vsel %vm1340_vm8, %v1338_v57, %v1339_v48  ;;  %vm1411_vm6 = vcmp.lt.s32.totalorder %v1409_v51, %v1410_v63  ;;  %v1481_v45 = vrot.slane %v1480_v4, 1  ;;  %v2942_v49 = vpop.xlane.xlu0 %2941 }
 0x334   :  { %v1412_v1 = vsel %vm1411_vm6, %v1409_v51, %v1410_v63  ;;  %v1484_v58 = vcombine.low %v1270_v9, %v1341_v7  ;;  %3063 = vst.msk [vmem:[%s8640_s6 + $0x48] sm:$0xff] %vm3053_vm3, %v2942_v49 }
 0x335   :  { %vm1482_vm5 = vcmp.lt.s32.totalorder %v1480_v4, %v1481_v45 }
 0x336   :  { %v1483_v37 = vsel %vm1482_vm5, %v1480_v4, %v1481_v45  ;;  %v1492_v26 = vrot.slane %v1484_v58, %v8448_v13 }
 0x337   :  { %v1485_v5 = vcombine.low %v1412_v1, %v1483_v37 }
 0x339   :  { %v1499_v14 = vrot.slane %v1485_v5, %v8448_v13 }
 0x33b   :  { %v1500_v39 = vcombine.low %v1492_v26, %v1499_v14 }
 0x33d   :  { %v1507_v62 = vrot.slane %v1500_v39, %v8448_v13 }
 0x33f   :  { %1512 = vst.msk [vmem:[#allocation7] sm:$0xf] %vm8429_vm9, %v1507_v62 }
 0x340   :  { %3447 = shalt.err (!%p3444_p6)
}
 0x341   :  { %s3448_s13 = scalar_lea.hbm %s8639_s5, 64 }
 0x342   :  { %p3449_p7 = scmp.ne.s32.totalorder %s8639_s5, %s3448_s13  ;;  %p3452_p8 = scmp.lt.u32.totalorder %s3448_s13, %s8639_s5 }
 0x344   :  { %p3454_p9 = pnand %p3452_p8, %p3449_p7 }
 0x346   :  { %3457 = shalt.err (!%p3454_p9)
}
 0x347   :  { %3105 = dma.vmem_to_hbm [thread:$0]  %s3103_s7, 64, %s8639_s5, [#allocation8]   ;;  %v2967_v27 = vpop.xlane.xlu1 %2966  ;;  %v2952_v13 = vpop.xlane.xlu0 %2951 }
 0x348   :  { %3068 = vst.msk [vmem:[%s8640_s6 + $0x70] sm:$0xff] %vm3053_vm3, %v2967_v27  ;;  %3065 = vst.msk [vmem:[%s8640_s6 + $0x58] sm:$0xff] %vm3053_vm3, %v2952_v13 }
 0x34b   :  { %v2977_v42 = vpop.xlane.xlu1 %2976  ;;  %v2962_v30 = vpop.xlane.xlu0 %2961 }
 0x34c   :  { %3070 = vst.msk [vmem:[%s8640_s6 + $0x80] sm:$0xff] %vm3053_vm3, %v2977_v42  ;;  %3067 = vst.msk [vmem:[%s8640_s6 + $0x68] sm:$0xff] %vm3053_vm3, %v2962_v30 }
 0x34f   :  { %v2987_v36 = vpop.xlane.xlu1 %2986  ;;  %v2972_v43 = vpop.xlane.xlu0 %2971 }
 0x350   :  { %3072 = vst.msk [vmem:[%s8640_s6 + $0x90] sm:$0xff] %vm3053_vm3, %v2987_v36  ;;  %3069 = vst.msk [vmem:[%s8640_s6 + $0x78] sm:$0xff] %vm3053_vm3, %v2972_v43 }
 0x353   :  { %v2997_v44 = vpop.xlane.xlu1 %2996  ;;  %v2982_v55 = vpop.xlane.xlu0 %2981 }
 0x354   :  { %3074 = vst.msk [vmem:[%s8640_s6 + $0xa0] sm:$0xff] %vm3053_vm3, %v2997_v44  ;;  %3071 = vst.msk [vmem:[%s8640_s6 + $0x88] sm:$0xff] %vm3053_vm3, %v2982_v55 }
 0x357   :  { %v3007_v32 = vpop.xlane.xlu1 %3006 }
 0x358   :  { %3076 = vst.msk [vmem:[%s8640_s6 + $0xb0] sm:$0xff] %vm3053_vm3, %v3007_v32 }
 0x359   :  { %v2992_v52 = vpop.xlane.xlu0 %2991 }
 0x35a   :  { %3073 = vst.msk [vmem:[%s8640_s6 + $0x98] sm:$0xff] %vm3053_vm3, %v2992_v52 }
 0x35c   :  { %v3017_v29 = vpop.xlane.xlu1 %3016 }
 0x35d   :  { %3078 = vst.msk [vmem:[%s8640_s6 + $0xc0] sm:$0xff] %vm3053_vm3, %v3017_v29 }
 0x360   :  { %v3002_v16 = vpop.xlane.xlu0 %3001 }
 0x361   :  { %3075 = vst.msk [vmem:[%s8640_s6 + $0xa8] sm:$0xff] %vm3053_vm3, %v3002_v16 }
 0x364   :  { %v3027_v25 = vpop.xlane.xlu1 %3026 }
 0x365   :  { %3080 = vst.msk [vmem:[%s8640_s6 + $0xd0] sm:$0xff] %vm3053_vm3, %v3027_v25 }
 0x368   :  { %v3012_v53 = vpop.xlane.xlu0 %3011 }
 0x369   :  { %3077 = vst.msk [vmem:[%s8640_s6 + $0xb8] sm:$0xff] %vm3053_vm3, %v3012_v53 }
 0x36c   :  { %v3037_v47 = vpop.xlane.xlu1 %3036 }
 0x36d   :  { %3082 = vst.msk [vmem:[%s8640_s6 + $0xe0] sm:$0xff] %vm3053_vm3, %v3037_v47 }
 0x370   :  { %v3022_v18 = vpop.xlane.xlu0 %3021 }
 0x371   :  { %3079 = vst.msk [vmem:[%s8640_s6 + $0xc8] sm:$0xff] %vm3053_vm3, %v3022_v18 }
 0x373   :  { %v3047_v40 = vpop.xlane.xlu1 %3046 }
 0x374   :  { %3084 = vst.msk [vmem:[%s8640_s6 + $0xf0] sm:$0xff] %vm3053_vm3, %v3047_v40 }
 0x378   :  { %v3032_v24 = vpop.xlane.xlu0 %3031 }
 0x379   :  { %3081 = vst.msk [vmem:[%s8640_s6 + $0xd8] sm:$0xff] %vm3053_vm3, %v3032_v24 }
 0x37e   :  { %v3042_v23 = vpop.xlane.xlu0 %3041 }
 0x37f   :  { %3083 = vst.msk [vmem:[%s8640_s6 + $0xe8] sm:$0xff] %vm3053_vm3, %v3042_v23 }
 0x384   :  { %v3052_v31 = vpop.xlane.xlu0 %3051 }
 0x385   :  { %3085 = vst.msk [vmem:[%s8640_s6 + $0xf8] sm:$0xff] %vm3053_vm3, %v3052_v31 }
 0x386   :  { %3460 = dma.done.wait [#allocation5], 64  }
 0x387   :  { %3461 = vsyncadd [#allocation5], 4294967232 }
 0x388   :  { %3462 = dma.done.wait [#allocation8], 64  }
 0x389   :  { %3463 = vsyncadd [#allocation8], 4294967232 }
 0x38a   :  { %3116 = vsyncpa [#allocation4], 1 }
 0x38b   :  { %3117 = vsyncpa [#allocation5], 1 }
 0x38c   :  { %3118 = vsyncpa [#allocation8], 1 }

</bundles_post_ra>
